<compile_context>
chip_gen: v7x
topology: tpu7x:2x2x1
jax: 0.10.0
libtpu: 0.0.40
codegen_flags: <defaults>
</compile_context>

<pallas_src>
import functools
import math

import jax
import jax.numpy as jnp
from jax.experimental import pallas as pl
from jax.experimental.pallas import tpu as pltpu


# ---------------------------------------------------------------------------
# One-time weight packing (never done per forward)
# ---------------------------------------------------------------------------
def _pack_conv(w_oihw, b):
    """(Cout, Cin, KH, KW) torch-layout -> ((KH*KW, Cin, Cout) bf16, (1, Cout) f32)."""
    cout, cin, kh, kw = w_oihw.shape
    w_taps = jnp.transpose(w_oihw, (2, 3, 1, 0)).reshape(kh * kw, cin, cout)
    return w_taps.astype(jnp.bfloat16), b.reshape(1, cout).astype(jnp.float32)


# ---------------------------------------------------------------------------
# Fused stage kernel:
#   4x4 stride-2 conv (+bias+LeakyReLU)
#   [+ residual block: 3x3 conv + ReLU, 3x3 conv, skip-add]
#   [+ reality score: 1x1 conv, Cout=1, no bias]
# All activations stay resident in VMEM for the whole stage.
# ---------------------------------------------------------------------------
def _stage_kernel(*refs, N, OH, OW, Cin, Cout, slope, has_res, has_reality):
    idx = 0
    x_ref = refs[idx]; idx += 1          # (N, 2, 2, OH+1, OW+1, Cin) bf16
    wd_ref = refs[idx]; idx += 1         # (16, Cin, Cout) bf16
    bd_ref = refs[idx]; idx += 1         # (1, Cout) f32
    if has_res:
        wr1_ref = refs[idx]; idx += 1    # (9, Cout, Cout) bf16
        br1_ref = refs[idx]; idx += 1
        wr2_ref = refs[idx]; idx += 1
        br2_ref = refs[idx]; idx += 1
    if has_reality:
        wrs_ref = refs[idx]; idx += 1    # (1, Cout) f32
    o_ref = refs[idx]; idx += 1
    if has_res:
        padA_ref = refs[idx]; idx += 1   # (N, OH+2, OW+2, Cout) bf16 scratch
        padB_ref = refs[idx]; idx += 1

    M = N * OH * OW

    # ---- 4x4 stride-2 conv via 16 tap-matmuls on the paired layout --------
    # padded input coord (2*oh + ki, 2*ow + kj)  ->  pair (oh + ki//2, ow + kj//2),
    # slot (ki % 2, kj % 2): every tap is a static *contiguous* slice.
    acc = jnp.zeros((M, Cout), jnp.float32)
    for ki in range(4):
        for kj in range(4):
            t = ki * 4 + kj
            patch = x_ref[:, ki % 2, kj % 2,
                          ki // 2:ki // 2 + OH,
                          kj // 2:kj // 2 + OW, :]          # (N, OH, OW, Cin)
            acc = acc + jnp.dot(patch.reshape(M, Cin), wd_ref[t],
                                preferred_element_type=jnp.float32)
    h = acc + bd_ref[...]
    h = jnp.where(h >= 0.0, h, slope * h)                    # LeakyReLU(slope)

    if has_res:
        # residual conv 1: 3x3, stride 1, pad 1, ReLU
        padA_ref[...] = jnp.zeros_like(padA_ref)
        padA_ref[:, 1:OH + 1, 1:OW + 1, :] = (
            h.reshape(N, OH, OW, Cout).astype(jnp.bfloat16))
        acc1 = jnp.zeros((M, Cout), jnp.float32)
        for ki in range(3):
            for kj in range(3):
                t = ki * 3 + kj
                patch = padA_ref[:, ki:ki + OH, kj:kj + OW, :]
                acc1 = acc1 + jnp.dot(patch.reshape(M, Cout), wr1_ref[t],
                                      preferred_element_type=jnp.float32)
        r1 = jnp.maximum(acc1 + br1_ref[...], 0.0)

        # residual conv 2: 3x3, stride 1, pad 1, no activation
        padB_ref[...] = jnp.zeros_like(padB_ref)
        padB_ref[:, 1:OH + 1, 1:OW + 1, :] = (
            r1.reshape(N, OH, OW, Cout).astype(jnp.bfloat16))
        acc2 = jnp.zeros((M, Cout), jnp.float32)
        for ki in range(3):
            for kj in range(3):
                t = ki * 3 + kj
                patch = padB_ref[:, ki:ki + OH, kj:kj + OW, :]
                acc2 = acc2 + jnp.dot(patch.reshape(M, Cout), wr2_ref[t],
                                      preferred_element_type=jnp.float32)
        # residual skip-add
        h = h + acc2 + br2_ref[...]

    if has_reality:
        # 1x1 conv, Cout = 1, bias = False  ->  lane reduction (no MXU pad waste)
        score = jnp.sum(h * wrs_ref[...], axis=-1, keepdims=True)   # (M, 1)
        o_ref[...] = score
    else:
        o_ref[...] = h.reshape(N, OH, OW, Cout).astype(o_ref.dtype)


def _fused_stage(x_nhwc, wd, bd, res, wrs, slope=0.2):
    """One downsample stage (+ optional residual block + optional reality score)."""
    N, H, W, Cin = x_nhwc.shape
    OH, OW = H // 2, W // 2
    Cout = wd.shape[-1]

    # pad by 1 and re-layout to the "paired" form (N, hslot, wslot, hpair, wpair, C).
    # These are the only per-forward XLA glue ops (cheap: pad + free reshapes).
    xp = jnp.pad(x_nhwc, ((0, 0), (1, 1), (1, 1), (0, 0)))
    x6 = xp.reshape(N, OH + 1, 2, OW + 1, 2, Cin).transpose(0, 2, 4, 1, 3, 5)
    x6 = x6.astype(jnp.bfloat16)

    has_res = res is not None
    has_reality = wrs is not None

    inputs = [x6, wd, bd]
    if has_res:
        (wr1, br1), (wr2, br2) = res
        inputs += [wr1, br1, wr2, br2]
    if has_reality:
        inputs += [wrs]

    M = N * OH * OW
    if has_reality:
        out_shape = jax.ShapeDtypeStruct((M, 1), jnp.float32)
    else:
        out_shape = jax.ShapeDtypeStruct((N, OH, OW, Cout), jnp.bfloat16)

    scratch = []
    if has_res:
        scratch = [pltpu.VMEM((N, OH + 2, OW + 2, Cout), jnp.bfloat16),
                   pltpu.VMEM((N, OH + 2, OW + 2, Cout), jnp.bfloat16)]

    vmem_spec = pl.BlockSpec(memory_space=pltpu.MemorySpace.VMEM)
    kernel = functools.partial(
        _stage_kernel, N=N, OH=OH, OW=OW, Cin=Cin, Cout=Cout,
        slope=slope, has_res=has_res, has_reality=has_reality)

    return pl.pallas_call(
        kernel,
        out_shape=out_shape,
        in_specs=[vmem_spec] * len(inputs),
        out_specs=vmem_spec,
        scratch_shapes=scratch,
    )(*inputs)


# ---------------------------------------------------------------------------
# Parameters (deterministic He init, pre-packed) and forward pass
# ---------------------------------------------------------------------------
def init_params(key, image_size=16, initial_dim=16, max_dim=64,
                insert_residual_blocks=True, in_channels=8):
    keys = jax.random.split(key, 64)
    ki = 0

    def he_conv(kk, cout, cin, kh, kw):
        fan_in = cin * kh * kw
        w = jax.random.normal(kk, (cout, cin, kh, kw), jnp.float32) * math.sqrt(2.0 / fan_in)
        b = jnp.zeros((cout,), jnp.float32)
        return _pack_conv(w, b)

    params = {"downs": [], "res": []}
    # first downsample: in_channels -> initial_dim, 4x4 s2 p1 (no residual block)
    params["downs"].append(he_conv(keys[ki], initial_dim, in_channels, 4, 4)); ki += 1
    params["res"].append(None)

    cur_dim = initial_dim
    cur_size = image_size // 2
    while cur_size > 4:
        new_dim = min(cur_dim * 2, max_dim)
        params["downs"].append(he_conv(keys[ki], new_dim, cur_dim, 4, 4)); ki += 1
        if insert_residual_blocks:
            r1 = he_conv(keys[ki], new_dim, new_dim, 3, 3); ki += 1
            r2 = he_conv(keys[ki], new_dim, new_dim, 3, 3); ki += 1
            params["res"].append((r1, r2))
        else:
            params["res"].append(None)
        cur_dim = new_dim
        cur_size //= 2

    params["out_dim"] = cur_dim
    # reality_score: 1x1 conv, bias=False, pre-packed as a (1, cur_dim) row
    w_rs = (jax.random.normal(keys[ki], (1, cur_dim, 1, 1), jnp.float32)
            * math.sqrt(2.0 / cur_dim))
    params["reality_score"] = w_rs.reshape(1, cur_dim).astype(jnp.float32)
    return params


def discriminator_forward(params, input_image_nchw, output_image_nchw):
    # torch.cat([input_image, output_image], dim=1)  (NCHW), then NHWC internally
    x = jnp.concatenate([input_image_nchw, output_image_nchw], axis=1)
    x = jnp.transpose(x, (0, 2, 3, 1))

    n_stages = len(params["downs"])
    for s, ((wd, bd), res) in enumerate(zip(params["downs"], params["res"])):
        is_last = (s == n_stages - 1)
        wrs = params["reality_score"] if is_last else None
        x = _fused_stage(x, wd, bd, res, wrs, slope=0.2)

    n = input_image_nchw.shape[0]
    h_out = input_image_nchw.shape[2] // (2 ** n_stages)
    y = x.reshape(n, 1, h_out, h_out)        # (N, 1, H', W')
    return jnp.squeeze(y)                    # matches torch .squeeze()


if __name__ == "__main__":
    key = jax.random.PRNGKey(0)
    k_params, k_in, k_out = jax.random.split(key, 3)

    # small config: image_size=16, initial_dim=16, max_dim=64, two 4-channel images
    params = init_params(k_params, image_size=16, initial_dim=16, max_dim=64,
                         insert_residual_blocks=True, in_channels=8)

    input_image = jax.random.normal(k_in, (2, 4, 16, 16), jnp.float32)
    output_image = jax.random.normal(k_out, (2, 4, 16, 16), jnp.float32)

    forward = jax.jit(discriminator_forward)
    result = forward(params, input_image, output_image)
    jax.block_until_ready(result)
    assert result.shape == (2, 4, 4), result.shape
    print("KERNEL_OK")
</pallas_src>

<mosaic_0001>
module attributes {stable_mosaic.version = 11 : i64} {
  func.func @_stage_kernel(%arg0: memref<2x2x2x9x9x8xbf16, #tpu.memory_space<vmem>>, %arg1: memref<16x8x16xbf16, #tpu.memory_space<vmem>>, %arg2: memref<1x16xf32, #tpu.memory_space<vmem>>, %arg3: memref<2x8x8x16xbf16, #tpu.memory_space<vmem>>) attributes {dimension_semantics = [], scalar_prefetch = 0 : i64, scratch_operands = 0 : i64, tpu.core_type = #tpu.core_type<tc>} {
    %cst = arith.constant 0.000000e+00 : f32
    %0 = vector.broadcast %cst : f32 to vector<128x16xf32>
    %c0 = arith.constant 0 : index
    %c0_0 = arith.constant 0 : index
    %c0_1 = arith.constant 0 : index
    %c0_2 = arith.constant 0 : index
    %c0_3 = arith.constant 0 : index
    %c0_4 = arith.constant 0 : index
    %1 = vector.load %arg0[%c0, %c0_0, %c0_1, %c0_2, %c0_3, %c0_4] : memref<2x2x2x9x9x8xbf16, #tpu.memory_space<vmem>>, vector<2x1x1x8x8x8xbf16>
    %2 = vector.shape_cast %1 : vector<2x1x1x8x8x8xbf16> to vector<2x8x8x8xbf16>
    %3 = vector.shape_cast %2 : vector<2x8x8x8xbf16> to vector<128x8xbf16>
    %c0_5 = arith.constant 0 : index
    %c0_6 = arith.constant 0 : index
    %c0_7 = arith.constant 0 : index
    %4 = vector.load %arg1[%c0_5, %c0_6, %c0_7] : memref<16x8x16xbf16, #tpu.memory_space<vmem>>, vector<1x8x16xbf16>
    %5 = vector.shape_cast %4 : vector<1x8x16xbf16> to vector<8x16xbf16>
    %cst_8 = arith.constant dense<0.000000e+00> : vector<128x16xf32>
    %6 = tpu.matmul %3, %5, %cst_8 {dimension_numbers = #tpu.dot_dimension_numbers<[1], [0], [0], [1], [0, 0, 1, 1], [], []>} : vector<128x8xbf16>, vector<8x16xbf16>, vector<128x16xf32> -> vector<128x16xf32>
    %7 = arith.addf %0, %6 : vector<128x16xf32>
    %c0_9 = arith.constant 0 : index
    %c0_10 = arith.constant 0 : index
    %c1 = arith.constant 1 : index
    %c0_11 = arith.constant 0 : index
    %c0_12 = arith.constant 0 : index
    %c0_13 = arith.constant 0 : index
    %8 = vector.load %arg0[%c0_9, %c0_10, %c1, %c0_11, %c0_12, %c0_13] : memref<2x2x2x9x9x8xbf16, #tpu.memory_space<vmem>>, vector<2x1x1x8x8x8xbf16>
    %9 = vector.shape_cast %8 : vector<2x1x1x8x8x8xbf16> to vector<2x8x8x8xbf16>
    %10 = vector.shape_cast %9 : vector<2x8x8x8xbf16> to vector<128x8xbf16>
    %c1_14 = arith.constant 1 : index
    %c0_15 = arith.constant 0 : index
    %c0_16 = arith.constant 0 : index
    %11 = vector.load %arg1[%c1_14, %c0_15, %c0_16] : memref<16x8x16xbf16, #tpu.memory_space<vmem>>, vector<1x8x16xbf16>
    %12 = vector.shape_cast %11 : vector<1x8x16xbf16> to vector<8x16xbf16>
    %cst_17 = arith.constant dense<0.000000e+00> : vector<128x16xf32>
    %13 = tpu.matmul %10, %12, %cst_17 {dimension_numbers = #tpu.dot_dimension_numbers<[1], [0], [0], [1], [0, 0, 1, 1], [], []>} : vector<128x8xbf16>, vector<8x16xbf16>, vector<128x16xf32> -> vector<128x16xf32>
    %14 = arith.addf %7, %13 : vector<128x16xf32>
    %c0_18 = arith.constant 0 : index
    %c0_19 = arith.constant 0 : index
    %c0_20 = arith.constant 0 : index
    %c0_21 = arith.constant 0 : index
    %c1_22 = arith.constant 1 : index
    %c0_23 = arith.constant 0 : index
    %15 = vector.load %arg0[%c0_18, %c0_19, %c0_20, %c0_21, %c1_22, %c0_23] : memref<2x2x2x9x9x8xbf16, #tpu.memory_space<vmem>>, vector<2x1x1x8x8x8xbf16>
    %16 = vector.shape_cast %15 : vector<2x1x1x8x8x8xbf16> to vector<2x8x8x8xbf16>
    %17 = vector.shape_cast %16 : vector<2x8x8x8xbf16> to vector<128x8xbf16>
    %c2 = arith.constant 2 : index
    %c0_24 = arith.constant 0 : index
    %c0_25 = arith.constant 0 : index
    %18 = vector.load %arg1[%c2, %c0_24, %c0_25] : memref<16x8x16xbf16, #tpu.memory_space<vmem>>, vector<1x8x16xbf16>
    %19 = vector.shape_cast %18 : vector<1x8x16xbf16> to vector<8x16xbf16>
    %cst_26 = arith.constant dense<0.000000e+00> : vector<128x16xf32>
    %20 = tpu.matmul %17, %19, %cst_26 {dimension_numbers = #tpu.dot_dimension_numbers<[1], [0], [0], [1], [0, 0, 1, 1], [], []>} : vector<128x8xbf16>, vector<8x16xbf16>, vector<128x16xf32> -> vector<128x16xf32>
    %21 = arith.addf %14, %20 : vector<128x16xf32>
    %c0_27 = arith.constant 0 : index
    %c0_28 = arith.constant 0 : index
    %c1_29 = arith.constant 1 : index
    %c0_30 = arith.constant 0 : index
    %c1_31 = arith.constant 1 : index
    %c0_32 = arith.constant 0 : index
    %22 = vector.load %arg0[%c0_27, %c0_28, %c1_29, %c0_30, %c1_31, %c0_32] : memref<2x2x2x9x9x8xbf16, #tpu.memory_space<vmem>>, vector<2x1x1x8x8x8xbf16>
    %23 = vector.shape_cast %22 : vector<2x1x1x8x8x8xbf16> to vector<2x8x8x8xbf16>
    %24 = vector.shape_cast %23 : vector<2x8x8x8xbf16> to vector<128x8xbf16>
    %c3 = arith.constant 3 : index
    %c0_33 = arith.constant 0 : index
    %c0_34 = arith.constant 0 : index
    %25 = vector.load %arg1[%c3, %c0_33, %c0_34] : memref<16x8x16xbf16, #tpu.memory_space<vmem>>, vector<1x8x16xbf16>
    %26 = vector.shape_cast %25 : vector<1x8x16xbf16> to vector<8x16xbf16>
    %cst_35 = arith.constant dense<0.000000e+00> : vector<128x16xf32>
    %27 = tpu.matmul %24, %26, %cst_35 {dimension_numbers = #tpu.dot_dimension_numbers<[1], [0], [0], [1], [0, 0, 1, 1], [], []>} : vector<128x8xbf16>, vector<8x16xbf16>, vector<128x16xf32> -> vector<128x16xf32>
    %28 = arith.addf %21, %27 : vector<128x16xf32>
    %c0_36 = arith.constant 0 : index
    %c1_37 = arith.constant 1 : index
    %c0_38 = arith.constant 0 : index
    %c0_39 = arith.constant 0 : index
    %c0_40 = arith.constant 0 : index
    %c0_41 = arith.constant 0 : index
    %29 = vector.load %arg0[%c0_36, %c1_37, %c0_38, %c0_39, %c0_40, %c0_41] : memref<2x2x2x9x9x8xbf16, #tpu.memory_space<vmem>>, vector<2x1x1x8x8x8xbf16>
    %30 = vector.shape_cast %29 : vector<2x1x1x8x8x8xbf16> to vector<2x8x8x8xbf16>
    %31 = vector.shape_cast %30 : vector<2x8x8x8xbf16> to vector<128x8xbf16>
    %c4 = arith.constant 4 : index
    %c0_42 = arith.constant 0 : index
    %c0_43 = arith.constant 0 : index
    %32 = vector.load %arg1[%c4, %c0_42, %c0_43] : memref<16x8x16xbf16, #tpu.memory_space<vmem>>, vector<1x8x16xbf16>
    %33 = vector.shape_cast %32 : vector<1x8x16xbf16> to vector<8x16xbf16>
    %cst_44 = arith.constant dense<0.000000e+00> : vector<128x16xf32>
    %34 = tpu.matmul %31, %33, %cst_44 {dimension_numbers = #tpu.dot_dimension_numbers<[1], [0], [0], [1], [0, 0, 1, 1], [], []>} : vector<128x8xbf16>, vector<8x16xbf16>, vector<128x16xf32> -> vector<128x16xf32>
    %35 = arith.addf %28, %34 : vector<128x16xf32>
    %c0_45 = arith.constant 0 : index
    %c1_46 = arith.constant 1 : index
    %c1_47 = arith.constant 1 : index
    %c0_48 = arith.constant 0 : index
    %c0_49 = arith.constant 0 : index
    %c0_50 = arith.constant 0 : index
    %36 = vector.load %arg0[%c0_45, %c1_46, %c1_47, %c0_48, %c0_49, %c0_50] : memref<2x2x2x9x9x8xbf16, #tpu.memory_space<vmem>>, vector<2x1x1x8x8x8xbf16>
    %37 = vector.shape_cast %36 : vector<2x1x1x8x8x8xbf16> to vector<2x8x8x8xbf16>
    %38 = vector.shape_cast %37 : vector<2x8x8x8xbf16> to vector<128x8xbf16>
    %c5 = arith.constant 5 : index
    %c0_51 = arith.constant 0 : index
    %c0_52 = arith.constant 0 : index
    %39 = vector.load %arg1[%c5, %c0_51, %c0_52] : memref<16x8x16xbf16, #tpu.memory_space<vmem>>, vector<1x8x16xbf16>
    %40 = vector.shape_cast %39 : vector<1x8x16xbf16> to vector<8x16xbf16>
    %cst_53 = arith.constant dense<0.000000e+00> : vector<128x16xf32>
    %41 = tpu.matmul %38, %40, %cst_53 {dimension_numbers = #tpu.dot_dimension_numbers<[1], [0], [0], [1], [0, 0, 1, 1], [], []>} : vector<128x8xbf16>, vector<8x16xbf16>, vector<128x16xf32> -> vector<128x16xf32>
    %42 = arith.addf %35, %41 : vector<128x16xf32>
    %c0_54 = arith.constant 0 : index
    %c1_55 = arith.constant 1 : index
    %c0_56 = arith.constant 0 : index
    %c0_57 = arith.constant 0 : index
    %c1_58 = arith.constant 1 : index
    %c0_59 = arith.constant 0 : index
    %43 = vector.load %arg0[%c0_54, %c1_55, %c0_56, %c0_57, %c1_58, %c0_59] : memref<2x2x2x9x9x8xbf16, #tpu.memory_space<vmem>>, vector<2x1x1x8x8x8xbf16>
    %44 = vector.shape_cast %43 : vector<2x1x1x8x8x8xbf16> to vector<2x8x8x8xbf16>
    %45 = vector.shape_cast %44 : vector<2x8x8x8xbf16> to vector<128x8xbf16>
    %c6 = arith.constant 6 : index
    %c0_60 = arith.constant 0 : index
    %c0_61 = arith.constant 0 : index
    %46 = vector.load %arg1[%c6, %c0_60, %c0_61] : memref<16x8x16xbf16, #tpu.memory_space<vmem>>, vector<1x8x16xbf16>
    %47 = vector.shape_cast %46 : vector<1x8x16xbf16> to vector<8x16xbf16>
    %cst_62 = arith.constant dense<0.000000e+00> : vector<128x16xf32>
    %48 = tpu.matmul %45, %47, %cst_62 {dimension_numbers = #tpu.dot_dimension_numbers<[1], [0], [0], [1], [0, 0, 1, 1], [], []>} : vector<128x8xbf16>, vector<8x16xbf16>, vector<128x16xf32> -> vector<128x16xf32>
    %49 = arith.addf %42, %48 : vector<128x16xf32>
    %c0_63 = arith.constant 0 : index
    %c1_64 = arith.constant 1 : index
    %c1_65 = arith.constant 1 : index
    %c0_66 = arith.constant 0 : index
    %c1_67 = arith.constant 1 : index
    %c0_68 = arith.constant 0 : index
    %50 = vector.load %arg0[%c0_63, %c1_64, %c1_65, %c0_66, %c1_67, %c0_68] : memref<2x2x2x9x9x8xbf16, #tpu.memory_space<vmem>>, vector<2x1x1x8x8x8xbf16>
    %51 = vector.shape_cast %50 : vector<2x1x1x8x8x8xbf16> to vector<2x8x8x8xbf16>
    %52 = vector.shape_cast %51 : vector<2x8x8x8xbf16> to vector<128x8xbf16>
    %c7 = arith.constant 7 : index
    %c0_69 = arith.constant 0 : index
    %c0_70 = arith.constant 0 : index
    %53 = vector.load %arg1[%c7, %c0_69, %c0_70] : memref<16x8x16xbf16, #tpu.memory_space<vmem>>, vector<1x8x16xbf16>
    %54 = vector.shape_cast %53 : vector<1x8x16xbf16> to vector<8x16xbf16>
    %cst_71 = arith.constant dense<0.000000e+00> : vector<128x16xf32>
    %55 = tpu.matmul %52, %54, %cst_71 {dimension_numbers = #tpu.dot_dimension_numbers<[1], [0], [0], [1], [0, 0, 1, 1], [], []>} : vector<128x8xbf16>, vector<8x16xbf16>, vector<128x16xf32> -> vector<128x16xf32>
    %56 = arith.addf %49, %55 : vector<128x16xf32>
    %c0_72 = arith.constant 0 : index
    %c0_73 = arith.constant 0 : index
    %c0_74 = arith.constant 0 : index
    %c1_75 = arith.constant 1 : index
    %c0_76 = arith.constant 0 : index
    %c0_77 = arith.constant 0 : index
    %57 = vector.load %arg0[%c0_72, %c0_73, %c0_74, %c1_75, %c0_76, %c0_77] : memref<2x2x2x9x9x8xbf16, #tpu.memory_space<vmem>>, vector<2x1x1x8x8x8xbf16>
    %58 = vector.shape_cast %57 : vector<2x1x1x8x8x8xbf16> to vector<2x8x8x8xbf16>
    %59 = vector.shape_cast %58 : vector<2x8x8x8xbf16> to vector<128x8xbf16>
    %c8 = arith.constant 8 : index
    %c0_78 = arith.constant 0 : index
    %c0_79 = arith.constant 0 : index
    %60 = vector.load %arg1[%c8, %c0_78, %c0_79] : memref<16x8x16xbf16, #tpu.memory_space<vmem>>, vector<1x8x16xbf16>
    %61 = vector.shape_cast %60 : vector<1x8x16xbf16> to vector<8x16xbf16>
    %cst_80 = arith.constant dense<0.000000e+00> : vector<128x16xf32>
    %62 = tpu.matmul %59, %61, %cst_80 {dimension_numbers = #tpu.dot_dimension_numbers<[1], [0], [0], [1], [0, 0, 1, 1], [], []>} : vector<128x8xbf16>, vector<8x16xbf16>, vector<128x16xf32> -> vector<128x16xf32>
    %63 = arith.addf %56, %62 : vector<128x16xf32>
    %c0_81 = arith.constant 0 : index
    %c0_82 = arith.constant 0 : index
    %c1_83 = arith.constant 1 : index
    %c1_84 = arith.constant 1 : index
    %c0_85 = arith.constant 0 : index
    %c0_86 = arith.constant 0 : index
    %64 = vector.load %arg0[%c0_81, %c0_82, %c1_83, %c1_84, %c0_85, %c0_86] : memref<2x2x2x9x9x8xbf16, #tpu.memory_space<vmem>>, vector<2x1x1x8x8x8xbf16>
    %65 = vector.shape_cast %64 : vector<2x1x1x8x8x8xbf16> to vector<2x8x8x8xbf16>
    %66 = vector.shape_cast %65 : vector<2x8x8x8xbf16> to vector<128x8xbf16>
    %c9 = arith.constant 9 : index
    %c0_87 = arith.constant 0 : index
    %c0_88 = arith.constant 0 : index
    %67 = vector.load %arg1[%c9, %c0_87, %c0_88] : memref<16x8x16xbf16, #tpu.memory_space<vmem>>, vector<1x8x16xbf16>
    %68 = vector.shape_cast %67 : vector<1x8x16xbf16> to vector<8x16xbf16>
    %cst_89 = arith.constant dense<0.000000e+00> : vector<128x16xf32>
    %69 = tpu.matmul %66, %68, %cst_89 {dimension_numbers = #tpu.dot_dimension_numbers<[1], [0], [0], [1], [0, 0, 1, 1], [], []>} : vector<128x8xbf16>, vector<8x16xbf16>, vector<128x16xf32> -> vector<128x16xf32>
    %70 = arith.addf %63, %69 : vector<128x16xf32>
    %c0_90 = arith.constant 0 : index
    %c0_91 = arith.constant 0 : index
    %c0_92 = arith.constant 0 : index
    %c1_93 = arith.constant 1 : index
    %c1_94 = arith.constant 1 : index
    %c0_95 = arith.constant 0 : index
    %71 = vector.load %arg0[%c0_90, %c0_91, %c0_92, %c1_93, %c1_94, %c0_95] : memref<2x2x2x9x9x8xbf16, #tpu.memory_space<vmem>>, vector<2x1x1x8x8x8xbf16>
    %72 = vector.shape_cast %71 : vector<2x1x1x8x8x8xbf16> to vector<2x8x8x8xbf16>
    %73 = vector.shape_cast %72 : vector<2x8x8x8xbf16> to vector<128x8xbf16>
    %c10 = arith.constant 10 : index
    %c0_96 = arith.constant 0 : index
    %c0_97 = arith.constant 0 : index
    %74 = vector.load %arg1[%c10, %c0_96, %c0_97] : memref<16x8x16xbf16, #tpu.memory_space<vmem>>, vector<1x8x16xbf16>
    %75 = vector.shape_cast %74 : vector<1x8x16xbf16> to vector<8x16xbf16>
    %cst_98 = arith.constant dense<0.000000e+00> : vector<128x16xf32>
    %76 = tpu.matmul %73, %75, %cst_98 {dimension_numbers = #tpu.dot_dimension_numbers<[1], [0], [0], [1], [0, 0, 1, 1], [], []>} : vector<128x8xbf16>, vector<8x16xbf16>, vector<128x16xf32> -> vector<128x16xf32>
    %77 = arith.addf %70, %76 : vector<128x16xf32>
    %c0_99 = arith.constant 0 : index
    %c0_100 = arith.constant 0 : index
    %c1_101 = arith.constant 1 : index
    %c1_102 = arith.constant 1 : index
    %c1_103 = arith.constant 1 : index
    %c0_104 = arith.constant 0 : index
    %78 = vector.load %arg0[%c0_99, %c0_100, %c1_101, %c1_102, %c1_103, %c0_104] : memref<2x2x2x9x9x8xbf16, #tpu.memory_space<vmem>>, vector<2x1x1x8x8x8xbf16>
    %79 = vector.shape_cast %78 : vector<2x1x1x8x8x8xbf16> to vector<2x8x8x8xbf16>
    %80 = vector.shape_cast %79 : vector<2x8x8x8xbf16> to vector<128x8xbf16>
    %c11 = arith.constant 11 : index
    %c0_105 = arith.constant 0 : index
    %c0_106 = arith.constant 0 : index
    %81 = vector.load %arg1[%c11, %c0_105, %c0_106] : memref<16x8x16xbf16, #tpu.memory_space<vmem>>, vector<1x8x16xbf16>
    %82 = vector.shape_cast %81 : vector<1x8x16xbf16> to vector<8x16xbf16>
    %cst_107 = arith.constant dense<0.000000e+00> : vector<128x16xf32>
    %83 = tpu.matmul %80, %82, %cst_107 {dimension_numbers = #tpu.dot_dimension_numbers<[1], [0], [0], [1], [0, 0, 1, 1], [], []>} : vector<128x8xbf16>, vector<8x16xbf16>, vector<128x16xf32> -> vector<128x16xf32>
    %84 = arith.addf %77, %83 : vector<128x16xf32>
    %c0_108 = arith.constant 0 : index
    %c1_109 = arith.constant 1 : index
    %c0_110 = arith.constant 0 : index
    %c1_111 = arith.constant 1 : index
    %c0_112 = arith.constant 0 : index
    %c0_113 = arith.constant 0 : index
    %85 = vector.load %arg0[%c0_108, %c1_109, %c0_110, %c1_111, %c0_112, %c0_113] : memref<2x2x2x9x9x8xbf16, #tpu.memory_space<vmem>>, vector<2x1x1x8x8x8xbf16>
    %86 = vector.shape_cast %85 : vector<2x1x1x8x8x8xbf16> to vector<2x8x8x8xbf16>
    %87 = vector.shape_cast %86 : vector<2x8x8x8xbf16> to vector<128x8xbf16>
    %c12 = arith.constant 12 : index
    %c0_114 = arith.constant 0 : index
    %c0_115 = arith.constant 0 : index
    %88 = vector.load %arg1[%c12, %c0_114, %c0_115] : memref<16x8x16xbf16, #tpu.memory_space<vmem>>, vector<1x8x16xbf16>
    %89 = vector.shape_cast %88 : vector<1x8x16xbf16> to vector<8x16xbf16>
    %cst_116 = arith.constant dense<0.000000e+00> : vector<128x16xf32>
    %90 = tpu.matmul %87, %89, %cst_116 {dimension_numbers = #tpu.dot_dimension_numbers<[1], [0], [0], [1], [0, 0, 1, 1], [], []>} : vector<128x8xbf16>, vector<8x16xbf16>, vector<128x16xf32> -> vector<128x16xf32>
    %91 = arith.addf %84, %90 : vector<128x16xf32>
    %c0_117 = arith.constant 0 : index
    %c1_118 = arith.constant 1 : index
    %c1_119 = arith.constant 1 : index
    %c1_120 = arith.constant 1 : index
    %c0_121 = arith.constant 0 : index
    %c0_122 = arith.constant 0 : index
    %92 = vector.load %arg0[%c0_117, %c1_118, %c1_119, %c1_120, %c0_121, %c0_122] : memref<2x2x2x9x9x8xbf16, #tpu.memory_space<vmem>>, vector<2x1x1x8x8x8xbf16>
    %93 = vector.shape_cast %92 : vector<2x1x1x8x8x8xbf16> to vector<2x8x8x8xbf16>
    %94 = vector.shape_cast %93 : vector<2x8x8x8xbf16> to vector<128x8xbf16>
    %c13 = arith.constant 13 : index
    %c0_123 = arith.constant 0 : index
    %c0_124 = arith.constant 0 : index
    %95 = vector.load %arg1[%c13, %c0_123, %c0_124] : memref<16x8x16xbf16, #tpu.memory_space<vmem>>, vector<1x8x16xbf16>
    %96 = vector.shape_cast %95 : vector<1x8x16xbf16> to vector<8x16xbf16>
    %cst_125 = arith.constant dense<0.000000e+00> : vector<128x16xf32>
    %97 = tpu.matmul %94, %96, %cst_125 {dimension_numbers = #tpu.dot_dimension_numbers<[1], [0], [0], [1], [0, 0, 1, 1], [], []>} : vector<128x8xbf16>, vector<8x16xbf16>, vector<128x16xf32> -> vector<128x16xf32>
    %98 = arith.addf %91, %97 : vector<128x16xf32>
    %c0_126 = arith.constant 0 : index
    %c1_127 = arith.constant 1 : index
    %c0_128 = arith.constant 0 : index
    %c1_129 = arith.constant 1 : index
    %c1_130 = arith.constant 1 : index
    %c0_131 = arith.constant 0 : index
    %99 = vector.load %arg0[%c0_126, %c1_127, %c0_128, %c1_129, %c1_130, %c0_131] : memref<2x2x2x9x9x8xbf16, #tpu.memory_space<vmem>>, vector<2x1x1x8x8x8xbf16>
    %100 = vector.shape_cast %99 : vector<2x1x1x8x8x8xbf16> to vector<2x8x8x8xbf16>
    %101 = vector.shape_cast %100 : vector<2x8x8x8xbf16> to vector<128x8xbf16>
    %c14 = arith.constant 14 : index
    %c0_132 = arith.constant 0 : index
    %c0_133 = arith.constant 0 : index
    %102 = vector.load %arg1[%c14, %c0_132, %c0_133] : memref<16x8x16xbf16, #tpu.memory_space<vmem>>, vector<1x8x16xbf16>
    %103 = vector.shape_cast %102 : vector<1x8x16xbf16> to vector<8x16xbf16>
    %cst_134 = arith.constant dense<0.000000e+00> : vector<128x16xf32>
    %104 = tpu.matmul %101, %103, %cst_134 {dimension_numbers = #tpu.dot_dimension_numbers<[1], [0], [0], [1], [0, 0, 1, 1], [], []>} : vector<128x8xbf16>, vector<8x16xbf16>, vector<128x16xf32> -> vector<128x16xf32>
    %105 = arith.addf %98, %104 : vector<128x16xf32>
    %c0_135 = arith.constant 0 : index
    %c1_136 = arith.constant 1 : index
    %c1_137 = arith.constant 1 : index
    %c1_138 = arith.constant 1 : index
    %c1_139 = arith.constant 1 : index
    %c0_140 = arith.constant 0 : index
    %106 = vector.load %arg0[%c0_135, %c1_136, %c1_137, %c1_138, %c1_139, %c0_140] : memref<2x2x2x9x9x8xbf16, #tpu.memory_space<vmem>>, vector<2x1x1x8x8x8xbf16>
    %107 = vector.shape_cast %106 : vector<2x1x1x8x8x8xbf16> to vector<2x8x8x8xbf16>
    %108 = vector.shape_cast %107 : vector<2x8x8x8xbf16> to vector<128x8xbf16>
    %c15 = arith.constant 15 : index
    %c0_141 = arith.constant 0 : index
    %c0_142 = arith.constant 0 : index
    %109 = vector.load %arg1[%c15, %c0_141, %c0_142] : memref<16x8x16xbf16, #tpu.memory_space<vmem>>, vector<1x8x16xbf16>
    %110 = vector.shape_cast %109 : vector<1x8x16xbf16> to vector<8x16xbf16>
    %cst_143 = arith.constant dense<0.000000e+00> : vector<128x16xf32>
    %111 = tpu.matmul %108, %110, %cst_143 {dimension_numbers = #tpu.dot_dimension_numbers<[1], [0], [0], [1], [0, 0, 1, 1], [], []>} : vector<128x8xbf16>, vector<8x16xbf16>, vector<128x16xf32> -> vector<128x16xf32>
    %112 = arith.addf %105, %111 : vector<128x16xf32>
    %c0_144 = arith.constant 0 : index
    %c0_145 = arith.constant 0 : index
    %113 = vector.load %arg2[%c0_144, %c0_145] : memref<1x16xf32, #tpu.memory_space<vmem>>, vector<1x16xf32>
    %114 = vector.broadcast %113 : vector<1x16xf32> to vector<128x16xf32>
    %115 = arith.addf %112, %114 : vector<128x16xf32>
    %cst_146 = arith.constant 0.000000e+00 : f32
    %116 = vector.broadcast %cst_146 : f32 to vector<128x16xf32>
    %117 = arith.cmpf oge, %115, %116 : vector<128x16xf32>
    %cst_147 = arith.constant 2.000000e-01 : f32
    %118 = vector.broadcast %cst_147 : f32 to vector<128x16xf32>
    %119 = arith.mulf %118, %115 : vector<128x16xf32>
    %120 = arith.select %117, %115, %119 : vector<128x16xi1>, vector<128x16xf32>
    %121 = vector.shape_cast %120 : vector<128x16xf32> to vector<2x8x8x16xf32>
    %122 = arith.truncf %121 : vector<2x8x8x16xf32> to vector<2x8x8x16xbf16>
    %c0_148 = arith.constant 0 : index
    %c0_149 = arith.constant 0 : index
    %c0_150 = arith.constant 0 : index
    %c0_151 = arith.constant 0 : index
    %123 = vector.load %arg3[%c0_148, %c0_149, %c0_150, %c0_151] : memref<2x8x8x16xbf16, #tpu.memory_space<vmem>>, vector<2x8x8x16xbf16>
    tpu.vector_store %arg3[%c0_148, %c0_149, %c0_150, %c0_151], %122 {strides = array<i32>} : memref<2x8x8x16xbf16, #tpu.memory_space<vmem>>, vector<2x8x8x16xbf16>,
    return
  }
}

module attributes {stable_mosaic.version = 11 : i64} {
  func.func @_stage_kernel(%arg0: memref<2x2x2x5x5x16xbf16, #tpu.memory_space<vmem>>, %arg1: memref<16x16x32xbf16, #tpu.memory_space<vmem>>, %arg2: memref<1x32xf32, #tpu.memory_space<vmem>>, %arg3: memref<9x32x32xbf16, #tpu.memory_space<vmem>>, %arg4: memref<1x32xf32, #tpu.memory_space<vmem>>, %arg5: memref<9x32x32xbf16, #tpu.memory_space<vmem>>, %arg6: memref<1x32xf32, #tpu.memory_space<vmem>>, %arg7: memref<1x32xf32, #tpu.memory_space<vmem>>, %arg8: memref<32x1xf32, #tpu.memory_space<vmem>>, %arg9: memref<2x6x6x32xbf16, #tpu.memory_space<vmem>>, %arg10: memref<2x6x6x32xbf16, #tpu.memory_space<vmem>>) attributes {dimension_semantics = [], scalar_prefetch = 0 : i64, scratch_operands = 2 : i64, tpu.core_type = #tpu.core_type<tc>} {
    %cst = arith.constant 0.000000e+00 : f32
    %0 = vector.broadcast %cst : f32 to vector<32x32xf32>
    %c0 = arith.constant 0 : index
    %c0_0 = arith.constant 0 : index
    %c0_1 = arith.constant 0 : index
    %c0_2 = arith.constant 0 : index
    %c0_3 = arith.constant 0 : index
    %c0_4 = arith.constant 0 : index
    %1 = vector.load %arg0[%c0, %c0_0, %c0_1, %c0_2, %c0_3, %c0_4] : memref<2x2x2x5x5x16xbf16, #tpu.memory_space<vmem>>, vector<2x1x1x4x4x16xbf16>
    %2 = vector.shape_cast %1 : vector<2x1x1x4x4x16xbf16> to vector<2x4x4x16xbf16>
    %3 = vector.shape_cast %2 : vector<2x4x4x16xbf16> to vector<32x16xbf16>
    %c0_5 = arith.constant 0 : index
    %c0_6 = arith.constant 0 : index
    %c0_7 = arith.constant 0 : index
    %4 = vector.load %arg1[%c0_5, %c0_6, %c0_7] : memref<16x16x32xbf16, #tpu.memory_space<vmem>>, vector<1x16x32xbf16>
    %5 = vector.shape_cast %4 : vector<1x16x32xbf16> to vector<16x32xbf16>
    %cst_8 = arith.constant dense<0.000000e+00> : vector<32x32xf32>
    %6 = tpu.matmul %3, %5, %cst_8 {dimension_numbers = #tpu.dot_dimension_numbers<[1], [0], [0], [1], [0, 0, 1, 1], [], []>} : vector<32x16xbf16>, vector<16x32xbf16>, vector<32x32xf32> -> vector<32x32xf32>
    %7 = arith.addf %0, %6 : vector<32x32xf32>
    %c0_9 = arith.constant 0 : index
    %c0_10 = arith.constant 0 : index
    %c1 = arith.constant 1 : index
    %c0_11 = arith.constant 0 : index
    %c0_12 = arith.constant 0 : index
    %c0_13 = arith.constant 0 : index
    %8 = vector.load %arg0[%c0_9, %c0_10, %c1, %c0_11, %c0_12, %c0_13] : memref<2x2x2x5x5x16xbf16, #tpu.memory_space<vmem>>, vector<2x1x1x4x4x16xbf16>
    %9 = vector.shape_cast %8 : vector<2x1x1x4x4x16xbf16> to vector<2x4x4x16xbf16>
    %10 = vector.shape_cast %9 : vector<2x4x4x16xbf16> to vector<32x16xbf16>
    %c1_14 = arith.constant 1 : index
    %c0_15 = arith.constant 0 : index
    %c0_16 = arith.constant 0 : index
    %11 = vector.load %arg1[%c1_14, %c0_15, %c0_16] : memref<16x16x32xbf16, #tpu.memory_space<vmem>>, vector<1x16x32xbf16>
    %12 = vector.shape_cast %11 : vector<1x16x32xbf16> to vector<16x32xbf16>
    %cst_17 = arith.constant dense<0.000000e+00> : vector<32x32xf32>
    %13 = tpu.matmul %10, %12, %cst_17 {dimension_numbers = #tpu.dot_dimension_numbers<[1], [0], [0], [1], [0, 0, 1, 1], [], []>} : vector<32x16xbf16>, vector<16x32xbf16>, vector<32x32xf32> -> vector<32x32xf32>
    %14 = arith.addf %7, %13 : vector<32x32xf32>
    %c0_18 = arith.constant 0 : index
    %c0_19 = arith.constant 0 : index
    %c0_20 = arith.constant 0 : index
    %c0_21 = arith.constant 0 : index
    %c1_22 = arith.constant 1 : index
    %c0_23 = arith.constant 0 : index
    %15 = vector.load %arg0[%c0_18, %c0_19, %c0_20, %c0_21, %c1_22, %c0_23] : memref<2x2x2x5x5x16xbf16, #tpu.memory_space<vmem>>, vector<2x1x1x4x4x16xbf16>
    %16 = vector.shape_cast %15 : vector<2x1x1x4x4x16xbf16> to vector<2x4x4x16xbf16>
    %17 = vector.shape_cast %16 : vector<2x4x4x16xbf16> to vector<32x16xbf16>
    %c2 = arith.constant 2 : index
    %c0_24 = arith.constant 0 : index
    %c0_25 = arith.constant 0 : index
    %18 = vector.load %arg1[%c2, %c0_24, %c0_25] : memref<16x16x32xbf16, #tpu.memory_space<vmem>>, vector<1x16x32xbf16>
    %19 = vector.shape_cast %18 : vector<1x16x32xbf16> to vector<16x32xbf16>
    %cst_26 = arith.constant dense<0.000000e+00> : vector<32x32xf32>
    %20 = tpu.matmul %17, %19, %cst_26 {dimension_numbers = #tpu.dot_dimension_numbers<[1], [0], [0], [1], [0, 0, 1, 1], [], []>} : vector<32x16xbf16>, vector<16x32xbf16>, vector<32x32xf32> -> vector<32x32xf32>
    %21 = arith.addf %14, %20 : vector<32x32xf32>
    %c0_27 = arith.constant 0 : index
    %c0_28 = arith.constant 0 : index
    %c1_29 = arith.constant 1 : index
    %c0_30 = arith.constant 0 : index
    %c1_31 = arith.constant 1 : index
    %c0_32 = arith.constant 0 : index
    %22 = vector.load %arg0[%c0_27, %c0_28, %c1_29, %c0_30, %c1_31, %c0_32] : memref<2x2x2x5x5x16xbf16, #tpu.memory_space<vmem>>, vector<2x1x1x4x4x16xbf16>
    %23 = vector.shape_cast %22 : vector<2x1x1x4x4x16xbf16> to vector<2x4x4x16xbf16>
    %24 = vector.shape_cast %23 : vector<2x4x4x16xbf16> to vector<32x16xbf16>
    %c3 = arith.constant 3 : index
    %c0_33 = arith.constant 0 : index
    %c0_34 = arith.constant 0 : index
    %25 = vector.load %arg1[%c3, %c0_33, %c0_34] : memref<16x16x32xbf16, #tpu.memory_space<vmem>>, vector<1x16x32xbf16>
    %26 = vector.shape_cast %25 : vector<1x16x32xbf16> to vector<16x32xbf16>
    %cst_35 = arith.constant dense<0.000000e+00> : vector<32x32xf32>
    %27 = tpu.matmul %24, %26, %cst_35 {dimension_numbers = #tpu.dot_dimension_numbers<[1], [0], [0], [1], [0, 0, 1, 1], [], []>} : vector<32x16xbf16>, vector<16x32xbf16>, vector<32x32xf32> -> vector<32x32xf32>
    %28 = arith.addf %21, %27 : vector<32x32xf32>
    %c0_36 = arith.constant 0 : index
    %c1_37 = arith.constant 1 : index
    %c0_38 = arith.constant 0 : index
    %c0_39 = arith.constant 0 : index
    %c0_40 = arith.constant 0 : index
    %c0_41 = arith.constant 0 : index
    %29 = vector.load %arg0[%c0_36, %c1_37, %c0_38, %c0_39, %c0_40, %c0_41] : memref<2x2x2x5x5x16xbf16, #tpu.memory_space<vmem>>, vector<2x1x1x4x4x16xbf16>
    %30 = vector.shape_cast %29 : vector<2x1x1x4x4x16xbf16> to vector<2x4x4x16xbf16>
    %31 = vector.shape_cast %30 : vector<2x4x4x16xbf16> to vector<32x16xbf16>
    %c4 = arith.constant 4 : index
    %c0_42 = arith.constant 0 : index
    %c0_43 = arith.constant 0 : index
    %32 = vector.load %arg1[%c4, %c0_42, %c0_43] : memref<16x16x32xbf16, #tpu.memory_space<vmem>>, vector<1x16x32xbf16>
    %33 = vector.shape_cast %32 : vector<1x16x32xbf16> to vector<16x32xbf16>
    %cst_44 = arith.constant dense<0.000000e+00> : vector<32x32xf32>
    %34 = tpu.matmul %31, %33, %cst_44 {dimension_numbers = #tpu.dot_dimension_numbers<[1], [0], [0], [1], [0, 0, 1, 1], [], []>} : vector<32x16xbf16>, vector<16x32xbf16>, vector<32x32xf32> -> vector<32x32xf32>
    %35 = arith.addf %28, %34 : vector<32x32xf32>
    %c0_45 = arith.constant 0 : index
    %c1_46 = arith.constant 1 : index
    %c1_47 = arith.constant 1 : index
    %c0_48 = arith.constant 0 : index
    %c0_49 = arith.constant 0 : index
    %c0_50 = arith.constant 0 : index
    %36 = vector.load %arg0[%c0_45, %c1_46, %c1_47, %c0_48, %c0_49, %c0_50] : memref<2x2x2x5x5x16xbf16, #tpu.memory_space<vmem>>, vector<2x1x1x4x4x16xbf16>
    %37 = vector.shape_cast %36 : vector<2x1x1x4x4x16xbf16> to vector<2x4x4x16xbf16>
    %38 = vector.shape_cast %37 : vector<2x4x4x16xbf16> to vector<32x16xbf16>
    %c5 = arith.constant 5 : index
    %c0_51 = arith.constant 0 : index
    %c0_52 = arith.constant 0 : index
    %39 = vector.load %arg1[%c5, %c0_51, %c0_52] : memref<16x16x32xbf16, #tpu.memory_space<vmem>>, vector<1x16x32xbf16>
    %40 = vector.shape_cast %39 : vector<1x16x32xbf16> to vector<16x32xbf16>
    %cst_53 = arith.constant dense<0.000000e+00> : vector<32x32xf32>
    %41 = tpu.matmul %38, %40, %cst_53 {dimension_numbers = #tpu.dot_dimension_numbers<[1], [0], [0], [1], [0, 0, 1, 1], [], []>} : vector<32x16xbf16>, vector<16x32xbf16>, vector<32x32xf32> -> vector<32x32xf32>
    %42 = arith.addf %35, %41 : vector<32x32xf32>
    %c0_54 = arith.constant 0 : index
    %c1_55 = arith.constant 1 : index
    %c0_56 = arith.constant 0 : index
    %c0_57 = arith.constant 0 : index
    %c1_58 = arith.constant 1 : index
    %c0_59 = arith.constant 0 : index
    %43 = vector.load %arg0[%c0_54, %c1_55, %c0_56, %c0_57, %c1_58, %c0_59] : memref<2x2x2x5x5x16xbf16, #tpu.memory_space<vmem>>, vector<2x1x1x4x4x16xbf16>
    %44 = vector.shape_cast %43 : vector<2x1x1x4x4x16xbf16> to vector<2x4x4x16xbf16>
    %45 = vector.shape_cast %44 : vector<2x4x4x16xbf16> to vector<32x16xbf16>
    %c6 = arith.constant 6 : index
    %c0_60 = arith.constant 0 : index
    %c0_61 = arith.constant 0 : index
    %46 = vector.load %arg1[%c6, %c0_60, %c0_61] : memref<16x16x32xbf16, #tpu.memory_space<vmem>>, vector<1x16x32xbf16>
    %47 = vector.shape_cast %46 : vector<1x16x32xbf16> to vector<16x32xbf16>
    %cst_62 = arith.constant dense<0.000000e+00> : vector<32x32xf32>
    %48 = tpu.matmul %45, %47, %cst_62 {dimension_numbers = #tpu.dot_dimension_numbers<[1], [0], [0], [1], [0, 0, 1, 1], [], []>} : vector<32x16xbf16>, vector<16x32xbf16>, vector<32x32xf32> -> vector<32x32xf32>
    %49 = arith.addf %42, %48 : vector<32x32xf32>
    %c0_63 = arith.constant 0 : index
    %c1_64 = arith.constant 1 : index
    %c1_65 = arith.constant 1 : index
    %c0_66 = arith.constant 0 : index
    %c1_67 = arith.constant 1 : index
    %c0_68 = arith.constant 0 : index
    %50 = vector.load %arg0[%c0_63, %c1_64, %c1_65, %c0_66, %c1_67, %c0_68] : memref<2x2x2x5x5x16xbf16, #tpu.memory_space<vmem>>, vector<2x1x1x4x4x16xbf16>
    %51 = vector.shape_cast %50 : vector<2x1x1x4x4x16xbf16> to vector<2x4x4x16xbf16>
    %52 = vector.shape_cast %51 : vector<2x4x4x16xbf16> to vector<32x16xbf16>
    %c7 = arith.constant 7 : index
    %c0_69 = arith.constant 0 : index
    %c0_70 = arith.constant 0 : index
    %53 = vector.load %arg1[%c7, %c0_69, %c0_70] : memref<16x16x32xbf16, #tpu.memory_space<vmem>>, vector<1x16x32xbf16>
    %54 = vector.shape_cast %53 : vector<1x16x32xbf16> to vector<16x32xbf16>
    %cst_71 = arith.constant dense<0.000000e+00> : vector<32x32xf32>
    %55 = tpu.matmul %52, %54, %cst_71 {dimension_numbers = #tpu.dot_dimension_numbers<[1], [0], [0], [1], [0, 0, 1, 1], [], []>} : vector<32x16xbf16>, vector<16x32xbf16>, vector<32x32xf32> -> vector<32x32xf32>
    %56 = arith.addf %49, %55 : vector<32x32xf32>
    %c0_72 = arith.constant 0 : index
    %c0_73 = arith.constant 0 : index
    %c0_74 = arith.constant 0 : index
    %c1_75 = arith.constant 1 : index
    %c0_76 = arith.constant 0 : index
    %c0_77 = arith.constant 0 : index
    %57 = vector.load %arg0[%c0_72, %c0_73, %c0_74, %c1_75, %c0_76, %c0_77] : memref<2x2x2x5x5x16xbf16, #tpu.memory_space<vmem>>, vector<2x1x1x4x4x16xbf16>
    %58 = vector.shape_cast %57 : vector<2x1x1x4x4x16xbf16> to vector<2x4x4x16xbf16>
    %59 = vector.shape_cast %58 : vector<2x4x4x16xbf16> to vector<32x16xbf16>
    %c8 = arith.constant 8 : index
    %c0_78 = arith.constant 0 : index
    %c0_79 = arith.constant 0 : index
    %60 = vector.load %arg1[%c8, %c0_78, %c0_79] : memref<16x16x32xbf16, #tpu.memory_space<vmem>>, vector<1x16x32xbf16>
    %61 = vector.shape_cast %60 : vector<1x16x32xbf16> to vector<16x32xbf16>
    %cst_80 = arith.constant dense<0.000000e+00> : vector<32x32xf32>
    %62 = tpu.matmul %59, %61, %cst_80 {dimension_numbers = #tpu.dot_dimension_numbers<[1], [0], [0], [1], [0, 0, 1, 1], [], []>} : vector<32x16xbf16>, vector<16x32xbf16>, vector<32x32xf32> -> vector<32x32xf32>
    %63 = arith.addf %56, %62 : vector<32x32xf32>
    %c0_81 = arith.constant 0 : index
    %c0_82 = arith.constant 0 : index
    %c1_83 = arith.constant 1 : index
    %c1_84 = arith.constant 1 : index
    %c0_85 = arith.constant 0 : index
    %c0_86 = arith.constant 0 : index
    %64 = vector.load %arg0[%c0_81, %c0_82, %c1_83, %c1_84, %c0_85, %c0_86] : memref<2x2x2x5x5x16xbf16, #tpu.memory_space<vmem>>, vector<2x1x1x4x4x16xbf16>
    %65 = vector.shape_cast %64 : vector<2x1x1x4x4x16xbf16> to vector<2x4x4x16xbf16>
    %66 = vector.shape_cast %65 : vector<2x4x4x16xbf16> to vector<32x16xbf16>
    %c9 = arith.constant 9 : index
    %c0_87 = arith.constant 0 : index
    %c0_88 = arith.constant 0 : index
    %67 = vector.load %arg1[%c9, %c0_87, %c0_88] : memref<16x16x32xbf16, #tpu.memory_space<vmem>>, vector<1x16x32xbf16>
    %68 = vector.shape_cast %67 : vector<1x16x32xbf16> to vector<16x32xbf16>
    %cst_89 = arith.constant dense<0.000000e+00> : vector<32x32xf32>
    %69 = tpu.matmul %66, %68, %cst_89 {dimension_numbers = #tpu.dot_dimension_numbers<[1], [0], [0], [1], [0, 0, 1, 1], [], []>} : vector<32x16xbf16>, vector<16x32xbf16>, vector<32x32xf32> -> vector<32x32xf32>
    %70 = arith.addf %63, %69 : vector<32x32xf32>
    %c0_90 = arith.constant 0 : index
    %c0_91 = arith.constant 0 : index
    %c0_92 = arith.constant 0 : index
    %c1_93 = arith.constant 1 : index
    %c1_94 = arith.constant 1 : index
    %c0_95 = arith.constant 0 : index
    %71 = vector.load %arg0[%c0_90, %c0_91, %c0_92, %c1_93, %c1_94, %c0_95] : memref<2x2x2x5x5x16xbf16, #tpu.memory_space<vmem>>, vector<2x1x1x4x4x16xbf16>
    %72 = vector.shape_cast %71 : vector<2x1x1x4x4x16xbf16> to vector<2x4x4x16xbf16>
    %73 = vector.shape_cast %72 : vector<2x4x4x16xbf16> to vector<32x16xbf16>
    %c10 = arith.constant 10 : index
    %c0_96 = arith.constant 0 : index
    %c0_97 = arith.constant 0 : index
    %74 = vector.load %arg1[%c10, %c0_96, %c0_97] : memref<16x16x32xbf16, #tpu.memory_space<vmem>>, vector<1x16x32xbf16>
    %75 = vector.shape_cast %74 : vector<1x16x32xbf16> to vector<16x32xbf16>
    %cst_98 = arith.constant dense<0.000000e+00> : vector<32x32xf32>
    %76 = tpu.matmul %73, %75, %cst_98 {dimension_numbers = #tpu.dot_dimension_numbers<[1], [0], [0], [1], [0, 0, 1, 1], [], []>} : vector<32x16xbf16>, vector<16x32xbf16>, vector<32x32xf32> -> vector<32x32xf32>
    %77 = arith.addf %70, %76 : vector<32x32xf32>
    %c0_99 = arith.constant 0 : index
    %c0_100 = arith.constant 0 : index
    %c1_101 = arith.constant 1 : index
    %c1_102 = arith.constant 1 : index
    %c1_103 = arith.constant 1 : index
    %c0_104 = arith.constant 0 : index
    %78 = vector.load %arg0[%c0_99, %c0_100, %c1_101, %c1_102, %c1_103, %c0_104] : memref<2x2x2x5x5x16xbf16, #tpu.memory_space<vmem>>, vector<2x1x1x4x4x16xbf16>
    %79 = vector.shape_cast %78 : vector<2x1x1x4x4x16xbf16> to vector<2x4x4x16xbf16>
    %80 = vector.shape_cast %79 : vector<2x4x4x16xbf16> to vector<32x16xbf16>
    %c11 = arith.constant 11 : index
    %c0_105 = arith.constant 0 : index
    %c0_106 = arith.constant 0 : index
    %81 = vector.load %arg1[%c11, %c0_105, %c0_106] : memref<16x16x32xbf16, #tpu.memory_space<vmem>>, vector<1x16x32xbf16>
    %82 = vector.shape_cast %81 : vector<1x16x32xbf16> to vector<16x32xbf16>
    %cst_107 = arith.constant dense<0.000000e+00> : vector<32x32xf32>
    %83 = tpu.matmul %80, %82, %cst_107 {dimension_numbers = #tpu.dot_dimension_numbers<[1], [0], [0], [1], [0, 0, 1, 1], [], []>} : vector<32x16xbf16>, vector<16x32xbf16>, vector<32x32xf32> -> vector<32x32xf32>
    %84 = arith.addf %77, %83 : vector<32x32xf32>
    %c0_108 = arith.constant 0 : index
    %c1_109 = arith.constant 1 : index
    %c0_110 = arith.constant 0 : index
    %c1_111 = arith.constant 1 : index
    %c0_112 = arith.constant 0 : index
    %c0_113 = arith.constant 0 : index
    %85 = vector.load %arg0[%c0_108, %c1_109, %c0_110, %c1_111, %c0_112, %c0_113] : memref<2x2x2x5x5x16xbf16, #tpu.memory_space<vmem>>, vector<2x1x1x4x4x16xbf16>
    %86 = vector.shape_cast %85 : vector<2x1x1x4x4x16xbf16> to vector<2x4x4x16xbf16>
    %87 = vector.shape_cast %86 : vector<2x4x4x16xbf16> to vector<32x16xbf16>
    %c12 = arith.constant 12 : index
    %c0_114 = arith.constant 0 : index
    %c0_115 = arith.constant 0 : index
    %88 = vector.load %arg1[%c12, %c0_114, %c0_115] : memref<16x16x32xbf16, #tpu.memory_space<vmem>>, vector<1x16x32xbf16>
    %89 = vector.shape_cast %88 : vector<1x16x32xbf16> to vector<16x32xbf16>
    %cst_116 = arith.constant dense<0.000000e+00> : vector<32x32xf32>
    %90 = tpu.matmul %87, %89, %cst_116 {dimension_numbers = #tpu.dot_dimension_numbers<[1], [0], [0], [1], [0, 0, 1, 1], [], []>} : vector<32x16xbf16>, vector<16x32xbf16>, vector<32x32xf32> -> vector<32x32xf32>
    %91 = arith.addf %84, %90 : vector<32x32xf32>
    %c0_117 = arith.constant 0 : index
    %c1_118 = arith.constant 1 : index
    %c1_119 = arith.constant 1 : index
    %c1_120 = arith.constant 1 : index
    %c0_121 = arith.constant 0 : index
    %c0_122 = arith.constant 0 : index
    %92 = vector.load %arg0[%c0_117, %c1_118, %c1_119, %c1_120, %c0_121, %c0_122] : memref<2x2x2x5x5x16xbf16, #tpu.memory_space<vmem>>, vector<2x1x1x4x4x16xbf16>
    %93 = vector.shape_cast %92 : vector<2x1x1x4x4x16xbf16> to vector<2x4x4x16xbf16>
    %94 = vector.shape_cast %93 : vector<2x4x4x16xbf16> to vector<32x16xbf16>
    %c13 = arith.constant 13 : index
    %c0_123 = arith.constant 0 : index
    %c0_124 = arith.constant 0 : index
    %95 = vector.load %arg1[%c13, %c0_123, %c0_124] : memref<16x16x32xbf16, #tpu.memory_space<vmem>>, vector<1x16x32xbf16>
    %96 = vector.shape_cast %95 : vector<1x16x32xbf16> to vector<16x32xbf16>
    %cst_125 = arith.constant dense<0.000000e+00> : vector<32x32xf32>
    %97 = tpu.matmul %94, %96, %cst_125 {dimension_numbers = #tpu.dot_dimension_numbers<[1], [0], [0], [1], [0, 0, 1, 1], [], []>} : vector<32x16xbf16>, vector<16x32xbf16>, vector<32x32xf32> -> vector<32x32xf32>
    %98 = arith.addf %91, %97 : vector<32x32xf32>
    %c0_126 = arith.constant 0 : index
    %c1_127 = arith.constant 1 : index
    %c0_128 = arith.constant 0 : index
    %c1_129 = arith.constant 1 : index
    %c1_130 = arith.constant 1 : index
    %c0_131 = arith.constant 0 : index
    %99 = vector.load %arg0[%c0_126, %c1_127, %c0_128, %c1_129, %c1_130, %c0_131] : memref<2x2x2x5x5x16xbf16, #tpu.memory_space<vmem>>, vector<2x1x1x4x4x16xbf16>
    %100 = vector.shape_cast %99 : vector<2x1x1x4x4x16xbf16> to vector<2x4x4x16xbf16>
    %101 = vector.shape_cast %100 : vector<2x4x4x16xbf16> to vector<32x16xbf16>
    %c14 = arith.constant 14 : index
    %c0_132 = arith.constant 0 : index
    %c0_133 = arith.constant 0 : index
    %102 = vector.load %arg1[%c14, %c0_132, %c0_133] : memref<16x16x32xbf16, #tpu.memory_space<vmem>>, vector<1x16x32xbf16>
    %103 = vector.shape_cast %102 : vector<1x16x32xbf16> to vector<16x32xbf16>
    %cst_134 = arith.constant dense<0.000000e+00> : vector<32x32xf32>
    %104 = tpu.matmul %101, %103, %cst_134 {dimension_numbers = #tpu.dot_dimension_numbers<[1], [0], [0], [1], [0, 0, 1, 1], [], []>} : vector<32x16xbf16>, vector<16x32xbf16>, vector<32x32xf32> -> vector<32x32xf32>
    %105 = arith.addf %98, %104 : vector<32x32xf32>
    %c0_135 = arith.constant 0 : index
    %c1_136 = arith.constant 1 : index
    %c1_137 = arith.constant 1 : index
    %c1_138 = arith.constant 1 : index
    %c1_139 = arith.constant 1 : index
    %c0_140 = arith.constant 0 : index
    %106 = vector.load %arg0[%c0_135, %c1_136, %c1_137, %c1_138, %c1_139, %c0_140] : memref<2x2x2x5x5x16xbf16, #tpu.memory_space<vmem>>, vector<2x1x1x4x4x16xbf16>
    %107 = vector.shape_cast %106 : vector<2x1x1x4x4x16xbf16> to vector<2x4x4x16xbf16>
    %108 = vector.shape_cast %107 : vector<2x4x4x16xbf16> to vector<32x16xbf16>
    %c15 = arith.constant 15 : index
    %c0_141 = arith.constant 0 : index
    %c0_142 = arith.constant 0 : index
    %109 = vector.load %arg1[%c15, %c0_141, %c0_142] : memref<16x16x32xbf16, #tpu.memory_space<vmem>>, vector<1x16x32xbf16>
    %110 = vector.shape_cast %109 : vector<1x16x32xbf16> to vector<16x32xbf16>
    %cst_143 = arith.constant dense<0.000000e+00> : vector<32x32xf32>
    %111 = tpu.matmul %108, %110, %cst_143 {dimension_numbers = #tpu.dot_dimension_numbers<[1], [0], [0], [1], [0, 0, 1, 1], [], []>} : vector<32x16xbf16>, vector<16x32xbf16>, vector<32x32xf32> -> vector<32x32xf32>
    %112 = arith.addf %105, %111 : vector<32x32xf32>
    %c0_144 = arith.constant 0 : index
    %c0_145 = arith.constant 0 : index
    %113 = vector.load %arg2[%c0_144, %c0_145] : memref<1x32xf32, #tpu.memory_space<vmem>>, vector<1x32xf32>
    %114 = vector.broadcast %113 : vector<1x32xf32> to vector<32x32xf32>
    %115 = arith.addf %112, %114 : vector<32x32xf32>
    %cst_146 = arith.constant 0.000000e+00 : f32
    %116 = vector.broadcast %cst_146 : f32 to vector<32x32xf32>
    %117 = arith.cmpf oge, %115, %116 : vector<32x32xf32>
    %cst_147 = arith.constant 2.000000e-01 : f32
    %118 = vector.broadcast %cst_147 : f32 to vector<32x32xf32>
    %119 = arith.mulf %118, %115 : vector<32x32xf32>
    %120 = arith.select %117, %115, %119 : vector<32x32xi1>, vector<32x32xf32>
    %cst_148 = arith.constant 0.000000e+00 : bf16
    %121 = vector.broadcast %cst_148 : bf16 to vector<2x6x6x32xbf16>
    %c0_149 = arith.constant 0 : index
    %c0_150 = arith.constant 0 : index
    %c0_151 = arith.constant 0 : index
    %c0_152 = arith.constant 0 : index
    %122 = vector.load %arg9[%c0_149, %c0_150, %c0_151, %c0_152] : memref<2x6x6x32xbf16, #tpu.memory_space<vmem>>, vector<2x6x6x32xbf16>
    tpu.vector_store %arg9[%c0_149, %c0_150, %c0_151, %c0_152], %121 {strides = array<i32>} : memref<2x6x6x32xbf16, #tpu.memory_space<vmem>>, vector<2x6x6x32xbf16>,
    %123 = vector.shape_cast %120 : vector<32x32xf32> to vector<2x4x4x32xf32>
    %124 = arith.truncf %123 : vector<2x4x4x32xf32> to vector<2x4x4x32xbf16>
    %c0_153 = arith.constant 0 : index
    %c1_154 = arith.constant 1 : index
    %c1_155 = arith.constant 1 : index
    %c0_156 = arith.constant 0 : index
    %125 = vector.load %arg9[%c0_153, %c1_154, %c1_155, %c0_156] : memref<2x6x6x32xbf16, #tpu.memory_space<vmem>>, vector<2x4x4x32xbf16>
    tpu.vector_store %arg9[%c0_153, %c1_154, %c1_155, %c0_156], %124 {strides = array<i32>} : memref<2x6x6x32xbf16, #tpu.memory_space<vmem>>, vector<2x4x4x32xbf16>,
    %cst_157 = arith.constant 0.000000e+00 : f32
    %126 = vector.broadcast %cst_157 : f32 to vector<32x32xf32>
    %c0_158 = arith.constant 0 : index
    %c0_159 = arith.constant 0 : index
    %c0_160 = arith.constant 0 : index
    %c0_161 = arith.constant 0 : index
    %127 = vector.load %arg9[%c0_158, %c0_159, %c0_160, %c0_161] : memref<2x6x6x32xbf16, #tpu.memory_space<vmem>>, vector<2x4x4x32xbf16>
    %128 = vector.shape_cast %127 : vector<2x4x4x32xbf16> to vector<32x32xbf16>
    %c0_162 = arith.constant 0 : index
    %c0_163 = arith.constant 0 : index
    %c0_164 = arith.constant 0 : index
    %129 = vector.load %arg3[%c0_162, %c0_163, %c0_164] : memref<9x32x32xbf16, #tpu.memory_space<vmem>>, vector<1x32x32xbf16>
    %130 = vector.shape_cast %129 : vector<1x32x32xbf16> to vector<32x32xbf16>
    %cst_165 = arith.constant dense<0.000000e+00> : vector<32x32xf32>
    %131 = tpu.matmul %128, %130, %cst_165 {dimension_numbers = #tpu.dot_dimension_numbers<[1], [0], [0], [1], [0, 0, 1, 1], [], []>} : vector<32x32xbf16>, vector<32x32xbf16>, vector<32x32xf32> -> vector<32x32xf32>
    %132 = arith.addf %126, %131 : vector<32x32xf32>
    %c0_166 = arith.constant 0 : index
    %c0_167 = arith.constant 0 : index
    %c1_168 = arith.constant 1 : index
    %c0_169 = arith.constant 0 : index
    %133 = vector.load %arg9[%c0_166, %c0_167, %c1_168, %c0_169] : memref<2x6x6x32xbf16, #tpu.memory_space<vmem>>, vector<2x4x4x32xbf16>
    %134 = vector.shape_cast %133 : vector<2x4x4x32xbf16> to vector<32x32xbf16>
    %c1_170 = arith.constant 1 : index
    %c0_171 = arith.constant 0 : index
    %c0_172 = arith.constant 0 : index
    %135 = vector.load %arg3[%c1_170, %c0_171, %c0_172] : memref<9x32x32xbf16, #tpu.memory_space<vmem>>, vector<1x32x32xbf16>
    %136 = vector.shape_cast %135 : vector<1x32x32xbf16> to vector<32x32xbf16>
    %cst_173 = arith.constant dense<0.000000e+00> : vector<32x32xf32>
    %137 = tpu.matmul %134, %136, %cst_173 {dimension_numbers = #tpu.dot_dimension_numbers<[1], [0], [0], [1], [0, 0, 1, 1], [], []>} : vector<32x32xbf16>, vector<32x32xbf16>, vector<32x32xf32> -> vector<32x32xf32>
    %138 = arith.addf %132, %137 : vector<32x32xf32>
    %c0_174 = arith.constant 0 : index
    %c0_175 = arith.constant 0 : index
    %c2_176 = arith.constant 2 : index
    %c0_177 = arith.constant 0 : index
    %139 = vector.load %arg9[%c0_174, %c0_175, %c2_176, %c0_177] : memref<2x6x6x32xbf16, #tpu.memory_space<vmem>>, vector<2x4x4x32xbf16>
    %140 = vector.shape_cast %139 : vector<2x4x4x32xbf16> to vector<32x32xbf16>
    %c2_178 = arith.constant 2 : index
    %c0_179 = arith.constant 0 : index
    %c0_180 = arith.constant 0 : index
    %141 = vector.load %arg3[%c2_178, %c0_179, %c0_180] : memref<9x32x32xbf16, #tpu.memory_space<vmem>>, vector<1x32x32xbf16>
    %142 = vector.shape_cast %141 : vector<1x32x32xbf16> to vector<32x32xbf16>
    %cst_181 = arith.constant dense<0.000000e+00> : vector<32x32xf32>
    %143 = tpu.matmul %140, %142, %cst_181 {dimension_numbers = #tpu.dot_dimension_numbers<[1], [0], [0], [1], [0, 0, 1, 1], [], []>} : vector<32x32xbf16>, vector<32x32xbf16>, vector<32x32xf32> -> vector<32x32xf32>
    %144 = arith.addf %138, %143 : vector<32x32xf32>
    %c0_182 = arith.constant 0 : index
    %c1_183 = arith.constant 1 : index
    %c0_184 = arith.constant 0 : index
    %c0_185 = arith.constant 0 : index
    %145 = vector.load %arg9[%c0_182, %c1_183, %c0_184, %c0_185] : memref<2x6x6x32xbf16, #tpu.memory_space<vmem>>, vector<2x4x4x32xbf16>
    %146 = vector.shape_cast %145 : vector<2x4x4x32xbf16> to vector<32x32xbf16>
    %c3_186 = arith.constant 3 : index
    %c0_187 = arith.constant 0 : index
    %c0_188 = arith.constant 0 : index
    %147 = vector.load %arg3[%c3_186, %c0_187, %c0_188] : memref<9x32x32xbf16, #tpu.memory_space<vmem>>, vector<1x32x32xbf16>
    %148 = vector.shape_cast %147 : vector<1x32x32xbf16> to vector<32x32xbf16>
    %cst_189 = arith.constant dense<0.000000e+00> : vector<32x32xf32>
    %149 = tpu.matmul %146, %148, %cst_189 {dimension_numbers = #tpu.dot_dimension_numbers<[1], [0], [0], [1], [0, 0, 1, 1], [], []>} : vector<32x32xbf16>, vector<32x32xbf16>, vector<32x32xf32> -> vector<32x32xf32>
    %150 = arith.addf %144, %149 : vector<32x32xf32>
    %c0_190 = arith.constant 0 : index
    %c1_191 = arith.constant 1 : index
    %c1_192 = arith.constant 1 : index
    %c0_193 = arith.constant 0 : index
    %151 = vector.load %arg9[%c0_190, %c1_191, %c1_192, %c0_193] : memref<2x6x6x32xbf16, #tpu.memory_space<vmem>>, vector<2x4x4x32xbf16>
    %152 = vector.shape_cast %151 : vector<2x4x4x32xbf16> to vector<32x32xbf16>
    %c4_194 = arith.constant 4 : index
    %c0_195 = arith.constant 0 : index
    %c0_196 = arith.constant 0 : index
    %153 = vector.load %arg3[%c4_194, %c0_195, %c0_196] : memref<9x32x32xbf16, #tpu.memory_space<vmem>>, vector<1x32x32xbf16>
    %154 = vector.shape_cast %153 : vector<1x32x32xbf16> to vector<32x32xbf16>
    %cst_197 = arith.constant dense<0.000000e+00> : vector<32x32xf32>
    %155 = tpu.matmul %152, %154, %cst_197 {dimension_numbers = #tpu.dot_dimension_numbers<[1], [0], [0], [1], [0, 0, 1, 1], [], []>} : vector<32x32xbf16>, vector<32x32xbf16>, vector<32x32xf32> -> vector<32x32xf32>
    %156 = arith.addf %150, %155 : vector<32x32xf32>
    %c0_198 = arith.constant 0 : index
    %c1_199 = arith.constant 1 : index
    %c2_200 = arith.constant 2 : index
    %c0_201 = arith.constant 0 : index
    %157 = vector.load %arg9[%c0_198, %c1_199, %c2_200, %c0_201] : memref<2x6x6x32xbf16, #tpu.memory_space<vmem>>, vector<2x4x4x32xbf16>
    %158 = vector.shape_cast %157 : vector<2x4x4x32xbf16> to vector<32x32xbf16>
    %c5_202 = arith.constant 5 : index
    %c0_203 = arith.constant 0 : index
    %c0_204 = arith.constant 0 : index
    %159 = vector.load %arg3[%c5_202, %c0_203, %c0_204] : memref<9x32x32xbf16, #tpu.memory_space<vmem>>, vector<1x32x32xbf16>
    %160 = vector.shape_cast %159 : vector<1x32x32xbf16> to vector<32x32xbf16>
    %cst_205 = arith.constant dense<0.000000e+00> : vector<32x32xf32>
    %161 = tpu.matmul %158, %160, %cst_205 {dimension_numbers = #tpu.dot_dimension_numbers<[1], [0], [0], [1], [0, 0, 1, 1], [], []>} : vector<32x32xbf16>, vector<32x32xbf16>, vector<32x32xf32> -> vector<32x32xf32>
    %162 = arith.addf %156, %161 : vector<32x32xf32>
    %c0_206 = arith.constant 0 : index
    %c2_207 = arith.constant 2 : index
    %c0_208 = arith.constant 0 : index
    %c0_209 = arith.constant 0 : index
    %163 = vector.load %arg9[%c0_206, %c2_207, %c0_208, %c0_209] : memref<2x6x6x32xbf16, #tpu.memory_space<vmem>>, vector<2x4x4x32xbf16>
    %164 = vector.shape_cast %163 : vector<2x4x4x32xbf16> to vector<32x32xbf16>
    %c6_210 = arith.constant 6 : index
    %c0_211 = arith.constant 0 : index
    %c0_212 = arith.constant 0 : index
    %165 = vector.load %arg3[%c6_210, %c0_211, %c0_212] : memref<9x32x32xbf16, #tpu.memory_space<vmem>>, vector<1x32x32xbf16>
    %166 = vector.shape_cast %165 : vector<1x32x32xbf16> to vector<32x32xbf16>
    %cst_213 = arith.constant dense<0.000000e+00> : vector<32x32xf32>
    %167 = tpu.matmul %164, %166, %cst_213 {dimension_numbers = #tpu.dot_dimension_numbers<[1], [0], [0], [1], [0, 0, 1, 1], [], []>} : vector<32x32xbf16>, vector<32x32xbf16>, vector<32x32xf32> -> vector<32x32xf32>
    %168 = arith.addf %162, %167 : vector<32x32xf32>
    %c0_214 = arith.constant 0 : index
    %c2_215 = arith.constant 2 : index
    %c1_216 = arith.constant 1 : index
    %c0_217 = arith.constant 0 : index
    %169 = vector.load %arg9[%c0_214, %c2_215, %c1_216, %c0_217] : memref<2x6x6x32xbf16, #tpu.memory_space<vmem>>, vector<2x4x4x32xbf16>
    %170 = vector.shape_cast %169 : vector<2x4x4x32xbf16> to vector<32x32xbf16>
    %c7_218 = arith.constant 7 : index
    %c0_219 = arith.constant 0 : index
    %c0_220 = arith.constant 0 : index
    %171 = vector.load %arg3[%c7_218, %c0_219, %c0_220] : memref<9x32x32xbf16, #tpu.memory_space<vmem>>, vector<1x32x32xbf16>
    %172 = vector.shape_cast %171 : vector<1x32x32xbf16> to vector<32x32xbf16>
    %cst_221 = arith.constant dense<0.000000e+00> : vector<32x32xf32>
    %173 = tpu.matmul %170, %172, %cst_221 {dimension_numbers = #tpu.dot_dimension_numbers<[1], [0], [0], [1], [0, 0, 1, 1], [], []>} : vector<32x32xbf16>, vector<32x32xbf16>, vector<32x32xf32> -> vector<32x32xf32>
    %174 = arith.addf %168, %173 : vector<32x32xf32>
    %c0_222 = arith.constant 0 : index
    %c2_223 = arith.constant 2 : index
    %c2_224 = arith.constant 2 : index
    %c0_225 = arith.constant 0 : index
    %175 = vector.load %arg9[%c0_222, %c2_223, %c2_224, %c0_225] : memref<2x6x6x32xbf16, #tpu.memory_space<vmem>>, vector<2x4x4x32xbf16>
    %176 = vector.shape_cast %175 : vector<2x4x4x32xbf16> to vector<32x32xbf16>
    %c8_226 = arith.constant 8 : index
    %c0_227 = arith.constant 0 : index
    %c0_228 = arith.constant 0 : index
    %177 = vector.load %arg3[%c8_226, %c0_227, %c0_228] : memref<9x32x32xbf16, #tpu.memory_space<vmem>>, vector<1x32x32xbf16>
    %178 = vector.shape_cast %177 : vector<1x32x32xbf16> to vector<32x32xbf16>
    %cst_229 = arith.constant dense<0.000000e+00> : vector<32x32xf32>
    %179 = tpu.matmul %176, %178, %cst_229 {dimension_numbers = #tpu.dot_dimension_numbers<[1], [0], [0], [1], [0, 0, 1, 1], [], []>} : vector<32x32xbf16>, vector<32x32xbf16>, vector<32x32xf32> -> vector<32x32xf32>
    %180 = arith.addf %174, %179 : vector<32x32xf32>
    %c0_230 = arith.constant 0 : index
    %c0_231 = arith.constant 0 : index
    %181 = vector.load %arg4[%c0_230, %c0_231] : memref<1x32xf32, #tpu.memory_space<vmem>>, vector<1x32xf32>
    %182 = vector.broadcast %181 : vector<1x32xf32> to vector<32x32xf32>
    %183 = arith.addf %180, %182 : vector<32x32xf32>
    %cst_232 = arith.constant 0.000000e+00 : f32
    %184 = vector.broadcast %cst_232 : f32 to vector<32x32xf32>
    %185 = arith.maximumf %183, %184 : vector<32x32xf32>
    %cst_233 = arith.constant 0.000000e+00 : bf16
    %186 = vector.broadcast %cst_233 : bf16 to vector<2x6x6x32xbf16>
    %c0_234 = arith.constant 0 : index
    %c0_235 = arith.constant 0 : index
    %c0_236 = arith.constant 0 : index
    %c0_237 = arith.constant 0 : index
    %187 = vector.load %arg10[%c0_234, %c0_235, %c0_236, %c0_237] : memref<2x6x6x32xbf16, #tpu.memory_space<vmem>>, vector<2x6x6x32xbf16>
    tpu.vector_store %arg10[%c0_234, %c0_235, %c0_236, %c0_237], %186 {strides = array<i32>} : memref<2x6x6x32xbf16, #tpu.memory_space<vmem>>, vector<2x6x6x32xbf16>,
    %188 = vector.shape_cast %185 : vector<32x32xf32> to vector<2x4x4x32xf32>
    %189 = arith.truncf %188 : vector<2x4x4x32xf32> to vector<2x4x4x32xbf16>
    %c0_238 = arith.constant 0 : index
    %c1_239 = arith.constant 1 : index
    %c1_240 = arith.constant 1 : index
    %c0_241 = arith.constant 0 : index
    %190 = vector.load %arg10[%c0_238, %c1_239, %c1_240, %c0_241] : memref<2x6x6x32xbf16, #tpu.memory_space<vmem>>, vector<2x4x4x32xbf16>
    tpu.vector_store %arg10[%c0_238, %c1_239, %c1_240, %c0_241], %189 {strides = array<i32>} : memref<2x6x6x32xbf16, #tpu.memory_space<vmem>>, vector<2x4x4x32xbf16>,
    %cst_242 = arith.constant 0.000000e+00 : f32
    %191 = vector.broadcast %cst_242 : f32 to vector<32x32xf32>
    %c0_243 = arith.constant 0 : index
    %c0_244 = arith.constant 0 : index
    %c0_245 = arith.constant 0 : index
    %c0_246 = arith.constant 0 : index
    %192 = vector.load %arg10[%c0_243, %c0_244, %c0_245, %c0_246] : memref<2x6x6x32xbf16, #tpu.memory_space<vmem>>, vector<2x4x4x32xbf16>
    %193 = vector.shape_cast %192 : vector<2x4x4x32xbf16> to vector<32x32xbf16>
    %c0_247 = arith.constant 0 : index
    %c0_248 = arith.constant 0 : index
    %c0_249 = arith.constant 0 : index
    %194 = vector.load %arg5[%c0_247, %c0_248, %c0_249] : memref<9x32x32xbf16, #tpu.memory_space<vmem>>, vector<1x32x32xbf16>
    %195 = vector.shape_cast %194 : vector<1x32x32xbf16> to vector<32x32xbf16>
    %cst_250 = arith.constant dense<0.000000e+00> : vector<32x32xf32>
    %196 = tpu.matmul %193, %195, %cst_250 {dimension_numbers = #tpu.dot_dimension_numbers<[1], [0], [0], [1], [0, 0, 1, 1], [], []>} : vector<32x32xbf16>, vector<32x32xbf16>, vector<32x32xf32> -> vector<32x32xf32>
    %197 = arith.addf %191, %196 : vector<32x32xf32>
    %c0_251 = arith.constant 0 : index
    %c0_252 = arith.constant 0 : index
    %c1_253 = arith.constant 1 : index
    %c0_254 = arith.constant 0 : index
    %198 = vector.load %arg10[%c0_251, %c0_252, %c1_253, %c0_254] : memref<2x6x6x32xbf16, #tpu.memory_space<vmem>>, vector<2x4x4x32xbf16>
    %199 = vector.shape_cast %198 : vector<2x4x4x32xbf16> to vector<32x32xbf16>
    %c1_255 = arith.constant 1 : index
    %c0_256 = arith.constant 0 : index
    %c0_257 = arith.constant 0 : index
    %200 = vector.load %arg5[%c1_255, %c0_256, %c0_257] : memref<9x32x32xbf16, #tpu.memory_space<vmem>>, vector<1x32x32xbf16>
    %201 = vector.shape_cast %200 : vector<1x32x32xbf16> to vector<32x32xbf16>
    %cst_258 = arith.constant dense<0.000000e+00> : vector<32x32xf32>
    %202 = tpu.matmul %199, %201, %cst_258 {dimension_numbers = #tpu.dot_dimension_numbers<[1], [0], [0], [1], [0, 0, 1, 1], [], []>} : vector<32x32xbf16>, vector<32x32xbf16>, vector<32x32xf32> -> vector<32x32xf32>
    %203 = arith.addf %197, %202 : vector<32x32xf32>
    %c0_259 = arith.constant 0 : index
    %c0_260 = arith.constant 0 : index
    %c2_261 = arith.constant 2 : index
    %c0_262 = arith.constant 0 : index
    %204 = vector.load %arg10[%c0_259, %c0_260, %c2_261, %c0_262] : memref<2x6x6x32xbf16, #tpu.memory_space<vmem>>, vector<2x4x4x32xbf16>
    %205 = vector.shape_cast %204 : vector<2x4x4x32xbf16> to vector<32x32xbf16>
    %c2_263 = arith.constant 2 : index
    %c0_264 = arith.constant 0 : index
    %c0_265 = arith.constant 0 : index
    %206 = vector.load %arg5[%c2_263, %c0_264, %c0_265] : memref<9x32x32xbf16, #tpu.memory_space<vmem>>, vector<1x32x32xbf16>
    %207 = vector.shape_cast %206 : vector<1x32x32xbf16> to vector<32x32xbf16>
    %cst_266 = arith.constant dense<0.000000e+00> : vector<32x32xf32>
    %208 = tpu.matmul %205, %207, %cst_266 {dimension_numbers = #tpu.dot_dimension_numbers<[1], [0], [0], [1], [0, 0, 1, 1], [], []>} : vector<32x32xbf16>, vector<32x32xbf16>, vector<32x32xf32> -> vector<32x32xf32>
    %209 = arith.addf %203, %208 : vector<32x32xf32>
    %c0_267 = arith.constant 0 : index
    %c1_268 = arith.constant 1 : index
    %c0_269 = arith.constant 0 : index
    %c0_270 = arith.constant 0 : index
    %210 = vector.load %arg10[%c0_267, %c1_268, %c0_269, %c0_270] : memref<2x6x6x32xbf16, #tpu.memory_space<vmem>>, vector<2x4x4x32xbf16>
    %211 = vector.shape_cast %210 : vector<2x4x4x32xbf16> to vector<32x32xbf16>
    %c3_271 = arith.constant 3 : index
    %c0_272 = arith.constant 0 : index
    %c0_273 = arith.constant 0 : index
    %212 = vector.load %arg5[%c3_271, %c0_272, %c0_273] : memref<9x32x32xbf16, #tpu.memory_space<vmem>>, vector<1x32x32xbf16>
    %213 = vector.shape_cast %212 : vector<1x32x32xbf16> to vector<32x32xbf16>
    %cst_274 = arith.constant dense<0.000000e+00> : vector<32x32xf32>
    %214 = tpu.matmul %211, %213, %cst_274 {dimension_numbers = #tpu.dot_dimension_numbers<[1], [0], [0], [1], [0, 0, 1, 1], [], []>} : vector<32x32xbf16>, vector<32x32xbf16>, vector<32x32xf32> -> vector<32x32xf32>
    %215 = arith.addf %209, %214 : vector<32x32xf32>
    %c0_275 = arith.constant 0 : index
    %c1_276 = arith.constant 1 : index
    %c1_277 = arith.constant 1 : index
    %c0_278 = arith.constant 0 : index
    %216 = vector.load %arg10[%c0_275, %c1_276, %c1_277, %c0_278] : memref<2x6x6x32xbf16, #tpu.memory_space<vmem>>, vector<2x4x4x32xbf16>
    %217 = vector.shape_cast %216 : vector<2x4x4x32xbf16> to vector<32x32xbf16>
    %c4_279 = arith.constant 4 : index
    %c0_280 = arith.constant 0 : index
    %c0_281 = arith.constant 0 : index
    %218 = vector.load %arg5[%c4_279, %c0_280, %c0_281] : memref<9x32x32xbf16, #tpu.memory_space<vmem>>, vector<1x32x32xbf16>
    %219 = vector.shape_cast %218 : vector<1x32x32xbf16> to vector<32x32xbf16>
    %cst_282 = arith.constant dense<0.000000e+00> : vector<32x32xf32>
    %220 = tpu.matmul %217, %219, %cst_282 {dimension_numbers = #tpu.dot_dimension_numbers<[1], [0], [0], [1], [0, 0, 1, 1], [], []>} : vector<32x32xbf16>, vector<32x32xbf16>, vector<32x32xf32> -> vector<32x32xf32>
    %221 = arith.addf %215, %220 : vector<32x32xf32>
    %c0_283 = arith.constant 0 : index
    %c1_284 = arith.constant 1 : index
    %c2_285 = arith.constant 2 : index
    %c0_286 = arith.constant 0 : index
    %222 = vector.load %arg10[%c0_283, %c1_284, %c2_285, %c0_286] : memref<2x6x6x32xbf16, #tpu.memory_space<vmem>>, vector<2x4x4x32xbf16>
    %223 = vector.shape_cast %222 : vector<2x4x4x32xbf16> to vector<32x32xbf16>
    %c5_287 = arith.constant 5 : index
    %c0_288 = arith.constant 0 : index
    %c0_289 = arith.constant 0 : index
    %224 = vector.load %arg5[%c5_287, %c0_288, %c0_289] : memref<9x32x32xbf16, #tpu.memory_space<vmem>>, vector<1x32x32xbf16>
    %225 = vector.shape_cast %224 : vector<1x32x32xbf16> to vector<32x32xbf16>
    %cst_290 = arith.constant dense<0.000000e+00> : vector<32x32xf32>
    %226 = tpu.matmul %223, %225, %cst_290 {dimension_numbers = #tpu.dot_dimension_numbers<[1], [0], [0], [1], [0, 0, 1, 1], [], []>} : vector<32x32xbf16>, vector<32x32xbf16>, vector<32x32xf32> -> vector<32x32xf32>
    %227 = arith.addf %221, %226 : vector<32x32xf32>
    %c0_291 = arith.constant 0 : index
    %c2_292 = arith.constant 2 : index
    %c0_293 = arith.constant 0 : index
    %c0_294 = arith.constant 0 : index
    %228 = vector.load %arg10[%c0_291, %c2_292, %c0_293, %c0_294] : memref<2x6x6x32xbf16, #tpu.memory_space<vmem>>, vector<2x4x4x32xbf16>
    %229 = vector.shape_cast %228 : vector<2x4x4x32xbf16> to vector<32x32xbf16>
    %c6_295 = arith.constant 6 : index
    %c0_296 = arith.constant 0 : index
    %c0_297 = arith.constant 0 : index
    %230 = vector.load %arg5[%c6_295, %c0_296, %c0_297] : memref<9x32x32xbf16, #tpu.memory_space<vmem>>, vector<1x32x32xbf16>
    %231 = vector.shape_cast %230 : vector<1x32x32xbf16> to vector<32x32xbf16>
    %cst_298 = arith.constant dense<0.000000e+00> : vector<32x32xf32>
    %232 = tpu.matmul %229, %231, %cst_298 {dimension_numbers = #tpu.dot_dimension_numbers<[1], [0], [0], [1], [0, 0, 1, 1], [], []>} : vector<32x32xbf16>, vector<32x32xbf16>, vector<32x32xf32> -> vector<32x32xf32>
    %233 = arith.addf %227, %232 : vector<32x32xf32>
    %c0_299 = arith.constant 0 : index
    %c2_300 = arith.constant 2 : index
    %c1_301 = arith.constant 1 : index
    %c0_302 = arith.constant 0 : index
    %234 = vector.load %arg10[%c0_299, %c2_300, %c1_301, %c0_302] : memref<2x6x6x32xbf16, #tpu.memory_space<vmem>>, vector<2x4x4x32xbf16>
    %235 = vector.shape_cast %234 : vector<2x4x4x32xbf16> to vector<32x32xbf16>
    %c7_303 = arith.constant 7 : index
    %c0_304 = arith.constant 0 : index
    %c0_305 = arith.constant 0 : index
    %236 = vector.load %arg5[%c7_303, %c0_304, %c0_305] : memref<9x32x32xbf16, #tpu.memory_space<vmem>>, vector<1x32x32xbf16>
    %237 = vector.shape_cast %236 : vector<1x32x32xbf16> to vector<32x32xbf16>
    %cst_306 = arith.constant dense<0.000000e+00> : vector<32x32xf32>
    %238 = tpu.matmul %235, %237, %cst_306 {dimension_numbers = #tpu.dot_dimension_numbers<[1], [0], [0], [1], [0, 0, 1, 1], [], []>} : vector<32x32xbf16>, vector<32x32xbf16>, vector<32x32xf32> -> vector<32x32xf32>
    %239 = arith.addf %233, %238 : vector<32x32xf32>
    %c0_307 = arith.constant 0 : index
    %c2_308 = arith.constant 2 : index
    %c2_309 = arith.constant 2 : index
    %c0_310 = arith.constant 0 : index
    %240 = vector.load %arg10[%c0_307, %c2_308, %c2_309, %c0_310] : memref<2x6x6x32xbf16, #tpu.memory_space<vmem>>, vector<2x4x4x32xbf16>
    %241 = vector.shape_cast %240 : vector<2x4x4x32xbf16> to vector<32x32xbf16>
    %c8_311 = arith.constant 8 : index
    %c0_312 = arith.constant 0 : index
    %c0_313 = arith.constant 0 : index
    %242 = vector.load %arg5[%c8_311, %c0_312, %c0_313] : memref<9x32x32xbf16, #tpu.memory_space<vmem>>, vector<1x32x32xbf16>
    %243 = vector.shape_cast %242 : vector<1x32x32xbf16> to vector<32x32xbf16>
    %cst_314 = arith.constant dense<0.000000e+00> : vector<32x32xf32>
    %244 = tpu.matmul %241, %243, %cst_314 {dimension_numbers = #tpu.dot_dimension_numbers<[1], [0], [0], [1], [0, 0, 1, 1], [], []>} : vector<32x32xbf16>, vector<32x32xbf16>, vector<32x32xf32> -> vector<32x32xf32>
    %245 = arith.addf %239, %244 : vector<32x32xf32>
    %246 = arith.addf %120, %245 : vector<32x32xf32>
    %c0_315 = arith.constant 0 : index
    %c0_316 = arith.constant 0 : index
    %247 = vector.load %arg6[%c0_315, %c0_316] : memref<1x32xf32, #tpu.memory_space<vmem>>, vector<1x32xf32>
    %248 = vector.broadcast %247 : vector<1x32xf32> to vector<32x32xf32>
    %249 = arith.addf %246, %248 : vector<32x32xf32>
    %c0_317 = arith.constant 0 : index
    %c0_318 = arith.constant 0 : index
    %250 = vector.load %arg7[%c0_317, %c0_318] : memref<1x32xf32, #tpu.memory_space<vmem>>, vector<1x32xf32>
    %251 = vector.broadcast %250 : vector<1x32xf32> to vector<32x32xf32>
    %252 = arith.mulf %249, %251 : vector<32x32xf32>
    %cst_319 = arith.constant dense<0.000000e+00> : vector<32xf32>
    %253 = vector.multi_reduction <add>, %252, %cst_319 [1] : vector<32x32xf32> to vector<32xf32>
    %254 = vector.shape_cast %253 : vector<32xf32> to vector<32x1xf32>
    %c0_320 = arith.constant 0 : index
    %c0_321 = arith.constant 0 : index
    %255 = vector.load %arg8[%c0_320, %c0_321] : memref<32x1xf32, #tpu.memory_space<vmem>>, vector<32x1xf32>
    tpu.vector_store %arg8[%c0_320, %c0_321], %254 {strides = array<i32>} : memref<32x1xf32, #tpu.memory_space<vmem>>, vector<32x1xf32>,
    return
  }
}

</mosaic_0001>

<bundles_post_ra>
// kernel: discriminator_forward.2
= control target key start
LH: loop header
LB: loop body
LE: loop exit
PB: predicated region body
PF: predicated region fallthrough
CT: control target
= control target key end

     0   :  { %vm116_vm0 = vcmask 1043456   ;;  %vm91_vm1 = vcmask 64512   ;;  %vm413_vm2 = vsmask.f32 3328  ;;  %vm414_vm3 = vsmask.f32 7440  ;;  %s8047_s1 = inlined_call_operand.vmem [shape: bf16[16,8,16], index: 1, kind: input, shape index: {}]   ;;  %s8048_s0 = inlined_call_operand.vmem [shape: bf16[2,2,2,9,9,8], index: 0, kind: input, shape index: {}]   ;;  %s8049_s2 = inlined_call_operand.vmem [shape: f32[1,16], index: 2, kind: input, shape index: {}]   ;;  %s8050_s3 = inlined_call_operand.vmem [shape: bf16[2,8,8,16], index: 3, kind: output, shape index: {}]  }
   0x1   :  { %v5078_v0 = vld [vmem:[%s8047_s1 + $0x4] sm:$0xf]  ;;  %v5357_v1 = vld [vmem:[%s8047_s1 + $0x20] sm:$0xf]  ;;  %v6358_v4 = vld [vmem:[%s8048_s0 + $0x48] ss:$8 sps:$4 sm:$0xff]  }
   0x2   :  { %6342 = vmatprep.subr.msk.bf16.mxu1 %vm116_vm0, %v5078_v0  ;;  %6350 = vmatprep.subr.msk.bf16.mxu0 %vm116_vm0, %v5357_v1  ;;  %v118_v2 = vsel %vm116_vm0, %v5078_v0, 0  ;;  %v2554_v3 = vsel %vm116_vm0, %v5357_v1, 0  ;;  %v6359_v5 = vld [vmem:[%s8048_s0 + $0x8] ss:$8 sps:$4 sm:$0xff]   ;;  %v6360_v6 = vld [vmem:[%s8048_s0 + $0x58] ss:$8 sps:$4 sm:$0xff]   ;;  %vm6595_vm4 = vmor %vm413_vm2, %vm414_vm3 }
   0x3   :  { %5815 = vmatpush3.bf16.msra.mxu1 %v118_v2  ;;  %5959 = vmatpush3.bf16.msra.mxu0 %v2554_v3  ;;  %v31_v7 = vld [vmem:[%s8047_s1] sm:$0xf]  ;;  %v5390_v9 = vld [vmem:[%s8047_s1 + $0x24] sm:$0xf]  ;;  %v6362_v12 = vld [vmem:[%s8048_s0 + $0x68] ss:$8 sps:$4 sm:$0xff]  }
   0x4   :  { %5816 = vmatprep.mubr.msk.bf16.mxu1 %vm91_vm1, %v6358_v4  ;;  %5960 = vmatprep.mubr.msk.bf16.mxu0 %vm91_vm1, %v6359_v5  ;;  %v6361_v8 = vld [vmem:[%s8048_s0 + $0x18] ss:$8 sps:$4 sm:$0xff]   ;;  %v282_v10 = vsel %vm116_vm0, %v31_v7, 0  ;;  %v2753_v11 = vsel %vm116_vm0, %v5390_v9, 0  ;;  %v6363_v13 = vld [vmem:[%s8048_s0 + $0x28] ss:$8 sps:$4 sm:$0xff]  }
   0x5   :  { %6343 = vmatprep.subr.msk.bf16.mxu1 %vm116_vm0, %v31_v7  ;;  %6351 = vmatprep.subr.msk.bf16.mxu0 %vm116_vm0, %v5390_v9  ;;  %v6364_v14 = vld [vmem:[%s8048_s0 + $0x78] ss:$8 sps:$4 sm:$0xff]   ;;  %v6366_v16 = vld [vmem:[%s8048_s0 + $0x168] ss:$8 sps:$4 sm:$0xff]   ;;  %v382_v35 = vld [vmem:[%s8048_s0 + $0x4] sm:$0x1] }
   0x6   :  { %5817 = vmatmul.mubr.msk.bf16.vlgmr.msra.gmra.mrb[0].mxu1 %vm91_vm1, %v6360_v6  ;;  %5961 = vmatmul.mubr.msk.bf16.vlgmr.msra.gmra.mrb[0].mxu0 %vm91_vm1, %v6361_v8  ;;  %v6365_v15 = vld [vmem:[%s8048_s0 + $0x38] ss:$8 sps:$4 sm:$0xff]   ;;  %v6367_v17 = vld [vmem:[%s8048_s0 + $0x128] ss:$8 sps:$4 sm:$0xff]   ;;  %v384_v37 = vld [vmem:[%s8048_s0 + $0xc] sm:$0x1] }
   0x7   :  { %5833 = vmatpush3.bf16.msra.mxu1 %v282_v10  ;;  %5977 = vmatpush3.bf16.msra.mxu0 %v2753_v11  ;;  %v6368_v18 = vld [vmem:[%s8048_s0 + $0x178] ss:$8 sps:$4 sm:$0xff]   ;;  %v6370_v19 = vld [vmem:[%s8048_s0 + $0x188] ss:$8 sps:$4 sm:$0xff]   ;;  %v426_v40 = vshll.u32 %v382_v35, 16  ;;  %v440_v43 = vshll.u32 %v384_v37, 16 }
   0x8   :  { %5820 = vmatprep.mubr.msk.bf16.mxu1 %vm91_vm1, %v6362_v12  ;;  %5964 = vmatprep.mubr.msk.bf16.mxu0 %vm91_vm1, %v6363_v13  ;;  %v6369_v20 = vld [vmem:[%s8048_s0 + $0x138] ss:$8 sps:$4 sm:$0xff]   ;;  %v6371_v21 = vld [vmem:[%s8048_s0 + $0x148] ss:$8 sps:$4 sm:$0xff]   ;;  %v5408_v47 = vld [vmem:[%s8048_s0 + $0xc] sm:$0x1] }
   0x9   :  { %v5111_v22 = vld [vmem:[%s8047_s1 + $0x8] sm:$0xf]  ;;  %v6372_v24 = vld [vmem:[%s8048_s0 + $0x198] ss:$8 sps:$4 sm:$0xff]   ;;  %v5409_v48 = vld [vmem:[%s8048_s0 + $0x10] sm:$0xf] }
   0xa   :  { %6344 = vmatprep.subr.msk.bf16.mxu1 %vm116_vm0, %v5111_v22  ;;  %v5439_v23 = vld [vmem:[%s8047_s1 + $0x28] sm:$0xf]  ;;  %v6373_v26 = vld [vmem:[%s8048_s0 + $0x158] ss:$8 sps:$4 sm:$0xff]   ;;  %v691_v30 = vsel %vm116_vm0, %v5111_v22, 0  ;;  %v428_v50 = vrot.slane %v426_v40, 5 }
   0xb   :  { %6352 = vmatprep.subr.msk.bf16.mxu0 %vm116_vm0, %v5439_v23  ;;  %v6374_v25 = vld [vmem:[%s8048_s0] ss:$8 sps:$4 sm:$0xff]   ;;  %v6375_v27 = vld [vmem:[%s8048_s0 + $0x50] ss:$8 sps:$4 sm:$0xff]   ;;  %v3175_v31 = vsel %vm116_vm0, %v5439_v23, 0  ;;  %v442_v53 = vrot.slane %v440_v43, 5 }
   0xc   :  { %v6376_v28 = vld [vmem:[%s8048_s0 + $0x10] ss:$8 sps:$4 sm:$0xff]   ;;  %v6377_v29 = vld [vmem:[%s8048_s0 + $0x60] ss:$8 sps:$4 sm:$0xff]   ;;  %v5410_v54 = vld [vmem:[%s8048_s0 + $0x14] sm:$0x1] }
   0xd   :  { %v6378_v32 = vld [vmem:[%s8048_s0 + $0x20] ss:$8 sps:$4 sm:$0xff]   ;;  %v6379_v33 = vld [vmem:[%s8048_s0 + $0x70] ss:$8 sps:$4 sm:$0xff]   ;;  %v2910_v59 = vshll.u32 %v5408_v47, 16  ;;  %v2915_v63 = vshrl.u32 %v5409_v48, 16 }
   0xe   :  { %5821 = vmatmul.mubr.msk.bf16.gmra.mrb[4].mxu1 %vm91_vm1, %v6364_v14  ;;  %5965 = vmatmul.mubr.msk.bf16.gmra.mrb[4].mxu0 %vm91_vm1, %v6365_v15  ;;  %v381_v34 = vld [vmem:[%s8048_s0] sm:$0xf]  ;;  %v383_v36 = vld [vmem:[%s8048_s0 + $0x8] sm:$0xf]  ;;  %v6380_v49 = vld [vmem:[%s8048_s0 + $0x30] ss:$8 sps:$4 sm:$0xff]  }
   0xf   :  { %5824 = vmatprep.mubr.msk.bf16.mxu1 %vm91_vm1, %v6366_v16  ;;  %5968 = vmatprep.mubr.msk.bf16.mxu0 %vm91_vm1, %v6367_v17  ;;  %v417_v38 = vshrl.u32 %v381_v34, 16  ;;  %v420_v39 = vshll.u32 %v381_v34, 16  ;;  %v431_v41 = vshrl.u32 %v383_v36, 16  ;;  %v434_v42 = vshll.u32 %v383_v36, 16  ;;  %v5407_v44 = vld [vmem:[%s8048_s0 + $0x8] sm:$0xf] }
  0x10   :  { %v6382_v55 = vld [vmem:[%s8048_s0 + $0x120] ss:$8 sps:$4 sm:$0xff]   ;;  %v2901_v57 = vshrl.u32 %v5407_v44, 16  ;;  %v2904_v58 = vshll.u32 %v5407_v44, 16  ;;  %v385_v60 = vld [vmem:[%s8048_s0 + $0x10] sm:$0xf] }
  0x11   :  { %v419_v45 = vrot.slane %v417_v38, 4  ;;  %v422_v46 = vrot.slane %v420_v39, 5  ;;  %v433_v51 = vrot.slane %v431_v41, 4  ;;  %v436_v52 = vrot.slane %v434_v42, 5  ;;  %v386_v2 = vld [vmem:[%s8048_s0 + $0x14] sm:$0x1] }
  0x12   :  { %v2918_v0 = vshll.u32 %v5409_v48, 16  ;;  %v2924_v1 = vshll.u32 %v5410_v54, 16  ;;  %v2903_v4 = vrot.slane %v2901_v57, 4  ;;  %v2906_v5 = vrot.slane %v2904_v58, 5  ;;  %v387_v7 = vld [vmem:[%s8048_s0 + $0x18] sm:$0xf] }
  0x13   :  { %v423_v56 = vor.u32 %v422_v46, %v419_v45  ;;  %v437_v62 = vor.u32 %v436_v52, %v433_v51  ;;  %v2912_v6 = vrot.slane %v2910_v59, 5  ;;  %v6381_v8 = vld [vmem:[%s8048_s0 + $0x80] ss:$8 sps:$4 sm:$0xff]   ;;  %v2917_v10 = vrot.slane %v2915_v63, 4  ;;  %v6383_v13 = vld [vmem:[%s8048_s0 + $0x170] ss:$8 sps:$4 sm:$0xff]  }
  0x14   :  { %v2920_v11 = vrot.slane %v2918_v0, 5  ;;  %v2926_v12 = vrot.slane %v2924_v1, 5  ;;  %v2907_v15 = vor.u32 %v2906_v5, %v2903_v4  ;;  %v445_v16 = vshrl.u32 %v385_v60, 16  ;;  %v5488_v35 = vld [vmem:[%s8047_s1 + $0x2c] sm:$0xf] }
  0x15   :  { %v424_v3 = vrot.slane %v423_v56, 4  ;;  %v438_v9 = vrot.slane %v437_v62, 4  ;;  %v448_v17 = vshll.u32 %v385_v60, 16  ;;  %v454_v22 = vshll.u32 %v386_v2, 16  ;;  %v6386_v36 = vld [vmem:[%s8048_s0 + $0x140] ss:$8 sps:$4 sm:$0xff]  }
  0x16   :  { %5825 = vmatmul.mubr.msk.bf16.gmra.mrb[8].mxu1 %vm91_vm1, %v6368_v18  ;;  %5969 = vmatmul.mubr.msk.bf16.gmra.mrb[8].mxu0 %vm91_vm1, %v6369_v20  ;;  %v5160_v18 = vld [vmem:[%s8047_s1 + $0xc] sm:$0xf]  ;;  %v2921_v20 = vor.u32 %v2920_v11, %v2917_v10  ;;  %v459_v23 = vshrl.u32 %v387_v7, 16  ;;  %v462_v34 = vshll.u32 %v387_v7, 16  ;;  %v5413_v40 = vld [vmem:[%s8048_s0 + $0x20] sm:$0xf] }
  0x17   :  { %5828 = vmatprep.mubr.msk.bf16.mxu1 %vm91_vm1, %v6370_v19  ;;  %5972 = vmatprep.mubr.msk.bf16.mxu0 %vm91_vm1, %v6371_v21  ;;  %v429_v14 = vsel %vm6595_vm4, %v424_v3, %v428_v50  ;;  %v443_v19 = vsel %vm6595_vm4, %v438_v9, %v442_v53  ;;  %v388_v21 = vld [vmem:[%s8048_s0 + $0x1c] sm:$0x1]  ;;  %v6385_v42 = vld [vmem:[%s8048_s0 + $0x180] ss:$8 sps:$4 sm:$0xff]   ;;  %v5414_v45 = vld [vmem:[%s8048_s0 + $0x24] sm:$0x1] }
  0x18   :  { %v468_v39 = vshll.u32 %v388_v21, 16  ;;  %v464_v44 = vrot.slane %v462_v34, 5  ;;  %v6387_v48 = vld [vmem:[%s8048_s0 + $0x190] ss:$8 sps:$4 sm:$0xff]   ;;  %v389_v53 = vld [vmem:[%s8048_s0 + $0x20] sm:$0xf] }
  0x19   :  { %v2943_v57 = vshrl.u32 %v5413_v40, 16  ;;  %v390_v58 = vld [vmem:[%s8048_s0 + $0x24] sm:$0x1]  ;;  %v2946_v60 = vshll.u32 %v5413_v40, 16  ;;  %v2952_v62 = vshll.u32 %v5414_v45, 16  ;;  %v6671_v63 = vsel %vm116_vm0, %v5160_v18, 0 }
  0x1a   :  { %v470_v51 = vrot.slane %v468_v39, 5  ;;  %v391_v0 = vld [vmem:[%s8048_s0 + $0x28] sm:$0xf]  ;;  %v6678_v4 = vsel %vm116_vm0, %v5488_v35, 0  ;;  %v392_v7 = vld [vmem:[%s8048_s0 + $0x2c] sm:$0x1] }
  0x1b   :  { %v2945_v3 = vrot.slane %v2943_v57, 4  ;;  %v2948_v5 = vrot.slane %v2946_v60, 5  ;;  %v476_v9 = vshll.u32 %v389_v53, 16  ;;  %v6388_v21 = vld [vmem:[%s8048_s0 + $0x150] ss:$8 sps:$4 sm:$0xff]   ;;  %vm5041_vm7 = vcmask 125952  }
  0x1e   :  { %5829 = vmatmul.mubr.msk.bf16.gmra.mrb[12].mxu1 %vm91_vm1, %v6372_v24  ;;  %5973 = vmatmul.mubr.msk.bf16.gmra.mrb[12].mxu0 %vm91_vm1, %v6373_v26  ;;  %v5411_v24 = vld [vmem:[%s8048_s0 + $0x18] sm:$0xf]  ;;  %v2908_v26 = vrot.slane %v2907_v15, 4 }
  0x1f   :  { %5834 = vmatprep.mubr.msk.bf16.mxu1 %vm91_vm1, %v6374_v25  ;;  %5978 = vmatprep.mubr.msk.bf16.mxu0 %vm91_vm1, %v6375_v27  ;;  %v6627_v25 = vcombine.low %v429_v14, %v443_v19  ;;  %v447_v27 = vrot.slane %v445_v16, 4  ;;  %v2929_v41 = vshrl.u32 %v5411_v24, 16  ;;  %v2932_v46 = vshll.u32 %v5411_v24, 16  ;;  %v5415_v14 = vld [vmem:[%s8048_s0 + $0x28] sm:$0xf] }
  0x20   :  { %v2913_v37 = vsel %vm6595_vm4, %v2908_v26, %v2912_v6  ;;  %v2954_v6 = vrot.slane %v2952_v62, 5  ;;  %v2949_v16 = vor.u32 %v2948_v5, %v2945_v3  ;;  %v5416_v19 = vld [vmem:[%s8048_s0 + $0x2c] sm:$0x1]  ;;  %v490_v26 = vshll.u32 %v391_v0, 16  ;;  %v5419_v62 = vld [vmem:[%s8048_s0 + $0x38] sm:$0xf] }
  0x21   :  { %v2931_v52 = vrot.slane %v2929_v41, 4  ;;  %v2960_v34 = vshll.u32 %v5415_v14, 16  ;;  %v393_v41 = vld [vmem:[%s8048_s0 + $0x30] sm:$0xf]  ;;  %v5420_v5 = vld [vmem:[%s8048_s0 + $0x3c] sm:$0x1] }
  0x22   :  { %v504_v57 = vshll.u32 %v393_v41, 16 }
  0x24   :  { %v506_v3 = vrot.slane %v504_v57, 5 }
  0x26   :  { %5835 = vmatmul.mubr.msk.bf16.vlgmr.msra.gmra.mrb[0].mxu1 %vm91_vm1, %v6376_v28  ;;  %5979 = vmatmul.mubr.msk.bf16.vlgmr.msra.gmra.mrb[0].mxu0 %vm91_vm1, %v6377_v29  ;;  %v450_v28 = vrot.slane %v448_v17, 5  ;;  %v5412_v29 = vld [vmem:[%s8048_s0 + $0x1c] sm:$0x1] }
  0x27   :  { %5851 = vmatpush3.bf16.msra.mxu1 %v691_v30  ;;  %5838 = vmatprep.mubr.msk.bf16.mxu1 %vm91_vm1, %v6378_v32  ;;  %v6384_v30 = vld [vmem:[%s8048_s0 + $0x130] ss:$8 sps:$4 sm:$0xff]   ;;  %v456_v32 = vrot.slane %v454_v22, 5  ;;  %v2938_v47 = vshll.u32 %v5412_v29, 16 }
  0x28   :  { %5995 = vmatpush3.bf16.msra.mxu0 %v3175_v31  ;;  %5982 = vmatprep.mubr.msk.bf16.mxu0 %vm91_vm1, %v6379_v33  ;;  %v2922_v31 = vrot.slane %v2921_v20, 4  ;;  %v461_v33 = vrot.slane %v459_v23, 4  ;;  %v451_v38 = vor.u32 %v450_v28, %v447_v27  ;;  %v5417_v20 = vld [vmem:[%s8048_s0 + $0x30] sm:$0xf]  ;;  %v6389_v27 = vld [vmem:[%s8048_s0 + $0x1a0] ss:$8 sps:$4 sm:$0xff]  }
  0x29   :  { %6345 = vmatprep.subr.msk.bf16.mxu1 %vm116_vm0, %v5160_v18  ;;  %6353 = vmatprep.subr.msk.bf16.mxu0 %vm116_vm0, %v5488_v35  ;;  %v2940_v56 = vrot.slane %v2938_v47, 5  ;;  %v478_v18 = vrot.slane %v476_v9, 5  ;;  %v2950_v28 = vrot.slane %v2949_v16, 4  ;;  %v2966_v35 = vshll.u32 %v5416_v19, 16  ;;  %v395_v47 = vld [vmem:[%s8048_s0 + $0x38] sm:$0xf] }
  0x2a   :  { %v2927_v43 = vsel %vm6595_vm4, %v2922_v31, %v2926_v12  ;;  %v452_v50 = vrot.slane %v451_v38, 4  ;;  %v465_v54 = vor.u32 %v464_v44, %v461_v33  ;;  %v482_v12 = vshll.u32 %v390_v58, 16  ;;  %v5418_v33 = vld [vmem:[%s8048_s0 + $0x34] sm:$0x1]  ;;  %v5421_v9 = vld [vmem:[%s8048_s0 + $0x40] sm:$0xf] }
  0x2b   :  { %v2957_v31 = vshrl.u32 %v5415_v14, 16  ;;  %v2962_v44 = vrot.slane %v2960_v34, 5  ;;  %v2968_v45 = vrot.slane %v2966_v35, 5  ;;  %v515_v60 = vshrl.u32 %v395_v47, 16  ;;  %v5422_v14 = vld [vmem:[%s8048_s0 + $0x44] sm:$0x1] }
  0x2c   :  { %v457_v59 = vsel %vm6595_vm4, %v452_v50, %v456_v32  ;;  %v466_v1 = vrot.slane %v465_v54, 4  ;;  %v484_v23 = vrot.slane %v482_v12, 5  ;;  %v492_v32 = vrot.slane %v490_v26, 5  ;;  %v398_v26 = vld [vmem:[%s8048_s0 + $0x124] sm:$0x1] }
  0x2d   :  { %v2959_v40 = vrot.slane %v2957_v31, 4  ;;  %v518_v12 = vshll.u32 %v395_v47, 16  ;;  %v2994_v19 = vshll.u32 %v5420_v5, 16  ;;  %v3002_v35 = vshll.u32 %v5421_v9, 16  ;;  %v5424_v47 = vld [vmem:[%s8048_s0 + $0x12c] sm:$0x1] }
  0x2e   :  { %5839 = vmatmul.mubr.msk.bf16.gmra.mrb[4].mxu1 %vm91_vm1, %v6380_v49  ;;  %5983 = vmatmul.mubr.msk.bf16.gmra.mrb[4].mxu0 %vm91_vm1, %v6381_v8  ;;  %v6660_v49 = vcombine.low %v2913_v37, %v2927_v43  ;;  %v473_v8 = vshrl.u32 %v389_v53, 16  ;;  %v471_v10 = vsel %vm6595_vm4, %v466_v1, %v470_v51  ;;  %v2955_v37 = vsel %vm6595_vm4, %v2950_v28, %v2954_v6 }
  0x2f   :  { %5842 = vmatprep.mubr.msk.bf16.mxu1 %vm91_vm1, %v6382_v55  ;;  %5986 = vmatprep.mubr.msk.bf16.mxu0 %vm91_vm1, %v6383_v13  ;;  %v2934_v55 = vrot.slane %v2932_v46, 5  ;;  %v487_v13 = vshrl.u32 %v391_v0, 16  ;;  %v6691_v15 = vcombine.low %v457_v59, %v471_v10  ;;  %v394_v46 = vld [vmem:[%s8048_s0 + $0x34] sm:$0x1]  ;;  %v2974_v51 = vshll.u32 %v5417_v20, 16 }
  0x30   :  { %v475_v17 = vrot.slane %v473_v8, 4  ;;  %v2963_v54 = vor.u32 %v2962_v44, %v2959_v40  ;;  %v510_v59 = vshll.u32 %v394_v46, 16  ;;  %v517_v8 = vrot.slane %v515_v60, 4 }
  0x31   :  { %v2935_v2 = vor.u32 %v2934_v55, %v2931_v52  ;;  %v489_v24 = vrot.slane %v487_v13, 4  ;;  %v2980_v52 = vshll.u32 %v5418_v33, 16  ;;  %v396_v55 = vld [vmem:[%s8048_s0 + $0x3c] sm:$0x1] }
  0x32   :  { %v479_v29 = vor.u32 %v478_v18, %v475_v17  ;;  %v2964_v1 = vrot.slane %v2963_v54, 4  ;;  %v524_v13 = vshll.u32 %v396_v55, 16  ;;  %v2985_v17 = vshrl.u32 %v5419_v62, 16 }
  0x33   :  { %v2936_v11 = vrot.slane %v2935_v2, 4  ;;  %v493_v43 = vor.u32 %v492_v32, %v489_v24  ;;  %v2982_v58 = vrot.slane %v2980_v52, 5  ;;  %v2988_v18 = vshll.u32 %v5419_v62, 16 }
  0x34   :  { %v480_v38 = vrot.slane %v479_v29, 4  ;;  %v2969_v10 = vsel %vm6595_vm4, %v2964_v1, %v2968_v45  ;;  %v2999_v24 = vshrl.u32 %v5421_v9, 16  ;;  %v2987_v28 = vrot.slane %v2985_v17, 4  ;;  %v5426_v1 = vld [vmem:[%s8048_s0 + $0x134] sm:$0x1] }
  0x35   :  { %v2941_v22 = vsel %vm6595_vm4, %v2936_v11, %v2940_v56  ;;  %v494_v53 = vrot.slane %v493_v43, 4  ;;  %v501_v56 = vshrl.u32 %v393_v41, 16  ;;  %v2990_v29 = vrot.slane %v2988_v18, 5  ;;  %v5423_v43 = vld [vmem:[%s8048_s0 + $0x128] sm:$0xf] }
  0x36   :  { %5843 = vmatmul.mubr.msk.bf16.gmra.mrb[8].mxu1 %vm91_vm1, %v6384_v30  ;;  %5987 = vmatmul.mubr.msk.bf16.gmra.mrb[8].mxu0 %vm91_vm1, %v6385_v42  ;;  %v496_v30 = vshll.u32 %v392_v7, 16  ;;  %v5441_v42 = vcombine.low %v2941_v22, %v2955_v37  ;;  %v512_v7 = vrot.slane %v510_v59, 5  ;;  %v520_v22 = vrot.slane %v518_v12, 5  ;;  %v400_v37 = vld [vmem:[%s8048_s0 + $0x12c] sm:$0x1] }
  0x37   :  { %5846 = vmatprep.mubr.msk.bf16.mxu1 %vm91_vm1, %v6386_v36  ;;  %5990 = vmatprep.mubr.msk.bf16.mxu0 %vm91_vm1, %v6387_v48  ;;  %v2971_v36 = vshrl.u32 %v5417_v20, 16  ;;  %v485_v48 = vsel %vm6595_vm4, %v480_v38, %v484_v23  ;;  %v503_v2 = vrot.slane %v501_v56, 4  ;;  %v397_v20 = vld [vmem:[%s8048_s0 + $0x120] sm:$0xf]  ;;  %v526_v23 = vrot.slane %v524_v13, 5 }
  0x38   :  { %v498_v39 = vrot.slane %v496_v30, 5  ;;  %v2996_v30 = vrot.slane %v2994_v19, 5  ;;  %v521_v33 = vor.u32 %v520_v22, %v517_v8  ;;  %v2991_v34 = vor.u32 %v2990_v29, %v2987_v28  ;;  %v401_v8 = vld [vmem:[%s8048_s0 + $0x130] sm:$0xf]  ;;  %v402_v13 = vld [vmem:[%s8048_s0 + $0x134] sm:$0x1] }
  0x39   :  { %v2973_v50 = vrot.slane %v2971_v36, 4  ;;  %v507_v11 = vor.u32 %v506_v3, %v503_v2  ;;  %v3008_v36 = vshll.u32 %v5422_v14, 16  ;;  %v529_v38 = vshrl.u32 %v397_v20, 16  ;;  %v403_v14 = vld [vmem:[%s8048_s0 + $0x138] sm:$0xf] }
  0x3a   :  { %v499_v0 = vsel %vm6595_vm4, %v494_v53, %v498_v39  ;;  %v522_v39 = vrot.slane %v521_v33, 4  ;;  %v532_v40 = vshll.u32 %v397_v20, 16  ;;  %v538_v41 = vshll.u32 %v398_v26, 16  ;;  %v5425_v53 = vld [vmem:[%s8048_s0 + $0x130] sm:$0xf] }
  0x3b   :  { %v5114_v6 = vcombine.low %v485_v48, %v499_v0  ;;  %v2992_v44 = vrot.slane %v2991_v34, 4  ;;  %v3010_v45 = vrot.slane %v3008_v36, 5  ;;  %v531_v46 = vrot.slane %v529_v38, 4  ;;  %v404_v22 = vld [vmem:[%s8048_s0 + $0x13c] sm:$0x1] }
  0x3c   :  { %v527_v48 = vsel %vm6595_vm4, %v522_v39, %v526_v23  ;;  %v3013_v59 = vshrl.u32 %v5423_v43, 16  ;;  %v3016_v60 = vshll.u32 %v5423_v43, 16  ;;  %v3022_v2 = vshll.u32 %v5424_v47, 16  ;;  %v5429_v38 = vld [vmem:[%s8048_s0 + $0x140] sm:$0xf] }
  0x3d   :  { %v2997_v55 = vsel %vm6595_vm4, %v2992_v44, %v2996_v30  ;;  %v3027_v3 = vshrl.u32 %v5425_v53, 16  ;;  %v3030_v19 = vshll.u32 %v5425_v53, 16  ;;  %v557_v23 = vshrl.u32 %v401_v8, 16  ;;  %v5427_v30 = vld [vmem:[%s8048_s0 + $0x138] sm:$0xf] }
  0x3e   :  { %5847 = vmatmul.mubr.msk.bf16.gmra.mrb[12].mxu1 %vm91_vm1, %v6388_v21  ;;  %5991 = vmatmul.mubr.msk.bf16.gmra.mrb[12].mxu0 %vm91_vm1, %v6389_v27  ;;  %v508_v21 = vrot.slane %v507_v11, 4  ;;  %v3024_v11 = vrot.slane %v3022_v2, 5  ;;  %v566_v28 = vshll.u32 %v402_v13, 16  ;;  %v571_v29 = vshrl.u32 %v403_v14, 16  ;;  %v5430_v43 = vld [vmem:[%s8048_s0 + $0x144] sm:$0x1] }
  0x3f   :  { %5852 = vmatprep.mubr.msk.bf16.mxu1 %vm91_vm1, %v6627_v25  ;;  %5996 = vmatprep.mubr.msk.bf16.mxu0 %vm91_vm1, %v6660_v49  ;;  %v2976_v25 = vrot.slane %v2974_v51, 5  ;;  %v540_v51 = vrot.slane %v538_v41, 5  ;;  %v3029_v12 = vrot.slane %v3027_v3, 4  ;;  %v574_v41 = vshll.u32 %v403_v14, 16  ;;  %v405_v47 = vld [vmem:[%s8048_s0 + $0x140] sm:$0xf] }
  0x40   :  { %v513_v32 = vsel %vm6595_vm4, %v508_v21, %v512_v7  ;;  %v3018_v7 = vrot.slane %v3016_v60, 5  ;;  %v3036_v21 = vshll.u32 %v5426_v1, 16  ;;  %v406_v53 = vld [vmem:[%s8048_s0 + $0x144] sm:$0x1]  ;;  %v3058_v1 = vshll.u32 %v5429_v38, 16 }
  0x41   :  { %v2977_v49 = vor.u32 %v2976_v25, %v2973_v50  ;;  %v534_v50 = vrot.slane %v532_v40, 5  ;;  %v5115_v54 = vcombine.low %v513_v32, %v527_v48  ;;  %v559_v32 = vrot.slane %v557_v23, 4  ;;  %v408_v3 = vld [vmem:[%s8048_s0 + $0x14c] sm:$0x1] }
  0x42   :  { %v573_v40 = vrot.slane %v571_v29, 4  ;;  %v3064_v2 = vshll.u32 %v5430_v43, 16  ;;  %v5432_v14 = vld [vmem:[%s8048_s0 + $0x14c] sm:$0x1]  ;;  %v410_v43 = vld [vmem:[%s8048_s0 + $0x154] sm:$0x1] }
  0x43   :  { %v2978_v16 = vrot.slane %v2977_v49, 4  ;;  %v535_v25 = vor.u32 %v534_v50, %v531_v46  ;;  %v3015_v49 = vrot.slane %v3013_v59, 4  ;;  %v576_v50 = vrot.slane %v574_v41, 5 }
  0x45   :  { %v2983_v27 = vsel %vm6595_vm4, %v2978_v16, %v2982_v58  ;;  %v552_v58 = vshll.u32 %v400_v37, 16  ;;  %v536_v5 = vrot.slane %v535_v25, 4  ;;  %v3019_v18 = vor.u32 %v3018_v7, %v3015_v49  ;;  %v407_v25 = vld [vmem:[%s8048_s0 + $0x148] sm:$0xf] }
  0x46   :  { %5853 = vmatmul.mubr.msk.bf16.vlgmr.msra.gmra.mrb[0].mxu1 %vm91_vm1, %v6691_v15  ;;  %v399_v15 = vld [vmem:[%s8048_s0 + $0x128] sm:$0xf]  ;;  %5997 = vmatmul.mubr.msk.bf16.vlgmr.msra.gmra.mrb[0].mxu0 %vm91_vm1, %v5441_v42  ;;  %v5442_v31 = vcombine.low %v2969_v10, %v2983_v27  ;;  %v3032_v27 = vrot.slane %v3030_v19, 5  ;;  %v568_v37 = vrot.slane %v566_v28, 5  ;;  %v577_v60 = vor.u32 %v576_v50, %v573_v40 }
  0x47   :  { %5869 = vmatpush3.bf16.msra.mxu1 %v6671_v63  ;;  %5856 = vmatprep.mubr.msk.bf16.mxu1 %vm91_vm1, %v5114_v6  ;;  %v3001_v63 = vrot.slane %v2999_v24, 4  ;;  %v543_v42 = vshrl.u32 %v399_v15, 16  ;;  %v546_v57 = vshll.u32 %v399_v15, 16  ;;  %v554_v6 = vrot.slane %v552_v58, 5 }
  0x48   :  { %6013 = vmatpush3.bf16.msra.mxu0 %v6678_v4  ;;  %6000 = vmatprep.mubr.msk.bf16.mxu0 %vm91_vm1, %v5442_v31  ;;  %v3004_v4 = vrot.slane %v3002_v35, 5  ;;  %v541_v17 = vsel %vm6595_vm4, %v536_v5, %v540_v51  ;;  %v560_v24 = vshll.u32 %v401_v8, 16  ;;  %v3020_v26 = vrot.slane %v3019_v18, 4 }
  0x49   :  { %v545_v52 = vrot.slane %v543_v42, 4  ;;  %v548_v0 = vrot.slane %v546_v57, 5  ;;  %v3038_v31 = vrot.slane %v3036_v21, 5  ;;  %v3033_v36 = vor.u32 %v3032_v27, %v3029_v12 }
  0x4a   :  { %v3005_v56 = vor.u32 %v3004_v4, %v3001_v63  ;;  %v562_v33 = vrot.slane %v560_v24, 5  ;;  %v5428_v63 = vld [vmem:[%s8048_s0 + $0x13c] sm:$0x1]  ;;  %v3025_v35 = vsel %vm6595_vm4, %v3020_v26, %v3024_v11  ;;  %v580_v42 = vshll.u32 %v404_v22, 16 }
  0x4b   :  { %v549_v10 = vor.u32 %v548_v0, %v545_v52  ;;  %v3034_v44 = vrot.slane %v3033_v36, 4  ;;  %v3041_v4 = vshrl.u32 %v5427_v30, 16  ;;  %v3050_v46 = vshll.u32 %v5428_v63, 16 }
  0x4c   :  { %v3006_v62 = vrot.slane %v3005_v56, 4  ;;  %v563_v39 = vor.u32 %v562_v33, %v559_v32  ;;  %v582_v51 = vrot.slane %v580_v42, 5  ;;  %v3055_v52 = vshrl.u32 %v5429_v38, 16  ;;  %v5434_v32 = vld [vmem:[%s8048_s0 + $0x154] sm:$0x1] }
  0x4d   :  { %v550_v20 = vrot.slane %v549_v10, 4  ;;  %v3052_v57 = vrot.slane %v3050_v46, 5  ;;  %v585_v5 = vshrl.u32 %v405_v47, 16  ;;  %v588_v49 = vshll.u32 %v405_v47, 16  ;;  %v409_v38 = vld [vmem:[%s8048_s0 + $0x150] sm:$0xf] }
  0x4e   :  { %5857 = vmatmul.mubr.msk.bf16.gmra.mrb[4].mxu1 %vm91_vm1, %v5115_v54  ;;  %v3011_v9 = vsel %vm6595_vm4, %v3006_v62, %v3010_v45  ;;  %v3044_v45 = vshll.u32 %v5427_v30, 16  ;;  %v564_v48 = vrot.slane %v563_v39, 4  ;;  %v3039_v54 = vsel %vm6595_vm4, %v3034_v44, %v3038_v31  ;;  %v6855_v30 = vld [vmem:[%s8047_s1 + $0x10] sm:$0xf]  ;;  %v411_v44 = vld [vmem:[%s8048_s0 + $0x158] sm:$0xf] }
  0x4f   :  { %v5443_v16 = vcombine.low %v2997_v55, %v3011_v9  ;;  %v555_v15 = vsel %vm6595_vm4, %v550_v20, %v554_v6  ;;  %v3043_v55 = vrot.slane %v3041_v4, 4  ;;  %v5444_v58 = vcombine.low %v3025_v35, %v3039_v54  ;;  %v5431_v9 = vld [vmem:[%s8048_s0 + $0x148] sm:$0xf]  ;;  %v5433_v20 = vld [vmem:[%s8048_s0 + $0x150] sm:$0xf]  ;;  %6346 = vmatprep.subr.msk.bf16.mxu1 %vm116_vm0, %v6855_v30 }
  0x50   :  { %v5116_v34 = vcombine.low %v541_v17, %v555_v15  ;;  %v3046_v56 = vrot.slane %v3044_v45, 5  ;;  %v569_v59 = vsel %vm6595_vm4, %v564_v48, %v568_v37  ;;  %v3057_v62 = vrot.slane %v3055_v52, 4  ;;  %v6879_v48 = vld [vmem:[%s8047_s1 + $0x30] sm:$0xf]  ;;  %v412_v52 = vld [vmem:[%s8048_s0 + $0x15c] sm:$0x1] }
  0x51   :  { %6001 = vmatmul.mubr.msk.bf16.gmra.mrb[4].mxu0 %vm91_vm1, %v5443_v16  ;;  %v578_v6 = vrot.slane %v577_v60, 4  ;;  %v594_v7 = vshll.u32 %v406_v53, 16  ;;  %v599_v8 = vshrl.u32 %v407_v25, 16  ;;  %v3060_v11 = vrot.slane %v3058_v1, 5  ;;  %6354 = vmatprep.subr.msk.bf16.mxu0 %vm116_vm0, %v6879_v48  ;;  %v5436_v1 = vld [vmem:[%s8048_s0 + $0x15c] sm:$0x1] }
  0x52   :  { %5860 = vmatprep.mubr.msk.bf16.mxu1 %vm91_vm1, %v5116_v34  ;;  %v3047_v0 = vor.u32 %v3046_v56, %v3043_v55  ;;  %6004 = vmatprep.mubr.msk.bf16.mxu0 %vm91_vm1, %v5444_v58  ;;  %v3066_v12 = vrot.slane %v3064_v2, 5  ;;  %v587_v13 = vrot.slane %v585_v5, 4  ;;  %v590_v17 = vrot.slane %v588_v49, 5  ;;  %v5435_v58 = vld [vmem:[%s8048_s0 + $0x158] sm:$0xf] }
  0x53   :  { %v583_v16 = vsel %vm6595_vm4, %v578_v6, %v582_v51  ;;  %v596_v18 = vrot.slane %v594_v7, 5  ;;  %v601_v19 = vrot.slane %v599_v8, 4  ;;  %v3061_v23 = vor.u32 %v3060_v11, %v3057_v62  ;;  %v5437_v49 = vld [vmem:[%s8048_s0 + $0x160] sm:$0xf]  ;;  %v5438_v11 = vld [vmem:[%s8048_s0 + $0x164] sm:$0x1] }
  0x54   :  { %v3048_v10 = vrot.slane %v3047_v0, 4  ;;  %v5117_v21 = vcombine.low %v569_v59, %v583_v16  ;;  %v602_v24 = vshll.u32 %v407_v25, 16  ;;  %v591_v26 = vor.u32 %v590_v17, %v587_v13  ;;  %v5128_v17 = vld [vmem:[%s8048_s0 + $0x48] sm:$0xf] }
  0x55   :  { %v608_v27 = vshll.u32 %v408_v3, 16  ;;  %v3069_v28 = vshrl.u32 %v5431_v9, 16  ;;  %v3072_v29 = vshll.u32 %v5431_v9, 16  ;;  %v3062_v15 = vrot.slane %v3061_v23, 4 }
  0x56   :  { %v3053_v22 = vsel %vm6595_vm4, %v3048_v10, %v3052_v57  ;;  %5861 = vmatmul.mubr.msk.bf16.gmra.mrb[8].mxu1 %vm91_vm1, %v5117_v21  ;;  %v604_v31 = vrot.slane %v602_v24, 5  ;;  %v3078_v33 = vshll.u32 %v5432_v14, 16  ;;  %v3083_v63 = vshrl.u32 %v5433_v20, 16 }
  0x57   :  { %v592_v34 = vrot.slane %v591_v26, 4  ;;  %v610_v35 = vrot.slane %v608_v27, 5  ;;  %v3071_v36 = vrot.slane %v3069_v28, 4  ;;  %v3074_v37 = vrot.slane %v3072_v29, 5  ;;  %v5130_v28 = vld [vmem:[%s8048_s0 + $0x50] sm:$0xf] }
  0x58   :  { %v3067_v39 = vsel %vm6595_vm4, %v3062_v15, %v3066_v12  ;;  %v605_v40 = vor.u32 %v604_v31, %v601_v19  ;;  %v3080_v41 = vrot.slane %v3078_v33, 5  ;;  %v3085_v42 = vrot.slane %v3083_v63, 4 }
  0x59   :  { %v5445_v4 = vcombine.low %v3053_v22, %v3067_v39  ;;  %v597_v45 = vsel %vm6595_vm4, %v592_v34, %v596_v18  ;;  %v3075_v46 = vor.u32 %v3074_v37, %v3071_v36  ;;  %v3086_v47 = vshll.u32 %v5433_v20, 16  ;;  %v5129_v22 = vld [vmem:[%s8048_s0 + $0x4c] sm:$0x1] }
  0x5a   :  { %v606_v50 = vrot.slane %v605_v40, 4  ;;  %v3092_v51 = vshll.u32 %v5434_v32, 16  ;;  %v613_v53 = vshrl.u32 %v409_v38, 16  ;;  %v616_v54 = vshll.u32 %v409_v38, 16 }
  0x5b   :  { %6005 = vmatmul.mubr.msk.bf16.gmra.mrb[8].mxu0 %vm91_vm1, %v5445_v4  ;;  %v3076_v55 = vrot.slane %v3075_v46, 4  ;;  %v3088_v56 = vrot.slane %v3086_v47, 5  ;;  %v622_v57 = vshll.u32 %v410_v43, 16  ;;  %v627_v25 = vshrl.u32 %v411_v44, 16 }
  0x5c   :  { %v611_v59 = vsel %vm6595_vm4, %v606_v50, %v610_v35  ;;  %v3094_v60 = vrot.slane %v3092_v51, 5  ;;  %v615_v62 = vrot.slane %v613_v53, 4  ;;  %v618_v0 = vrot.slane %v616_v54, 5  ;;  %v5131_v35 = vld [vmem:[%s8048_s0 + $0x54] sm:$0x1] }
  0x5d   :  { %v5118_v2 = vcombine.low %v597_v45, %v611_v59  ;;  %v3081_v3 = vsel %vm6595_vm4, %v3076_v55, %v3080_v41  ;;  %v3089_v5 = vor.u32 %v3088_v56, %v3085_v42  ;;  %v624_v6 = vrot.slane %v622_v57, 5  ;;  %v5456_v41 = vld [vmem:[%s8048_s0 + $0x50] sm:$0xf]  ;;  %v5457_v45 = vld [vmem:[%s8048_s0 + $0x54] sm:$0x1] }
  0x5e   :  { %v619_v7 = vor.u32 %v618_v0, %v615_v62  ;;  %v629_v8 = vrot.slane %v627_v25, 4  ;;  %v630_v9 = vshll.u32 %v411_v44, 16  ;;  %v636_v10 = vshll.u32 %v412_v52, 16  ;;  %v5458_v52 = vld [vmem:[%s8048_s0 + $0x58] sm:$0xf] }
  0x5f   :  { %5864 = vmatprep.mubr.msk.bf16.mxu1 %vm91_vm1, %v5118_v2  ;;  %v3090_v12 = vrot.slane %v3089_v5, 4  ;;  %v3097_v13 = vshrl.u32 %v5435_v58, 16  ;;  %v3100_v14 = vshll.u32 %v5435_v58, 16  ;;  %v3106_v16 = vshll.u32 %v5436_v1, 16  ;;  %v5459_v0 = vld [vmem:[%s8048_s0 + $0x5c] sm:$0x1] }
  0x60   :  { %v620_v18 = vrot.slane %v619_v7, 4  ;;  %v632_v19 = vrot.slane %v630_v9, 5  ;;  %v638_v20 = vrot.slane %v636_v10, 5  ;;  %v3111_v21 = vshrl.u32 %v5437_v49, 16  ;;  %v5132_v7 = vld [vmem:[%s8048_s0 + $0x58] sm:$0xf] }
  0x61   :  { %v3095_v23 = vsel %vm6595_vm4, %v3090_v12, %v3094_v60  ;;  %v3099_v24 = vrot.slane %v3097_v13, 4  ;;  %v3102_v26 = vrot.slane %v3100_v14, 5  ;;  %v3108_v27 = vrot.slane %v3106_v16, 5  ;;  %v5133_v12 = vld [vmem:[%s8048_s0 + $0x5c] sm:$0x1] }
  0x62   :  { %v5446_v29 = vcombine.low %v3081_v3, %v3095_v23  ;;  %v625_v15 = vsel %vm6595_vm4, %v620_v18, %v624_v6  ;;  %v633_v31 = vor.u32 %v632_v19, %v629_v8  ;;  %v3113_v32 = vrot.slane %v3111_v21, 4  ;;  %v5134_v13 = vld [vmem:[%s8048_s0 + $0x60] sm:$0xf]  ;;  %v5135_v21 = vld [vmem:[%s8048_s0 + $0x64] sm:$0x1] }
  0x63   :  { %v3103_v33 = vor.u32 %v3102_v26, %v3099_v24  ;;  %v3114_v63 = vshll.u32 %v5437_v49, 16  ;;  %v3120_v34 = vshll.u32 %v5438_v11, 16  ;;  %v839_v36 = vshrl.u32 %v5128_v17, 16 }
  0x64   :  { %6008 = vmatprep.mubr.msk.bf16.mxu0 %vm91_vm1, %v5446_v29  ;;  %v634_v37 = vrot.slane %v633_v31, 4  ;;  %v842_v38 = vshll.u32 %v5128_v17, 16  ;;  %v848_v39 = vshll.u32 %v5129_v22, 16  ;;  %v853_v40 = vshrl.u32 %v5130_v28, 16  ;;  %v5460_v29 = vld [vmem:[%s8048_s0 + $0x60] sm:$0xf] }
  0x65   :  { %v3104_v42 = vrot.slane %v3103_v33, 4  ;;  %v3116_v43 = vrot.slane %v3114_v63, 5  ;;  %v3122_v44 = vrot.slane %v3120_v34, 5  ;;  %v841_v4 = vrot.slane %v839_v36, 4  ;;  %v5461_v63 = vld [vmem:[%s8048_s0 + $0x64] sm:$0x1] }
  0x66   :  { %v639_v46 = vsel %vm6595_vm4, %v634_v37, %v638_v20  ;;  %v844_v47 = vrot.slane %v842_v38, 5  ;;  %v850_v50 = vrot.slane %v848_v39, 5  ;;  %v855_v51 = vrot.slane %v853_v40, 4  ;;  %v5462_v38 = vld [vmem:[%s8048_s0 + $0x68] sm:$0xf] }
  0x67   :  { %v5119_v53 = vcombine.low %v625_v15, %v639_v46  ;;  %v3109_v54 = vsel %vm6595_vm4, %v3104_v42, %v3108_v27  ;;  %v3117_v55 = vor.u32 %v3116_v43, %v3113_v32  ;;  %v856_v56 = vshll.u32 %v5130_v28, 16 }
  0x68   :  { %v845_v57 = vor.u32 %v844_v47, %v841_v4  ;;  %v862_v25 = vshll.u32 %v5131_v35, 16  ;;  %v3323_v58 = vshrl.u32 %v5456_v41, 16  ;;  %v3326_v59 = vshll.u32 %v5456_v41, 16 }
  0x69   :  { %5865 = vmatmul.mubr.msk.bf16.gmra.mrb[12].mxu1 %vm91_vm1, %v5119_v53  ;;  %v3118_v60 = vrot.slane %v3117_v55, 4  ;;  %v858_v62 = vrot.slane %v856_v56, 5  ;;  %v3332_v1 = vshll.u32 %v5457_v45, 16  ;;  %v3337_v2 = vshrl.u32 %v5458_v52, 16 }
  0x6a   :  { %v846_v3 = vrot.slane %v845_v57, 4  ;;  %v864_v5 = vrot.slane %v862_v25, 5  ;;  %v3325_v6 = vrot.slane %v3323_v58, 4  ;;  %v3328_v49 = vrot.slane %v3326_v59, 5  ;;  %v5136_v57 = vld [vmem:[%s8048_s0 + $0x68] sm:$0xf] }
  0x6b   :  { %v3123_v8 = vsel %vm6595_vm4, %v3118_v60, %v3122_v44  ;;  %v859_v9 = vor.u32 %v858_v62, %v855_v51  ;;  %v3334_v10 = vrot.slane %v3332_v1, 5  ;;  %v3339_v11 = vrot.slane %v3337_v2, 4  ;;  %v5463_v51 = vld [vmem:[%s8048_s0 + $0x6c] sm:$0x1] }
  0x6c   :  { %v5447_v14 = vcombine.low %v3109_v54, %v3123_v8  ;;  %v851_v16 = vsel %vm6595_vm4, %v846_v3, %v850_v50  ;;  %v3329_v17 = vor.u32 %v3328_v49, %v3325_v6  ;;  %v3340_v18 = vshll.u32 %v5458_v52, 16  ;;  %v5137_v62 = vld [vmem:[%s8048_s0 + $0x6c] sm:$0x1] }
  0x6d   :  { %v860_v19 = vrot.slane %v859_v9, 4  ;;  %v3346_v20 = vshll.u32 %v5459_v0, 16  ;;  %v867_v22 = vshrl.u32 %v5132_v7, 16  ;;  %v870_v23 = vshll.u32 %v5132_v7, 16  ;;  %v5139_v7 = vld [vmem:[%s8048_s0 + $0x74] sm:$0x1] }
  0x6e   :  { %6009 = vmatmul.mubr.msk.bf16.gmra.mrb[12].mxu0 %vm91_vm1, %v5447_v14  ;;  %v3330_v24 = vrot.slane %v3329_v17, 4  ;;  %v3342_v26 = vrot.slane %v3340_v18, 5  ;;  %v876_v27 = vshll.u32 %v5133_v12, 16  ;;  %v881_v28 = vshrl.u32 %v5134_v13, 16  ;;  %v5465_v18 = vld [vmem:[%s8048_s0 + $0x74] sm:$0x1] }
  0x6f   :  { %v865_v15 = vsel %vm6595_vm4, %v860_v19, %v864_v5  ;;  %v3348_v31 = vrot.slane %v3346_v20, 5  ;;  %v869_v32 = vrot.slane %v867_v22, 4  ;;  %v872_v33 = vrot.slane %v870_v23, 5  ;;  %v5138_v5 = vld [vmem:[%s8048_s0 + $0x70] sm:$0xf] }
  0x70   :  { %v5161_v34 = vcombine.low %v851_v16, %v865_v15  ;;  %v3335_v35 = vsel %vm6595_vm4, %v3330_v24, %v3334_v10  ;;  %v3343_v36 = vor.u32 %v3342_v26, %v3339_v11  ;;  %v878_v37 = vrot.slane %v876_v27, 5  ;;  %v5466_v23 = vld [vmem:[%s8048_s0 + $0x78] sm:$0xf] }
  0x71   :  { %v873_v39 = vor.u32 %v872_v33, %v869_v32  ;;  %v883_v40 = vrot.slane %v881_v28, 4  ;;  %v884_v41 = vshll.u32 %v5134_v13, 16  ;;  %v890_v42 = vshll.u32 %v5135_v21, 16  ;;  %v5464_v13 = vld [vmem:[%s8048_s0 + $0x70] sm:$0xf] }
  0x72   :  { %5870 = vmatprep.mubr.msk.bf16.mxu1 %vm91_vm1, %v5161_v34  ;;  %v3344_v43 = vrot.slane %v3343_v36, 4  ;;  %v3351_v44 = vshrl.u32 %v5460_v29, 16  ;;  %v3354_v4 = vshll.u32 %v5460_v29, 16  ;;  %v3360_v45 = vshll.u32 %v5461_v63, 16  ;;  %v5467_v29 = vld [vmem:[%s8048_s0 + $0x7c] sm:$0x1] }
  0x73   :  { %v874_v46 = vrot.slane %v873_v39, 4  ;;  %v886_v47 = vrot.slane %v884_v41, 5  ;;  %v892_v50 = vrot.slane %v890_v42, 5  ;;  %v3365_v52 = vshrl.u32 %v5462_v38, 16  ;;  %v5140_v63 = vld [vmem:[%s8048_s0 + $0x78] sm:$0xf] }
  0x74   :  { %v3349_v53 = vsel %vm6595_vm4, %v3344_v43, %v3348_v31  ;;  %v3353_v54 = vrot.slane %v3351_v44, 4  ;;  %v3356_v55 = vrot.slane %v3354_v4, 5  ;;  %v3362_v56 = vrot.slane %v3360_v45, 5  ;;  %v5142_v43 = vld [vmem:[%s8048_s0 + $0x80] sm:$0xf] }
  0x75   :  { %v5489_v25 = vcombine.low %v3335_v35, %v3349_v53  ;;  %v879_v58 = vsel %vm6595_vm4, %v874_v46, %v878_v37  ;;  %v887_v59 = vor.u32 %v886_v47, %v883_v40  ;;  %v3367_v60 = vrot.slane %v3365_v52, 4  ;;  %v5143_v52 = vld [vmem:[%s8048_s0 + $0x84] sm:$0x1] }
  0x76   :  { %v3357_v0 = vor.u32 %v3356_v55, %v3353_v54  ;;  %v3368_v1 = vshll.u32 %v5462_v38, 16  ;;  %v3374_v2 = vshll.u32 %v5463_v51, 16  ;;  %v1312_v3 = vsel %vm116_vm0, %v6855_v30, 0  ;;  %v5141_v38 = vld [vmem:[%s8048_s0 + $0x7c] sm:$0x1] }
  0x77   :  { %6014 = vmatprep.mubr.msk.bf16.mxu0 %vm91_vm1, %v5489_v25  ;;  %v888_v6 = vrot.slane %v887_v59, 4  ;;  %v3796_v49 = vsel %vm116_vm0, %v6879_v48, 0  ;;  %v895_v8 = vshrl.u32 %v5136_v57, 16  ;;  %v898_v9 = vshll.u32 %v5136_v57, 16  ;;  %v5468_v54 = vld [vmem:[%s8048_s0 + $0x80] sm:$0xf] }
  0x78   :  { %v3358_v10 = vrot.slane %v3357_v0, 4  ;;  %v3370_v11 = vrot.slane %v3368_v1, 5  ;;  %v3376_v12 = vrot.slane %v3374_v2, 5  ;;  %v904_v30 = vshll.u32 %v5137_v62, 16  ;;  %v5470_v1 = vld [vmem:[%s8048_s0 + $0x88] sm:$0xf] }
  0x79   :  { %v893_v14 = vsel %vm6595_vm4, %v888_v6, %v892_v50  ;;  %v897_v16 = vrot.slane %v895_v8, 4  ;;  %v900_v17 = vrot.slane %v898_v9, 5  ;;  %v909_v48 = vshrl.u32 %v5138_v5, 16 }
  0x7a   :  { %v5162_v19 = vcombine.low %v879_v58, %v893_v14  ;;  %v3363_v20 = vsel %vm6595_vm4, %v3358_v10, %v3362_v56  ;;  %v3371_v21 = vor.u32 %v3370_v11, %v3367_v60  ;;  %v906_v22 = vrot.slane %v904_v30, 5  ;;  %v5469_v58 = vld [vmem:[%s8048_s0 + $0x84] sm:$0x1]  ;;  %v5144_v14 = vld [vmem:[%s8048_s0 + $0x168] sm:$0xf] }
  0x7b   :  { %v901_v24 = vor.u32 %v900_v17, %v897_v16  ;;  %v911_v26 = vrot.slane %v909_v48, 4  ;;  %v912_v27 = vshll.u32 %v5138_v5, 16  ;;  %v918_v28 = vshll.u32 %v5139_v7, 16 }
  0x7c   :  { %5871 = vmatmul.mubr.msk.bf16.vlgmr.msra.gmra.mrb[0].mxu1 %vm91_vm1, %v5162_v19  ;;  %v3372_v15 = vrot.slane %v3371_v21, 4  ;;  %v3379_v31 = vshrl.u32 %v5464_v13, 16  ;;  %v3382_v32 = vshll.u32 %v5464_v13, 16  ;;  %v3388_v33 = vshll.u32 %v5465_v18, 16  ;;  %v5145_v19 = vld [vmem:[%s8048_s0 + $0x16c] sm:$0x1] }
  0x7d   :  { %5887 = vmatpush3.bf16.msra.mxu1 %v1312_v3  ;;  %v902_v34 = vrot.slane %v901_v24, 4  ;;  %v914_v35 = vrot.slane %v912_v27, 5  ;;  %v920_v36 = vrot.slane %v918_v28, 5  ;;  %v3393_v37 = vshrl.u32 %v5466_v23, 16  ;;  %v5146_v24 = vld [vmem:[%s8048_s0 + $0x170] sm:$0xf] }
  0x7e   :  { %v3377_v39 = vsel %vm6595_vm4, %v3372_v15, %v3376_v12  ;;  %v3381_v40 = vrot.slane %v3379_v31, 4  ;;  %v3384_v41 = vrot.slane %v3382_v32, 5  ;;  %v3390_v42 = vrot.slane %v3388_v33, 5  ;;  %v5471_v12 = vld [vmem:[%s8048_s0 + $0x8c] sm:$0x1] }
  0x7f   :  { %v5490_v44 = vcombine.low %v3363_v20, %v3377_v39  ;;  %v907_v4 = vsel %vm6595_vm4, %v902_v34, %v906_v22  ;;  %v915_v45 = vor.u32 %v914_v35, %v911_v26  ;;  %v3395_v46 = vrot.slane %v3393_v37, 4  ;;  %v7058_v15 = vld [vmem:[%s8047_s1 + $0x14] sm:$0xf]  ;;  %v5472_v39 = vld [vmem:[%s8048_s0 + $0x170] sm:$0xf] }
  0x80   :  { %v3385_v47 = vor.u32 %v3384_v41, %v3381_v40  ;;  %v3396_v50 = vshll.u32 %v5466_v23, 16  ;;  %v3402_v51 = vshll.u32 %v5467_v29, 16  ;;  %v923_v53 = vshrl.u32 %v5140_v63, 16  ;;  %v5147_v34 = vld [vmem:[%s8048_s0 + $0x174] sm:$0x1]  ;;  %6347 = vmatprep.subr.msk.bf16.mxu1 %vm116_vm0, %v7058_v15 }
  0x81   :  { %6015 = vmatmul.mubr.msk.bf16.vlgmr.msra.gmra.mrb[0].mxu0 %vm91_vm1, %v5490_v44  ;;  %v916_v55 = vrot.slane %v915_v45, 4  ;;  %v926_v56 = vshll.u32 %v5140_v63, 16  ;;  %v932_v57 = vshll.u32 %v5141_v38, 16  ;;  %v937_v25 = vshrl.u32 %v5142_v43, 16  ;;  %v5473_v40 = vld [vmem:[%s8048_s0 + $0x174] sm:$0x1] }
  0x82   :  { %6031 = vmatpush3.bf16.msra.mxu0 %v3796_v49  ;;  %v3386_v59 = vrot.slane %v3385_v47, 4  ;;  %v3398_v60 = vrot.slane %v3396_v50, 5  ;;  %v3404_v62 = vrot.slane %v3402_v51, 5  ;;  %v925_v0 = vrot.slane %v923_v53, 4  ;;  %v7076_v41 = vld [vmem:[%s8047_s1 + $0x34] sm:$0xf] }
  0x83   :  { %v921_v2 = vsel %vm6595_vm4, %v916_v55, %v920_v36  ;;  %v928_v3 = vrot.slane %v926_v56, 5  ;;  %v934_v5 = vrot.slane %v932_v57, 5  ;;  %v939_v6 = vrot.slane %v937_v25, 4  ;;  %6355 = vmatprep.subr.msk.bf16.mxu0 %vm116_vm0, %v7076_v41  ;;  %v5474_v55 = vld [vmem:[%s8048_s0 + $0x178] sm:$0xf] }
  0x84   :  { %v5163_v7 = vcombine.low %v907_v4, %v921_v2  ;;  %v3391_v8 = vsel %vm6595_vm4, %v3386_v59, %v3390_v42  ;;  %v3399_v9 = vor.u32 %v3398_v60, %v3395_v46  ;;  %v940_v49 = vshll.u32 %v5142_v43, 16  ;;  %v5475_v59 = vld [vmem:[%s8048_s0 + $0x17c] sm:$0x1]  ;;  %v5148_v60 = vld [vmem:[%s8048_s0 + $0x178] sm:$0xf] }
  0x85   :  { %v929_v10 = vor.u32 %v928_v3, %v925_v0  ;;  %v946_v11 = vshll.u32 %v5143_v52, 16  ;;  %v3407_v30 = vshrl.u32 %v5468_v54, 16  ;;  %v3410_v13 = vshll.u32 %v5468_v54, 16  ;;  %v5149_v3 = vld [vmem:[%s8048_s0 + $0x17c] sm:$0x1] }
  0x86   :  { %5874 = vmatprep.mubr.msk.bf16.mxu1 %vm91_vm1, %v5163_v7  ;;  %v3400_v16 = vrot.slane %v3399_v9, 4  ;;  %v942_v17 = vrot.slane %v940_v49, 5  ;;  %v3416_v48 = vshll.u32 %v5469_v58, 16  ;;  %v3421_v18 = vshrl.u32 %v5470_v1, 16 }
  0x87   :  { %v930_v20 = vrot.slane %v929_v10, 4  ;;  %v948_v21 = vrot.slane %v946_v11, 5  ;;  %v3409_v22 = vrot.slane %v3407_v30, 4  ;;  %v3412_v23 = vrot.slane %v3410_v13, 5 }
  0x88   :  { %v3405_v26 = vsel %vm6595_vm4, %v3400_v16, %v3404_v62  ;;  %v943_v27 = vor.u32 %v942_v17, %v939_v6  ;;  %v3418_v28 = vrot.slane %v3416_v48, 5  ;;  %v3423_v29 = vrot.slane %v3421_v18, 4 }
  0x89   :  { %v5491_v31 = vcombine.low %v3391_v8, %v3405_v26  ;;  %v935_v32 = vsel %vm6595_vm4, %v930_v20, %v934_v5  ;;  %v3413_v33 = vor.u32 %v3412_v23, %v3409_v22  ;;  %v3424_v63 = vshll.u32 %v5470_v1, 16  ;;  %v5150_v5 = vld [vmem:[%s8048_s0 + $0x180] sm:$0xf] }
  0x8a   :  { %v944_v35 = vrot.slane %v943_v27, 4  ;;  %v3430_v36 = vshll.u32 %v5471_v12, 16  ;;  %v951_v37 = vshrl.u32 %v5144_v14, 16  ;;  %v954_v38 = vshll.u32 %v5144_v14, 16  ;;  %v5477_v27 = vld [vmem:[%s8048_s0 + $0x184] sm:$0x1] }
  0x8b   :  { %6018 = vmatprep.mubr.msk.bf16.mxu0 %vm91_vm1, %v5491_v31  ;;  %v3414_v42 = vrot.slane %v3413_v33, 4  ;;  %v3426_v43 = vrot.slane %v3424_v63, 5  ;;  %v960_v44 = vshll.u32 %v5145_v19, 16  ;;  %v965_v4 = vshrl.u32 %v5146_v24, 16  ;;  %v5151_v19 = vld [vmem:[%s8048_s0 + $0x184] sm:$0x1] }
  0x8c   :  { %v949_v45 = vsel %vm6595_vm4, %v944_v35, %v948_v21  ;;  %v3432_v46 = vrot.slane %v3430_v36, 5  ;;  %v953_v47 = vrot.slane %v951_v37, 4  ;;  %v956_v50 = vrot.slane %v954_v38, 5  ;;  %v5476_v21 = vld [vmem:[%s8048_s0 + $0x180] sm:$0xf] }
  0x8d   :  { %v5164_v51 = vcombine.low %v935_v32, %v949_v45  ;;  %v3419_v52 = vsel %vm6595_vm4, %v3414_v42, %v3418_v28  ;;  %v3427_v53 = vor.u32 %v3426_v43, %v3423_v29  ;;  %v962_v54 = vrot.slane %v960_v44, 5  ;;  %v5478_v28 = vld [vmem:[%s8048_s0 + $0x188] sm:$0xf]  ;;  %v5479_v44 = vld [vmem:[%s8048_s0 + $0x18c] sm:$0x1] }
  0x8e   :  { %v957_v56 = vor.u32 %v956_v50, %v953_v47  ;;  %v967_v57 = vrot.slane %v965_v4, 4  ;;  %v968_v25 = vshll.u32 %v5146_v24, 16  ;;  %v974_v58 = vshll.u32 %v5147_v34, 16 }
  0x8f   :  { %5875 = vmatmul.mubr.msk.bf16.gmra.mrb[4].mxu1 %vm91_vm1, %v5164_v51  ;;  %v3428_v62 = vrot.slane %v3427_v53, 4  ;;  %v3435_v0 = vshrl.u32 %v5472_v39, 16  ;;  %v3438_v1 = vshll.u32 %v5472_v39, 16  ;;  %v3444_v2 = vshll.u32 %v5473_v40, 16  ;;  %v5153_v53 = vld [vmem:[%s8048_s0 + $0x18c] sm:$0x1] }
  0x90   :  { %v958_v6 = vrot.slane %v957_v56, 4  ;;  %v970_v7 = vrot.slane %v968_v25, 5  ;;  %v976_v8 = vrot.slane %v974_v58, 5  ;;  %v3449_v9 = vshrl.u32 %v5474_v55, 16 }
  0x91   :  { %v3433_v49 = vsel %vm6595_vm4, %v3428_v62, %v3432_v46  ;;  %v3437_v10 = vrot.slane %v3435_v0, 4  ;;  %v3440_v11 = vrot.slane %v3438_v1, 5  ;;  %v3446_v12 = vrot.slane %v3444_v2, 5  ;;  %v5152_v46 = vld [vmem:[%s8048_s0 + $0x188] sm:$0xf] }
  0x92   :  { %v5492_v30 = vcombine.low %v3419_v52, %v3433_v49  ;;  %v963_v13 = vsel %vm6595_vm4, %v958_v6, %v962_v54  ;;  %v971_v14 = vor.u32 %v970_v7, %v967_v57  ;;  %v3451_v16 = vrot.slane %v3449_v9, 4  ;;  %v5154_v62 = vld [vmem:[%s8048_s0 + $0x190] sm:$0xf] }
  0x93   :  { %v3441_v17 = vor.u32 %v3440_v11, %v3437_v10  ;;  %v3452_v48 = vshll.u32 %v5474_v55, 16  ;;  %v3458_v18 = vshll.u32 %v5475_v59, 16  ;;  %v979_v20 = vshrl.u32 %v5148_v60, 16  ;;  %v5480_v49 = vld [vmem:[%s8048_s0 + $0x190] sm:$0xf] }
  0x94   :  { %6019 = vmatmul.mubr.msk.bf16.gmra.mrb[4].mxu0 %vm91_vm1, %v5492_v30  ;;  %v972_v22 = vrot.slane %v971_v14, 4  ;;  %v982_v23 = vshll.u32 %v5148_v60, 16  ;;  %v988_v24 = vshll.u32 %v5149_v3, 16  ;;  %v993_v26 = vshrl.u32 %v5150_v5, 16 }
  0x95   :  { %v3442_v29 = vrot.slane %v3441_v17, 4  ;;  %v3454_v31 = vrot.slane %v3452_v48, 5  ;;  %v3460_v32 = vrot.slane %v3458_v18, 5  ;;  %v981_v33 = vrot.slane %v979_v20, 4  ;;  %v5481_v17 = vld [vmem:[%s8048_s0 + $0x194] sm:$0x1] }
  0x96   :  { %v977_v63 = vsel %vm6595_vm4, %v972_v22, %v976_v8  ;;  %v984_v34 = vrot.slane %v982_v23, 5  ;;  %v990_v35 = vrot.slane %v988_v24, 5  ;;  %v995_v36 = vrot.slane %v993_v26, 4 }
  0x97   :  { %v5165_v37 = vcombine.low %v963_v13, %v977_v63  ;;  %v3447_v38 = vsel %vm6595_vm4, %v3442_v29, %v3446_v12  ;;  %v3455_v39 = vor.u32 %v3454_v31, %v3451_v16  ;;  %v996_v40 = vshll.u32 %v5150_v5, 16  ;;  %v5155_v5 = vld [vmem:[%s8048_s0 + $0x194] sm:$0x1]  ;;  %v5157_v63 = vld [vmem:[%s8048_s0 + $0x19c] sm:$0x1] }
  0x98   :  { %v985_v42 = vor.u32 %v984_v34, %v981_v33  ;;  %v1002_v43 = vshll.u32 %v5151_v19, 16  ;;  %v3463_v4 = vshrl.u32 %v5476_v21, 16  ;;  %v3466_v45 = vshll.u32 %v5476_v21, 16  ;;  %v5482_v21 = vld [vmem:[%s8048_s0 + $0x198] sm:$0xf] }
  0x99   :  { %5878 = vmatprep.mubr.msk.bf16.mxu1 %vm91_vm1, %v5165_v37  ;;  %v3456_v47 = vrot.slane %v3455_v39, 4  ;;  %v998_v50 = vrot.slane %v996_v40, 5  ;;  %v3472_v51 = vshll.u32 %v5477_v27, 16  ;;  %v3477_v52 = vshrl.u32 %v5478_v28, 16  ;;  %v5483_v27 = vld [vmem:[%s8048_s0 + $0x19c] sm:$0x1] }
  0x9a   :  { %v986_v54 = vrot.slane %v985_v42, 4  ;;  %v1004_v55 = vrot.slane %v1002_v43, 5  ;;  %v3465_v56 = vrot.slane %v3463_v4, 4  ;;  %v3468_v57 = vrot.slane %v3466_v45, 5  ;;  %v5158_v34 = vld [vmem:[%s8048_s0 + $0x1a0] sm:$0xf] }
  0x9b   :  { %v3461_v25 = vsel %vm6595_vm4, %v3456_v47, %v3460_v32  ;;  %v999_v58 = vor.u32 %v998_v50, %v995_v36  ;;  %v3474_v59 = vrot.slane %v3472_v51, 5  ;;  %v3479_v60 = vrot.slane %v3477_v52, 4  ;;  %v5159_v52 = vld [vmem:[%s8048_s0 + $0x1a4] sm:$0x1] }
  0x9c   :  { %v5493_v0 = vcombine.low %v3447_v38, %v3461_v25  ;;  %v991_v1 = vsel %vm6595_vm4, %v986_v54, %v990_v35  ;;  %v3469_v2 = vor.u32 %v3468_v57, %v3465_v56  ;;  %v3480_v3 = vshll.u32 %v5478_v28, 16  ;;  %v5156_v28 = vld [vmem:[%s8048_s0 + $0x198] sm:$0xf]  ;;  %v5484_v54 = vld [vmem:[%s8048_s0 + $0x1a0] sm:$0xf] }
  0x9d   :  { %v1000_v6 = vrot.slane %v999_v58, 4  ;;  %v3486_v7 = vshll.u32 %v5479_v44, 16  ;;  %v1007_v8 = vshrl.u32 %v5152_v46, 16  ;;  %v1010_v9 = vshll.u32 %v5152_v46, 16  ;;  %v5486_v58 = vld [vmem:[%s8048_s0 + $0x1a8] sm:$0xf] }
  0x9e   :  { %6022 = vmatprep.mubr.msk.bf16.mxu0 %vm91_vm1, %v5493_v0  ;;  %v3470_v10 = vrot.slane %v3469_v2, 4  ;;  %v3482_v11 = vrot.slane %v3480_v3, 5  ;;  %v1016_v12 = vshll.u32 %v5153_v53, 16  ;;  %v1021_v30 = vshrl.u32 %v5154_v62, 16 }
  0x9f   :  { %v1005_v13 = vsel %vm6595_vm4, %v1000_v6, %v1004_v55  ;;  %v1009_v14 = vrot.slane %v1007_v8, 4  ;;  %v1012_v16 = vrot.slane %v1010_v9, 5  ;;  %v3488_v19 = vrot.slane %v3486_v7, 5 }
  0xa0   :  { %v5166_v48 = vcombine.low %v991_v1, %v1005_v13  ;;  %v3483_v18 = vor.u32 %v3482_v11, %v3479_v60  ;;  %v1018_v20 = vrot.slane %v1016_v12, 5  ;;  %v1023_v23 = vrot.slane %v1021_v30, 4 }
  0xa1   :  { %v1013_v22 = vor.u32 %v1012_v16, %v1009_v14  ;;  %v1024_v24 = vshll.u32 %v5154_v62, 16  ;;  %v1030_v26 = vshll.u32 %v5155_v5, 16  ;;  %v3475_v29 = vsel %vm6595_vm4, %v3470_v10, %v3474_v59 }
  0xa2   :  { %5879 = vmatmul.mubr.msk.bf16.gmra.mrb[8].mxu1 %vm91_vm1, %v5166_v48  ;;  %v3484_v31 = vrot.slane %v3483_v18, 4  ;;  %v3491_v32 = vshrl.u32 %v5480_v49, 16  ;;  %v3494_v33 = vshll.u32 %v5480_v49, 16  ;;  %v3500_v37 = vshll.u32 %v5481_v17, 16  ;;  %v5485_v49 = vld [vmem:[%s8048_s0 + $0x1a4] sm:$0x1] }
  0xa3   :  { %v1014_v35 = vrot.slane %v1013_v22, 4  ;;  %v1026_v36 = vrot.slane %v1024_v24, 5  ;;  %v3505_v38 = vshrl.u32 %v5482_v21, 16  ;;  %v1032_v40 = vrot.slane %v1030_v26, 5  ;;  %v5487_v17 = vld [vmem:[%s8048_s0 + $0x1ac] sm:$0x1] }
  0xa4   :  { %v3489_v39 = vsel %vm6595_vm4, %v3484_v31, %v3488_v19  ;;  %v3493_v42 = vrot.slane %v3491_v32, 4  ;;  %v3496_v43 = vrot.slane %v3494_v33, 5  ;;  %v3508_v50 = vshll.u32 %v5482_v21, 16 }
  0xa5   :  { %v5494_v44 = vcombine.low %v3475_v29, %v3489_v39  ;;  %v1019_v4 = vsel %vm6595_vm4, %v1014_v35, %v1018_v20  ;;  %v1027_v45 = vor.u32 %v1026_v36, %v1023_v23  ;;  %v3507_v46 = vrot.slane %v3505_v38, 4 }
  0xa6   :  { %v3497_v47 = vor.u32 %v3496_v43, %v3493_v42  ;;  %v3514_v51 = vshll.u32 %v5483_v27, 16  ;;  %v1035_v53 = vshrl.u32 %v5156_v28, 16  ;;  %v1038_v56 = vshll.u32 %v5156_v28, 16 }
  0xa7   :  { %6023 = vmatmul.mubr.msk.bf16.gmra.mrb[8].mxu0 %vm91_vm1, %v5494_v44  ;;  %v1028_v55 = vrot.slane %v1027_v45, 4  ;;  %v1044_v57 = vshll.u32 %v5157_v63, 16  ;;  %v1049_v25 = vshrl.u32 %v5158_v34, 16  ;;  %v3502_v60 = vrot.slane %v3500_v37, 5  ;;  %v6390_v37 = vld [vmem:[%s8048_s0 + $0x90] ss:$8 sps:$4 sm:$0xff]  }
  0xa8   :  { %v3498_v59 = vrot.slane %v3497_v47, 4  ;;  %v3510_v62 = vrot.slane %v3508_v50, 5  ;;  %v1037_v0 = vrot.slane %v1035_v53, 4  ;;  %v3516_v2 = vrot.slane %v3514_v51, 5  ;;  %v6391_v44 = vld [vmem:[%s8048_s0 + $0x98] ss:$8 sps:$4 sm:$0xff]  }
  0xa9   :  { %v1033_v1 = vsel %vm6595_vm4, %v1028_v55, %v1032_v40  ;;  %v1040_v3 = vrot.slane %v1038_v56, 5  ;;  %v1046_v5 = vrot.slane %v1044_v57, 5  ;;  %v1051_v8 = vrot.slane %v1049_v25, 4  ;;  %v6392_v45 = vld [vmem:[%s8048_s0 + $0xa0] ss:$8 sps:$4 sm:$0xff]  }
  0xaa   :  { %v5167_v6 = vcombine.low %v1019_v4, %v1033_v1  ;;  %v3511_v7 = vor.u32 %v3510_v62, %v3507_v46  ;;  %v1052_v9 = vshll.u32 %v5158_v34, 16  ;;  %v1058_v11 = vshll.u32 %v5159_v52, 16  ;;  %v6394_v47 = vld [vmem:[%s8048_s0 + $0xb0] ss:$8 sps:$4 sm:$0xff]   ;;  %v6396_v57 = vld [vmem:[%s8048_s0 + $0xc0] ss:$8 sps:$4 sm:$0xff]  }
  0xab   :  { %v1041_v10 = vor.u32 %v1040_v3, %v1037_v0  ;;  %v3519_v12 = vshrl.u32 %v5484_v54, 16  ;;  %v3522_v30 = vshll.u32 %v5484_v54, 16  ;;  %v3503_v13 = vsel %vm6595_vm4, %v3498_v59, %v3502_v60  ;;  %v5275_v50 = vld [vmem:[%s8047_s1 + $0x18] sm:$0xf]  ;;  %v6393_v53 = vld [vmem:[%s8048_s0 + $0xa8] ss:$8 sps:$4 sm:$0xff]  }
  0xac   :  { %5882 = vmatprep.mubr.msk.bf16.mxu1 %vm91_vm1, %v5167_v6  ;;  %v3512_v14 = vrot.slane %v3511_v7, 4  ;;  %v1054_v16 = vrot.slane %v1052_v9, 5  ;;  %v3533_v48 = vshrl.u32 %v5486_v58, 16  ;;  %v3528_v21 = vshll.u32 %v5485_v49, 16  ;;  %v5603_v52 = vld [vmem:[%s8047_s1 + $0x38] sm:$0xf] }
  0xad   :  { %v1042_v18 = vrot.slane %v1041_v10, 4  ;;  %v3521_v19 = vrot.slane %v3519_v12, 4  ;;  %v3524_v20 = vrot.slane %v3522_v30, 5  ;;  %v1060_v24 = vrot.slane %v1058_v11, 5  ;;  %v6395_v55 = vld [vmem:[%s8048_s0 + $0xb8] ss:$8 sps:$4 sm:$0xff]  }
  0xae   :  { %v3517_v22 = vsel %vm6595_vm4, %v3512_v14, %v3516_v2  ;;  %v1055_v23 = vor.u32 %v1054_v16, %v1051_v8  ;;  %v3535_v28 = vrot.slane %v3533_v48, 4  ;;  %v3536_v29 = vshll.u32 %v5486_v58, 16  ;;  %v5244_v25 = vld [vmem:[%s8048_s0 + $0x94] sm:$0x1]  ;;  %v5245_v58 = vld [vmem:[%s8048_s0 + $0x98] sm:$0xf] }
  0xaf   :  { %v5495_v26 = vcombine.low %v3503_v13, %v3517_v22  ;;  %v3525_v27 = vor.u32 %v3524_v20, %v3521_v19  ;;  %v1047_v31 = vsel %vm6595_vm4, %v1042_v18, %v1046_v5  ;;  %v3542_v33 = vshll.u32 %v5487_v17, 16  ;;  %v6398_v59 = vld [vmem:[%s8048_s0 + $0x1b0] ss:$8 sps:$4 sm:$0xff]   ;;  %v5246_v60 = vld [vmem:[%s8048_s0 + $0x9c] sm:$0x1] }
  0xb0   :  { %v1056_v32 = vrot.slane %v1055_v23, 4  ;;  %v3530_v34 = vrot.slane %v3528_v21, 5  ;;  %v3538_v35 = vrot.slane %v3536_v29, 5  ;;  %v1511_v51 = vsel %vm116_vm0, %v7058_v15, 0  ;;  %v5571_v6 = vld [vmem:[%s8048_s0 + $0x98] sm:$0xf] }
  0xb1   :  { %6026 = vmatprep.mubr.msk.bf16.mxu0 %vm91_vm1, %v5495_v26  ;;  %v3526_v63 = vrot.slane %v3525_v27, 4  ;;  %v3544_v40 = vrot.slane %v3542_v33, 5  ;;  %v3995_v54 = vsel %vm116_vm0, %v7076_v41, 0  ;;  %v7240_v15 = vsel %vm116_vm0, %v5275_v50, 0  ;;  %v5243_v41 = vld [vmem:[%s8048_s0 + $0x90] sm:$0xf] }
  0xb2   :  { %v1061_v36 = vsel %vm6595_vm4, %v1056_v32, %v1060_v24  ;;  %v3539_v39 = vor.u32 %v3538_v35, %v3535_v28  ;;  %v7243_v56 = vsel %vm116_vm0, %v5603_v52, 0  ;;  %v1659_v62 = vshrl.u32 %v5243_v41, 16  ;;  %v5572_v7 = vld [vmem:[%s8048_s0 + $0x9c] sm:$0x1]  ;;  %v5573_v11 = vld [vmem:[%s8048_s0 + $0xa0] sm:$0xf] }
  0xb3   :  { %v5168_v38 = vcombine.low %v1047_v31, %v1061_v36  ;;  %v3531_v42 = vsel %vm6595_vm4, %v3526_v63, %v3530_v34  ;;  %v1662_v0 = vshll.u32 %v5243_v41, 16  ;;  %v1668_v1 = vshll.u32 %v5244_v25, 16  ;;  %v5574_v13 = vld [vmem:[%s8048_s0 + $0xa4] sm:$0x1]  ;;  %v6397_v17 = vld [vmem:[%s8048_s0 + $0xc8] ss:$8 sps:$4 sm:$0xff]  }
  0xb4   :  { %v3540_v43 = vrot.slane %v3539_v39, 4  ;;  %v1673_v2 = vshrl.u32 %v5245_v58, 16  ;;  %v1676_v3 = vshll.u32 %v5245_v58, 16  ;;  %v1682_v5 = vshll.u32 %v5246_v60, 16  ;;  %v5247_v21 = vld [vmem:[%s8048_s0 + $0xa0] sm:$0xf] }
  0xb5   :  { %5883 = vmatmul.mubr.msk.bf16.gmra.mrb[12].mxu1 %vm91_vm1, %v5168_v38  ;;  %v1661_v8 = vrot.slane %v1659_v62, 4  ;;  %v1664_v9 = vrot.slane %v1662_v0, 5  ;;  %v1670_v49 = vrot.slane %v1668_v1, 5  ;;  %v4143_v14 = vshrl.u32 %v5571_v6, 16  ;;  %v6399_v22 = vld [vmem:[%s8048_s0 + $0x1b8] ss:$8 sps:$4 sm:$0xff]  }
  0xb6   :  { %5888 = vmatprep.mubr.msk.bf16.mxu1 %vm91_vm1, %v6390_v37  ;;  %v3545_v4 = vsel %vm6595_vm4, %v3540_v43, %v3544_v40  ;;  %v1675_v10 = vrot.slane %v1673_v2, 4  ;;  %v1678_v12 = vrot.slane %v1676_v3, 5  ;;  %v1684_v30 = vrot.slane %v1682_v5, 5  ;;  %v5248_v28 = vld [vmem:[%s8048_s0 + $0xa4] sm:$0x1] }
  0xb7   :  { %v5496_v46 = vcombine.low %v3531_v42, %v3545_v4  ;;  %v4146_v16 = vshll.u32 %v5571_v6, 16  ;;  %v1665_v48 = vor.u32 %v1664_v9, %v1661_v8  ;;  %v4152_v18 = vshll.u32 %v5572_v7, 16  ;;  %v5249_v63 = vld [vmem:[%s8048_s0 + $0xa8] sm:$0xf]  ;;  %v6402_v39 = vld [vmem:[%s8048_s0 + $0x1d0] ss:$8 sps:$4 sm:$0xff]  }
  0xb8   :  { %v4157_v19 = vshrl.u32 %v5573_v11, 16  ;;  %v4160_v20 = vshll.u32 %v5573_v11, 16  ;;  %v1679_v23 = vor.u32 %v1678_v12, %v1675_v10  ;;  %v4145_v24 = vrot.slane %v4143_v14, 4  ;;  %v6400_v34 = vld [vmem:[%s8048_s0 + $0x1c0] ss:$8 sps:$4 sm:$0xff]  }
  0xb9   :  { %6027 = vmatmul.mubr.msk.bf16.gmra.mrb[12].mxu0 %vm91_vm1, %v5496_v46  ;;  %v4148_v26 = vrot.slane %v4146_v16, 5  ;;  %v4166_v27 = vshll.u32 %v5574_v13, 16  ;;  %v1666_v29 = vrot.slane %v1665_v48, 4  ;;  %v4154_v31 = vrot.slane %v4152_v18, 5  ;;  %v5250_v43 = vld [vmem:[%s8048_s0 + $0xac] sm:$0x1] }
  0xba   :  { %6032 = vmatprep.mubr.msk.bf16.mxu0 %vm91_vm1, %v6391_v44  ;;  %v4159_v32 = vrot.slane %v4157_v19, 4  ;;  %v4162_v33 = vrot.slane %v4160_v20, 5  ;;  %v1680_v35 = vrot.slane %v1679_v23, 4  ;;  %v1687_v38 = vshrl.u32 %v5247_v21, 16  ;;  %v5577_v60 = vld [vmem:[%s8048_s0 + $0xb0] sm:$0xf] }
  0xbb   :  { %v4149_v36 = vor.u32 %v4148_v26, %v4145_v24  ;;  %v4168_v37 = vrot.slane %v4166_v27, 5  ;;  %v1671_v40 = vsel %vm6595_vm4, %v1666_v29, %v1670_v49  ;;  %v1690_v44 = vshll.u32 %v5247_v21, 16  ;;  %v6401_v62 = vld [vmem:[%s8048_s0 + $0x1c8] ss:$8 sps:$4 sm:$0xff]   ;;  %v7332_v2 = vld [vmem:[%s8047_s1 + $0x1c] sm:$0xf] }
  0xbc   :  { %v4163_v42 = vor.u32 %v4162_v33, %v4159_v32  ;;  %v1696_v4 = vshll.u32 %v5248_v28, 16  ;;  %v1704_v58 = vshll.u32 %v5249_v63, 16  ;;  %v5578_v3 = vld [vmem:[%s8048_s0 + $0xb4] sm:$0x1]  ;;  %v6403_v7 = vld [vmem:[%s8048_s0 + $0x1d8] ss:$8 sps:$4 sm:$0xff]  }
  0xbd   :  { %5889 = vmatmul.mubr.msk.bf16.vlgmr.msra.gmra.mrb[0].mxu1 %vm91_vm1, %v6392_v45  ;;  %v1685_v45 = vsel %vm6595_vm4, %v1680_v35, %v1684_v30  ;;  %v4150_v46 = vrot.slane %v4149_v36, 4  ;;  %v7346_v11 = vld [vmem:[%s8047_s1 + $0x3c] sm:$0xf]  ;;  %v4185_v14 = vshrl.u32 %v5577_v60, 16  ;;  %v5251_v16 = vld [vmem:[%s8048_s0 + $0xb0] sm:$0xf] }
  0xbe   :  { %5905 = vmatpush3.bf16.msra.mxu1 %v1511_v51  ;;  %5892 = vmatprep.mubr.msk.bf16.mxu1 %vm91_vm1, %v6394_v47  ;;  %v1689_v47 = vrot.slane %v1687_v38, 4  ;;  %v5575_v51 = vld [vmem:[%s8048_s0 + $0xa8] sm:$0xf]  ;;  %v1706_v9 = vrot.slane %v1704_v58, 5  ;;  %v4188_v18 = vshll.u32 %v5577_v60, 16  ;;  %v4194_v19 = vshll.u32 %v5578_v3, 16 }
  0xbf   :  { %6348 = vmatprep.subr.msk.bf16.mxu1 %vm116_vm0, %v5275_v50  ;;  %v1701_v50 = vshrl.u32 %v5249_v63, 16  ;;  %v4155_v41 = vsel %vm6595_vm4, %v4150_v46, %v4154_v31  ;;  %v4171_v5 = vshrl.u32 %v5575_v51, 16  ;;  %v4174_v6 = vshll.u32 %v5575_v51, 16  ;;  %v5252_v20 = vld [vmem:[%s8048_s0 + $0xb4] sm:$0x1] }
  0xc0   :  { %v4187_v23 = vrot.slane %v4185_v14, 4  ;;  %v7359_v24 = vsel %vm116_vm0, %v7332_v2, 0  ;;  %v5253_v26 = vld [vmem:[%s8048_s0 + $0xb8] sm:$0xf]  ;;  %v6404_v27 = vld [vmem:[%s8048_s0 + $0x1e0] ss:$8 sps:$4 sm:$0xff]  }
  0xc1   :  { %6033 = vmatmul.mubr.msk.bf16.vlgmr.msra.gmra.mrb[0].mxu0 %vm91_vm1, %v6393_v53  ;;  %v4164_v53 = vrot.slane %v4163_v42, 4  ;;  %v1703_v25 = vrot.slane %v1701_v50, 4  ;;  %v4173_v30 = vrot.slane %v4171_v5, 4  ;;  %v4176_v13 = vrot.slane %v4174_v6, 5  ;;  %v6406_v33 = vld [vmem:[%s8048_s0 + $0xd8] ss:$8 sps:$4 sm:$0xff]  }
  0xc2   :  { %6049 = vmatpush3.bf16.msra.mxu0 %v3995_v54  ;;  %6036 = vmatprep.mubr.msk.bf16.mxu0 %vm91_vm1, %v6395_v55  ;;  %v1692_v54 = vrot.slane %v1690_v44, 5  ;;  %v1698_v55 = vrot.slane %v1696_v4, 5  ;;  %v4190_v29 = vrot.slane %v4188_v18, 5  ;;  %v4196_v31 = vrot.slane %v4194_v19, 5  ;;  %v5581_v50 = vld [vmem:[%s8048_s0 + $0xc0] sm:$0xf] }
  0xc3   :  { %6356 = vmatprep.subr.msk.bf16.mxu0 %vm116_vm0, %v5603_v52  ;;  %v7313_v52 = vcombine.low %v1671_v40, %v1685_v45  ;;  %v4169_v0 = vsel %vm6595_vm4, %v4164_v53, %v4168_v37  ;;  %v7369_v32 = vsel %vm116_vm0, %v7346_v11, 0  ;;  %v1718_v35 = vshll.u32 %v5251_v16, 16  ;;  %v6405_v51 = vld [vmem:[%s8048_s0 + $0x1e8] ss:$8 sps:$4 sm:$0xff]   ;;  %v5582_v3 = vld [vmem:[%s8048_s0 + $0xc4] sm:$0x1] }
  0xc4   :  { %v1693_v1 = vor.u32 %v1692_v54, %v1689_v47  ;;  %v7341_v8 = vcombine.low %v4155_v41, %v4169_v0  ;;  %v1724_v36 = vshll.u32 %v5252_v20, 16  ;;  %v4191_v38 = vor.u32 %v4190_v29, %v4187_v23  ;;  %v5580_v47 = vld [vmem:[%s8048_s0 + $0xbc] sm:$0x1]  ;;  %v6407_v41 = vld [vmem:[%s8048_s0 + $0xe0] ss:$8 sps:$4 sm:$0xff]  }
  0xc5   :  { %5893 = vmatmul.mubr.msk.bf16.gmra.mrb[4].mxu1 %vm91_vm1, %v6396_v57  ;;  %v5576_v57 = vld [vmem:[%s8048_s0 + $0xac] sm:$0x1]  ;;  %v1729_v40 = vshrl.u32 %v5253_v26, 16  ;;  %v1732_v42 = vshll.u32 %v5253_v26, 16  ;;  %v1720_v46 = vrot.slane %v1718_v35, 5  ;;  %v4208_v5 = vshll.u32 %v5580_v47, 16 }
  0xc6   :  { %5896 = vmatprep.mubr.msk.bf16.mxu1 %vm91_vm1, %v6398_v59  ;;  %v1710_v59 = vshll.u32 %v5250_v43, 16  ;;  %v4180_v10 = vshll.u32 %v5576_v57, 16  ;;  %v1694_v12 = vrot.slane %v1693_v1, 4  ;;  %v5579_v43 = vld [vmem:[%s8048_s0 + $0xb8] sm:$0xf]  ;;  %v4192_v53 = vrot.slane %v4191_v38, 4 }
  0xc7   :  { %v1726_v54 = vrot.slane %v1724_v36, 5  ;;  %v1734_v57 = vrot.slane %v1732_v42, 5  ;;  %v4202_v60 = vshll.u32 %v5579_v43, 16  ;;  %v4213_v6 = vshrl.u32 %v5581_v50, 16  ;;  %v5584_v42 = vld [vmem:[%s8048_s0 + $0xcc] sm:$0x1] }
  0xc8   :  { %v1712_v49 = vrot.slane %v1710_v59, 5  ;;  %v4182_v48 = vrot.slane %v4180_v10, 5  ;;  %v1699_v21 = vsel %vm6595_vm4, %v1694_v12, %v1698_v55  ;;  %v1731_v55 = vrot.slane %v1729_v40, 4 }
  0xc9   :  { %6037 = vmatmul.mubr.msk.bf16.gmra.mrb[4].mxu0 %vm91_vm1, %v6397_v17  ;;  %v1707_v17 = vor.u32 %v1706_v9, %v1703_v25  ;;  %v4199_v59 = vshrl.u32 %v5579_v43, 16  ;;  %v4197_v0 = vsel %vm6595_vm4, %v4192_v53, %v4196_v31  ;;  %v4216_v19 = vshll.u32 %v5581_v50, 16  ;;  %v5583_v31 = vld [vmem:[%s8048_s0 + $0xc8] sm:$0xf] }
  0xca   :  { %6040 = vmatprep.mubr.msk.bf16.mxu0 %vm91_vm1, %v6399_v22  ;;  %v4177_v22 = vor.u32 %v4176_v13, %v4173_v30  ;;  %v1735_v1 = vor.u32 %v1734_v57, %v1731_v55  ;;  %v5256_v30 = vld [vmem:[%s8048_s0 + $0xc4] sm:$0x1]  ;;  %v6410_v13 = vld [vmem:[%s8048_s0 + $0xf8] ss:$8 sps:$4 sm:$0xff]   ;;  %v4222_v20 = vshll.u32 %v5582_v3, 16  ;;  %v4227_v47 = vshrl.u32 %v5583_v31, 16 }
  0xcb   :  { %v1708_v28 = vrot.slane %v1707_v17, 4  ;;  %v4201_v12 = vrot.slane %v4199_v59, 4  ;;  %v4210_v17 = vrot.slane %v4208_v5, 5  ;;  %v1752_v29 = vshll.u32 %v5256_v30, 16  ;;  %v6411_v50 = vld [vmem:[%s8048_s0 + $0x100] ss:$8 sps:$4 sm:$0xff]  }
  0xcc   :  { %v4178_v63 = vrot.slane %v4177_v22, 4  ;;  %v1736_v14 = vrot.slane %v1735_v1, 4  ;;  %v4224_v35 = vrot.slane %v4222_v20, 5  ;;  %v4230_v55 = vshll.u32 %v5583_v31, 16  ;;  %v6412_v57 = vld [vmem:[%s8048_s0 + $0x108] ss:$8 sps:$4 sm:$0xff]  }
  0xcd   :  { %5897 = vmatmul.mubr.msk.bf16.gmra.mrb[8].mxu1 %vm91_vm1, %v6400_v34  ;;  %v1715_v34 = vshrl.u32 %v5251_v16, 16  ;;  %v1713_v37 = vsel %vm6595_vm4, %v1708_v28, %v1712_v49  ;;  %v4204_v16 = vrot.slane %v4202_v60, 5  ;;  %v4229_v59 = vrot.slane %v4227_v47, 4  ;;  %v6415_v20 = vld [vmem:[%s8048_s0 + $0x200] ss:$8 sps:$4 sm:$0xff]  }
  0xce   :  { %5900 = vmatprep.mubr.msk.bf16.mxu1 %vm91_vm1, %v6402_v39  ;;  %v5254_v39 = vld [vmem:[%s8048_s0 + $0xbc] sm:$0x1]  ;;  %v7384_v44 = vcombine.low %v1699_v21, %v1713_v37  ;;  %v4183_v4 = vsel %vm6595_vm4, %v4178_v63, %v4182_v48  ;;  %v4215_v48 = vrot.slane %v4213_v6, 4  ;;  %v5257_v21 = vld [vmem:[%s8048_s0 + $0xc8] sm:$0xf] }
  0xcf   :  { %v1717_v45 = vrot.slane %v1715_v34, 4  ;;  %v1738_v58 = vshll.u32 %v5254_v39, 16  ;;  %v7413_v9 = vcombine.low %v4183_v4, %v4197_v0  ;;  %v4205_v26 = vor.u32 %v4204_v16, %v4201_v12  ;;  %v5261_v16 = vld [vmem:[%s8048_s0 + $0x1b8] sm:$0xf] }
  0xd0   :  { %v4218_v34 = vrot.slane %v4216_v19, 5  ;;  %v1754_v39 = vrot.slane %v1752_v29, 5  ;;  %v1757_v40 = vshrl.u32 %v5257_v21, 16  ;;  %v1760_v4 = vshll.u32 %v5257_v21, 16 }
  0xd1   :  { %6041 = vmatmul.mubr.msk.bf16.gmra.mrb[8].mxu0 %vm91_vm1, %v6401_v62  ;;  %v1721_v25 = vor.u32 %v1720_v46, %v1717_v45  ;;  %v6408_v62 = vld [vmem:[%s8048_s0 + $0xe8] ss:$8 sps:$4 sm:$0xff]   ;;  %v1740_v10 = vrot.slane %v1738_v58, 5  ;;  %v4206_v37 = vrot.slane %v4205_v26, 4  ;;  %v4236_v0 = vshll.u32 %v5584_v42, 16 }
  0xd2   :  { %6044 = vmatprep.mubr.msk.bf16.mxu0 %vm91_vm1, %v6403_v7  ;;  %v5255_v7 = vld [vmem:[%s8048_s0 + $0xc0] sm:$0xf]  ;;  %v4219_v43 = vor.u32 %v4218_v34, %v4215_v48  ;;  %v5585_v46 = vld [vmem:[%s8048_s0 + $0xd0] sm:$0xf]  ;;  %v1759_v53 = vrot.slane %v1757_v40, 4  ;;  %v1785_v29 = vshrl.u32 %v5261_v16, 16 }
  0xd3   :  { %v1722_v49 = vrot.slane %v1721_v25, 4  ;;  %v1743_v22 = vshrl.u32 %v5255_v7, 16  ;;  %v1741_v23 = vsel %vm6595_vm4, %v1736_v14, %v1740_v10  ;;  %v1746_v28 = vshll.u32 %v5255_v7, 16  ;;  %v5260_v10 = vld [vmem:[%s8048_s0 + $0x1b4] sm:$0x1] }
  0xd4   :  { %v1762_v25 = vrot.slane %v1760_v4, 5  ;;  %v4241_v1 = vshrl.u32 %v5585_v46, 16  ;;  %v4244_v6 = vshll.u32 %v5585_v46, 16  ;;  %v4238_v14 = vrot.slane %v4236_v0, 5  ;;  %v6416_v40 = vld [vmem:[%s8048_s0 + $0x208] ss:$8 sps:$4 sm:$0xff]  }
  0xd5   :  { %5901 = vmatmul.mubr.msk.bf16.gmra.mrb[12].mxu1 %vm91_vm1, %v6404_v27  ;;  %v1727_v18 = vsel %vm6595_vm4, %v1722_v49, %v1726_v54  ;;  %v5258_v27 = vld [vmem:[%s8048_s0 + $0xcc] sm:$0x1]  ;;  %v1745_v36 = vrot.slane %v1743_v22, 4  ;;  %v1748_v38 = vrot.slane %v1746_v28, 5  ;;  %v5586_v54 = vld [vmem:[%s8048_s0 + $0xd4] sm:$0x1] }
  0xd6   :  { %5906 = vmatprep.mubr.msk.bf16.mxu1 %vm91_vm1, %v6406_v33  ;;  %v6409_v33 = vld [vmem:[%s8048_s0 + $0xf0] ss:$8 sps:$4 sm:$0xff]   ;;  %v7439_v63 = vcombine.low %v1727_v18, %v1741_v23  ;;  %v1766_v45 = vshll.u32 %v5258_v27, 16  ;;  %v1763_v5 = vor.u32 %v1762_v25, %v1759_v53  ;;  %v4250_v7 = vshll.u32 %v5586_v54, 16  ;;  %v5262_v28 = vld [vmem:[%s8048_s0 + $0x1bc] sm:$0x1] }
  0xd7   :  { %v5259_v49 = vld [vmem:[%s8048_s0 + $0x1b0] sm:$0xf]  ;;  %v4243_v48 = vrot.slane %v4241_v1, 4  ;;  %v4246_v18 = vrot.slane %v4244_v6, 5  ;;  %v1780_v26 = vshll.u32 %v5260_v10, 16  ;;  %v1788_v31 = vshll.u32 %v5261_v16, 16 }
  0xd8   :  { %v1768_v58 = vrot.slane %v1766_v45, 5  ;;  %v4252_v19 = vrot.slane %v4250_v7, 5  ;;  %v1771_v22 = vshrl.u32 %v5259_v49, 16  ;;  %v1774_v23 = vshll.u32 %v5259_v49, 16  ;;  %v6418_v46 = vld [vmem:[%s8048_s0 + $0x218] ss:$8 sps:$4 sm:$0xff]  }
  0xd9   :  { %6045 = vmatmul.mubr.msk.bf16.gmra.mrb[12].mxu0 %vm91_vm1, %v6405_v51  ;;  %v1749_v51 = vor.u32 %v1748_v38, %v1745_v36  ;;  %v5588_v38 = vld [vmem:[%s8048_s0 + $0x1bc] sm:$0x1]  ;;  %v1787_v4 = vrot.slane %v1785_v29, 4  ;;  %v1790_v45 = vrot.slane %v1788_v31, 5  ;;  %v5263_v25 = vld [vmem:[%s8048_s0 + $0x1c0] sm:$0xf] }
  0xda   :  { %6050 = vmatprep.mubr.msk.bf16.mxu0 %vm91_vm1, %v6407_v41  ;;  %v4220_v41 = vrot.slane %v4219_v43, 4  ;;  %v1773_v36 = vrot.slane %v1771_v22, 4  ;;  %v1782_v43 = vrot.slane %v1780_v26, 5  ;;  %v6417_v0 = vld [vmem:[%s8048_s0 + $0x210] ss:$8 sps:$4 sm:$0xff]  }
  0xdb   :  { %v1750_v60 = vrot.slane %v1749_v51, 4  ;;  %v1791_v54 = vor.u32 %v1790_v45, %v1787_v4  ;;  %v6419_v7 = vld [vmem:[%s8048_s0 + $0x220] ss:$8 sps:$4 sm:$0xff]   ;;  %v5592_v31 = vld [vmem:[%s8048_s0 + $0x1cc] sm:$0x1] }
  0xdc   :  { %v4225_v3 = vsel %vm6595_vm4, %v4220_v41, %v4224_v35 }
  0xdd   :  { %5907 = vmatmul.mubr.msk.bf16.vlgmr.msra.gmra.mrb[0].mxu1 %vm91_vm1, %v6408_v62  ;;  %v4232_v62 = vrot.slane %v4230_v55, 5  ;;  %v1755_v30 = vsel %vm6595_vm4, %v1750_v60, %v1754_v39  ;;  %v5589_v39 = vld [vmem:[%s8048_s0 + $0x1c0] sm:$0xf]  ;;  %v5590_v55 = vld [vmem:[%s8048_s0 + $0x1c4] sm:$0x1]  ;;  %v1792_v1 = vrot.slane %v1791_v54, 4 }
  0xde   :  { %5923 = vmatpush3.bf16.msra.mxu1 %v7240_v15  ;;  %5910 = vmatprep.mubr.msk.bf16.mxu1 %vm91_vm1, %v6410_v13  ;;  %v4211_v15 = vsel %vm6595_vm4, %v4206_v37, %v4210_v17  ;;  %v6413_v17 = vld [vmem:[%s8048_s0 + $0x110] ss:$8 sps:$4 sm:$0xff]   ;;  %v1776_v37 = vrot.slane %v1774_v23, 5  ;;  %v4269_v41 = vshrl.u32 %v5589_v39, 16  ;;  %v4272_v10 = vshll.u32 %v5589_v39, 16 }
  0xdf   :  { %6349 = vmatprep.subr.msk.bf16.mxu1 %vm116_vm0, %v7332_v2  ;;  %v6414_v2 = vld [vmem:[%s8048_s0 + $0x1f8] ss:$8 sps:$4 sm:$0xff]   ;;  %v7477_v12 = vcombine.low %v4211_v15, %v4225_v3  ;;  %v4233_v13 = vor.u32 %v4232_v62, %v4229_v59  ;;  %v5264_v62 = vld [vmem:[%s8048_s0 + $0x1c4] sm:$0x1] }
  0xe0   :  { %v1777_v47 = vor.u32 %v1776_v37, %v1773_v36  ;;  %v4271_v6 = vrot.slane %v4269_v41, 4  ;;  %v4274_v22 = vrot.slane %v4272_v10, 5  ;;  %v5593_v37 = vld [vmem:[%s8048_s0 + $0x1d0] sm:$0xf] }
  0xe1   :  { %6051 = vmatmul.mubr.msk.bf16.vlgmr.msra.gmra.mrb[0].mxu0 %vm91_vm1, %v6409_v33  ;;  %v4234_v21 = vrot.slane %v4233_v13, 4  ;;  %v5587_v33 = vld [vmem:[%s8048_s0 + $0x1b8] sm:$0xf]  ;;  %v5265_v13 = vld [vmem:[%s8048_s0 + $0x1c8] sm:$0xf]  ;;  %v4297_v54 = vshrl.u32 %v5593_v37, 16 }
  0xe2   :  { %6067 = vmatpush3.bf16.msra.mxu0 %v7243_v56  ;;  %6054 = vmatprep.mubr.msk.bf16.mxu0 %vm91_vm1, %v6411_v50  ;;  %v1764_v56 = vrot.slane %v1763_v5, 4  ;;  %v1794_v50 = vshll.u32 %v5262_v28, 16  ;;  %v4255_v15 = vshrl.u32 %v5587_v33, 16  ;;  %v4258_v51 = vshll.u32 %v5587_v33, 16 }
  0xe3   :  { %6357 = vmatprep.subr.msk.bf16.mxu0 %vm116_vm0, %v7346_v11  ;;  %v4247_v11 = vor.u32 %v4246_v18, %v4243_v48  ;;  %v4239_v35 = vsel %vm6595_vm4, %v4234_v21, %v4238_v14  ;;  %v1778_v59 = vrot.slane %v1777_v47, 4  ;;  %v1799_v14 = vshrl.u32 %v5263_v25, 16 }
  0xe4   :  { %v1769_v27 = vsel %vm6595_vm4, %v1764_v56, %v1768_v58  ;;  %v4257_v60 = vrot.slane %v4255_v15, 4  ;;  %v4260_v3 = vrot.slane %v4258_v51, 5  ;;  %v5266_v56 = vld [vmem:[%s8048_s0 + $0x1cc] sm:$0x1]  ;;  %v1802_v48 = vshll.u32 %v5263_v25, 16 }
  0xe5   :  { %5911 = vmatmul.mubr.msk.bf16.gmra.mrb[4].mxu1 %vm91_vm1, %v6412_v57  ;;  %v7502_v34 = vcombine.low %v1755_v30, %v1769_v27  ;;  %v4248_v42 = vrot.slane %v4247_v11, 4  ;;  %v4264_v57 = vshll.u32 %v5588_v38, 16  ;;  %v1783_v49 = vsel %vm6595_vm4, %v1778_v59, %v1782_v43  ;;  %v5594_v43 = vld [vmem:[%s8048_s0 + $0x1d4] sm:$0x1]  ;;  %v5267_v59 = vld [vmem:[%s8048_s0 + $0x1d0] sm:$0xf] }
  0xe6   :  { %5914 = vmatprep.mubr.msk.bf16.mxu1 %vm91_vm1, %v6414_v2  ;;  %v1796_v2 = vrot.slane %v1794_v50, 5  ;;  %v4278_v30 = vshll.u32 %v5590_v55, 16  ;;  %v1808_v18 = vshll.u32 %v5264_v62, 16  ;;  %v1801_v26 = vrot.slane %v1799_v14, 4 }
  0xe7   :  { %v4253_v53 = vsel %vm6595_vm4, %v4248_v42, %v4252_v19  ;;  %v4266_v5 = vrot.slane %v4264_v57, 5  ;;  %v5591_v19 = vld [vmem:[%s8048_s0 + $0x1c8] sm:$0xf]  ;;  %v1804_v11 = vrot.slane %v1802_v48, 5  ;;  %v1813_v29 = vshrl.u32 %v5265_v13, 16 }
  0xe8   :  { %v7528_v58 = vcombine.low %v4239_v35, %v4253_v53  ;;  %v1797_v16 = vsel %vm6595_vm4, %v1792_v1, %v1796_v2  ;;  %v4280_v23 = vrot.slane %v4278_v30, 5  ;;  %v1810_v28 = vrot.slane %v1808_v18, 5  ;;  %v5268_v2 = vld [vmem:[%s8048_s0 + $0x1d4] sm:$0x1] }
  0xe9   :  { %6055 = vmatmul.mubr.msk.bf16.gmra.mrb[4].mxu0 %vm91_vm1, %v6413_v17  ;;  %v4261_v17 = vor.u32 %v4260_v3, %v4257_v60  ;;  %v7557_v21 = vcombine.low %v1783_v49, %v1797_v16  ;;  %v4275_v33 = vor.u32 %v4274_v22, %v4271_v6  ;;  %v1816_v35 = vshll.u32 %v5265_v13, 16  ;;  %v6421_v60 = vld [vmem:[%s8048_s0 + $0x230] ss:$8 sps:$4 sm:$0xff]  }
  0xea   :  { %6058 = vmatprep.mubr.msk.bf16.mxu0 %vm91_vm1, %v6415_v20  ;;  %v6420_v20 = vld [vmem:[%s8048_s0 + $0x228] ss:$8 sps:$4 sm:$0xff]   ;;  %v1822_v36 = vshll.u32 %v5266_v56, 16  ;;  %v4283_v38 = vshrl.u32 %v5591_v19, 16  ;;  %v1815_v42 = vrot.slane %v1813_v29, 4  ;;  %v4286_v4 = vshll.u32 %v5591_v19, 16 }
  0xeb   :  { %v4262_v27 = vrot.slane %v4261_v17, 4  ;;  %v4276_v45 = vrot.slane %v4275_v33, 4  ;;  %v4292_v53 = vshll.u32 %v5592_v31, 16  ;;  %v4300_v41 = vshll.u32 %v5593_v37, 16  ;;  %v5270_v56 = vld [vmem:[%s8048_s0 + $0x1dc] sm:$0x1] }
  0xec   :  { %v1824_v47 = vrot.slane %v1822_v36, 5  ;;  %v4285_v50 = vrot.slane %v4283_v38, 4  ;;  %v4288_v51 = vrot.slane %v4286_v4, 5  ;;  %v4306_v25 = vshll.u32 %v5594_v43, 16  ;;  %v5595_v19 = vld [vmem:[%s8048_s0 + $0x1d8] sm:$0xf] }
  0xed   :  { %5915 = vmatmul.mubr.msk.bf16.gmra.mrb[8].mxu1 %vm91_vm1, %v6416_v40  ;;  %v4267_v39 = vsel %vm6595_vm4, %v4262_v27, %v4266_v5  ;;  %v1805_v40 = vor.u32 %v1804_v11, %v1801_v26  ;;  %v4281_v55 = vsel %vm6595_vm4, %v4276_v45, %v4280_v23  ;;  %v4294_v3 = vrot.slane %v4292_v53, 5  ;;  %v5269_v5 = vld [vmem:[%s8048_s0 + $0x1d8] sm:$0xf]  ;;  %v5596_v27 = vld [vmem:[%s8048_s0 + $0x1dc] sm:$0x1] }
  0xee   :  { %5918 = vmatprep.mubr.msk.bf16.mxu1 %vm91_vm1, %v6418_v46  ;;  %v1818_v46 = vrot.slane %v1816_v35, 5  ;;  %v7586_v62 = vcombine.low %v4267_v39, %v4281_v55  ;;  %v4289_v1 = vor.u32 %v4288_v51, %v4285_v50  ;;  %v4302_v49 = vrot.slane %v4300_v41, 5  ;;  %v5597_v11 = vld [vmem:[%s8048_s0 + $0x1e0] sm:$0xf]  ;;  %v5272_v50 = vld [vmem:[%s8048_s0 + $0x1e4] sm:$0x1] }
  0xef   :  { %v1806_v15 = vrot.slane %v1805_v40, 4  ;;  %v4308_v10 = vrot.slane %v4306_v25, 5  ;;  %v1827_v13 = vshrl.u32 %v5267_v59, 16  ;;  %v1830_v14 = vshll.u32 %v5267_v59, 16  ;;  %v5271_v4 = vld [vmem:[%s8048_s0 + $0x1e0] sm:$0xf] }
  0xf0   :  { %v1819_v57 = vor.u32 %v1818_v46, %v1815_v42  ;;  %v4290_v30 = vrot.slane %v4289_v1, 4  ;;  %v1836_v16 = vshll.u32 %v5268_v2, 16  ;;  %v1841_v48 = vshrl.u32 %v5269_v5, 16  ;;  %v5598_v42 = vld [vmem:[%s8048_s0 + $0x1e4] sm:$0x1] }
  0xf1   :  { %6059 = vmatmul.mubr.msk.bf16.gmra.mrb[8].mxu0 %vm91_vm1, %v6417_v0  ;;  %v1811_v0 = vsel %vm6595_vm4, %v1806_v15, %v1810_v28  ;;  %v1844_v18 = vshll.u32 %v5269_v5, 16  ;;  %v1829_v23 = vrot.slane %v1827_v13, 4  ;;  %v1832_v26 = vrot.slane %v1830_v14, 5  ;;  %v5274_v2 = vld [vmem:[%s8048_s0 + $0x1ec] sm:$0x1] }
  0xf2   :  { %6062 = vmatprep.mubr.msk.bf16.mxu0 %vm91_vm1, %v6419_v7  ;;  %v1820_v6 = vrot.slane %v1819_v57, 4  ;;  %v4299_v7 = vrot.slane %v4297_v54, 4  ;;  %v4295_v22 = vsel %vm6595_vm4, %v4290_v30, %v4294_v3  ;;  %v1838_v29 = vrot.slane %v1836_v16, 5  ;;  %v5599_v1 = vld [vmem:[%s8048_s0 + $0x1e8] sm:$0xf] }
  0xf3   :  { %v1843_v31 = vrot.slane %v1841_v48, 4  ;;  %v1846_v33 = vrot.slane %v1844_v18, 5  ;;  %v1833_v35 = vor.u32 %v1832_v26, %v1829_v23  ;;  %v1850_v36 = vshll.u32 %v5270_v56, 16  ;;  %v5600_v14 = vld [vmem:[%s8048_s0 + $0x1ec] sm:$0x1] }
  0xf4   :  { %v4303_v17 = vor.u32 %v4302_v49, %v4299_v7  ;;  %v4311_v37 = vshrl.u32 %v5595_v19, 16  ;;  %v4314_v38 = vshll.u32 %v5595_v19, 16  ;;  %v4325_v43 = vshrl.u32 %v5597_v11, 16  ;;  %v5602_v18 = vld [vmem:[%s8048_s0 + $0x1f4] sm:$0x1] }
  0xf5   :  { %5919 = vmatmul.mubr.msk.bf16.gmra.mrb[12].mxu1 %vm91_vm1, %v6420_v20  ;;  %v1847_v40 = vor.u32 %v1846_v33, %v1843_v31  ;;  %v1834_v45 = vrot.slane %v1833_v35, 4  ;;  %v1852_v46 = vrot.slane %v1850_v36, 5  ;;  %v4334_v57 = vshll.u32 %v5598_v42, 16 }
  0xf6   :  { %5924 = vmatprep.mubr.msk.bf16.mxu1 %vm91_vm1, %v7313_v52  ;;  %v1825_v52 = vsel %vm6595_vm4, %v1820_v6, %v1824_v47  ;;  %v4304_v28 = vrot.slane %v4303_v17, 4  ;;  %v4313_v47 = vrot.slane %v4311_v37, 4  ;;  %v4316_v51 = vrot.slane %v4314_v38, 5  ;;  %v5601_v17 = vld [vmem:[%s8048_s0 + $0x1f0] sm:$0xf] }
  0xf7   :  { %v7602_v20 = vcombine.low %v1811_v0, %v1825_v52  ;;  %v1848_v15 = vrot.slane %v1847_v40, 4  ;;  %v4327_v54 = vrot.slane %v4325_v43, 4  ;;  %v1839_v55 = vsel %vm6595_vm4, %v1834_v45, %v1838_v29  ;;  %v5292_v37 = vld [vmem:[%s8048_s0 + $0xd8] sm:$0xf] }
  0xf8   :  { %v4309_v39 = vsel %vm6595_vm4, %v4304_v28, %v4308_v10  ;;  %v1855_v41 = vshrl.u32 %v5271_v4, 16  ;;  %v4317_v59 = vor.u32 %v4316_v51, %v4313_v47  ;;  %v1864_v0 = vshll.u32 %v5272_v50, 16 }
  0xf9   :  { %6063 = vmatmul.mubr.msk.bf16.gmra.mrb[12].mxu0 %vm91_vm1, %v6421_v60  ;;  %v1853_v25 = vsel %vm6595_vm4, %v1848_v15, %v1852_v46  ;;  %v1858_v60 = vshll.u32 %v5271_v4, 16  ;;  %v4336_v6 = vrot.slane %v4334_v57, 5  ;;  %v1878_v52 = vshll.u32 %v5274_v2, 16  ;;  %v5620_v57 = vld [vmem:[%s8048_s0 + $0xe0] sm:$0xf] }
  0xfa   :  { %6068 = vmatprep.mubr.msk.bf16.mxu0 %vm91_vm1, %v7341_v8  ;;  %v4320_v8 = vshll.u32 %v5596_v27, 16  ;;  %v7647_v3 = vcombine.low %v1839_v55, %v1853_v25  ;;  %v1857_v7 = vrot.slane %v1855_v41, 4  ;;  %v4318_v49 = vrot.slane %v4317_v59, 4  ;;  %v5295_v55 = vld [vmem:[%s8048_s0 + $0xe4] sm:$0x1] }
  0xfb   :  { %v1860_v10 = vrot.slane %v1858_v60, 5  ;;  %v1866_v30 = vrot.slane %v1864_v0, 5  ;;  %v4339_v56 = vshrl.u32 %v5599_v1, 16  ;;  %v4342_v19 = vshll.u32 %v5599_v1, 16  ;;  %v5621_v59 = vld [vmem:[%s8048_s0 + $0xe4] sm:$0x1] }
  0xfc   :  { %v4322_v53 = vrot.slane %v4320_v8, 5  ;;  %v1880_v26 = vrot.slane %v1878_v52, 5  ;;  %v4353_v29 = vshrl.u32 %v5601_v17, 16  ;;  %v4356_v35 = vshll.u32 %v5601_v17, 16  ;;  %v5294_v8 = vld [vmem:[%s8048_s0 + $0xe0] sm:$0xf] }
  0xfd   :  { %5925 = vmatmul.mubr.msk.bf16.vlgmr.msra.gmra.mrb[0].mxu1 %vm91_vm1, %v7384_v44  ;;  %v7627_v44 = vcombine.low %v4295_v22, %v4309_v39  ;;  %v4341_v27 = vrot.slane %v4339_v56, 4  ;;  %v4344_v28 = vrot.slane %v4342_v19, 5  ;;  %v4362_v36 = vshll.u32 %v5602_v18, 16  ;;  %v5622_v2 = vld [vmem:[%s8048_s0 + $0xe8] sm:$0xf] }
  0xfe   :  { %5941 = vmatpush3.bf16.msra.mxu1 %v7359_v24  ;;  %5928 = vmatprep.mubr.msk.bf16.mxu1 %vm91_vm1, %v7439_v63  ;;  %v4328_v24 = vshll.u32 %v5597_v11, 16  ;;  %v5273_v63 = vld [vmem:[%s8048_s0 + $0x1e8] sm:$0xf]  ;;  %v4355_v4 = vrot.slane %v4353_v29, 4  ;;  %v4358_v45 = vrot.slane %v4356_v35, 5  ;;  %v2081_v50 = vshrl.u32 %v5292_v37, 16 }
  0xff   :  { %v1869_v13 = vshrl.u32 %v5273_v63, 16  ;;  %v4345_v40 = vor.u32 %v4344_v28, %v4341_v27  ;;  %v4364_v46 = vrot.slane %v4362_v36, 5  ;;  %v2084_v15 = vshll.u32 %v5292_v37, 16  ;;  %v5298_v27 = vld [vmem:[%s8048_s0 + $0xf0] sm:$0xf] }
 0x100   :  { %v4330_v5 = vrot.slane %v4328_v24, 5  ;;  %v2098_v24 = vshll.u32 %v5294_v8, 16  ;;  %v2083_v41 = vrot.slane %v2081_v50, 4 }
 0x101   :  { %6069 = vmatmul.mubr.msk.bf16.vlgmr.msra.gmra.mrb[0].mxu0 %vm91_vm1, %v7413_v9  ;;  %v1872_v9 = vshll.u32 %v5273_v63, 16  ;;  %v1871_v48 = vrot.slane %v1869_v13, 4  ;;  %v4346_v47 = vrot.slane %v4345_v40, 4  ;;  %v2086_v25 = vrot.slane %v2084_v15, 5  ;;  %v5623_v13 = vld [vmem:[%s8048_s0 + $0xec] sm:$0x1] }
 0x102   :  { %6085 = vmatpush3.bf16.msra.mxu0 %v7369_v32  ;;  %6072 = vmatprep.mubr.msk.bf16.mxu0 %vm91_vm1, %v7477_v12  ;;  %v4331_v16 = vor.u32 %v4330_v5, %v4327_v54  ;;  %v4323_v32 = vsel %vm6595_vm4, %v4318_v49, %v4322_v53  ;;  %v1861_v12 = vor.u32 %v1860_v10, %v1857_v7  ;;  %v2100_v1 = vrot.slane %v2098_v24, 5 }
 0x103   :  { %v1874_v23 = vrot.slane %v1872_v9, 5  ;;  %v4359_v54 = vor.u32 %v4358_v45, %v4355_v4  ;;  %v2087_v5 = vor.u32 %v2086_v25, %v2083_v41  ;;  %v4565_v7 = vshrl.u32 %v5620_v57, 16 }
 0x104   :  { %v4332_v22 = vrot.slane %v4331_v16, 4  ;;  %v1862_v11 = vrot.slane %v1861_v12, 4  ;;  %v4568_v49 = vshll.u32 %v5620_v57, 16  ;;  %v4579_v16 = vshrl.u32 %v5622_v2, 16 }
 0x105   :  { %5929 = vmatmul.mubr.msk.bf16.gmra.mrb[4].mxu1 %vm91_vm1, %v7502_v34  ;;  %v4348_v34 = vshll.u32 %v5600_v14, 16  ;;  %v1875_v33 = vor.u32 %v1874_v23, %v1871_v48  ;;  %v4360_v60 = vrot.slane %v4359_v54, 4  ;;  %v4574_v14 = vshll.u32 %v5621_v59, 16 }
 0x106   :  { %5932 = vmatprep.mubr.msk.bf16.mxu1 %vm91_vm1, %v7557_v21  ;;  %v4337_v31 = vsel %vm6595_vm4, %v4332_v22, %v4336_v6  ;;  %v5293_v21 = vld [vmem:[%s8048_s0 + $0xdc] sm:$0x1]  ;;  %v1867_v39 = vsel %vm6595_vm4, %v1862_v11, %v1866_v30  ;;  %v2104_v6 = vshll.u32 %v5295_v55, 16  ;;  %v2088_v52 = vrot.slane %v2087_v5, 4 }
 0x107   :  { %v5610_v38 = vcombine.low %v4323_v32, %v4337_v31  ;;  %v4350_v42 = vrot.slane %v4348_v34, 5  ;;  %v1876_v43 = vrot.slane %v1875_v33, 4  ;;  %v2090_v51 = vshll.u32 %v5293_v21, 16  ;;  %v5297_v32 = vld [vmem:[%s8048_s0 + $0xec] sm:$0x1] }
 0x108   :  { %v4365_v10 = vsel %vm6595_vm4, %v4360_v60, %v4364_v46  ;;  %v2106_v17 = vrot.slane %v2104_v6, 5  ;;  %v4567_v56 = vrot.slane %v4565_v7, 4  ;;  %v4570_v48 = vrot.slane %v4568_v49, 5  ;;  %v5299_v34 = vld [vmem:[%s8048_s0 + $0xf4] sm:$0x1] }
 0x109   :  { %6073 = vmatmul.mubr.msk.bf16.gmra.mrb[4].mxu0 %vm91_vm1, %v7528_v58  ;;  %v1881_v53 = vsel %vm6595_vm4, %v1876_v43, %v1880_v26  ;;  %v2095_v58 = vshrl.u32 %v5294_v8, 16  ;;  %v4351_v63 = vsel %vm6595_vm4, %v4346_v47, %v4350_v42  ;;  %v2092_v0 = vrot.slane %v2090_v51, 5  ;;  %v5624_v33 = vld [vmem:[%s8048_s0 + $0xf0] sm:$0xf]  ;;  %v5625_v8 = vld [vmem:[%s8048_s0 + $0xf4] sm:$0x1] }
 0x10a   :  { %6076 = vmatprep.mubr.msk.bf16.mxu0 %vm91_vm1, %v7586_v62  ;;  %v5283_v62 = vcombine.low %v1867_v39, %v1881_v53  ;;  %v5611_v9 = vcombine.low %v4351_v63, %v4365_v10  ;;  %v4576_v18 = vrot.slane %v4574_v14, 5  ;;  %v4581_v19 = vrot.slane %v4579_v16, 4  ;;  %v5626_v46 = vld [vmem:[%s8048_s0 + $0xf8] sm:$0xf]  ;;  %v5627_v53 = vld [vmem:[%s8048_s0 + $0xfc] sm:$0x1] }
 0x10b   :  { %v2093_v22 = vsel %vm6595_vm4, %v2088_v52, %v2092_v0  ;;  %v4582_v23 = vshll.u32 %v5622_v2, 16  ;;  %v4588_v26 = vshll.u32 %v5623_v13, 16  ;;  %v2118_v31 = vshll.u32 %v5297_v32, 16  ;;  %v5302_v10 = vld [vmem:[%s8048_s0 + $0x100] sm:$0xf] }
 0x10c   :  { %v2123_v42 = vshrl.u32 %v5298_v27, 16  ;;  %v2126_v4 = vshll.u32 %v5298_v27, 16  ;;  %v2132_v45 = vshll.u32 %v5299_v34, 16  ;;  %v4593_v47 = vshrl.u32 %v5624_v33, 16 }
 0x10d   :  { %5933 = vmatmul.mubr.msk.bf16.gmra.mrb[8].mxu1 %vm91_vm1, %v7602_v20  ;;  %v2097_v20 = vrot.slane %v2095_v58, 4  ;;  %v4584_v36 = vrot.slane %v4582_v23, 5  ;;  %v4590_v37 = vrot.slane %v4588_v26, 5  ;;  %v2120_v40 = vrot.slane %v2118_v31, 5 }
 0x10e   :  { %5936 = vmatprep.mubr.msk.bf16.mxu1 %vm91_vm1, %v7647_v3  ;;  %v5296_v3 = vld [vmem:[%s8048_s0 + $0xe8] sm:$0xf]  ;;  %v2125_v51 = vrot.slane %v2123_v42, 4  ;;  %v4596_v54 = vshll.u32 %v5624_v33, 16  ;;  %v2128_v58 = vrot.slane %v2126_v4, 5  ;;  %v2134_v24 = vrot.slane %v2132_v45, 5 }
 0x10f   :  { %v2101_v30 = vor.u32 %v2100_v1, %v2097_v20  ;;  %v2109_v11 = vshrl.u32 %v5296_v3, 16  ;;  %v2112_v29 = vshll.u32 %v5296_v3, 16  ;;  %v4585_v43 = vor.u32 %v4584_v36, %v4581_v19  ;;  %v5300_v20 = vld [vmem:[%s8048_s0 + $0xf8] sm:$0xf]  ;;  %v5301_v1 = vld [vmem:[%s8048_s0 + $0xfc] sm:$0x1] }
 0x110   :  { %v4595_v57 = vrot.slane %v4593_v47, 4  ;;  %v4598_v63 = vrot.slane %v4596_v54, 5  ;;  %v4602_v41 = vshll.u32 %v5625_v8, 16  ;;  %v4607_v25 = vshrl.u32 %v5626_v46, 16  ;;  %v5628_v19 = vld [vmem:[%s8048_s0 + $0x100] sm:$0xf] }
 0x111   :  { %6077 = vmatmul.mubr.msk.bf16.gmra.mrb[8].mxu0 %vm91_vm1, %v7627_v44  ;;  %v2102_v12 = vrot.slane %v2101_v30, 4  ;;  %v4571_v44 = vor.u32 %v4570_v48, %v4567_v56  ;;  %v2111_v21 = vrot.slane %v2109_v11, 4  ;;  %v2114_v39 = vrot.slane %v2112_v29, 5  ;;  %v5629_v11 = vld [vmem:[%s8048_s0 + $0x104] sm:$0x1] }
 0x112   :  { %6080 = vmatprep.mubr.msk.bf16.mxu0 %vm91_vm1, %v5610_v38  ;;  %v4586_v55 = vrot.slane %v4585_v43, 4  ;;  %v2129_v2 = vor.u32 %v2128_v58, %v2125_v51  ;;  %v4610_v60 = vshll.u32 %v5626_v46, 16  ;;  %v4616_v0 = vshll.u32 %v5627_v53, 16  ;;  %v5304_v8 = vld [vmem:[%s8048_s0 + $0x108] sm:$0xf] }
 0x113   :  { %v2107_v28 = vsel %vm6595_vm4, %v2102_v12, %v2106_v17  ;;  %v4572_v38 = vrot.slane %v4571_v44, 4  ;;  %v2115_v15 = vor.u32 %v2114_v39, %v2111_v21  ;;  %v4599_v7 = vor.u32 %v4598_v63, %v4595_v57  ;;  %v5303_v12 = vld [vmem:[%s8048_s0 + $0x104] sm:$0x1]  ;;  %v5631_v39 = vld [vmem:[%s8048_s0 + $0x10c] sm:$0x1] }
 0x114   :  { %v5325_v35 = vcombine.low %v2093_v22, %v2107_v28  ;;  %v4591_v59 = vsel %vm6595_vm4, %v4586_v55, %v4590_v37  ;;  %v4604_v49 = vrot.slane %v4602_v41, 5  ;;  %v2130_v30 = vrot.slane %v2129_v2, 4  ;;  %v5630_v28 = vld [vmem:[%s8048_s0 + $0x108] sm:$0xf]  ;;  %v5305_v47 = vld [vmem:[%s8048_s0 + $0x10c] sm:$0x1] }
 0x115   :  { %5937 = vmatmul.mubr.msk.bf16.gmra.mrb[12].mxu1 %vm91_vm1, %v5283_v62  ;;  %v4577_v50 = vsel %vm6595_vm4, %v4572_v38, %v4576_v18  ;;  %v2116_v62 = vrot.slane %v2115_v15, 4  ;;  %v4609_v13 = vrot.slane %v4607_v25, 4  ;;  %v4612_v14 = vrot.slane %v4610_v60, 5  ;;  %v5307_v41 = vld [vmem:[%s8048_s0 + $0x114] sm:$0x1] }
 0x116   :  { %5942 = vmatprep.mubr.msk.bf16.mxu1 %vm91_vm1, %v5325_v35  ;;  %v5653_v5 = vcombine.low %v4577_v50, %v4591_v59  ;;  %v4618_v16 = vrot.slane %v4616_v0, 5  ;;  %v4600_v3 = vrot.slane %v4599_v7, 4  ;;  %v2140_v52 = vshll.u32 %v5300_v20, 16  ;;  %v5632_v2 = vld [vmem:[%s8048_s0 + $0x110] sm:$0xf] }
 0x117   :  { %v2121_v6 = vsel %vm6595_vm4, %v2116_v62, %v2120_v40  ;;  %v2146_v17 = vshll.u32 %v5301_v1, 16  ;;  %v2135_v56 = vsel %vm6595_vm4, %v2130_v30, %v2134_v24  ;;  %v4613_v32 = vor.u32 %v4612_v14, %v4609_v13  ;;  %v5306_v24 = vld [vmem:[%s8048_s0 + $0x110] sm:$0xf] }
 0x118   :  { %v2151_v48 = vshrl.u32 %v5302_v10, 16  ;;  %v2154_v18 = vshll.u32 %v5302_v10, 16  ;;  %v5326_v22 = vcombine.low %v2121_v6, %v2135_v56  ;;  %v4605_v23 = vsel %vm6595_vm4, %v4600_v3, %v4604_v49  ;;  %v5633_v10 = vld [vmem:[%s8048_s0 + $0x114] sm:$0x1]  ;;  %v5635_v56 = vld [vmem:[%s8048_s0 + $0x11c] sm:$0x1] }
 0x119   :  { %6081 = vmatmul.mubr.msk.bf16.gmra.mrb[12].mxu0 %vm91_vm1, %v5611_v9  ;;  %v2137_v9 = vshrl.u32 %v5300_v20, 16  ;;  %v2142_v27 = vrot.slane %v2140_v52, 5  ;;  %v4614_v44 = vrot.slane %v4613_v32, 4  ;;  %v2148_v34 = vrot.slane %v2146_v17, 5 }
 0x11a   :  { %6086 = vmatprep.mubr.msk.bf16.mxu0 %vm91_vm1, %v5653_v5  ;;  %v2153_v29 = vrot.slane %v2151_v48, 4  ;;  %v2156_v31 = vrot.slane %v2154_v18, 5  ;;  %v2160_v35 = vshll.u32 %v5303_v12, 16  ;;  %v4621_v36 = vshrl.u32 %v5628_v19, 16 }
 0x11b   :  { %v2139_v26 = vrot.slane %v2137_v9, 4  ;;  %v4624_v37 = vshll.u32 %v5628_v19, 16  ;;  %v4619_v21 = vsel %vm6595_vm4, %v4614_v44, %v4618_v16  ;;  %v4630_v40 = vshll.u32 %v5629_v11, 16  ;;  %v5634_v16 = vld [vmem:[%s8048_s0 + $0x118] sm:$0xf] }
 0x11c   :  { %v2157_v38 = vor.u32 %v2156_v31, %v2153_v29  ;;  %v4635_v42 = vshrl.u32 %v5630_v28, 16  ;;  %v5654_v43 = vcombine.low %v4605_v23, %v4619_v21  ;;  %v2162_v45 = vrot.slane %v2160_v35, 5  ;;  %v5308_v29 = vld [vmem:[%s8048_s0 + $0x1f8] sm:$0xf]  ;;  %v5309_v31 = vld [vmem:[%s8048_s0 + $0x1fc] sm:$0x1] }
 0x11d   :  { %5943 = vmatmul.mubr.msk.bf16.vlgmr.msra.gmra.mrb[0].mxu1 %vm91_vm1, %v5326_v22  ;;  %v2143_v33 = vor.u32 %v2142_v27, %v2139_v26  ;;  %v4623_v46 = vrot.slane %v4621_v36, 4  ;;  %v4626_v15 = vrot.slane %v4624_v37, 5  ;;  %v4632_v51 = vrot.slane %v4630_v40, 5  ;;  %v5310_v21 = vld [vmem:[%s8048_s0 + $0x200] sm:$0xf] }
 0x11e   :  { %v2158_v50 = vrot.slane %v2157_v38, 4  ;;  %v4637_v53 = vrot.slane %v4635_v42, 4  ;;  %v4638_v55 = vshll.u32 %v5630_v28, 16  ;;  %v4644_v58 = vshll.u32 %v5631_v39, 16 }
 0x11f   :  { %v2144_v4 = vrot.slane %v2143_v33, 4  ;;  %v2165_v57 = vshrl.u32 %v5304_v8, 16  ;;  %v4627_v63 = vor.u32 %v4626_v15, %v4623_v46  ;;  %v2168_v25 = vshll.u32 %v5304_v8, 16 }
 0x120   :  { %v2163_v62 = vsel %vm6595_vm4, %v2158_v50, %v2162_v45  ;;  %v2174_v59 = vshll.u32 %v5305_v47, 16  ;;  %v4640_v0 = vrot.slane %v4638_v55, 5  ;;  %v4646_v20 = vrot.slane %v4644_v58, 5  ;;  %v5311_v50 = vld [vmem:[%s8048_s0 + $0x204] sm:$0x1] }
 0x121   :  { %6087 = vmatmul.mubr.msk.bf16.vlgmr.msra.gmra.mrb[0].mxu0 %vm91_vm1, %v5654_v43  ;;  %v2149_v54 = vsel %vm6595_vm4, %v2144_v4, %v2148_v34  ;;  %v2167_v1 = vrot.slane %v2165_v57, 4  ;;  %v4628_v5 = vrot.slane %v4627_v63, 4  ;;  %v2170_v6 = vrot.slane %v2168_v25, 5  ;;  %v5637_v57 = vld [vmem:[%s8048_s0 + $0x204] sm:$0x1] }
 0x122   :  { %v5327_v60 = vcombine.low %v2149_v54, %v2163_v62  ;;  %v2176_v7 = vrot.slane %v2174_v59, 5  ;;  %v2179_v49 = vshrl.u32 %v5306_v24, 16  ;;  %v4641_v30 = vor.u32 %v4640_v0, %v4637_v53  ;;  %v5636_v53 = vld [vmem:[%s8048_s0 + $0x200] sm:$0xf]  ;;  %v5638_v62 = vld [vmem:[%s8048_s0 + $0x208] sm:$0xf] }
 0x123   :  { %v2182_v13 = vshll.u32 %v5306_v24, 16  ;;  %v2188_v14 = vshll.u32 %v5307_v41, 16  ;;  %v4649_v3 = vshrl.u32 %v5632_v2, 16  ;;  %v4633_v9 = vsel %vm6595_vm4, %v4628_v5, %v4632_v51 }
 0x124   :  { %5946 = vmatprep.mubr.msk.bf16.mxu1 %vm91_vm1, %v5327_v60  ;;  %v2171_v52 = vor.u32 %v2170_v6, %v2167_v1  ;;  %v2181_v17 = vrot.slane %v2179_v49, 4  ;;  %v4652_v32 = vshll.u32 %v5632_v2, 16  ;;  %v4642_v12 = vrot.slane %v4641_v30, 4  ;;  %v5639_v6 = vld [vmem:[%s8048_s0 + $0x20c] sm:$0x1] }
 0x125   :  { %v2184_v48 = vrot.slane %v2182_v13, 5  ;;  %v2190_v18 = vrot.slane %v2188_v14, 5  ;;  %v4651_v19 = vrot.slane %v4649_v3, 4  ;;  %v4658_v26 = vshll.u32 %v5633_v10, 16  ;;  %v5312_v10 = vld [vmem:[%s8048_s0 + $0x208] sm:$0xf] }
 0x126   :  { %v2172_v22 = vrot.slane %v2171_v52, 4  ;;  %v4654_v23 = vrot.slane %v4652_v32, 5  ;;  %v4663_v27 = vshrl.u32 %v5634_v16, 16  ;;  %v4647_v11 = vsel %vm6595_vm4, %v4642_v12, %v4646_v20  ;;  %v5313_v3 = vld [vmem:[%s8048_s0 + $0x20c] sm:$0x1] }
 0x127   :  { %v2185_v28 = vor.u32 %v2184_v48, %v2181_v17  ;;  %v4666_v44 = vshll.u32 %v5634_v16, 16  ;;  %v4672_v34 = vshll.u32 %v5635_v56, 16  ;;  %v5655_v33 = vcombine.low %v4633_v9, %v4647_v11 }
 0x128   :  { %v2177_v35 = vsel %vm6595_vm4, %v2172_v22, %v2176_v7  ;;  %v4655_v36 = vor.u32 %v4654_v23, %v4651_v19  ;;  %v4660_v37 = vrot.slane %v4658_v26, 5  ;;  %v4665_v39 = vrot.slane %v4663_v27, 4  ;;  %v5315_v26 = vld [vmem:[%s8048_s0 + $0x214] sm:$0x1] }
 0x129   :  { %v2186_v38 = vrot.slane %v2185_v28, 4  ;;  %v4668_v40 = vrot.slane %v4666_v44, 5  ;;  %v4674_v42 = vrot.slane %v4672_v34, 5  ;;  %6090 = vmatprep.mubr.msk.bf16.mxu0 %vm91_vm1, %v5655_v33  ;;  %v2193_v43 = vshrl.u32 %v5308_v29, 16  ;;  %v5640_v28 = vld [vmem:[%s8048_s0 + $0x210] sm:$0xf] }
 0x12a   :  { %v4656_v8 = vrot.slane %v4655_v36, 4  ;;  %v2196_v4 = vshll.u32 %v5308_v29, 16  ;;  %v2202_v45 = vshll.u32 %v5309_v31, 16  ;;  %v2207_v15 = vshrl.u32 %v5310_v21, 16 }
 0x12b   :  { %v2191_v46 = vsel %vm6595_vm4, %v2186_v38, %v2190_v18  ;;  %v4669_v47 = vor.u32 %v4668_v40, %v4665_v39  ;;  %v2210_v51 = vshll.u32 %v5310_v21, 16  ;;  %v2195_v58 = vrot.slane %v2193_v43, 4  ;;  %v5314_v18 = vld [vmem:[%s8048_s0 + $0x210] sm:$0xf]  ;;  %v5641_v21 = vld [vmem:[%s8048_s0 + $0x214] sm:$0x1] }
 0x12c   :  { %v5328_v54 = vcombine.low %v2177_v35, %v2191_v46  ;;  %v4661_v55 = vsel %vm6595_vm4, %v4656_v8, %v4660_v37  ;;  %v2198_v24 = vrot.slane %v2196_v4, 5  ;;  %v2204_v41 = vrot.slane %v2202_v45, 5  ;;  %v5643_v46 = vld [vmem:[%s8048_s0 + $0x21c] sm:$0x1] }
 0x12d   :  { %v4670_v63 = vrot.slane %v4669_v47, 4  ;;  %v2209_v25 = vrot.slane %v2207_v15, 4  ;;  %v2212_v59 = vrot.slane %v2210_v51, 5  ;;  %v2216_v60 = vshll.u32 %v5311_v50, 16 }
 0x12e   :  { %5947 = vmatmul.mubr.msk.bf16.gmra.mrb[4].mxu1 %vm91_vm1, %v5328_v54  ;;  %v2199_v2 = vor.u32 %v2198_v24, %v2195_v58  ;;  %v4677_v0 = vshrl.u32 %v5636_v53, 16  ;;  %v4680_v20 = vshll.u32 %v5636_v53, 16  ;;  %v4686_v7 = vshll.u32 %v5637_v57, 16 }
 0x12f   :  { %v4675_v1 = vsel %vm6595_vm4, %v4670_v63, %v4674_v42  ;;  %v2213_v5 = vor.u32 %v2212_v59, %v2209_v25  ;;  %v4691_v49 = vshrl.u32 %v5638_v62, 16  ;;  %v2218_v14 = vrot.slane %v2216_v60, 5  ;;  %v5642_v42 = vld [vmem:[%s8048_s0 + $0x218] sm:$0xf]  ;;  %v5317_v59 = vld [vmem:[%s8048_s0 + $0x21c] sm:$0x1] }
 0x130   :  { %v5656_v30 = vcombine.low %v4661_v55, %v4675_v1  ;;  %v2200_v13 = vrot.slane %v2199_v2, 4  ;;  %v4679_v16 = vrot.slane %v4677_v0, 4  ;;  %v4682_v52 = vrot.slane %v4680_v20, 5  ;;  %v5316_v25 = vld [vmem:[%s8048_s0 + $0x218] sm:$0xf] }
 0x131   :  { %v2214_v9 = vrot.slane %v2213_v5, 4  ;;  %v4688_v17 = vrot.slane %v4686_v7, 5  ;;  %v4693_v56 = vrot.slane %v4691_v49, 4  ;;  %v4694_v12 = vshll.u32 %v5638_v62, 16  ;;  %v5318_v1 = vld [vmem:[%s8048_s0 + $0x220] sm:$0xf] }
 0x132   :  { %6091 = vmatmul.mubr.msk.bf16.gmra.mrb[4].mxu0 %vm91_vm1, %v5656_v30  ;;  %v2205_v32 = vsel %vm6595_vm4, %v2200_v13, %v2204_v41  ;;  %v4700_v48 = vshll.u32 %v5639_v6, 16  ;;  %v2221_v19 = vshrl.u32 %v5312_v10, 16  ;;  %v4683_v23 = vor.u32 %v4682_v52, %v4679_v16 }
 0x133   :  { %v2219_v22 = vsel %vm6595_vm4, %v2214_v9, %v2218_v14  ;;  %v2224_v27 = vshll.u32 %v5312_v10, 16  ;;  %v2230_v11 = vshll.u32 %v5313_v3, 16  ;;  %v4696_v34 = vrot.slane %v4694_v12, 5  ;;  %v5319_v9 = vld [vmem:[%s8048_s0 + $0x224] sm:$0x1] }
 0x134   :  { %v5329_v44 = vcombine.low %v2205_v32, %v2219_v22  ;;  %v4702_v29 = vrot.slane %v4700_v48, 5  ;;  %v2223_v31 = vrot.slane %v2221_v19, 4  ;;  %v4684_v33 = vrot.slane %v4683_v23, 4  ;;  %v5645_v19 = vld [vmem:[%s8048_s0 + $0x224] sm:$0x1] }
 0x135   :  { %v2226_v35 = vrot.slane %v2224_v27, 5  ;;  %v2232_v36 = vrot.slane %v2230_v11, 5  ;;  %v2235_v37 = vshrl.u32 %v5314_v18, 16  ;;  %v4697_v38 = vor.u32 %v4696_v34, %v4693_v56  ;;  %v5644_v56 = vld [vmem:[%s8048_s0 + $0x220] sm:$0xf] }
 0x136   :  { %5950 = vmatprep.mubr.msk.bf16.mxu1 %vm91_vm1, %v5329_v44  ;;  %v2238_v39 = vshll.u32 %v5314_v18, 16  ;;  %v2244_v40 = vshll.u32 %v5315_v26, 16  ;;  %v4705_v8 = vshrl.u32 %v5640_v28, 16  ;;  %v4689_v43 = vsel %vm6595_vm4, %v4684_v33, %v4688_v17  ;;  %v5646_v22 = vld [vmem:[%s8048_s0 + $0x228] sm:$0xf] }
 0x137   :  { %v2227_v4 = vor.u32 %v2226_v35, %v2223_v31  ;;  %v2237_v45 = vrot.slane %v2235_v37, 4  ;;  %v4708_v47 = vshll.u32 %v5640_v28, 16  ;;  %v4698_v50 = vrot.slane %v4697_v38, 4  ;;  %v5647_v35 = vld [vmem:[%s8048_s0 + $0x22c] sm:$0x1] }
 0x138   :  { %v2240_v15 = vrot.slane %v2238_v39, 5  ;;  %v2246_v51 = vrot.slane %v2244_v40, 5  ;;  %v4707_v53 = vrot.slane %v4705_v8, 4  ;;  %v4714_v58 = vshll.u32 %v5641_v21, 16  ;;  %v5320_v21 = vld [vmem:[%s8048_s0 + $0x228] sm:$0xf] }
 0x139   :  { %v2228_v54 = vrot.slane %v2227_v4, 4  ;;  %v4710_v55 = vrot.slane %v4708_v47, 5  ;;  %v4719_v24 = vshrl.u32 %v5642_v42, 16  ;;  %v4703_v57 = vsel %vm6595_vm4, %v4698_v50, %v4702_v29  ;;  %v5321_v8 = vld [vmem:[%s8048_s0 + $0x22c] sm:$0x1] }
 0x13a   :  { %v2241_v62 = vor.u32 %v2240_v15, %v2237_v45  ;;  %v4722_v63 = vshll.u32 %v5642_v42, 16  ;;  %v4728_v41 = vshll.u32 %v5643_v46, 16  ;;  %v5657_v2 = vcombine.low %v4689_v43, %v4703_v57 }
 0x13b   :  { %v2233_v60 = vsel %vm6595_vm4, %v2228_v54, %v2232_v36  ;;  %v4711_v0 = vor.u32 %v4710_v55, %v4707_v53  ;;  %v4716_v20 = vrot.slane %v4714_v58, 5  ;;  %v4721_v6 = vrot.slane %v4719_v24, 4  ;;  %v5323_v58 = vld [vmem:[%s8048_s0 + $0x234] sm:$0x1] }
 0x13c   :  { %v2242_v5 = vrot.slane %v2241_v62, 4  ;;  %v4724_v7 = vrot.slane %v4722_v63, 5  ;;  %v4730_v49 = vrot.slane %v4728_v41, 5  ;;  %6094 = vmatprep.mubr.msk.bf16.mxu0 %vm91_vm1, %v5657_v2  ;;  %v2249_v30 = vshrl.u32 %v5316_v25, 16  ;;  %v5648_v62 = vld [vmem:[%s8048_s0 + $0x230] sm:$0xf] }
 0x13d   :  { %v4712_v10 = vrot.slane %v4711_v0, 4  ;;  %v2252_v13 = vshll.u32 %v5316_v25, 16  ;;  %v2258_v14 = vshll.u32 %v5317_v59, 16  ;;  %v2263_v52 = vshrl.u32 %v5318_v1, 16 }
 0x13e   :  { %v2247_v16 = vsel %vm6595_vm4, %v2242_v5, %v2246_v51  ;;  %v4725_v3 = vor.u32 %v4724_v7, %v4721_v6  ;;  %v2266_v17 = vshll.u32 %v5318_v1, 16  ;;  %v2251_v48 = vrot.slane %v2249_v30, 4  ;;  %v5322_v51 = vld [vmem:[%s8048_s0 + $0x230] sm:$0xf]  ;;  %v5649_v1 = vld [vmem:[%s8048_s0 + $0x234] sm:$0x1] }
 0x13f   :  { %v5330_v32 = vcombine.low %v2233_v60, %v2247_v16  ;;  %v4717_v12 = vsel %vm6595_vm4, %v4712_v10, %v4716_v20  ;;  %v2254_v18 = vrot.slane %v2252_v13, 5  ;;  %v2260_v26 = vrot.slane %v2258_v14, 5  ;;  %v5651_v16 = vld [vmem:[%s8048_s0 + $0x23c] sm:$0x1] }
 0x140   :  { %v4726_v23 = vrot.slane %v4725_v3, 4  ;;  %v2265_v27 = vrot.slane %v2263_v52, 4  ;;  %v2268_v11 = vrot.slane %v2266_v17, 5  ;;  %v2272_v44 = vshll.u32 %v5319_v9, 16 }
 0x141   :  { %5951 = vmatmul.mubr.msk.bf16.gmra.mrb[8].mxu1 %vm91_vm1, %v5330_v32  ;;  %v2255_v28 = vor.u32 %v2254_v18, %v2251_v48  ;;  %v4733_v34 = vshrl.u32 %v5644_v56, 16  ;;  %v4736_v29 = vshll.u32 %v5644_v56, 16  ;;  %v4742_v36 = vshll.u32 %v5645_v19, 16 }
 0x142   :  { %v4731_v31 = vsel %vm6595_vm4, %v4726_v23, %v4730_v49  ;;  %v2269_v33 = vor.u32 %v2268_v11, %v2265_v27  ;;  %v4747_v37 = vshrl.u32 %v5646_v22, 16  ;;  %v2274_v40 = vrot.slane %v2272_v44, 5  ;;  %v5650_v49 = vld [vmem:[%s8048_s0 + $0x238] sm:$0xf] }
 0x143   :  { %v5658_v38 = vcombine.low %v4717_v12, %v4731_v31  ;;  %v2256_v39 = vrot.slane %v2255_v28, 4  ;;  %v4735_v42 = vrot.slane %v4733_v34, 4  ;;  %v4738_v4 = vrot.slane %v4736_v29, 5 }
 0x144   :  { %v2270_v43 = vrot.slane %v2269_v33, 4  ;;  %v4744_v45 = vrot.slane %v4742_v36, 5  ;;  %v4749_v46 = vrot.slane %v4747_v37, 4  ;;  %v4750_v50 = vshll.u32 %v5646_v22, 16 }
 0x145   :  { %6095 = vmatmul.mubr.msk.bf16.gmra.mrb[8].mxu0 %vm91_vm1, %v5658_v38  ;;  %v2261_v47 = vsel %vm6595_vm4, %v2256_v39, %v2260_v26  ;;  %v4756_v15 = vshll.u32 %v5647_v35, 16  ;;  %v2277_v53 = vshrl.u32 %v5320_v21, 16  ;;  %v4739_v55 = vor.u32 %v4738_v4, %v4735_v42 }
 0x146   :  { %v2275_v54 = vsel %vm6595_vm4, %v2270_v43, %v2274_v40  ;;  %v2280_v24 = vshll.u32 %v5320_v21, 16  ;;  %v2286_v57 = vshll.u32 %v5321_v8, 16  ;;  %v4752_v41 = vrot.slane %v4750_v50, 5 }
 0x147   :  { %v5331_v63 = vcombine.low %v2261_v47, %v2275_v54  ;;  %v4758_v25 = vrot.slane %v4756_v15, 5  ;;  %v2279_v59 = vrot.slane %v2277_v53, 4  ;;  %v4740_v2 = vrot.slane %v4739_v55, 4  ;;  %v7965_v47 = vld [vmem:[%s8049_s2] ss:$0 sm:$0xff] }
 0x148   :  { %v2282_v60 = vrot.slane %v2280_v24, 5  ;;  %v2288_v0 = vrot.slane %v2286_v57, 5  ;;  %v2291_v20 = vshrl.u32 %v5322_v51, 16  ;;  %v4753_v5 = vor.u32 %v4752_v41, %v4749_v46 }
 0x149   :  { %5954 = vmatprep.mubr.msk.bf16.mxu1 %vm91_vm1, %v5331_v63  ;;  %v2294_v6 = vshll.u32 %v5322_v51, 16  ;;  %v2300_v7 = vshll.u32 %v5323_v58, 16  ;;  %v4761_v10 = vshrl.u32 %v5648_v62, 16  ;;  %v4745_v30 = vsel %vm6595_vm4, %v4740_v2, %v4744_v45 }
 0x14a   :  { %v2283_v13 = vor.u32 %v2282_v60, %v2279_v59  ;;  %v2293_v14 = vrot.slane %v2291_v20, 4  ;;  %v4764_v3 = vshll.u32 %v5648_v62, 16  ;;  %v4754_v9 = vrot.slane %v4753_v5, 4 }
 0x14b   :  { %v2296_v52 = vrot.slane %v2294_v6, 5  ;;  %v2302_v17 = vrot.slane %v2300_v7, 5  ;;  %v4763_v56 = vrot.slane %v4761_v10, 4  ;;  %v4770_v48 = vshll.u32 %v5649_v1, 16 }
 0x14c   :  { %v2284_v32 = vrot.slane %v2283_v13, 4  ;;  %v4766_v12 = vrot.slane %v4764_v3, 5  ;;  %v4775_v18 = vshrl.u32 %v5650_v49, 16  ;;  %v4759_v19 = vsel %vm6595_vm4, %v4754_v9, %v4758_v25 }
 0x14d   :  { %v2297_v22 = vor.u32 %v2296_v52, %v2293_v14  ;;  %v4778_v23 = vshll.u32 %v5650_v49, 16  ;;  %v4784_v26 = vshll.u32 %v5651_v16, 16  ;;  %v5659_v27 = vcombine.low %v4745_v30, %v4759_v19 }
 0x14e   :  { %v2289_v11 = vsel %vm6595_vm4, %v2284_v32, %v2288_v0  ;;  %v4767_v28 = vor.u32 %v4766_v12, %v4763_v56  ;;  %v4772_v34 = vrot.slane %v4770_v48, 5  ;;  %v4777_v29 = vrot.slane %v4775_v18, 4 }
 0x14f   :  { %v2298_v44 = vrot.slane %v2297_v22, 4  ;;  %v4780_v31 = vrot.slane %v4778_v23, 5  ;;  %6098 = vmatprep.mubr.msk.bf16.mxu0 %vm91_vm1, %v5659_v27  ;;  %v4786_v37 = vrot.slane %v4784_v26, 5 }
 0x150   :  { %v4768_v33 = vrot.slane %v4767_v28, 4 }
 0x151   :  { %v2303_v35 = vsel %vm6595_vm4, %v2298_v44, %v2302_v17  ;;  %v4781_v36 = vor.u32 %v4780_v31, %v4777_v29 }
 0x152   :  { %v5332_v21 = vcombine.low %v2289_v11, %v2303_v35  ;;  %v4773_v38 = vsel %vm6595_vm4, %v4768_v33, %v4772_v34 }
 0x153   :  { %v4782_v39 = vrot.slane %v4781_v36, 4 }
 0x154   :  { %5955 = vmatmul.mubr.msk.bf16.gmra.mrb[12].mxu1 %vm91_vm1, %v5332_v21 }
 0x155   :  { %v4787_v40 = vsel %vm6595_vm4, %v4782_v39, %v4786_v37 }
 0x156   :  { %v5660_v42 = vcombine.low %v4773_v38, %v4787_v40 }
 0x158   :  { %6099 = vmatmul.mubr.msk.bf16.gmra.mrb[12].mxu0 %vm91_vm1, %v5660_v42 }
 0x1f0   :  { %v5944_v8 = vpop.f32.mrb[0].mxu1 }
 0x1f1   :  { %v2391_v43 = vpop.f32.mrb[1].mxu1 }
 0x1f2   :  { %v5945_v4 = vpop.f32.mrb[2].mxu1 }
 0x1f3   :  { %v2394_v45 = vpop.f32.mrb[3].mxu1 }
 0x1f4   :  { %v6088_v46 = vpop.f32.mrb[0].mxu0 }
 0x1f5   :  { %v6102_v50 = vadd.f32 %v6088_v46, %v5944_v8  ;;  %v4875_v15 = vpop.f32.mrb[1].mxu0 }
 0x1f6   :  { %v6103_v51 = vadd.f32 %v4875_v15, %v2391_v43  ;;  %v6089_v53 = vpop.f32.mrb[2].mxu0 }
 0x1f7   :  { %v4963_v61 = vadd.f32 %v6102_v50, %v7965_v47  ;;  %v6104_v54 = vadd.f32 %v6089_v53, %v5945_v4  ;;  %v4878_v55 = vpop.f32.mrb[3].mxu0 }
 0x1f8   :  { %v4961_v58 = vadd.f32 %v6103_v51, %v7965_v47  ;;  %v6105_v24 = vadd.f32 %v4878_v55, %v2394_v45 }
 0x1f9   :  { %vm4979_vm5 = vcmp.ge.f32.partialorder %v4963_v61, 0.0  ;;  %v4995_v57 = vmul.f32 0.2, %v4963_v61  ;;  %v4964_v62 = vadd.f32 %v6104_v54, %v7965_v47 }
 0x1fa   :  { %vm4977_vm6 = vcmp.ge.f32.partialorder %v4961_v58, 0.0  ;;  %v4993_v63 = vmul.f32 0.2, %v4961_v58  ;;  %v4962_v41 = vadd.f32 %v6105_v24, %v7965_v47 }
 0x1fb   :  { %v5011_v25 = vsel %vm4979_vm5, %v4963_v61, %v4995_v57  ;;  %vm4980_vm8 = vcmp.ge.f32.partialorder %v4964_v62, 0.0  ;;  %v4996_v59 = vmul.f32 0.2, %v4964_v62 }
 0x1fc   :  { %v5027_v2 = vpack.c.bf16 %v5011_v25, %v5011_v25  ;;  %v5009_v60 = vsel %vm4977_vm6, %v4961_v58, %v4993_v63  ;;  %vm4978_vm9 = vcmp.ge.f32.partialorder %v4962_v41, 0.0  ;;  %v4994_v0 = vmul.f32 0.2, %v4962_v41 }
 0x1fd   :  { %v5025_v20 = vpack.c.bf16 %v5009_v60, %v5009_v60  ;;  %v5012_v1 = vsel %vm4980_vm8, %v4964_v62, %v4996_v59 }
 0x1fe   :  { %5044 = vst.msk [vmem:[%s8050_s3 + $0x8] sm:$0xf] %vm5041_vm7, %v5027_v2  ;;  %v5028_v5 = vpack.c.bf16 %v5012_v1, %v5012_v1  ;;  %v5010_v6 = vsel %vm4978_vm9, %v4962_v41, %v4994_v0 }
 0x1ff   :  { %5042 = vst.msk [vmem:[%s8050_s3] sm:$0xf] %vm5041_vm7, %v5025_v20  ;;  %v5026_v7 = vpack.c.bf16 %v5010_v6, %v5010_v6 }
 0x200   :  { %5045 = vst.msk [vmem:[%s8050_s3 + $0xc] sm:$0xf] %vm5041_vm7, %v5028_v5 }
 0x201   :  { %5043 = vst.msk [vmem:[%s8050_s3 + $0x4] sm:$0xf] %vm5041_vm7, %v5026_v7  ;;  %v5948_v49 = vpop.f32.mrb[4].mxu1 }
 0x202   :  { %v2407_v10 = vpop.f32.mrb[5].mxu1 }
 0x203   :  { %v5949_v30 = vpop.f32.mrb[6].mxu1 }
 0x204   :  { %v2410_v13 = vpop.f32.mrb[7].mxu1 }
 0x205   :  { %v6092_v14 = vpop.f32.mrb[4].mxu0 }
 0x206   :  { %v6106_v16 = vadd.f32 %v6092_v14, %v5948_v49  ;;  %v4891_v3 = vpop.f32.mrb[5].mxu0 }
 0x207   :  { %v6107_v9 = vadd.f32 %v4891_v3, %v2407_v10  ;;  %v6093_v52 = vpop.f32.mrb[6].mxu0 }
 0x208   :  { %v4967_v17 = vadd.f32 %v6106_v16, %v7965_v47  ;;  %v6108_v56 = vadd.f32 %v6093_v52, %v5949_v30  ;;  %v4894_v32 = vpop.f32.mrb[7].mxu0 }
 0x209   :  { %v4965_v12 = vadd.f32 %v6107_v9, %v7965_v47  ;;  %v6109_v48 = vadd.f32 %v4894_v32, %v2410_v13 }
 0x20a   :  { %vm4983_vm10 = vcmp.ge.f32.partialorder %v4967_v17, 0.0  ;;  %v4999_v18 = vmul.f32 0.2, %v4967_v17  ;;  %v4968_v19 = vadd.f32 %v6108_v56, %v7965_v47 }
 0x20b   :  { %vm4981_vm11 = vcmp.ge.f32.partialorder %v4965_v12, 0.0  ;;  %v4997_v22 = vmul.f32 0.2, %v4965_v12  ;;  %v4966_v23 = vadd.f32 %v6109_v48, %v7965_v47 }
 0x20c   :  { %v5015_v26 = vsel %vm4983_vm10, %v4967_v17, %v4999_v18  ;;  %vm4984_vm12 = vcmp.ge.f32.partialorder %v4968_v19, 0.0  ;;  %v5000_v27 = vmul.f32 0.2, %v4968_v19 }
 0x20d   :  { %v5031_v11 = vpack.c.bf16 %v5015_v26, %v5015_v26  ;;  %v5013_v28 = vsel %vm4981_vm11, %v4965_v12, %v4997_v22  ;;  %vm4982_vm13 = vcmp.ge.f32.partialorder %v4966_v23, 0.0  ;;  %v4998_v44 = vmul.f32 0.2, %v4966_v23 }
 0x20e   :  { %v5029_v34 = vpack.c.bf16 %v5013_v28, %v5013_v28  ;;  %v5016_v29 = vsel %vm4984_vm12, %v4968_v19, %v5000_v27 }
 0x20f   :  { %5048 = vst.msk [vmem:[%s8050_s3 + $0x18] sm:$0xf] %vm5041_vm7, %v5031_v11  ;;  %v5032_v31 = vpack.c.bf16 %v5016_v29, %v5016_v29  ;;  %v5014_v33 = vsel %vm4982_vm13, %v4966_v23, %v4998_v44 }
 0x210   :  { %5046 = vst.msk [vmem:[%s8050_s3 + $0x10] sm:$0xf] %vm5041_vm7, %v5029_v34  ;;  %v5030_v35 = vpack.c.bf16 %v5014_v33, %v5014_v33 }
 0x211   :  { %5049 = vst.msk [vmem:[%s8050_s3 + $0x1c] sm:$0xf] %vm5041_vm7, %v5032_v31 }
 0x212   :  { %5047 = vst.msk [vmem:[%s8050_s3 + $0x14] sm:$0xf] %vm5041_vm7, %v5030_v35 }
 0x214   :  { %v5952_v36 = vpop.f32.mrb[8].mxu1 }
 0x215   :  { %v2423_v37 = vpop.f32.mrb[9].mxu1 }
 0x216   :  { %v5953_v21 = vpop.f32.mrb[10].mxu1 }
 0x217   :  { %v2426_v38 = vpop.f32.mrb[11].mxu1 }
 0x218   :  { %v6096_v39 = vpop.f32.mrb[8].mxu0 }
 0x219   :  { %v6110_v40 = vadd.f32 %v6096_v39, %v5952_v36  ;;  %v4907_v42 = vpop.f32.mrb[9].mxu0 }
 0x21a   :  { %v6111_v8 = vadd.f32 %v4907_v42, %v2423_v37  ;;  %v6097_v43 = vpop.f32.mrb[10].mxu0 }
 0x21b   :  { %v4971_v4 = vadd.f32 %v6110_v40, %v7965_v47  ;;  %v6112_v45 = vadd.f32 %v6097_v43, %v5953_v21  ;;  %v4910_v46 = vpop.f32.mrb[11].mxu0 }
 0x21c   :  { %v4969_v50 = vadd.f32 %v6111_v8, %v7965_v47  ;;  %v6113_v15 = vadd.f32 %v4910_v46, %v2426_v38 }
 0x21d   :  { %vm4987_vm14 = vcmp.ge.f32.partialorder %v4971_v4, 0.0  ;;  %v5003_v51 = vmul.f32 0.2, %v4971_v4  ;;  %v4972_v53 = vadd.f32 %v6112_v45, %v7965_v47 }
 0x21e   :  { %vm4985_vm15 = vcmp.ge.f32.partialorder %v4969_v50, 0.0  ;;  %v5001_v61 = vmul.f32 0.2, %v4969_v50  ;;  %v4970_v54 = vadd.f32 %v6113_v15, %v7965_v47 }
 0x21f   :  { %v5019_v55 = vsel %vm4987_vm14, %v4971_v4, %v5003_v51  ;;  %vm4988_vm0 = vcmp.ge.f32.partialorder %v4972_v53, 0.0  ;;  %v5004_v58 = vmul.f32 0.2, %v4972_v53 }
 0x220   :  { %v5035_v24 = vpack.c.bf16 %v5019_v55, %v5019_v55  ;;  %v5017_v57 = vsel %vm4985_vm15, %v4969_v50, %v5001_v61  ;;  %vm4986_vm1 = vcmp.ge.f32.partialorder %v4970_v54, 0.0  ;;  %v5002_v62 = vmul.f32 0.2, %v4970_v54 }
 0x221   :  { %v5033_v63 = vpack.c.bf16 %v5017_v57, %v5017_v57  ;;  %v5020_v41 = vsel %vm4988_vm0, %v4972_v53, %v5004_v58 }
 0x222   :  { %5052 = vst.msk [vmem:[%s8050_s3 + $0x28] sm:$0xf] %vm5041_vm7, %v5035_v24  ;;  %v5036_v25 = vpack.c.bf16 %v5020_v41, %v5020_v41  ;;  %v5018_v59 = vsel %vm4986_vm1, %v4970_v54, %v5002_v62 }
 0x223   :  { %5050 = vst.msk [vmem:[%s8050_s3 + $0x20] sm:$0xf] %vm5041_vm7, %v5033_v63  ;;  %v5034_v2 = vpack.c.bf16 %v5018_v59, %v5018_v59 }
 0x224   :  { %5053 = vst.msk [vmem:[%s8050_s3 + $0x2c] sm:$0xf] %vm5041_vm7, %v5036_v25 }
 0x225   :  { %5051 = vst.msk [vmem:[%s8050_s3 + $0x24] sm:$0xf] %vm5041_vm7, %v5034_v2 }
 0x227   :  { %v5956_v60 = vpop.f32.mrb[12].mxu1 }
 0x228   :  { %v2439_v0 = vpop.f32.mrb[13].mxu1 }
 0x229   :  { %v5957_v20 = vpop.f32.mrb[14].mxu1 }
 0x22a   :  { %v2442_v1 = vpop.f32.mrb[15].mxu1 }
 0x22b   :  { %v6100_v5 = vpop.f32.mrb[12].mxu0 }
 0x22c   :  { %v6114_v6 = vadd.f32 %v6100_v5, %v5956_v60  ;;  %v4923_v7 = vpop.f32.mrb[13].mxu0 }
 0x22d   :  { %v6115_v49 = vadd.f32 %v4923_v7, %v2439_v0  ;;  %v6101_v10 = vpop.f32.mrb[14].mxu0 }
 0x22e   :  { %v4975_v30 = vadd.f32 %v6114_v6, %v7965_v47  ;;  %v6116_v13 = vadd.f32 %v6101_v10, %v5957_v20  ;;  %v4926_v14 = vpop.f32.mrb[15].mxu0 }
 0x22f   :  { %v4973_v16 = vadd.f32 %v6115_v49, %v7965_v47  ;;  %v6117_v3 = vadd.f32 %v4926_v14, %v2442_v1 }
 0x230   :  { %vm4991_vm2 = vcmp.ge.f32.partialorder %v4975_v30, 0.0  ;;  %v5007_v9 = vmul.f32 0.2, %v4975_v30  ;;  %v4976_v52 = vadd.f32 %v6116_v13, %v7965_v47 }
 0x231   :  { %vm4989_vm3 = vcmp.ge.f32.partialorder %v4973_v16, 0.0  ;;  %v5005_v17 = vmul.f32 0.2, %v4973_v16  ;;  %v4974_v56 = vadd.f32 %v6117_v3, %v7965_v47 }
 0x232   :  { %v5023_v32 = vsel %vm4991_vm2, %v4975_v30, %v5007_v9  ;;  %vm4992_vm4 = vcmp.ge.f32.partialorder %v4976_v52, 0.0  ;;  %v5008_v12 = vmul.f32 0.2, %v4976_v52 }
 0x233   :  { %v5039_v48 = vpack.c.bf16 %v5023_v32, %v5023_v32  ;;  %v5021_v18 = vsel %vm4989_vm3, %v4973_v16, %v5005_v17  ;;  %vm4990_vm5 = vcmp.ge.f32.partialorder %v4974_v56, 0.0  ;;  %v5006_v19 = vmul.f32 0.2, %v4974_v56 }
 0x234   :  { %v5037_v22 = vpack.c.bf16 %v5021_v18, %v5021_v18  ;;  %v5024_v23 = vsel %vm4992_vm4, %v4976_v52, %v5008_v12 }
 0x235   :  { %5056 = vst.msk [vmem:[%s8050_s3 + $0x38] sm:$0xf] %vm5041_vm7, %v5039_v48  ;;  %v5040_v26 = vpack.c.bf16 %v5024_v23, %v5024_v23  ;;  %v5022_v27 = vsel %vm4990_vm5, %v4974_v56, %v5006_v19 }
 0x236   :  { %5054 = vst.msk [vmem:[%s8050_s3 + $0x30] sm:$0xf] %vm5041_vm7, %v5037_v22  ;;  %v5038_v47 = vpack.c.bf16 %v5022_v27, %v5022_v27 }
 0x237   :  { %5057 = vst.msk [vmem:[%s8050_s3 + $0x3c] sm:$0xf] %vm5041_vm7, %v5040_v26 }
 0x238   :  { %5055 = vst.msk [vmem:[%s8050_s3 + $0x34] sm:$0xf] %vm5041_vm7, %v5038_v47 }

// kernel: discriminator_forward.3
= control target key start
LH: loop header
LB: loop body
LE: loop exit
PB: predicated region body
PF: predicated region fallthrough
CT: control target
= control target key end

     0   :  { %v65_v0 = vlaneseq  ;;  %v8823_v2 = vmov 1983009808   ;;  %vm339_vm0 = vsmask.f32 1280  ;;  %vm100_vm1 = vcmask 130048   ;;  %s10273_s1 = inlined_call_operand.vmem [shape: bf16[16,16,32], index: 1, kind: input, shape index: {}]   ;;  %s10274_s0 = inlined_call_operand.vmem [shape: bf16[2,2,2,5,5,16], index: 0, kind: input, shape index: {}]   ;;  %s10275_s3 = inlined_call_operand.vmem [shape: bf16[9,32,32], index: 3, kind: input, shape index: {}]   ;;  %s10276_s2 = inlined_call_operand.vmem [shape: f32[1,32], index: 2, kind: input, shape index: {}]   ;;  %s10277_s5 = inlined_call_operand.vmem [shape: bf16[9,32,32], index: 5, kind: input, shape index: {}]   ;;  %s10278_s4 = inlined_call_operand.vmem [shape: f32[1,32], index: 4, kind: input, shape index: {}]   ;;  %s10279_s6 = inlined_call_operand.vmem [shape: f32[1,32], index: 6, kind: input, shape index: {}]   ;;  %s10280_s7 = inlined_call_operand.vmem [shape: f32[1,32], index: 7, kind: input, shape index: {}]   ;;  %s10281_s8 = inlined_call_operand.vmem [shape: f32[32,1], index: 8, kind: output, shape index: {}]  }
   0x1   :  { %v8659_v1 = vld [vmem:[%s10273_s1 + $0x8] sm:$0xff]   ;;  %v63_v3 = vunpack.c.l.s4 %v8823_v2  ;;  %v8767_v4 = vld.sshfl [vmem:[%s10274_s0 + $0x14] sm:$0xf pattern:$0x76325410]  ;;  %v8662_v8 = vld [vmem:[%s10273_s1] sm:$0xff]  }
   0x2   :  { %8293 = vmatprep.subr.bf16.mxu0 %v8659_v1  ;;  %v8768_v5 = vld.sshfl [vmem:[%s10274_s0 + $0x1c] sm:$0xf pattern:$0x76325410]  ;;  %v66_v7 = vshrl.u32 %v65_v0, 7  ;;  %v8899_v14 = vld [vmem:[%s10273_s1 + $0x10] sm:$0xff]  }
   0x3   :  { %v64_v6 = vunpack.c.0.s8 %v63_v3  ;;  %8294 = vmatpush3.bf16.msra.mxu0 %v8659_v1  ;;  %v8769_v10 = vld.sshfl [vmem:[%s10274_s0 + $0x64] sm:$0xf pattern:$0x76325410]  ;;  %v76_v15 = vcombine.low %v8767_v4, %v8768_v5  ;;  %vm340_vm2 = vsmask.f32 3336 }
   0x4   :  { %8299 = vmatprep.subr.bf16.mxu0 %v8662_v8  ;;  %v8770_v11 = vld.sshfl [vmem:[%s10274_s0 + $0x6c] sm:$0xf pattern:$0x76325410]  ;;  %vm342_vm3 = vsmask.f32 5392  ;;  %vm341_vm4 = vmor %vm339_vm0, %vm340_vm2 }
   0x5   :  { %v8882_v9 = vsub.s32 %v64_v6, %v66_v7  ;;  %v8771_v12 = vld.sshfl [vmem:[%s10274_s0] sm:$0xf pattern:$0x76325410]  ;;  %v93_v16 = vcombine.low %v8769_v10, %v8770_v11  ;;  %8295 = vmatprep.mubr.msk.bf16.mxu0 %vm100_vm1, %v76_v15  ;;  %vm344_vm5 = vsmask.f32 7448  ;;  %vm343_vm6 = vmor %vm341_vm4, %vm342_vm3 }
   0x6   :  { %v8772_v13 = vld.sshfl [vmem:[%s10274_s0 + $0x8] sm:$0xf pattern:$0x76325410]  ;;  %vm8926_vm7 = vmor %vm343_vm6, %vm344_vm5  ;;  %v8935_v60 = vld [vmem:[%s10273_s1 + $0x18] sm:$0xff]   ;;  %vm3355_vm8 = vcmask 256000  }
   0x7   :  { %v8773_v17 = vld.sshfl [vmem:[%s10274_s0 + $0x50] sm:$0xf pattern:$0x76325410]  ;;  %v180_v19 = vcombine.low %v8771_v12, %v8772_v13  ;;  %8296 = vmatmul.mubr.msk.bf16.vlgmr.msra.gmra.mrb[0].mxu0 %vm100_vm1, %v93_v16  ;;  %vm3478_vm9 = vsmask.f32 2306 }
   0x8   :  { %v8774_v18 = vld.sshfl [vmem:[%s10274_s0 + $0x58] sm:$0xf pattern:$0x76325410]  ;;  %8300 = vmatpush3.bf16.msra.mxu0 %v8662_v8  ;;  %vm4004_vm13 = vcmask 1040384   ;;  %vm4005_vm14 = vcmask 1042434  }
   0x9   :  { %v7619_v20 = vld.sshfl [vmem:[%s10274_s0] sm:$0x13 pattern:$0x76325410]  ;;  %8301 = vmatprep.mubr.msk.bf16.mxu0 %vm100_vm1, %v180_v19  ;;  %8305 = vmatprep.subr.bf16.mxu0 %v8899_v14  ;;  %v197_v50 = vcombine.low %v8773_v17, %v8774_v18  ;;  %vm4007_vm0 = vcmask 1044484   ;;  %vm4006_vm2 = vmor %vm4004_vm13, %vm4005_vm14  ;;  %vm4009_vm4 = vcmask 1046534  }
   0xa   :  { %v7620_v21 = vld.sshfl [vmem:[%s10274_s0 + $0x4] sm:$0x13 pattern:$0x76325410]  ;;  %v282_v22 = vcombine.high %v7619_v20, %v7619_v20  ;;  %v347_v27 = vshrl.u32 %v7619_v20, 16  ;;  %v350_v28 = vshll.u32 %v7619_v20, 16  ;;  %vm9738_vm3 = vmor %vm4006_vm2, %vm4007_vm0 }
   0xb   :  { %v7621_v23 = vld.sshfl [vmem:[%s10274_s0 + $0x8] sm:$0x13 pattern:$0x76325410]  ;;  %v290_v24 = vcombine.high %v7620_v21, %v7620_v21  ;;  %v361_v31 = vshrl.u32 %v7620_v21, 16  ;;  %v364_v32 = vshll.u32 %v7620_v21, 16  ;;  %vm9752_vm5 = vmor %vm9738_vm3, %vm4009_vm4 }
   0xc   :  { %v7622_v25 = vld.sshfl [vmem:[%s10274_s0 + $0xc] sm:$0x13 pattern:$0x76325410]  ;;  %v298_v26 = vcombine.high %v7621_v23, %v7621_v23  ;;  %v356_v30 = vshll.u32 %v282_v22, 16  ;;  %v349_v33 = vrot.slane %v347_v27, 6 }
   0xd   :  { %v306_v29 = vcombine.high %v7622_v25, %v7622_v25  ;;  %v352_v34 = vrot.slane %v350_v28, 7  ;;  %v370_v35 = vshll.u32 %v290_v24, 16  ;;  %v375_v36 = vshrl.u32 %v7621_v23, 16 }
   0xe   :  { %v358_v37 = vrot.slane %v356_v30, 7  ;;  %v363_v38 = vrot.slane %v361_v31, 6  ;;  %v366_v39 = vrot.slane %v364_v32, 7  ;;  %v378_v40 = vshll.u32 %v7621_v23, 16 }
   0xf   :  { %v353_v41 = vor.u32 %v352_v34, %v349_v33  ;;  %v372_v42 = vrot.slane %v370_v35, 7  ;;  %v377_v43 = vrot.slane %v375_v36, 6  ;;  %v384_v44 = vshll.u32 %v298_v26, 16 }
  0x10   :  { %v367_v46 = vor.u32 %v366_v39, %v363_v38  ;;  %v380_v47 = vrot.slane %v378_v40, 7  ;;  %v389_v48 = vshrl.u32 %v7622_v25, 16  ;;  %v392_v49 = vshll.u32 %v7622_v25, 16 }
  0x11   :  { %v354_v51 = vrot.slane %v353_v41, 2  ;;  %v386_v52 = vrot.slane %v384_v44, 7  ;;  %v398_v53 = vshll.u32 %v306_v29, 16  ;;  %vm3759_vm6 = vcmask 261120  }
  0x12   :  { %v368_v54 = vrot.slane %v367_v46, 2  ;;  %v381_v55 = vor.u32 %v380_v47, %v377_v43  ;;  %v391_v56 = vrot.slane %v389_v48, 6  ;;  %v394_v57 = vrot.slane %v392_v49, 7 }
  0x13   :  { %v359_v58 = vsel %vm8926_vm7, %v354_v51, %v358_v37  ;;  %v400_v59 = vrot.slane %v398_v53, 7  ;;  %v7623_v61 = vld.sshfl [vmem:[%s10274_s0 + $0x50] sm:$0x13 pattern:$0x76325410]  ;;  %8302 = vmatmul.mubr.msk.bf16.vlgmr.msra.gmra.mrb[0].mxu0 %vm100_vm1, %v197_v50 }
  0x14   :  { %v373_v62 = vsel %vm8926_vm7, %v368_v54, %v372_v42  ;;  %v382_v63 = vrot.slane %v381_v55, 2  ;;  %v395_v0 = vor.u32 %v394_v57, %v391_v56  ;;  %v7624_v1 = vld.sshfl [vmem:[%s10274_s0 + $0x54] sm:$0x13 pattern:$0x76325410]  ;;  %v314_v2 = vcombine.high %v7623_v61, %v7623_v61  ;;  %8306 = vmatpush3.bf16.msra.mxu0 %v8899_v14 }
  0x15   :  { %v461_v3 = vcombine.low %v359_v58, %v373_v62  ;;  %v7625_v4 = vld.sshfl [vmem:[%s10274_s0 + $0x58] sm:$0x13 pattern:$0x76325410]  ;;  %v322_v5 = vcombine.high %v7624_v1, %v7624_v1  ;;  %v403_v6 = vshrl.u32 %v7623_v61, 16  ;;  %v406_v7 = vshll.u32 %v7623_v61, 16  ;;  %8311 = vmatprep.subr.bf16.mxu0 %v8935_v60 }
  0x16   :  { %v387_v8 = vsel %vm8926_vm7, %v382_v63, %v386_v52  ;;  %v396_v10 = vrot.slane %v395_v0, 2  ;;  %v7626_v11 = vld.sshfl [vmem:[%s10274_s0 + $0x5c] sm:$0x13 pattern:$0x76325410]  ;;  %v330_v12 = vcombine.high %v7625_v4, %v7625_v4  ;;  %v412_v13 = vshll.u32 %v314_v2, 16 }
  0x17   :  { %v469_v15 = vrot.slane %v461_v3, %v8882_v9  ;;  %v338_v16 = vcombine.high %v7626_v11, %v7626_v11  ;;  %v405_v17 = vrot.slane %v403_v6, 6  ;;  %v408_v18 = vrot.slane %v406_v7, 7  ;;  %v7640_v34 = vld.sshfl [vmem:[%s10274_s0 + $0x14] sm:$0x13 pattern:$0x76325410] }
  0x18   :  { %v401_v14 = vsel %vm8926_vm7, %v396_v10, %v400_v59  ;;  %v414_v19 = vrot.slane %v412_v13, 7  ;;  %v417_v20 = vshrl.u32 %v7624_v1, 16  ;;  %v420_v21 = vshll.u32 %v7624_v1, 16 }
  0x19   :  { %v462_v22 = vcombine.low %v387_v8, %v401_v14  ;;  %v409_v23 = vor.u32 %v408_v18, %v405_v17  ;;  %v426_v24 = vshll.u32 %v322_v5, 16  ;;  %v431_v25 = vshrl.u32 %v7625_v4, 16  ;;  %v7641_v43 = vld.sshfl [vmem:[%s10274_s0 + $0x18] sm:$0x13 pattern:$0x76325410] }
  0x1a   :  { %v419_v26 = vrot.slane %v417_v20, 6  ;;  %v422_v27 = vrot.slane %v420_v21, 7  ;;  %v434_v28 = vshll.u32 %v7625_v4, 16  ;;  %v440_v29 = vshll.u32 %v330_v12, 16 }
  0x1b   :  { %v476_v30 = vrot.slane %v462_v22, %v8882_v9  ;;  %v410_v31 = vrot.slane %v409_v23, 2  ;;  %v428_v32 = vrot.slane %v426_v24, 7  ;;  %v433_v33 = vrot.slane %v431_v25, 6 }
  0x1c   :  { %v423_v35 = vor.u32 %v422_v27, %v419_v26  ;;  %v436_v36 = vrot.slane %v434_v28, 7  ;;  %v442_v37 = vrot.slane %v440_v29, 7  ;;  %v445_v38 = vshrl.u32 %v7626_v11, 16 }
  0x1d   :  { %v477_v39 = vcombine.low %v469_v15, %v476_v30  ;;  %v415_v40 = vsel %vm8926_vm7, %v410_v31, %v414_v19  ;;  %v448_v41 = vshll.u32 %v7626_v11, 16  ;;  %v454_v42 = vshll.u32 %v338_v16, 16  ;;  %v7642_v48 = vld.sshfl [vmem:[%s10274_s0 + $0x1c] sm:$0x13 pattern:$0x76325410] }
  0x1e   :  { %v424_v44 = vrot.slane %v423_v35, 2  ;;  %v437_v46 = vor.u32 %v436_v36, %v433_v33  ;;  %v447_v47 = vrot.slane %v445_v38, 6  ;;  %v583_v49 = vcombine.high %v7640_v34, %v7640_v34  ;;  %v7643_v52 = vld.sshfl [vmem:[%s10274_s0 + $0x20] sm:$0x13 pattern:$0x76325410] }
  0x1f   :  { %8307 = vmatprep.mubr.msk.bf16.mxu0 %vm100_vm1, %v477_v39  ;;  %v450_v50 = vrot.slane %v448_v41, 7  ;;  %v456_v51 = vrot.slane %v454_v42, 7  ;;  %v591_v53 = vcombine.high %v7641_v43, %v7641_v43  ;;  %v599_v54 = vcombine.high %v7642_v48, %v7642_v48  ;;  %v7644_v21 = vld.sshfl [vmem:[%s10274_s0 + $0x64] sm:$0x13 pattern:$0x76325410] }
  0x20   :  { %v429_v55 = vsel %vm8926_vm7, %v424_v44, %v428_v32  ;;  %v438_v56 = vrot.slane %v437_v46, 2  ;;  %v607_v57 = vcombine.high %v7643_v52, %v7643_v52  ;;  %v641_v58 = vshrl.u32 %v7640_v34, 16  ;;  %v7645_v30 = vld.sshfl [vmem:[%s10274_s0 + $0x68] sm:$0x13 pattern:$0x76325410] }
  0x21   :  { %v451_v59 = vor.u32 %v450_v50, %v447_v47  ;;  %v478_v61 = vcombine.low %v415_v40, %v429_v55  ;;  %v644_v62 = vshll.u32 %v7640_v34, 16  ;;  %v650_v63 = vshll.u32 %v583_v49, 16  ;;  %v7646_v31 = vld.sshfl [vmem:[%s10274_s0 + $0x6c] sm:$0x13 pattern:$0x76325410] }
  0x22   :  { %v443_v0 = vsel %vm8926_vm7, %v438_v56, %v442_v37  ;;  %v643_v1 = vrot.slane %v641_v58, 6  ;;  %v655_v2 = vshrl.u32 %v7641_v43, 16  ;;  %v658_v3 = vshll.u32 %v7641_v43, 16  ;;  %v8997_v35 = vld [vmem:[%s10273_s1 + $0x20] sm:$0xff]  }
  0x23   :  { %v452_v4 = vrot.slane %v451_v59, 2  ;;  %v486_v5 = vrot.slane %v478_v61, %v8882_v9  ;;  %v646_v6 = vrot.slane %v644_v62, 7  ;;  %v652_v7 = vrot.slane %v650_v63, 7 }
  0x24   :  { %v657_v8 = vrot.slane %v655_v2, 6  ;;  %v660_v10 = vrot.slane %v658_v3, 7  ;;  %v664_v11 = vshll.u32 %v591_v53, 16  ;;  %v669_v12 = vshrl.u32 %v7642_v48, 16 }
  0x25   :  { %v457_v13 = vsel %vm8926_vm7, %v452_v4, %v456_v51  ;;  %v647_v15 = vor.u32 %v646_v6, %v643_v1  ;;  %v672_v16 = vshll.u32 %v7642_v48, 16  ;;  %v678_v17 = vshll.u32 %v599_v54, 16  ;;  %v7647_v43 = vld.sshfl [vmem:[%s10274_s0 + $0x70] sm:$0x13 pattern:$0x76325410] }
  0x26   :  { %v479_v18 = vcombine.low %v443_v0, %v457_v13  ;;  %v661_v14 = vor.u32 %v660_v10, %v657_v8  ;;  %v666_v19 = vrot.slane %v664_v11, 7  ;;  %v671_v20 = vrot.slane %v669_v12, 6  ;;  %v9020_v4 = vld.sshfl [vmem:[%s10274_s0 + $0x30] sm:$0xf pattern:$0x76325410] }
  0x27   :  { %v648_v22 = vrot.slane %v647_v15, 2  ;;  %v674_v23 = vrot.slane %v672_v16, 7  ;;  %v680_v24 = vrot.slane %v678_v17, 7  ;;  %v683_v25 = vshrl.u32 %v7643_v52, 16 }
  0x28   :  { %v493_v26 = vrot.slane %v479_v18, %v8882_v9  ;;  %v662_v27 = vrot.slane %v661_v14, 2  ;;  %v686_v28 = vshll.u32 %v7643_v52, 16  ;;  %v692_v29 = vshll.u32 %v607_v57, 16 }
  0x29   :  { %v653_v32 = vsel %vm8926_vm7, %v648_v22, %v652_v7  ;;  %v675_v33 = vor.u32 %v674_v23, %v671_v20  ;;  %v685_v34 = vrot.slane %v683_v25, 6  ;;  %v615_v36 = vcombine.high %v7644_v21, %v7644_v21  ;;  %v9030_v11 = vld.sshfl [vmem:[%s10274_s0 + $0x80] sm:$0xf pattern:$0x76325410] }
  0x2a   :  { %v494_v37 = vcombine.low %v486_v5, %v493_v26  ;;  %v667_v38 = vsel %vm8926_vm7, %v662_v27, %v666_v19  ;;  %v688_v39 = vrot.slane %v686_v28, 7  ;;  %v694_v40 = vrot.slane %v692_v29, 7  ;;  %v9025_v5 = vld.sshfl [vmem:[%s10274_s0 + $0x78] sm:$0xf pattern:$0x76325410] }
  0x2b   :  { %v676_v41 = vrot.slane %v675_v33, 2  ;;  %v755_v42 = vcombine.low %v653_v32, %v667_v38  ;;  %v623_v44 = vcombine.high %v7645_v30, %v7645_v30  ;;  %v631_v46 = vcombine.high %v7646_v31, %v7646_v31  ;;  %v9035_v12 = vld.sshfl [vmem:[%s10274_s0 + $0x3c] sm:$0xf pattern:$0x76325410] }
  0x2c   :  { %8308 = vmatmul.mubr.msk.bf16.vlgmr.msra.gmra.mrb[0].mxu0 %vm100_vm1, %v494_v37  ;;  %v689_v47 = vor.u32 %v688_v39, %v685_v34  ;;  %v639_v48 = vcombine.high %v7647_v43, %v7647_v43  ;;  %v697_v49 = vshrl.u32 %v7644_v21, 16  ;;  %v700_v50 = vshll.u32 %v7644_v21, 16  ;;  %v9043_v25 = vld.sshfl [vmem:[%s10274_s0 + $0x44] sm:$0xf pattern:$0x76325410] }
  0x2d   :  { %8312 = vmatpush3.bf16.msra.mxu0 %v8935_v60  ;;  %v681_v51 = vsel %vm8926_vm7, %v676_v41, %v680_v24  ;;  %v763_v52 = vrot.slane %v755_v42, %v8882_v9  ;;  %v706_v53 = vshll.u32 %v615_v36, 16  ;;  %v711_v54 = vshrl.u32 %v7645_v30, 16  ;;  %v9013_v60 = vld.sshfl [vmem:[%s10274_s0 + $0x28] sm:$0xf pattern:$0x76325410] }
  0x2e   :  { %v690_v55 = vrot.slane %v689_v47, 2  ;;  %8317 = vmatprep.subr.bf16.mxu0 %v8997_v35  ;;  %v699_v56 = vrot.slane %v697_v49, 6  ;;  %v702_v57 = vrot.slane %v700_v50, 7  ;;  %v714_v58 = vshll.u32 %v7645_v30, 16 }
  0x2f   :  { %v708_v59 = vrot.slane %v706_v53, 7  ;;  %v713_v61 = vrot.slane %v711_v54, 6  ;;  %v720_v62 = vshll.u32 %v623_v44, 16  ;;  %v725_v63 = vshrl.u32 %v7646_v31, 16 }
  0x30   :  { %v695_v0 = vsel %vm8926_vm7, %v690_v55, %v694_v40  ;;  %v703_v1 = vor.u32 %v702_v57, %v699_v56  ;;  %v716_v2 = vrot.slane %v714_v58, 7  ;;  %v728_v3 = vshll.u32 %v7646_v31, 16  ;;  %v9048_v26 = vld.sshfl [vmem:[%s10274_s0 + $0x8c] sm:$0xf pattern:$0x76325410] }
  0x31   :  { %v756_v6 = vcombine.low %v681_v51, %v695_v0  ;;  %v722_v7 = vrot.slane %v720_v62, 7  ;;  %v727_v8 = vrot.slane %v725_v63, 6  ;;  %v734_v10 = vshll.u32 %v631_v46, 16 }
  0x32   :  { %v704_v13 = vrot.slane %v703_v1, 2  ;;  %v717_v15 = vor.u32 %v716_v2, %v713_v61  ;;  %v730_v16 = vrot.slane %v728_v3, 7  ;;  %v739_v17 = vshrl.u32 %v7647_v43, 16  ;;  %v9087_v2 = vld [vmem:[%s10273_s1 + $0x28] sm:$0xff]  }
  0x33   :  { %v770_v18 = vrot.slane %v756_v6, %v8882_v9  ;;  %v736_v14 = vrot.slane %v734_v10, 7  ;;  %v742_v19 = vshll.u32 %v7647_v43, 16  ;;  %v748_v20 = vshll.u32 %v639_v48, 16 }
  0x34   :  { %v709_v21 = vsel %vm8926_vm7, %v704_v13, %v708_v59  ;;  %v718_v22 = vrot.slane %v717_v15, 2  ;;  %v731_v23 = vor.u32 %v730_v16, %v727_v8  ;;  %v741_v24 = vrot.slane %v739_v17, 6  ;;  %v9053_v30 = vld.sshfl [vmem:[%s10274_s0 + $0x94] sm:$0xf pattern:$0x76325410] }
  0x35   :  { %v771_v27 = vcombine.low %v763_v52, %v770_v18  ;;  %v744_v28 = vrot.slane %v742_v19, 7  ;;  %v750_v29 = vrot.slane %v748_v20, 7  ;;  %v7687_v36 = vld.sshfl [vmem:[%s10274_s0 + $0x28] sm:$0x13 pattern:$0x76325410]  ;;  %v890_v38 = vcombine.low %v9013_v60, %v9020_v4 }
  0x36   :  { %v723_v31 = vsel %vm8926_vm7, %v718_v22, %v722_v7  ;;  %v732_v32 = vrot.slane %v731_v23, 2  ;;  %v7688_v39 = vld.sshfl [vmem:[%s10274_s0 + $0x2c] sm:$0x13 pattern:$0x76325410]  ;;  %v907_v42 = vcombine.low %v9025_v5, %v9030_v11  ;;  %v1009_v44 = vcombine.low %v9035_v12, %v9043_v25 }
  0x37   :  { %8313 = vmatprep.mubr.msk.bf16.mxu0 %vm100_vm1, %v771_v27  ;;  %v745_v33 = vor.u32 %v744_v28, %v741_v24  ;;  %v772_v34 = vcombine.low %v709_v21, %v723_v31  ;;  %v7689_v43 = vld.sshfl [vmem:[%s10274_s0 + $0x30] sm:$0x13 pattern:$0x76325410]  ;;  %v1115_v47 = vcombine.high %v7687_v36, %v7687_v36  ;;  %v1123_v48 = vcombine.high %v7688_v39, %v7688_v39 }
  0x38   :  { %v737_v37 = vsel %vm8926_vm7, %v732_v32, %v736_v14  ;;  %v7690_v46 = vld.sshfl [vmem:[%s10274_s0 + $0x34] sm:$0x13 pattern:$0x76325410]  ;;  %v1131_v49 = vcombine.high %v7689_v43, %v7689_v43  ;;  %v1026_v51 = vcombine.low %v9048_v26, %v9053_v30  ;;  %v1173_v53 = vshrl.u32 %v7687_v36, 16 }
  0x39   :  { %v746_v40 = vrot.slane %v745_v33, 2  ;;  %v780_v41 = vrot.slane %v772_v34, %v8882_v9  ;;  %v1139_v52 = vcombine.high %v7690_v46, %v7690_v46  ;;  %v1176_v55 = vshll.u32 %v7687_v36, 16  ;;  %v7691_v16 = vld.sshfl [vmem:[%s10274_s0 + $0x78] sm:$0x13 pattern:$0x76325410] }
  0x3a   :  { %v1182_v56 = vshll.u32 %v1115_v47, 16  ;;  %v1187_v57 = vshrl.u32 %v7688_v39, 16  ;;  %v1175_v58 = vrot.slane %v1173_v53, 6  ;;  %v1190_v59 = vshll.u32 %v7688_v39, 16 }
  0x3b   :  { %v751_v50 = vsel %vm8926_vm7, %v746_v40, %v750_v29  ;;  %v1196_v61 = vshll.u32 %v1123_v48, 16  ;;  %v1201_v62 = vshrl.u32 %v7689_v43, 16  ;;  %v1178_v60 = vrot.slane %v1176_v55, 7 }
  0x3c   :  { %v773_v54 = vcombine.low %v737_v37, %v751_v50  ;;  %v1184_v0 = vrot.slane %v1182_v56, 7  ;;  %v1189_v1 = vrot.slane %v1187_v57, 6  ;;  %v1192_v3 = vrot.slane %v1190_v59, 7 }
  0x3d   :  { %v1198_v4 = vrot.slane %v1196_v61, 7  ;;  %v1203_v6 = vrot.slane %v1201_v62, 6  ;;  %v1204_v7 = vshll.u32 %v7689_v43, 16  ;;  %v1179_v10 = vor.u32 %v1178_v60, %v1175_v58 }
  0x3e   :  { %v787_v63 = vrot.slane %v773_v54, %v8882_v9  ;;  %v1210_v13 = vshll.u32 %v1131_v49, 16  ;;  %v1215_v15 = vshrl.u32 %v7690_v46, 16  ;;  %v1193_v17 = vor.u32 %v1192_v3, %v1189_v1  ;;  %v7692_v20 = vld.sshfl [vmem:[%s10274_s0 + $0x7c] sm:$0x13 pattern:$0x76325410] }
  0x3f   :  { %v1206_v18 = vrot.slane %v1204_v7, 7  ;;  %v1218_v14 = vshll.u32 %v7690_v46, 16  ;;  %v1224_v19 = vshll.u32 %v1139_v52, 16  ;;  %v1180_v23 = vrot.slane %v1179_v10, 2  ;;  %v9127_v10 = vld [vmem:[%s10273_s1 + $0x30] sm:$0xff]  }
  0x40   :  { %v788_v8 = vcombine.low %v780_v41, %v787_v63  ;;  %v7693_v21 = vld.sshfl [vmem:[%s10274_s0 + $0x80] sm:$0x13 pattern:$0x76325410]  ;;  %v1212_v24 = vrot.slane %v1210_v13, 7  ;;  %v1217_v27 = vrot.slane %v1215_v15, 6  ;;  %v1147_v28 = vcombine.high %v7691_v16, %v7691_v16 }
  0x41   :  { %v9101_v22 = vld.sshfl [vmem:[%s10274_s0 + $0x84] sm:$0x13 pattern:$0x76325410]  ;;  %v1194_v29 = vrot.slane %v1193_v17, 2  ;;  %v1207_v31 = vor.u32 %v1206_v18, %v1203_v6  ;;  %v1220_v32 = vrot.slane %v1218_v14, 7  ;;  %v1185_v34 = vsel %vm8926_vm7, %v1180_v23, %v1184_v0 }
  0x42   :  { %8314 = vmatmul.mubr.msk.bf16.vlgmr.msra.gmra.mrb[0].mxu0 %vm100_vm1, %v788_v8  ;;  %v1226_v33 = vrot.slane %v1224_v19, 7  ;;  %v1155_v36 = vcombine.high %v7692_v20, %v7692_v20  ;;  %v1163_v37 = vcombine.high %v7693_v21, %v7693_v21  ;;  %v1171_v39 = vcombine.high %v9101_v22, %v9101_v22  ;;  %v7708_v8 = vld.sshfl [vmem:[%s10274_s0 + $0x3c] sm:$0x13 pattern:$0x76325410] }
  0x43   :  { %8318 = vmatpush3.bf16.msra.mxu0 %v8997_v35  ;;  %8319 = vmatprep.mubr.msk.bf16.mxu0 %vm100_vm1, %v890_v38  ;;  %v1199_v40 = vsel %vm8926_vm7, %v1194_v29, %v1198_v4  ;;  %v1208_v35 = vrot.slane %v1207_v31, 2  ;;  %v1221_v41 = vor.u32 %v1220_v32, %v1217_v27  ;;  %v1229_v38 = vshrl.u32 %v7691_v16, 16  ;;  %v7709_v18 = vld.sshfl [vmem:[%s10274_s0 + $0x40] sm:$0x13 pattern:$0x76325410] }
  0x44   :  { %8323 = vmatprep.subr.bf16.mxu0 %v9087_v2  ;;  %v1287_v43 = vcombine.low %v1185_v34, %v1199_v40  ;;  %v1232_v46 = vshll.u32 %v7691_v16, 16  ;;  %v1238_v47 = vshll.u32 %v1147_v28, 16  ;;  %v1243_v48 = vshrl.u32 %v7692_v20, 16 }
  0x45   :  { %v1213_v49 = vsel %vm8926_vm7, %v1208_v35, %v1212_v24  ;;  %v1222_v50 = vrot.slane %v1221_v41, 2  ;;  %v1231_v52 = vrot.slane %v1229_v38, 6  ;;  %v1246_v53 = vshll.u32 %v7692_v20, 16 }
  0x46   :  { %v9116_v54 = vrot.slane %v1287_v43, %v8882_v9  ;;  %v1234_v55 = vrot.slane %v1232_v46, 7  ;;  %v1240_v56 = vrot.slane %v1238_v47, 7  ;;  %v1245_v57 = vrot.slane %v1243_v48, 6 }
  0x47   :  { %v1227_v58 = vsel %vm8926_vm7, %v1222_v50, %v1226_v33  ;;  %v1248_v59 = vrot.slane %v1246_v53, 7  ;;  %v1252_v61 = vshll.u32 %v1155_v36, 16  ;;  %v1257_v62 = vshrl.u32 %v7693_v21, 16 }
  0x48   :  { %v1288_v63 = vcombine.low %v1213_v49, %v1227_v58  ;;  %v1235_v60 = vor.u32 %v1234_v55, %v1231_v52  ;;  %v1260_v0 = vshll.u32 %v7693_v21, 16  ;;  %v1266_v1 = vshll.u32 %v1163_v37, 16  ;;  %v7710_v28 = vld.sshfl [vmem:[%s10274_s0 + $0x44] sm:$0x13 pattern:$0x76325410] }
  0x49   :  { %v1249_v3 = vor.u32 %v1248_v59, %v1245_v57  ;;  %v1254_v4 = vrot.slane %v1252_v61, 7  ;;  %v1259_v6 = vrot.slane %v1257_v62, 6  ;;  %v1271_v7 = vshrl.u32 %v9101_v22, 16 }
  0x4a   :  { %v9130_v13 = vrot.slane %v1288_v63, %v8882_v9  ;;  %v1236_v15 = vrot.slane %v1235_v60, 2  ;;  %v1262_v16 = vrot.slane %v1260_v0, 7  ;;  %v1268_v17 = vrot.slane %v1266_v1, 7 }
  0x4b   :  { %v1250_v14 = vrot.slane %v1249_v3, 2  ;;  %v1273_v19 = vrot.slane %v1271_v7, 6  ;;  %v1274_v20 = vshll.u32 %v9101_v22, 16  ;;  %v1280_v21 = vshll.u32 %v1171_v39, 16  ;;  %v9171_v3 = vld [vmem:[%s10273_s1 + $0x38] sm:$0xff]  }
  0x4c   :  { %v1303_v23 = vcombine.low %v9116_v54, %v9130_v13  ;;  %v1241_v24 = vsel %vm8926_vm7, %v1236_v15, %v1240_v56  ;;  %v1263_v27 = vor.u32 %v1262_v16, %v1259_v6  ;;  %v1409_v29 = vcombine.high %v7708_v8, %v7708_v8  ;;  %v7711_v22 = vld.sshfl [vmem:[%s10274_s0 + $0x48] sm:$0x13 pattern:$0x76325410] }
  0x4d   :  { %v1255_v5 = vsel %vm8926_vm7, %v1250_v14, %v1254_v4  ;;  %v1276_v11 = vrot.slane %v1274_v20, 7  ;;  %v1417_v31 = vcombine.high %v7709_v18, %v7709_v18  ;;  %v1433_v34 = vcombine.high %v7711_v22, %v7711_v22  ;;  %v7712_v62 = vld.sshfl [vmem:[%s10274_s0 + $0x8c] sm:$0x13 pattern:$0x76325410] }
  0x4e   :  { %8320 = vmatmul.mubr.msk.bf16.vlgmr.msra.gmra.mrb[0].mxu0 %vm100_vm1, %v907_v42  ;;  %v1282_v42 = vrot.slane %v1280_v21, 7  ;;  %v1264_v32 = vrot.slane %v1263_v27, 2  ;;  %v1304_v33 = vcombine.low %v1241_v24, %v1255_v5  ;;  %v1467_v12 = vshrl.u32 %v7708_v8, 16 }
  0x4f   :  { %8324 = vmatpush3.bf16.msra.mxu0 %v9087_v2  ;;  %8325 = vmatprep.mubr.msk.bf16.mxu0 %vm100_vm1, %v1009_v44  ;;  %v1425_v2 = vcombine.high %v7710_v28, %v7710_v28  ;;  %v1277_v36 = vor.u32 %v1276_v11, %v1273_v19  ;;  %v1470_v25 = vshll.u32 %v7708_v8, 16  ;;  %v1476_v44 = vshll.u32 %v1409_v29, 16  ;;  %v7713_v15 = vld.sshfl [vmem:[%s10274_s0 + $0x90] sm:$0x13 pattern:$0x76325410] }
  0x50   :  { %8329 = vmatprep.subr.bf16.mxu0 %v9127_v10  ;;  %v1269_v37 = vsel %vm8926_vm7, %v1264_v32, %v1268_v17  ;;  %v9161_v39 = vrot.slane %v1304_v33, %v8882_v9  ;;  %v1481_v40 = vshrl.u32 %v7709_v18, 16  ;;  %v1484_v35 = vshll.u32 %v7709_v18, 16  ;;  %v7714_v27 = vld.sshfl [vmem:[%s10274_s0 + $0x94] sm:$0x13 pattern:$0x76325410] }
  0x51   :  { %v1278_v41 = vrot.slane %v1277_v36, 2  ;;  %v1469_v38 = vrot.slane %v1467_v12, 6  ;;  %v1472_v43 = vrot.slane %v1470_v25, 7  ;;  %v1478_v46 = vrot.slane %v1476_v44, 7 }
  0x52   :  { %v1483_v47 = vrot.slane %v1481_v40, 6  ;;  %v1486_v48 = vrot.slane %v1484_v35, 7  ;;  %v1490_v49 = vshll.u32 %v1417_v31, 16  ;;  %v1495_v50 = vshrl.u32 %v7710_v28, 16 }
  0x53   :  { %v1283_v52 = vsel %vm8926_vm7, %v1278_v41, %v1282_v42  ;;  %v1473_v53 = vor.u32 %v1472_v43, %v1469_v38  ;;  %v1498_v55 = vshll.u32 %v7710_v28, 16  ;;  %v1504_v56 = vshll.u32 %v1425_v2, 16  ;;  %v9207_v44 = vld.sshfl [vmem:[%s10274_s0 + $0x4] sm:$0xf pattern:$0x76325410] }
  0x54   :  { %v1305_v57 = vcombine.low %v1269_v37, %v1283_v52  ;;  %v1487_v58 = vor.u32 %v1486_v48, %v1483_v47  ;;  %v1492_v59 = vrot.slane %v1490_v49, 7  ;;  %v1497_v61 = vrot.slane %v1495_v50, 6  ;;  %v9214_v41 = vld.sshfl [vmem:[%s10274_s0 + $0xc] sm:$0xf pattern:$0x76325410] }
  0x55   :  { %v1474_v63 = vrot.slane %v1473_v53, 2  ;;  %v1500_v60 = vrot.slane %v1498_v55, 7  ;;  %v1506_v0 = vrot.slane %v1504_v56, 7  ;;  %v1509_v1 = vshrl.u32 %v7711_v22, 16 }
  0x56   :  { %v9174_v4 = vrot.slane %v1305_v57, %v8882_v9  ;;  %v1488_v6 = vrot.slane %v1487_v58, 2  ;;  %v1512_v7 = vshll.u32 %v7711_v22, 16  ;;  %v1518_v8 = vshll.u32 %v1433_v34, 16 }
  0x57   :  { %v1479_v16 = vsel %vm8926_vm7, %v1474_v63, %v1478_v46  ;;  %v1501_v17 = vor.u32 %v1500_v60, %v1497_v61  ;;  %v1511_v18 = vrot.slane %v1509_v1, 6  ;;  %v1441_v14 = vcombine.high %v7712_v62, %v7712_v62  ;;  %v9219_v38 = vld.sshfl [vmem:[%s10274_s0 + $0x54] sm:$0xf pattern:$0x76325410] }
  0x58   :  { %v1320_v19 = vcombine.low %v9161_v39, %v9174_v4  ;;  %v1493_v20 = vsel %vm8926_vm7, %v1488_v6, %v1492_v59  ;;  %v1514_v21 = vrot.slane %v1512_v7, 7  ;;  %v1520_v24 = vrot.slane %v1518_v8, 7  ;;  %v9224_v49 = vld.sshfl [vmem:[%s10274_s0 + $0x5c] sm:$0xf pattern:$0x76325410] }
  0x59   :  { %v1502_v26 = vrot.slane %v1501_v17, 2  ;;  %v1581_v30 = vcombine.low %v1479_v16, %v1493_v20  ;;  %v1449_v28 = vcombine.high %v7713_v15, %v7713_v15  ;;  %v1457_v29 = vcombine.high %v7714_v27, %v7714_v27  ;;  %v9229_v56 = vld.sshfl [vmem:[%s10274_s0 + $0x18] sm:$0xf pattern:$0x76325410]  ;;  %v9240_v59 = vld [vmem:[%s10273_s1 + $0x40] sm:$0xff]  }
  0x5a   :  { %8326 = vmatmul.mubr.msk.bf16.vlgmr.msra.gmra.mrb[0].mxu0 %vm100_vm1, %v1026_v51  ;;  %v7715_v51 = vld.sshfl [vmem:[%s10274_s0 + $0x98] sm:$0x13 pattern:$0x76325410]  ;;  %v1515_v5 = vor.u32 %v1514_v21, %v1511_v18  ;;  %v1523_v42 = vshrl.u32 %v7712_v62, 16  ;;  %v1526_v22 = vshll.u32 %v7712_v62, 16 }
  0x5b   :  { %8330 = vmatpush3.bf16.msra.mxu0 %v9127_v10  ;;  %8331 = vmatprep.mubr.msk.bf16.mxu0 %vm100_vm1, %v1303_v23  ;;  %v1465_v11 = vcombine.high %v7715_v51, %v7715_v51  ;;  %v1507_v10 = vsel %vm8926_vm7, %v1502_v26, %v1506_v0  ;;  %v1589_v54 = vrot.slane %v1581_v30, %v8882_v9  ;;  %v1532_v13 = vshll.u32 %v1441_v14, 16  ;;  %v9234_v57 = vld.sshfl [vmem:[%s10274_s0 + $0x20] sm:$0xf pattern:$0x76325410] }
  0x5c   :  { %8335 = vmatprep.subr.bf16.mxu0 %v9171_v3  ;;  %v1537_v23 = vshrl.u32 %v7713_v15, 16  ;;  %v1516_v31 = vrot.slane %v1515_v5, 2  ;;  %v1525_v32 = vrot.slane %v1523_v42, 6  ;;  %v1528_v33 = vrot.slane %v1526_v22, 7 }
  0x5d   :  { %v1540_v2 = vshll.u32 %v7713_v15, 16  ;;  %v1534_v34 = vrot.slane %v1532_v13, 7  ;;  %v1546_v12 = vshll.u32 %v1449_v28, 16  ;;  %v1551_v25 = vshrl.u32 %v7714_v27, 16 }
  0x5e   :  { %v1539_v36 = vrot.slane %v1537_v23, 6  ;;  %v1521_v37 = vsel %vm8926_vm7, %v1516_v31, %v1520_v24  ;;  %v1529_v39 = vor.u32 %v1528_v33, %v1525_v32  ;;  %v1554_v35 = vshll.u32 %v7714_v27, 16  ;;  %v7755_v6 = vld.sshfl [vmem:[%s10274_s0 + $0x4] sm:$0x13 pattern:$0x76325410] }
  0x5f   :  { %v1542_v40 = vrot.slane %v1540_v2, 7  ;;  %v1582_v43 = vcombine.low %v1507_v10, %v1521_v37  ;;  %v1548_v46 = vrot.slane %v1546_v12, 7  ;;  %v1553_v47 = vrot.slane %v1551_v25, 6 }
  0x60   :  { %v1560_v48 = vshll.u32 %v1457_v29, 16  ;;  %v1530_v50 = vrot.slane %v1529_v39, 2  ;;  %v1556_v53 = vrot.slane %v1554_v35, 7  ;;  %v1565_v55 = vshrl.u32 %v7715_v51, 16 }
  0x61   :  { %v1543_v52 = vor.u32 %v1542_v40, %v1539_v36  ;;  %v1596_v58 = vrot.slane %v1582_v43, %v8882_v9  ;;  %v1568_v62 = vshll.u32 %v7715_v51, 16  ;;  %v1574_v63 = vshll.u32 %v1465_v11, 16  ;;  %v9250_v16 = vld.sshfl [vmem:[%s10274_s0 + $0x68] sm:$0xf pattern:$0x76325410] }
  0x62   :  { %v1562_v61 = vrot.slane %v1560_v48, 7  ;;  %v1535_v60 = vsel %vm8926_vm7, %v1530_v50, %v1534_v34  ;;  %v1557_v1 = vor.u32 %v1556_v53, %v1553_v47  ;;  %v1567_v4 = vrot.slane %v1565_v55, 6  ;;  %v9258_v14 = vld.sshfl [vmem:[%s10274_s0 + $0x70] sm:$0xf pattern:$0x76325410] }
  0x63   :  { %v1544_v0 = vrot.slane %v1543_v52, 2  ;;  %v1597_v7 = vcombine.low %v1589_v54, %v1596_v58  ;;  %v1570_v8 = vrot.slane %v1568_v62, 7  ;;  %v1576_v15 = vrot.slane %v1574_v63, 7 }
  0x64   :  { %v1558_v18 = vrot.slane %v1557_v1, 2  ;;  %v1999_v24 = vshrl.u32 %v7755_v6, 16  ;;  %v1716_v27 = vcombine.low %v9207_v44, %v9214_v41  ;;  %v7756_v26 = vld.sshfl [vmem:[%s10274_s0 + $0x8] sm:$0x13 pattern:$0x76325410]  ;;  %v1733_v51 = vcombine.low %v9219_v38, %v9224_v49 }
  0x65   :  { %v1549_v17 = vsel %vm8926_vm7, %v1544_v0, %v1548_v46  ;;  %v1571_v20 = vor.u32 %v1570_v8, %v1567_v4  ;;  %v7757_v28 = vld.sshfl [vmem:[%s10274_s0 + $0xc] sm:$0x13 pattern:$0x76325410]  ;;  %v1835_v29 = vcombine.low %v9229_v56, %v9234_v57  ;;  %v1941_v11 = vcombine.high %v7755_v6, %v7755_v6 }
  0x66   :  { %8332 = vmatmul.mubr.msk.bf16.vlgmr.msra.gmra.mrb[0].mxu0 %vm100_vm1, %v1320_v19  ;;  %v1598_v21 = vcombine.low %v1535_v60, %v1549_v17  ;;  %v1563_v19 = vsel %vm8926_vm7, %v1558_v18, %v1562_v61  ;;  %v7758_v5 = vld.sshfl [vmem:[%s10274_s0 + $0x10] sm:$0x13 pattern:$0x76325410]  ;;  %v1949_v42 = vcombine.high %v7756_v26, %v7756_v26  ;;  %v1957_v10 = vcombine.high %v7757_v28, %v7757_v28  ;;  %v9289_v44 = vld [vmem:[%s10273_s1 + $0x48] sm:$0xff]  }
  0x67   :  { %8336 = vmatpush3.bf16.msra.mxu0 %v9171_v3  ;;  %8337 = vmatprep.mubr.msk.bf16.mxu0 %vm100_vm1, %v1597_v7  ;;  %v1572_v30 = vrot.slane %v1571_v20, 2  ;;  %v1965_v54 = vcombine.high %v7758_v5, %v7758_v5  ;;  %v2001_v13 = vrot.slane %v1999_v24, 6  ;;  %v1852_v31 = vcombine.low %v9250_v16, %v9258_v14  ;;  %v7759_v53 = vld.sshfl [vmem:[%s10274_s0 + $0x54] sm:$0x13 pattern:$0x76325410] }
  0x68   :  { %8341 = vmatprep.subr.bf16.mxu0 %v9240_v59  ;;  %v1606_v3 = vrot.slane %v1598_v21, %v8882_v9  ;;  %v2002_v32 = vshll.u32 %v7755_v6, 16  ;;  %v2008_v33 = vshll.u32 %v1941_v11, 16  ;;  %v2013_v2 = vshrl.u32 %v7756_v26, 16 }
  0x69   :  { %v1577_v22 = vsel %vm8926_vm7, %v1572_v30, %v1576_v15  ;;  %v2016_v34 = vshll.u32 %v7756_v26, 16  ;;  %v2022_v36 = vshll.u32 %v1949_v42, 16  ;;  %v2027_v12 = vshrl.u32 %v7757_v28, 16 }
  0x6a   :  { %v1599_v23 = vcombine.low %v1563_v19, %v1577_v22  ;;  %v2004_v37 = vrot.slane %v2002_v32, 7  ;;  %v2010_v39 = vrot.slane %v2008_v33, 7  ;;  %v2030_v40 = vshll.u32 %v7757_v28, 16 }
  0x6b   :  { %v2015_v35 = vrot.slane %v2013_v2, 6  ;;  %v2018_v41 = vrot.slane %v2016_v34, 7  ;;  %v2024_v43 = vrot.slane %v2022_v36, 7  ;;  %v2029_v46 = vrot.slane %v2027_v12, 6 }
  0x6c   :  { %v1613_v25 = vrot.slane %v1599_v23, %v8882_v9  ;;  %v2005_v48 = vor.u32 %v2004_v37, %v2001_v13  ;;  %v2032_v50 = vrot.slane %v2030_v40, 7  ;;  %v2036_v52 = vshll.u32 %v1957_v10, 16  ;;  %v7760_v63 = vld.sshfl [vmem:[%s10274_s0 + $0x58] sm:$0x13 pattern:$0x76325410] }
  0x6d   :  { %v2019_v55 = vor.u32 %v2018_v41, %v2015_v35  ;;  %v2041_v58 = vshrl.u32 %v7758_v5, 16  ;;  %v2044_v61 = vshll.u32 %v7758_v5, 16  ;;  %v2050_v62 = vshll.u32 %v1965_v54, 16 }
  0x6e   :  { %v1614_v47 = vcombine.low %v1606_v3, %v1613_v25  ;;  %v7761_v60 = vld.sshfl [vmem:[%s10274_s0 + $0x5c] sm:$0x13 pattern:$0x76325410]  ;;  %v2006_v0 = vrot.slane %v2005_v48, 2  ;;  %v2033_v1 = vor.u32 %v2032_v50, %v2029_v46  ;;  %v2038_v4 = vrot.slane %v2036_v52, 7 }
  0x6f   :  { %v7762_v6 = vld.sshfl [vmem:[%s10274_s0 + $0x60] sm:$0x13 pattern:$0x76325410]  ;;  %v1973_v7 = vcombine.high %v7759_v53, %v7759_v53  ;;  %v2020_v8 = vrot.slane %v2019_v55, 2  ;;  %v2043_v15 = vrot.slane %v2041_v58, 6  ;;  %v1981_v24 = vcombine.high %v7760_v63, %v7760_v63 }
  0x70   :  { %v2046_v17 = vrot.slane %v2044_v61, 7  ;;  %v2052_v18 = vrot.slane %v2050_v62, 7  ;;  %v2011_v20 = vsel %vm8926_vm7, %v2006_v0, %v2010_v39  ;;  %v2034_v21 = vrot.slane %v2033_v1, 2 }
  0x71   :  { %v1989_v19 = vcombine.high %v7761_v60, %v7761_v60  ;;  %v2025_v26 = vsel %vm8926_vm7, %v2020_v8, %v2024_v43  ;;  %v1997_v3 = vcombine.high %v7762_v6, %v7762_v6  ;;  %v2058_v5 = vshll.u32 %v7759_v53, 16  ;;  %v7776_v55 = vld.sshfl [vmem:[%s10274_s0 + $0x18] sm:$0x13 pattern:$0x76325410] }
  0x72   :  { %8338 = vmatmul.mubr.msk.bf16.vlgmr.msra.gmra.mrb[0].mxu0 %vm100_vm1, %v1614_v47  ;;  %v2047_v30 = vor.u32 %v2046_v17, %v2043_v15  ;;  %v2113_v28 = vcombine.low %v2011_v20, %v2025_v26  ;;  %v2064_v11 = vshll.u32 %v1973_v7, 16  ;;  %v2069_v10 = vshrl.u32 %v7760_v63, 16  ;;  %v9321_v47 = vld [vmem:[%s10273_s1 + $0x50] sm:$0xff]  }
  0x73   :  { %8342 = vmatpush3.bf16.msra.mxu0 %v9240_v59  ;;  %8343 = vmatprep.mubr.msk.bf16.mxu0 %vm100_vm1, %v1716_v27  ;;  %v2055_v59 = vshrl.u32 %v7759_v53, 16  ;;  %v2039_v27 = vsel %vm8926_vm7, %v2034_v21, %v2038_v4  ;;  %v2072_v54 = vshll.u32 %v7760_v63, 16  ;;  %v2060_v23 = vrot.slane %v2058_v5, 7 }
  0x74   :  { %8347 = vmatprep.subr.bf16.mxu0 %v9289_v44  ;;  %v2048_v42 = vrot.slane %v2047_v30, 2  ;;  %v9314_v13 = vrot.slane %v2113_v28, %v8882_v9  ;;  %v2066_v32 = vrot.slane %v2064_v11, 7  ;;  %v2078_v33 = vshll.u32 %v1981_v24, 16 }
  0x75   :  { %v2057_v22 = vrot.slane %v2055_v59, 6  ;;  %v2071_v34 = vrot.slane %v2069_v10, 6  ;;  %v2074_v36 = vrot.slane %v2072_v54, 7  ;;  %v2083_v12 = vshrl.u32 %v7761_v60, 16 }
  0x76   :  { %v2053_v2 = vsel %vm8926_vm7, %v2048_v42, %v2052_v18  ;;  %v2080_v39 = vrot.slane %v2078_v33, 7  ;;  %v2086_v40 = vshll.u32 %v7761_v60, 16  ;;  %v2092_v43 = vshll.u32 %v1989_v19, 16 }
  0x77   :  { %v2114_v25 = vcombine.low %v2039_v27, %v2053_v2  ;;  %v2061_v37 = vor.u32 %v2060_v23, %v2057_v22  ;;  %v2075_v35 = vor.u32 %v2074_v36, %v2071_v34  ;;  %v2085_v41 = vrot.slane %v2083_v12, 6  ;;  %v7777_v58 = vld.sshfl [vmem:[%s10274_s0 + $0x1c] sm:$0x13 pattern:$0x76325410] }
  0x78   :  { %v2097_v46 = vshrl.u32 %v7762_v6, 16  ;;  %v2088_v52 = vrot.slane %v2086_v40, 7  ;;  %v2100_v53 = vshll.u32 %v7762_v6, 16  ;;  %v2094_v62 = vrot.slane %v2092_v43, 7 }
  0x79   :  { %v9324_v48 = vrot.slane %v2114_v25, %v8882_v9  ;;  %v2062_v50 = vrot.slane %v2061_v37, 2  ;;  %v2076_v61 = vrot.slane %v2075_v35, 2  ;;  %v2106_v60 = vshll.u32 %v1997_v3, 16 }
  0x7a   :  { %v2099_v63 = vrot.slane %v2097_v46, 6  ;;  %v7778_v0 = vld.sshfl [vmem:[%s10274_s0 + $0x20] sm:$0x13 pattern:$0x76325410]  ;;  %v2089_v6 = vor.u32 %v2088_v52, %v2085_v41  ;;  %v2102_v7 = vrot.slane %v2100_v53, 7  ;;  %v2243_v15 = vcombine.high %v7777_v58, %v7777_v58 }
  0x7b   :  { %v2129_v1 = vcombine.low %v9314_v13, %v9324_v48  ;;  %v2067_v4 = vsel %vm8926_vm7, %v2062_v50, %v2066_v32  ;;  %v7779_v8 = vld.sshfl [vmem:[%s10274_s0 + $0x24] sm:$0x13 pattern:$0x76325410]  ;;  %v2081_v38 = vsel %vm8926_vm7, %v2076_v61, %v2080_v39  ;;  %v2108_v49 = vrot.slane %v2106_v60, 7  ;;  %v9373_v41 = vld [vmem:[%s10273_s1 + $0x58] sm:$0xff]  }
  0x7c   :  { %v2090_v17 = vrot.slane %v2089_v6, 2  ;;  %v2103_v18 = vor.u32 %v2102_v7, %v2099_v63  ;;  %v2130_v20 = vcombine.low %v2067_v4, %v2081_v38  ;;  %v2251_v21 = vcombine.high %v7778_v0, %v7778_v0  ;;  %v7780_v40 = vld.sshfl [vmem:[%s10274_s0 + $0x68] sm:$0x13 pattern:$0x76325410] }
  0x7d   :  { %v2259_v24 = vcombine.high %v7779_v8, %v7779_v8  ;;  %v2293_v19 = vshrl.u32 %v7776_v55, 16  ;;  %v2307_v30 = vshrl.u32 %v7777_v58, 16  ;;  %v2310_v28 = vshll.u32 %v7777_v58, 16 }
  0x7e   :  { %8344 = vmatmul.mubr.msk.bf16.vlgmr.msra.gmra.mrb[0].mxu0 %vm100_vm1, %v1733_v51  ;;  %v2235_v51 = vcombine.high %v7776_v55, %v7776_v55  ;;  %v2095_v56 = vsel %vm8926_vm7, %v2090_v17, %v2094_v62  ;;  %v2104_v57 = vrot.slane %v2103_v18, 2  ;;  %v2316_v42 = vshll.u32 %v2243_v15, 16  ;;  %v7781_v35 = vld.sshfl [vmem:[%s10274_s0 + $0x6c] sm:$0x13 pattern:$0x76325410] }
  0x7f   :  { %8348 = vmatpush3.bf16.msra.mxu0 %v9289_v44  ;;  %8349 = vmatprep.mubr.msk.bf16.mxu0 %vm100_vm1, %v1835_v29  ;;  %v2296_v44 = vshll.u32 %v7776_v55, 16  ;;  %v9357_v29 = vrot.slane %v2130_v20, %v8882_v9  ;;  %v2295_v3 = vrot.slane %v2293_v19, 6  ;;  %v2309_v11 = vrot.slane %v2307_v30, 6 }
  0x80   :  { %8353 = vmatprep.subr.bf16.mxu0 %v9321_v47  ;;  %v2302_v26 = vshll.u32 %v2235_v51, 16  ;;  %v2109_v5 = vsel %vm8926_vm7, %v2104_v57, %v2108_v49  ;;  %v2321_v22 = vshrl.u32 %v7778_v0, 16  ;;  %v2312_v23 = vrot.slane %v2310_v28, 7 }
  0x81   :  { %v2298_v59 = vrot.slane %v2296_v44, 7  ;;  %v2131_v10 = vcombine.low %v2095_v56, %v2109_v5  ;;  %v2324_v32 = vshll.u32 %v7778_v0, 16  ;;  %v2318_v33 = vrot.slane %v2316_v42, 7 }
  0x82   :  { %v2304_v27 = vrot.slane %v2302_v26, 7  ;;  %v2323_v2 = vrot.slane %v2321_v22, 6  ;;  %v2330_v34 = vshll.u32 %v2251_v21, 16  ;;  %v2335_v36 = vshrl.u32 %v7779_v8, 16 }
  0x83   :  { %v2299_v54 = vor.u32 %v2298_v59, %v2295_v3  ;;  %v9362_v12 = vrot.slane %v2131_v10, %v8882_v9  ;;  %v2313_v37 = vor.u32 %v2312_v23, %v2309_v11  ;;  %v2326_v39 = vrot.slane %v2324_v32, 7  ;;  %v7782_v62 = vld.sshfl [vmem:[%s10274_s0 + $0x70] sm:$0x13 pattern:$0x76325410] }
  0x84   :  { %v2332_v43 = vrot.slane %v2330_v34, 7  ;;  %v2337_v46 = vrot.slane %v2335_v36, 6  ;;  %v2338_v50 = vshll.u32 %v7779_v8, 16  ;;  %v2344_v52 = vshll.u32 %v2259_v24, 16 }
  0x85   :  { %v2300_v25 = vrot.slane %v2299_v54, 2  ;;  %v2146_v53 = vcombine.low %v9357_v29, %v9362_v12  ;;  %v2314_v58 = vrot.slane %v2313_v37, 2  ;;  %v2327_v61 = vor.u32 %v2326_v39, %v2323_v2  ;;  %v7783_v0 = vld.sshfl [vmem:[%s10274_s0 + $0x74] sm:$0x13 pattern:$0x76325410] }
  0x86   :  { %v2340_v63 = vrot.slane %v2338_v50, 7  ;;  %v2346_v60 = vrot.slane %v2344_v52, 7  ;;  %v2267_v4 = vcombine.high %v7780_v40, %v7780_v40  ;;  %v2275_v6 = vcombine.high %v7781_v35, %v7781_v35  ;;  %v9405_v3 = vld.sshfl [vmem:[%s10274_s0 + $0x2c] sm:$0xf pattern:$0x76325410] }
  0x87   :  { %v2305_v55 = vsel %vm8926_vm7, %v2300_v25, %v2304_v27  ;;  %v2319_v16 = vsel %vm8926_vm7, %v2314_v58, %v2318_v33  ;;  %v2328_v14 = vrot.slane %v2327_v61, 2  ;;  %v2291_v7 = vcombine.high %v7783_v0, %v7783_v0  ;;  %v9410_v11 = vld.sshfl [vmem:[%s10274_s0 + $0x34] sm:$0xf pattern:$0x76325410]  ;;  %v9426_v2 = vld [vmem:[%s10273_s1 + $0x60] sm:$0xff]  }
  0x88   :  { %v2341_v8 = vor.u32 %v2340_v63, %v2337_v46  ;;  %v2407_v38 = vcombine.low %v2305_v55, %v2319_v16  ;;  %v2349_v49 = vshrl.u32 %v7780_v40, 16  ;;  %v2352_v51 = vshll.u32 %v7780_v40, 16  ;;  %v9415_v42 = vld.sshfl [vmem:[%s10274_s0 + $0x7c] sm:$0xf pattern:$0x76325410] }
  0x89   :  { %v2358_v15 = vshll.u32 %v2267_v4, 16  ;;  %v2363_v17 = vshrl.u32 %v7781_v35, 16  ;;  %v2366_v13 = vshll.u32 %v7781_v35, 16  ;;  %v2372_v44 = vshll.u32 %v2275_v6, 16 }
  0x8a   :  { %8350 = vmatmul.mubr.msk.bf16.vlgmr.msra.gmra.mrb[0].mxu0 %vm100_vm1, %v1852_v31  ;;  %v2283_v31 = vcombine.high %v7782_v62, %v7782_v62  ;;  %v2342_v48 = vrot.slane %v2341_v8, 2  ;;  %v2351_v18 = vrot.slane %v2349_v49, 6  ;;  %v2354_v20 = vrot.slane %v2352_v51, 7 }
  0x8b   :  { %8354 = vmatpush3.bf16.msra.mxu0 %v9321_v47  ;;  %8355 = vmatprep.mubr.msk.bf16.mxu0 %vm100_vm1, %v2129_v1  ;;  %v2333_v47 = vsel %vm8926_vm7, %v2328_v14, %v2332_v43  ;;  %v2415_v1 = vrot.slane %v2407_v38, %v8882_v9  ;;  %v2360_v21 = vrot.slane %v2358_v15, 7  ;;  %v2365_v24 = vrot.slane %v2363_v17, 6  ;;  %v9420_v32 = vld.sshfl [vmem:[%s10274_s0 + $0x84] sm:$0xf pattern:$0x76325410] }
  0x8c   :  { %8359 = vmatprep.subr.bf16.mxu0 %v9373_v41  ;;  %v2368_v19 = vrot.slane %v2366_v13, 7  ;;  %v2347_v26 = vsel %vm8926_vm7, %v2342_v48, %v2346_v60  ;;  %v2355_v56 = vor.u32 %v2354_v20, %v2351_v18  ;;  %v2377_v57 = vshrl.u32 %v7782_v62, 16  ;;  %v9431_v37 = vld.sshfl [vmem:[%s10274_s0 + $0x40] sm:$0xf pattern:$0x76325410] }
  0x8d   :  { %v2380_v30 = vshll.u32 %v7782_v62, 16  ;;  %v2408_v59 = vcombine.low %v2333_v47, %v2347_v26  ;;  %v2374_v28 = vrot.slane %v2372_v44, 7  ;;  %v2386_v5 = vshll.u32 %v2283_v31, 16 }
  0x8e   :  { %v2369_v27 = vor.u32 %v2368_v19, %v2365_v24  ;;  %v2356_v22 = vrot.slane %v2355_v56, 2  ;;  %v2379_v10 = vrot.slane %v2377_v57, 6  ;;  %v2391_v23 = vshrl.u32 %v7783_v0, 16 }
  0x8f   :  { %v2382_v54 = vrot.slane %v2380_v30, 7  ;;  %v2422_v33 = vrot.slane %v2408_v59, %v8882_v9  ;;  %v2388_v36 = vrot.slane %v2386_v5, 7  ;;  %v2394_v25 = vshll.u32 %v7783_v0, 16  ;;  %v9488_v30 = vld [vmem:[%s10273_s1 + $0x68] sm:$0xff]  }
  0x90   :  { %v2370_v34 = vrot.slane %v2369_v27, 2  ;;  %v2361_v39 = vsel %vm8926_vm7, %v2356_v22, %v2360_v21  ;;  %v2393_v35 = vrot.slane %v2391_v23, 6  ;;  %v2400_v43 = vshll.u32 %v2291_v7, 16 }
  0x91   :  { %v2383_v40 = vor.u32 %v2382_v54, %v2379_v10  ;;  %v7823_v46 = vld.sshfl [vmem:[%s10274_s0 + $0x2c] sm:$0x13 pattern:$0x76325410]  ;;  %v2423_v50 = vcombine.low %v2415_v1, %v2422_v33  ;;  %v2396_v55 = vrot.slane %v2394_v25, 7 }
  0x92   :  { %v2375_v52 = vsel %vm8926_vm7, %v2370_v34, %v2374_v28  ;;  %v9443_v58 = vld.sshfl [vmem:[%s10274_s0 + $0x48] sm:$0xf pattern:$0x76325410]  ;;  %v2402_v63 = vrot.slane %v2400_v43, 7  ;;  %v2825_v6 = vshrl.u32 %v7823_v46, 16  ;;  %v2767_v8 = vcombine.high %v7823_v46, %v7823_v46 }
  0x93   :  { %v9448_v61 = vld.sshfl [vmem:[%s10274_s0 + $0x90] sm:$0xf pattern:$0x76325410]  ;;  %v2384_v62 = vrot.slane %v2383_v40, 2  ;;  %v2424_v60 = vcombine.low %v2361_v39, %v2375_v52  ;;  %v2397_v4 = vor.u32 %v2396_v55, %v2393_v35  ;;  %v2661_v47 = vcombine.low %v9431_v37, %v9443_v58 }
  0x94   :  { %v9457_v0 = vld.sshfl [vmem:[%s10274_s0 + $0x98] sm:$0xf pattern:$0x76325410]  ;;  %v2827_v17 = vrot.slane %v2825_v6, 6  ;;  %v2828_v1 = vshll.u32 %v7823_v46, 16 }
  0x95   :  { %v2389_v29 = vsel %vm8926_vm7, %v2384_v62, %v2388_v36  ;;  %v2432_v12 = vrot.slane %v2424_v60, %v8882_v9  ;;  %v7824_v16 = vld.sshfl [vmem:[%s10274_s0 + $0x30] sm:$0x13 pattern:$0x76325410]  ;;  %v2398_v14 = vrot.slane %v2397_v4, 2  ;;  %v2678_v48 = vcombine.low %v9448_v61, %v9457_v0 }
  0x96   :  { %8356 = vmatmul.mubr.msk.bf16.vlgmr.msra.gmra.mrb[0].mxu0 %vm100_vm1, %v2146_v53  ;;  %v2542_v53 = vcombine.low %v9405_v3, %v9410_v11  ;;  %v7825_v31 = vld.sshfl [vmem:[%s10274_s0 + $0x34] sm:$0x13 pattern:$0x76325410]  ;;  %v2775_v38 = vcombine.high %v7824_v16, %v7824_v16  ;;  %v2834_v18 = vshll.u32 %v2767_v8, 16  ;;  %v2839_v20 = vshrl.u32 %v7824_v16, 16 }
  0x97   :  { %8360 = vmatpush3.bf16.msra.mxu0 %v9373_v41  ;;  %8361 = vmatprep.mubr.msk.bf16.mxu0 %vm100_vm1, %v2423_v50  ;;  %v2559_v41 = vcombine.low %v9415_v42, %v9420_v32  ;;  %v7826_v7 = vld.sshfl [vmem:[%s10274_s0 + $0x38] sm:$0x13 pattern:$0x76325410]  ;;  %v2783_v49 = vcombine.high %v7825_v31, %v7825_v31  ;;  %v2403_v51 = vsel %vm8926_vm7, %v2398_v14, %v2402_v63  ;;  %v2842_v21 = vshll.u32 %v7824_v16, 16 }
  0x98   :  { %8365 = vmatprep.subr.bf16.mxu0 %v9426_v2  ;;  %v2791_v15 = vcombine.high %v7826_v7, %v7826_v7  ;;  %v2425_v13 = vcombine.low %v2389_v29, %v2403_v51  ;;  %v2848_v24 = vshll.u32 %v2775_v38, 16  ;;  %v2853_v19 = vshrl.u32 %v7825_v31, 16  ;;  %v7827_v54 = vld.sshfl [vmem:[%s10274_s0 + $0x7c] sm:$0x13 pattern:$0x76325410] }
  0x99   :  { %v2830_v26 = vrot.slane %v2828_v1, 7  ;;  %v2836_v56 = vrot.slane %v2834_v18, 7  ;;  %v2856_v57 = vshll.u32 %v7825_v31, 16  ;;  %v2841_v3 = vrot.slane %v2839_v20, 6 }
  0x9a   :  { %v2439_v44 = vrot.slane %v2425_v13, %v8882_v9  ;;  %v2844_v59 = vrot.slane %v2842_v21, 7  ;;  %v2850_v27 = vrot.slane %v2848_v24, 7  ;;  %v2855_v28 = vrot.slane %v2853_v19, 6 }
  0x9b   :  { %v2831_v11 = vor.u32 %v2830_v26, %v2827_v17  ;;  %v2858_v22 = vrot.slane %v2856_v57, 7  ;;  %v2862_v10 = vshll.u32 %v2783_v49, 16  ;;  %v2867_v33 = vshrl.u32 %v7826_v7, 16 }
  0x9c   :  { %v2440_v5 = vcombine.low %v2432_v12, %v2439_v44  ;;  %v2845_v23 = vor.u32 %v2844_v59, %v2841_v3  ;;  %v2870_v34 = vshll.u32 %v7826_v7, 16  ;;  %v2876_v36 = vshll.u32 %v2791_v15, 16  ;;  %v7828_v25 = vld.sshfl [vmem:[%s10274_s0 + $0x80] sm:$0x13 pattern:$0x76325410] }
  0x9d   :  { %v2832_v39 = vrot.slane %v2831_v11, 2  ;;  %v2859_v40 = vor.u32 %v2858_v22, %v2855_v28  ;;  %v2864_v35 = vrot.slane %v2862_v10, 7  ;;  %v7829_v43 = vld.sshfl [vmem:[%s10274_s0 + $0x84] sm:$0x13 pattern:$0x76325410]  ;;  %v2799_v46 = vcombine.high %v7827_v54, %v7827_v54 }
  0x9e   :  { %v2846_v50 = vrot.slane %v2845_v23, 2  ;;  %v2869_v52 = vrot.slane %v2867_v33, 6  ;;  %v2872_v55 = vrot.slane %v2870_v34, 7  ;;  %v2878_v62 = vrot.slane %v2876_v36, 7 }
  0x9f   :  { %v2837_v63 = vsel %vm8926_vm7, %v2832_v39, %v2836_v56  ;;  %v2860_v60 = vrot.slane %v2859_v40, 2  ;;  %v7830_v4 = vld.sshfl [vmem:[%s10274_s0 + $0x88] sm:$0x13 pattern:$0x76325410]  ;;  %v2807_v6 = vcombine.high %v7828_v25, %v7828_v25  ;;  %v2815_v29 = vcombine.high %v7829_v43, %v7829_v43 }
  0xa0   :  { %v2873_v12 = vor.u32 %v2872_v55, %v2869_v52  ;;  %v2881_v16 = vshrl.u32 %v7827_v54, 16  ;;  %v2884_v7 = vshll.u32 %v7827_v54, 16  ;;  %v2890_v8 = vshll.u32 %v2799_v46, 16 }
  0xa1   :  { %v2865_v14 = vsel %vm8926_vm7, %v2860_v60, %v2864_v35  ;;  %v2895_v51 = vshrl.u32 %v7828_v25, 16  ;;  %v2898_v15 = vshll.u32 %v7828_v25, 16  ;;  %v2904_v18 = vshll.u32 %v2807_v6, 16 }
  0xa2   :  { %8362 = vmatmul.mubr.msk.bf16.vlgmr.msra.gmra.mrb[0].mxu0 %vm100_vm1, %v2440_v5  ;;  %v2874_v38 = vrot.slane %v2873_v12, 2  ;;  %v2883_v49 = vrot.slane %v2881_v16, 6  ;;  %v2886_v13 = vrot.slane %v2884_v7, 7  ;;  %v2892_v1 = vrot.slane %v2890_v8, 7  ;;  %v9520_v5 = vld [vmem:[%s10273_s1 + $0x70] sm:$0xff]  }
  0xa3   :  { %8366 = vmatpush3.bf16.msra.mxu0 %v9426_v2  ;;  %8367 = vmatprep.mubr.msk.bf16.mxu0 %vm100_vm1, %v2542_v53  ;;  %v2851_v2 = vsel %vm8926_vm7, %v2846_v50, %v2850_v27  ;;  %v2823_v53 = vcombine.high %v7830_v4, %v7830_v4  ;;  %v2897_v21 = vrot.slane %v2895_v51, 6  ;;  %v2900_v24 = vrot.slane %v2898_v15, 7  ;;  %v7844_v23 = vld.sshfl [vmem:[%s10274_s0 + $0x40] sm:$0x13 pattern:$0x76325410] }
  0xa4   :  { %8371 = vmatprep.subr.bf16.mxu0 %v9488_v30  ;;  %v2939_v31 = vcombine.low %v2837_v63, %v2851_v2  ;;  %v2879_v20 = vsel %vm8926_vm7, %v2874_v38, %v2878_v62  ;;  %v2909_v19 = vshrl.u32 %v7829_v43, 16  ;;  %v2887_v26 = vor.u32 %v2886_v13, %v2883_v49  ;;  %v7845_v46 = vld.sshfl [vmem:[%s10274_s0 + $0x44] sm:$0x13 pattern:$0x76325410] }
  0xa5   :  { %v2940_v44 = vcombine.low %v2865_v14, %v2879_v20  ;;  %v2906_v56 = vrot.slane %v2904_v18, 7  ;;  %v2912_v57 = vshll.u32 %v7829_v43, 16  ;;  %v2901_v3 = vor.u32 %v2900_v24, %v2897_v21  ;;  %v7847_v37 = vld.sshfl [vmem:[%s10274_s0 + $0x4c] sm:$0x13 pattern:$0x76325410] }
  0xa6   :  { %v9513_v17 = vrot.slane %v2939_v31, %v8882_v9  ;;  %v2911_v59 = vrot.slane %v2909_v19, 6  ;;  %v2918_v27 = vshll.u32 %v2815_v29, 16  ;;  %v2923_v28 = vshrl.u32 %v7830_v4, 16 }
  0xa7   :  { %v9523_v11 = vrot.slane %v2940_v44, %v8882_v9  ;;  %v2888_v22 = vrot.slane %v2887_v26, 2  ;;  %v2914_v10 = vrot.slane %v2912_v57, 7  ;;  %v2926_v54 = vshll.u32 %v7830_v4, 16 }
  0xa8   :  { %v2902_v33 = vrot.slane %v2901_v3, 2  ;;  %v2920_v34 = vrot.slane %v2918_v27, 7  ;;  %v2925_v36 = vrot.slane %v2923_v28, 6  ;;  %v2932_v25 = vshll.u32 %v2823_v53, 16 }
  0xa9   :  { %v2955_v39 = vcombine.low %v9513_v17, %v9523_v11  ;;  %v2893_v40 = vsel %vm8926_vm7, %v2888_v22, %v2892_v1  ;;  %v2915_v35 = vor.u32 %v2914_v10, %v2911_v59  ;;  %v2928_v43 = vrot.slane %v2926_v54, 7  ;;  %v7848_v57 = vld.sshfl [vmem:[%s10274_s0 + $0x90] sm:$0x13 pattern:$0x76325410]  ;;  %v9572_v59 = vld [vmem:[%s10273_s1 + $0x78] sm:$0xff]  }
  0xaa   :  { %v2907_v42 = vsel %vm8926_vm7, %v2902_v33, %v2906_v56  ;;  %v2934_v32 = vrot.slane %v2932_v25, 7  ;;  %v3061_v50 = vcombine.high %v7844_v23, %v7844_v23  ;;  %v3069_v52 = vcombine.high %v7845_v46, %v7845_v46  ;;  %v7849_v3 = vld.sshfl [vmem:[%s10274_s0 + $0x94] sm:$0x13 pattern:$0x76325410] }
  0xab   :  { %v2916_v55 = vrot.slane %v2915_v35, 2  ;;  %v2929_v62 = vor.u32 %v2928_v43, %v2925_v36  ;;  %v3119_v63 = vshrl.u32 %v7844_v23, 16  ;;  %v3122_v60 = vshll.u32 %v7844_v23, 16 }
  0xac   :  { %v3128_v4 = vshll.u32 %v3061_v50, 16  ;;  %v3133_v12 = vshrl.u32 %v7845_v46, 16  ;;  %v3136_v31 = vshll.u32 %v7845_v46, 16  ;;  %v3142_v38 = vshll.u32 %v3069_v52, 16 }
  0xad   :  { %v2921_v6 = vsel %vm8926_vm7, %v2916_v55, %v2920_v34  ;;  %v2930_v29 = vrot.slane %v2929_v62, 2  ;;  %v3121_v53 = vrot.slane %v3119_v63, 6  ;;  %v3124_v16 = vrot.slane %v3122_v60, 7 }
  0xae   :  { %8368 = vmatmul.mubr.msk.bf16.vlgmr.msra.gmra.mrb[0].mxu0 %vm100_vm1, %v2559_v41  ;;  %v7846_v41 = vld.sshfl [vmem:[%s10274_s0 + $0x48] sm:$0x13 pattern:$0x76325410]  ;;  %v3130_v14 = vrot.slane %v3128_v4, 7  ;;  %v3135_v8 = vrot.slane %v3133_v12, 6  ;;  %v3093_v43 = vcombine.high %v7848_v57, %v7848_v57  ;;  %v3101_v46 = vcombine.high %v7849_v3, %v7849_v3 }
  0xaf   :  { %8372 = vmatpush3.bf16.msra.mxu0 %v9488_v30  ;;  %8373 = vmatprep.mubr.msk.bf16.mxu0 %vm100_vm1, %v2661_v47  ;;  %v2956_v30 = vcombine.low %v2893_v40, %v2907_v42  ;;  %v3077_v58 = vcombine.high %v7846_v41, %v7846_v41  ;;  %v3085_v47 = vcombine.high %v7847_v37, %v7847_v37  ;;  %v3147_v49 = vshrl.u32 %v7846_v41, 16  ;;  %v7850_v36 = vld.sshfl [vmem:[%s10274_s0 + $0x98] sm:$0x13 pattern:$0x76325410] }
  0xb0   :  { %8377 = vmatprep.subr.bf16.mxu0 %v9520_v5  ;;  %v2935_v7 = vsel %vm8926_vm7, %v2930_v29, %v2934_v32  ;;  %v3125_v15 = vor.u32 %v3124_v16, %v3121_v53  ;;  %v3138_v13 = vrot.slane %v3136_v31, 7  ;;  %v3150_v1 = vshll.u32 %v7846_v41, 16  ;;  %v7851_v35 = vld.sshfl [vmem:[%s10274_s0 + $0x9c] sm:$0x13 pattern:$0x76325410] }
  0xb1   :  { %v9556_v2 = vrot.slane %v2956_v30, %v8882_v9  ;;  %v2957_v51 = vcombine.low %v2921_v6, %v2935_v7  ;;  %v3144_v18 = vrot.slane %v3142_v38, 7  ;;  %v3149_v20 = vrot.slane %v3147_v49, 6 }
  0xb2   :  { %v3156_v21 = vshll.u32 %v3077_v58, 16  ;;  %v3161_v24 = vshrl.u32 %v7847_v37, 16  ;;  %v3126_v44 = vrot.slane %v3125_v15, 2  ;;  %v3139_v26 = vor.u32 %v3138_v13, %v3135_v8 }
  0xb3   :  { %v9561_v19 = vrot.slane %v2957_v51, %v8882_v9  ;;  %v3152_v56 = vrot.slane %v3150_v1, 7  ;;  %v3164_v22 = vshll.u32 %v7847_v37, 16  ;;  %v3170_v10 = vshll.u32 %v3085_v47, 16 }
  0xb4   :  { %v3158_v27 = vrot.slane %v3156_v21, 7  ;;  %v3163_v28 = vrot.slane %v3161_v24, 6  ;;  %v3131_v23 = vsel %vm8926_vm7, %v3126_v44, %v3130_v14  ;;  %v3140_v33 = vrot.slane %v3139_v26, 2 }
  0xb5   :  { %v2972_v54 = vcombine.low %v9556_v2, %v9561_v19  ;;  %v3153_v34 = vor.u32 %v3152_v56, %v3149_v20  ;;  %v3166_v25 = vrot.slane %v3164_v22, 7  ;;  %v3172_v40 = vrot.slane %v3170_v10, 7 }
  0xb6   :  { %v3145_v61 = vsel %vm8926_vm7, %v3140_v33, %v3144_v18  ;;  %v3117_v42 = vcombine.high %v7851_v35, %v7851_v35  ;;  %v3175_v50 = vshrl.u32 %v7848_v57, 16  ;;  %v3178_v52 = vshll.u32 %v7848_v57, 16 }
  0xb7   :  { %v3154_v0 = vrot.slane %v3153_v34, 2  ;;  %v3167_v32 = vor.u32 %v3166_v25, %v3163_v28  ;;  %v3233_v41 = vcombine.low %v3131_v23, %v3145_v61  ;;  %v3184_v55 = vshll.u32 %v3093_v43, 16  ;;  %v8707_v34 = vld [vmem:[%s10275_s3] sm:$0xff]  }
  0xb8   :  { %v3189_v62 = vshrl.u32 %v7849_v3, 16  ;;  %v3192_v17 = vshll.u32 %v7849_v3, 16  ;;  %v3177_v30 = vrot.slane %v3175_v50, 6  ;;  %v3180_v37 = vrot.slane %v3178_v52, 7  ;;  %8397 = vmatprep.subr.bf16.mxu1 %v8707_v34  ;;  %v9649_v25 = vld [vmem:[%s10275_s3 + $0x20] sm:$0xff]  }
  0xb9   :  { %v3168_v11 = vrot.slane %v3167_v32, 2  ;;  %v3186_v58 = vrot.slane %v3184_v55, 7  ;;  %v3198_v60 = vshll.u32 %v3101_v46, 16  ;;  %v3203_v29 = vshrl.u32 %v7850_v36, 16  ;;  %8398 = vmatpush3.bf16.msra.mxu1 %v8707_v34 }
  0xba   :  { %8374 = vmatmul.mubr.msk.bf16.vlgmr.msra.gmra.mrb[0].mxu0 %vm100_vm1, %v2678_v48  ;;  %v3109_v48 = vcombine.high %v7850_v36, %v7850_v36  ;;  %v3191_v47 = vrot.slane %v3189_v62, 6  ;;  %v3194_v63 = vrot.slane %v3192_v17, 7  ;;  %v3181_v6 = vor.u32 %v3180_v37, %v3177_v30 }
  0xbb   :  { %8378 = vmatpush3.bf16.msra.mxu0 %v9520_v5  ;;  %8379 = vmatprep.mubr.msk.bf16.mxu0 %vm100_vm1, %v2955_v39  ;;  %v3159_v5 = vsel %vm8926_vm7, %v3154_v0, %v3158_v27  ;;  %v3241_v39 = vrot.slane %v3233_v41, %v8882_v9  ;;  %v3173_v4 = vsel %vm8926_vm7, %v3168_v11, %v3172_v40  ;;  %v3206_v2 = vshll.u32 %v7850_v36, 16  ;;  %v8708_v36 = vld [vmem:[%s10275_s3 + $0x8] sm:$0xff]   ;;  %v8714_v40 = vld [vmem:[%s10275_s3 + $0x10] sm:$0xff]  }
  0xbc   :  { %8383 = vmatprep.subr.bf16.mxu0 %v9572_v59  ;;  %v3234_v12 = vcombine.low %v3159_v5, %v3173_v4  ;;  %v3195_v53 = vor.u32 %v3194_v63, %v3191_v47  ;;  %v3200_v16 = vrot.slane %v3198_v60, 7  ;;  %v3212_v14 = vshll.u32 %v3109_v48, 16  ;;  %8399 = vmatprep.subr.bf16.mxu1 %v8708_v36  ;;  %v7857_v48 = vld [vmem:[%s10276_s2] ss:$0 sm:$0xff] }
  0xbd   :  { %v3182_v31 = vrot.slane %v3181_v6, 2  ;;  %v3205_v7 = vrot.slane %v3203_v29, 6  ;;  %v3208_v8 = vrot.slane %v3206_v2, 7  ;;  %v3217_v38 = vshrl.u32 %v7851_v35, 16  ;;  %8400 = vmatpush3.bf16.msra.mxu1 %v8708_v36 }
  0xbe   :  { %v3248_v49 = vrot.slane %v3234_v12, %v8882_v9  ;;  %v3196_v51 = vrot.slane %v3195_v53, 2  ;;  %v3220_v15 = vshll.u32 %v7851_v35, 16  ;;  %v3214_v1 = vrot.slane %v3212_v14, 7  ;;  %8405 = vmatprep.subr.bf16.mxu1 %v9649_v25  ;;  %v8715_v35 = vld [vmem:[%s10275_s3 + $0x18] sm:$0xff]  }
  0xbf   :  { %v3209_v13 = vor.u32 %v3208_v8, %v3205_v7  ;;  %v3219_v18 = vrot.slane %v3217_v38, 6  ;;  %v3226_v20 = vshll.u32 %v3117_v42, 16  ;;  %v3187_v24 = vsel %vm8926_vm7, %v3182_v31, %v3186_v58 }
  0xc0   :  { %v3249_v21 = vcombine.low %v3241_v39, %v3248_v49  ;;  %v3201_v19 = vsel %vm8926_vm7, %v3196_v51, %v3200_v16  ;;  %v3222_v44 = vrot.slane %v3220_v15, 7 }
  0xc1   :  { %v3210_v26 = vrot.slane %v3209_v13, 2  ;;  %v3228_v57 = vrot.slane %v3226_v20, 7  ;;  %v3250_v3 = vcombine.low %v3187_v24, %v3201_v19 }
  0xc2   :  { %v3223_v56 = vor.u32 %v3222_v44, %v3219_v18 }
  0xc3   :  { %v3215_v27 = vsel %vm8926_vm7, %v3210_v26, %v3214_v1  ;;  %v3258_v23 = vrot.slane %v3250_v3, %v8882_v9 }
  0xc4   :  { %v3224_v28 = vrot.slane %v3223_v56, 2 }
  0xc6   :  { %8380 = vmatmul.mubr.msk.bf16.vlgmr.msra.gmra.mrb[0].mxu0 %vm100_vm1, %v2972_v54  ;;  %v3229_v22 = vsel %vm8926_vm7, %v3224_v28, %v3228_v57 }
  0xc7   :  { %8384 = vmatpush3.bf16.msra.mxu0 %v9572_v59  ;;  %8385 = vmatprep.mubr.msk.bf16.mxu0 %vm100_vm1, %v3249_v21  ;;  %v3251_v10 = vcombine.low %v3215_v27, %v3229_v22  ;;  %v8824_v59 = vmov 0  }
  0xc8   :  { %3363 = vst.msk [vmem:[#allocation2 + $0x1c] sm:$0x7] %vm3355_vm8, %v8824_v59  ;;  %3364 = vst.msk [vmem:[#allocation2 + $0x20] sm:$0x7] %vm3355_vm8, %v8824_v59  ;;  %8389 = vmatprep.subr.bf16.mxu0 %v8714_v40 }
  0xc9   :  { %v3265_v54 = vrot.slane %v3251_v10, %v8882_v9  ;;  %3356 = vst.msk [vmem:[#allocation2] sm:$0x7] %vm3355_vm8, %v8824_v59  ;;  %3357 = vst.msk [vmem:[#allocation2 + $0x4] sm:$0x7] %vm3355_vm8, %v8824_v59 }
  0xca   :  { %3358 = vst.msk [vmem:[#allocation2 + $0x8] sm:$0x7] %vm3355_vm8, %v8824_v59  ;;  %3359 = vst.msk [vmem:[#allocation2 + $0xc] sm:$0x7] %vm3355_vm8, %v8824_v59 }
  0xcb   :  { %v3266_v33 = vcombine.low %v3258_v23, %v3265_v54  ;;  %3360 = vst.msk [vmem:[#allocation2 + $0x10] sm:$0x7] %vm3355_vm8, %v8824_v59  ;;  %3361 = vst.msk [vmem:[#allocation2 + $0x14] sm:$0x7] %vm3355_vm8, %v8824_v59 }
  0xcc   :  { %3362 = vst.msk [vmem:[#allocation2 + $0x18] sm:$0x7] %vm3355_vm8, %v8824_v59  ;;  %3365 = vst.msk [vmem:[#allocation2 + $0x24] sm:$0x7] %vm3355_vm8, %v8824_v59 }
  0xcd   :  { %3366 = vst.msk [vmem:[#allocation2 + $0x28] sm:$0x7] %vm3355_vm8, %v8824_v59  ;;  %3367 = vst.msk [vmem:[#allocation2 + $0x2c] sm:$0x7] %vm3355_vm8, %v8824_v59 }
  0xce   :  { %5469 = vst.msk [vmem:[#allocation3] sm:$0x7] %vm3355_vm8, %v8824_v59  ;;  %5470 = vst.msk [vmem:[#allocation3 + $0x4] sm:$0x7] %vm3355_vm8, %v8824_v59 }
  0xcf   :  { %5471 = vst.msk [vmem:[#allocation3 + $0x8] sm:$0x7] %vm3355_vm8, %v8824_v59  ;;  %5472 = vst.msk [vmem:[#allocation3 + $0xc] sm:$0x7] %vm3355_vm8, %v8824_v59  ;;  %v3492_v27 = vld [vmem:[#allocation2 + $0x1c] sm:$0x7] }
  0xd0   :  { %5473 = vst.msk [vmem:[#allocation3 + $0x10] sm:$0x7] %vm3355_vm8, %v8824_v59  ;;  %5474 = vst.msk [vmem:[#allocation3 + $0x14] sm:$0x7] %vm3355_vm8, %v8824_v59 }
  0xd1   :  { %5475 = vst.msk [vmem:[#allocation3 + $0x18] sm:$0x7] %vm3355_vm8, %v8824_v59  ;;  %5476 = vst.msk [vmem:[#allocation3 + $0x1c] sm:$0x7] %vm3355_vm8, %v8824_v59 }
  0xd2   :  { %8386 = vmatmul.mubr.msk.bf16.vlgmr.msra.gmra.mrb[0].mxu0 %vm100_vm1, %v3266_v33  ;;  %5477 = vst.msk [vmem:[#allocation3 + $0x20] sm:$0x7] %vm3355_vm8, %v8824_v59  ;;  %5478 = vst.msk [vmem:[#allocation3 + $0x24] sm:$0x7] %vm3355_vm8, %v8824_v59 }
  0xd3   :  { %5479 = vst.msk [vmem:[#allocation3 + $0x28] sm:$0x7] %vm3355_vm8, %v8824_v59  ;;  %5480 = vst.msk [vmem:[#allocation3 + $0x2c] sm:$0x7] %vm3355_vm8, %v8824_v59  ;;  %8390 = vmatpush3.bf16.msra.mxu0 %v8714_v40  ;;  %v3480_v59 = vld [vmem:[#allocation2 + $0x4] sm:$0x7] }
  0xd4   :  { %8391 = vmatprep.subr.bf16.mxu0 %v8715_v35  ;;  %v7866_v43 = vld.sshfl [vmem:[#allocation2] sm:$0x13 pattern:$0x76325410]  ;;  %vm9703_vm1 = vmand %vm3355_vm8, %vm3478_vm9 }
  0xd5   :  { %v3597_v46 = vshrl.u32 %v7866_v43, 16  ;;  %v3600_v61 = vshll.u32 %v7866_v43, 16  ;;  %v9658_v0 = vld.sshfl [vmem:[#allocation2 + $0x18] sm:$0x13 pattern:$0x76325410]  ;;  %v3539_v42 = vcombine.high %v7866_v43, %v7866_v43 }
  0xd6   :  { %v9663_v32 = vld.sshfl [vmem:[#allocation2] sm:$0x12 pattern:$0x76325410]  ;;  %v3653_v5 = vshrl.u32 %v9658_v0, 16  ;;  %v3656_v17 = vshll.u32 %v9658_v0, 16  ;;  %v3571_v58 = vcombine.high %v9658_v0, %v9658_v0 }
  0xd7   :  { %8392 = vmatpush3.bf16.msra.mxu0 %v8715_v35  ;;  %v9665_v41 = vrot.slane %v3597_v46, 6  ;;  %v9667_v50 = vrot.slane %v3600_v61, 7  ;;  %v3947_v30 = vcombine.high %v9663_v32, %v9663_v32  ;;  %v9673_v37 = vshll.u32 %v3539_v42, 16  ;;  %v3495_v40 = vld [vmem:[#allocation2 + $0x20] sm:$0x7] }
  0xd8   :  { %v9679_v2 = vrot.slane %v3653_v5, 6  ;;  %v9683_v16 = vrot.slane %v3656_v17, 7 }
  0xd9   :  { %v3603_v4 = vor.u32 %v9667_v50, %v9665_v41 }
 0x1a5   :  { %v8387_v52 = vpop.f32.mrb[0].mxu0 }
 0x1a6   :  { %v3341_v55 = vadd.f32 %v8387_v52, %v7857_v48  ;;  %v3313_v62 = vpop.f32.mrb[1].mxu0  ;;  %v3483_v52 = vld [vmem:[#allocation2 + $0x8] sm:$0x7] }
 0x1a7   :  { %v3339_v11 = vadd.f32 %v7857_v48, %v3313_v62  ;;  %v8388_v39 = vpop.f32.mrb[2].mxu0 }
 0x1a8   :  { %vm3345_vm10 = vcmp.ge.f32.partialorder %v3341_v55, 0.0  ;;  %v3349_v47 = vmul.f32 0.2, %v3341_v55  ;;  %v3342_v63 = vadd.f32 %v8388_v39, %v7857_v48  ;;  %v3316_v60 = vpop.f32.mrb[3].mxu0 }
 0x1a9   :  { %vm3343_vm11 = vcmp.ge.f32.partialorder %v3339_v11, 0.0  ;;  %v3347_v6 = vmul.f32 0.2, %v3339_v11  ;;  %v3340_v29 = vadd.f32 %v7857_v48, %v3316_v60 }
 0x1aa   :  { %v9681_v12 = vsel %vm3345_vm10, %v3341_v55, %v3349_v47  ;;  %vm3346_vm12 = vcmp.ge.f32.partialorder %v3342_v63, 0.0  ;;  %v3350_v53 = vmul.f32 0.2, %v3342_v63  ;;  %v3498_v55 = vld [vmem:[#allocation2 + $0x24] sm:$0x7] }
 0x1ab   :  { %v3374_v14 = vcombine.high %v9681_v12, %v9681_v12  ;;  %v8161_v31 = vpack.c.bf16 %v9681_v12, %v9681_v12  ;;  %v9689_v7 = vsel %vm3343_vm11, %v3339_v11, %v3347_v6  ;;  %vm3344_vm15 = vcmp.ge.f32.partialorder %v3340_v29, 0.0  ;;  %v3501_v47 = vld [vmem:[#allocation2 + $0x28] sm:$0x7] }
 0x1ac   :  { %v3372_v8 = vcombine.high %v9689_v7, %v9689_v7  ;;  %v8157_v38 = vpack.c.bf16 %v9689_v7, %v9689_v7  ;;  %v9695_v49 = vsel %vm3346_vm12, %v3342_v63, %v3350_v53  ;;  %v3348_v51 = vmul.f32 0.2, %v3340_v29  ;;  %v9716_v60 = vld.sshfl [vmem:[#allocation2 + $0x18] sm:$0x12 pattern:$0x76325410] }
 0x1ad   :  { %v8162_v15 = vpack.c.bf16 %v3374_v14, %v3374_v14  ;;  %v3441_v13 = vshrl.u32 %v8161_v31, 16  ;;  %v3444_v1 = vshll.u32 %v8161_v31, 16  ;;  %v3375_v18 = vcombine.high %v9695_v49, %v9695_v49 }
 0x1ae   :  { %v8158_v20 = vpack.c.bf16 %v3372_v8, %v3372_v8  ;;  %v3413_v21 = vshrl.u32 %v8157_v38, 16  ;;  %v3416_v24 = vshll.u32 %v8157_v38, 16  ;;  %v8163_v19 = vpack.c.bf16 %v9695_v49, %v9695_v49 }
 0x1af   :  { %v3443_v44 = vrot.slane %v3441_v13, 7  ;;  %v3448_v26 = vshrl.u32 %v8162_v15, 16  ;;  %v3451_v56 = vshll.u32 %v8162_v15, 16  ;;  %v8164_v57 = vpack.c.bf16 %v3375_v18, %v3375_v18 }
 0x1b0   :  { %v3415_v28 = vrot.slane %v3413_v21, 7  ;;  %v3420_v22 = vshrl.u32 %v8158_v20, 16  ;;  %v3423_v10 = vshll.u32 %v8158_v20, 16  ;;  %v3455_v23 = vshrl.u32 %v8163_v19, 16  ;;  %v3486_v21 = vld [vmem:[#allocation2 + $0xc] sm:$0x7] }
 0x1b1   :  { %v3446_v54 = vor.u32 %v3444_v1, %v3443_v44  ;;  %v3450_v33 = vrot.slane %v3448_v26, 7  ;;  %v3458_v34 = vshll.u32 %v8163_v19, 16  ;;  %v3462_v36 = vshrl.u32 %v8164_v57, 16 }
 0x1b2   :  { %v3418_v35 = vor.u32 %v3416_v24, %v3415_v28  ;;  %v3422_v43 = vrot.slane %v3420_v22, 7  ;;  %v3457_v46 = vrot.slane %v3455_v23, 7  ;;  %v3465_v61 = vshll.u32 %v8164_v57, 16 }
 0x1b3   :  { %v3453_v48 = vor.u32 %v3451_v56, %v3450_v33  ;;  %v3493_v42 = vsel %vm9703_vm1, %v3446_v54, %v3492_v27  ;;  %v3464_v5 = vrot.slane %v3462_v36, 7  ;;  %v9710_v62 = vsel %vm3344_vm15, %v3340_v29, %v3348_v51  ;;  %v3489_v56 = vld [vmem:[#allocation2 + $0x10] sm:$0x7] }
 0x1b4   :  { %3494 = vst [vmem:[#allocation2 + $0x1c] sm:$0x7] %v3493_v42  ;;  %v3425_v17 = vor.u32 %v3423_v10, %v3422_v43  ;;  %v3481_v11 = vsel %vm9703_vm1, %v3418_v35, %v3480_v59  ;;  %v3460_v39 = vor.u32 %v3458_v34, %v3457_v46  ;;  %v3373_v63 = vcombine.high %v9710_v62, %v9710_v62 }
 0x1b5   :  { %v3496_v6 = vsel %vm9703_vm1, %v3453_v48, %v3495_v40  ;;  %3482 = vst [vmem:[#allocation2 + $0x4] sm:$0x7] %v3481_v11  ;;  %v3467_v53 = vor.u32 %v3465_v61, %v3464_v5  ;;  %v8159_v29 = vpack.c.bf16 %v9710_v62, %v9710_v62  ;;  %v3662_v14 = vshll.u32 %v3571_v58, 16 }
 0x1b6   :  { %3497 = vst [vmem:[#allocation2 + $0x20] sm:$0x7] %v3496_v6  ;;  %v3484_v31 = vsel %vm9703_vm1, %v3425_v17, %v3483_v52  ;;  %v3499_v8 = vsel %vm9703_vm1, %v3460_v39, %v3498_v55  ;;  %v8160_v38 = vpack.c.bf16 %v3373_v63, %v3373_v63  ;;  %v3659_v51 = vor.u32 %v9683_v16, %v9679_v2 }
 0x1b7   :  { %3485 = vst [vmem:[#allocation2 + $0x8] sm:$0x7] %v3484_v31  ;;  %3500 = vst [vmem:[#allocation2 + $0x24] sm:$0x7] %v3499_v8  ;;  %v3502_v15 = vsel %vm9703_vm1, %v3467_v53, %v3501_v47  ;;  %v3427_v13 = vshrl.u32 %v8159_v29, 16  ;;  %v3979_v0 = vcombine.high %v9716_v60, %v9716_v60  ;;  %v7894_v18 = vrot.slane %v9663_v32, 9 }
 0x1b8   :  { %3503 = vst [vmem:[#allocation2 + $0x28] sm:$0x7] %v3502_v15  ;;  %v3434_v58 = vshrl.u32 %v8160_v38, 16  ;;  %v4013_v2 = vrot.slane %v3947_v30, 7  ;;  %v3430_v20 = vshll.u32 %v8159_v29, 16  ;;  %v3604_v24 = vrot.slane %v3603_v4, 2 }
 0x1b9   :  { %v3429_v16 = vrot.slane %v3427_v13, 7  ;;  %v3608_v19 = vrot.slane %v9673_v37, 7  ;;  %v3437_v26 = vshll.u32 %v8160_v38, 16  ;;  %v3660_v57 = vrot.slane %v3659_v51, 2  ;;  %v8155_v32 = vld [vmem:[%s10279_s6] ss:$0 sm:$0xff] }
 0x1ba   :  { %v3436_v44 = vrot.slane %v3434_v58, 7  ;;  %v3664_v27 = vrot.slane %v3662_v14, 7  ;;  %v7898_v30 = vrot.slane %v9716_v60, 9  ;;  %v9757_v22 = vrot.slane %v3979_v0, 7 }
 0x1bb   :  { %v3432_v28 = vor.u32 %v3430_v20, %v3429_v16  ;;  %v9759_v50 = vld.sshfl [vmem:[#allocation2 + $0x18] sm:$0xf pattern:$0x76325410]  ;;  %v4014_v34 = vsel %vm9752_vm5, %v7894_v18, %v4013_v2  ;;  %v9771_v36 = vsel %vm8926_vm7, %v3604_v24, %v3608_v19 }
 0x1bc   :  { %v3439_v41 = vor.u32 %v3437_v26, %v3436_v44  ;;  %v7887_v4 = vld.sshfl [vmem:[#allocation2 + $0x4] sm:$0x12 pattern:$0x76325410]  ;;  %v9775_v61 = vsel %vm8926_vm7, %v3660_v57, %v3664_v27 }
 0x1bd   :  { %v3487_v37 = vsel %vm9703_vm1, %v3432_v28, %v3486_v21  ;;  %v3955_v54 = vcombine.high %v7887_v4, %v7887_v4  ;;  %v8801_v33 = vld.sshfl [vmem:[#allocation2] sm:$0xf pattern:$0x76325410]  ;;  %v7895_v35 = vrot.slane %v7887_v4, 9  ;;  %v8716_v4 = vld [vmem:[%s10275_s3 + $0x28] sm:$0xff]  }
 0x1be   :  { %3488 = vst [vmem:[#allocation2 + $0xc] sm:$0x7] %v3487_v37  ;;  %v3490_v10 = vsel %vm9703_vm1, %v3439_v41, %v3489_v56  ;;  %v9765_v23 = vld.sshfl [vmem:[#allocation2 + $0x20] sm:$0xf pattern:$0x76325410] }
 0x1bf   :  { %3491 = vst [vmem:[#allocation2 + $0x10] sm:$0x7] %v3490_v10  ;;  %v7888_v59 = vld.sshfl [vmem:[#allocation2 + $0x8] sm:$0x12 pattern:$0x76325410]  ;;  %v3856_v38 = vcombine.low %v9759_v50, %v9765_v23 }
 0x1c0   :  { %v3963_v40 = vcombine.high %v7888_v59, %v7888_v59  ;;  %v4017_v43 = vrot.slane %v3955_v54, 7  ;;  %v7867_v46 = vld.sshfl [vmem:[#allocation2 + $0x4] sm:$0x13 pattern:$0x76325410]  ;;  %v7896_v53 = vrot.slane %v7888_v59, 9 }
 0x1c1   :  { %v7868_v48 = vld.sshfl [vmem:[#allocation2 + $0x8] sm:$0x13 pattern:$0x76325410]  ;;  %v3547_v42 = vcombine.high %v7867_v46, %v7867_v46  ;;  %v3611_v52 = vshrl.u32 %v7867_v46, 16  ;;  %v3614_v5 = vshll.u32 %v7867_v46, 16 }
 0x1c2   :  { %v9779_v55 = vsel %vm9752_vm5, %v7895_v35, %v4017_v43  ;;  %v4021_v17 = vrot.slane %v3963_v40, 7  ;;  %v3555_v11 = vcombine.high %v7868_v48, %v7868_v48  ;;  %v7871_v39 = vld.sshfl [vmem:[#allocation2 + $0x1c] sm:$0x13 pattern:$0x76325410]  ;;  %v3625_v29 = vshrl.u32 %v7868_v48, 16 }
 0x1c3   :  { %v3613_v47 = vrot.slane %v3611_v52, 6  ;;  %v3616_v63 = vrot.slane %v3614_v5, 7  ;;  %v3620_v6 = vshll.u32 %v3547_v42, 16  ;;  %v3628_v14 = vshll.u32 %v7868_v48, 16 }
 0x1c4   :  { %v3634_v31 = vshll.u32 %v3555_v11, 16  ;;  %v4048_v51 = vcombine.low %v4014_v34, %v9779_v55  ;;  %v9786_v58 = vsel %vm9752_vm5, %v7896_v53, %v4021_v17  ;;  %v3627_v1 = vrot.slane %v3625_v29, 6  ;;  %v7872_v57 = vld.sshfl [vmem:[#allocation2 + $0x20] sm:$0x13 pattern:$0x76325410] }
 0x1c5   :  { %v8802_v8 = vld.sshfl [vmem:[#allocation2 + $0x8] sm:$0xf pattern:$0x76325410]  ;;  %v3617_v15 = vor.u32 %v3616_v63, %v3613_v47  ;;  %v3622_v13 = vrot.slane %v3620_v6, 7  ;;  %v3630_v18 = vrot.slane %v3628_v14, 7  ;;  %v3579_v2 = vcombine.high %v7871_v39, %v7871_v39 }
 0x1c6   :  { %v7889_v0 = vld.sshfl [vmem:[#allocation2 + $0xc] sm:$0x12 pattern:$0x76325410]  ;;  %v3636_v26 = vrot.slane %v3634_v31, 7  ;;  %v3839_v27 = vcombine.low %v8801_v33, %v8802_v8  ;;  %v4056_v34 = vrot.slane %v4048_v51, %v8882_v9  ;;  %v3587_v35 = vcombine.high %v7872_v57, %v7872_v57  ;;  %v9814_v11 = vld [vmem:[%s10275_s3 + $0x30] sm:$0xff]  }
 0x1c7   :  { %v3971_v16 = vcombine.high %v7889_v0, %v7889_v0  ;;  %v7897_v20 = vrot.slane %v7889_v0, 9  ;;  %v7869_v21 = vld.sshfl [vmem:[#allocation2 + $0xc] sm:$0x13 pattern:$0x76325410]  ;;  %v3618_v24 = vrot.slane %v3617_v15, 2  ;;  %v3631_v44 = vor.u32 %v3630_v18, %v3627_v1 }
 0x1c8   :  { %v3563_v19 = vcombine.high %v7869_v21, %v7869_v21  ;;  %v3639_v56 = vshrl.u32 %v7869_v21, 16  ;;  %v3642_v50 = vshll.u32 %v7869_v21, 16  ;;  %v7873_v37 = vld.sshfl [vmem:[#allocation2 + $0x24] sm:$0x13 pattern:$0x76325410]  ;;  %8401 = vmatprep.mubr.msk.bf16.mxu1 %vm3759_vm6, %v3839_v27 }
 0x1c9   :  { %v4025_v28 = vrot.slane %v3971_v16, 7  ;;  %v9790_v41 = vsel %vm8926_vm7, %v3618_v24, %v3622_v13  ;;  %v3632_v10 = vrot.slane %v3631_v44, 2  ;;  %8402 = vmatmul.mubr.msk.bf16.vlgmr.msra.gmra.mrb[0].mxu1 %vm3759_vm6, %v3856_v38  ;;  %v3595_v48 = vcombine.high %v7873_v37, %v7873_v37  ;;  %v7891_v47 = vld.sshfl [vmem:[#allocation2 + $0x1c] sm:$0x12 pattern:$0x76325410] }
 0x1ca   :  { %v3641_v23 = vrot.slane %v3639_v56, 6  ;;  %v3648_v54 = vshll.u32 %v3563_v19, 16  ;;  %v3713_v59 = vcombine.low %v9771_v36, %v9790_v41  ;;  %v3644_v40 = vrot.slane %v3642_v50, 7  ;;  %8406 = vmatpush3.bf16.msra.mxu1 %v9649_v25 }
 0x1cb   :  { %v9800_v33 = vsel %vm9752_vm5, %v7897_v20, %v4025_v28  ;;  %v9808_v46 = vsel %vm8926_vm7, %v3632_v10, %v3636_v26  ;;  %v3667_v52 = vshrl.u32 %v7871_v39, 16  ;;  %v3670_v5 = vshll.u32 %v7871_v39, 16  ;;  %8407 = vmatprep.subr.bf16.mxu1 %v8716_v4  ;;  %v7892_v14 = vld.sshfl [vmem:[#allocation2 + $0x20] sm:$0x12 pattern:$0x76325410] }
 0x1cc   :  { %v4049_v43 = vcombine.low %v9786_v58, %v9800_v33  ;;  %v3650_v36 = vrot.slane %v3648_v54, 7  ;;  %v3645_v42 = vor.u32 %v3644_v40, %v3641_v23  ;;  %v3676_v17 = vshll.u32 %v3579_v2, 16  ;;  %v7893_v16 = vld.sshfl [vmem:[#allocation2 + $0x24] sm:$0x12 pattern:$0x76325410] }
 0x1cd   :  { %v3721_v6 = vrot.slane %v3713_v59, %v8882_v9  ;;  %v3681_v53 = vshrl.u32 %v7872_v57, 16  ;;  %v3684_v29 = vshll.u32 %v7872_v57, 16  ;;  %v3669_v25 = vrot.slane %v3667_v52, 6 }
 0x1ce   :  { %v4063_v63 = vrot.slane %v4049_v43, %v8882_v9  ;;  %v3646_v31 = vrot.slane %v3645_v42, 2  ;;  %v3672_v8 = vrot.slane %v3670_v5, 7  ;;  %v3690_v38 = vshll.u32 %v3587_v35, 16  ;;  %8408 = vmatpush3.bf16.msra.mxu1 %v8716_v4 }
 0x1cf   :  { %v3678_v51 = vrot.slane %v3676_v17, 7  ;;  %v3683_v15 = vrot.slane %v3681_v53, 6  ;;  %v3686_v13 = vrot.slane %v3684_v29, 7  ;;  %v3695_v18 = vshrl.u32 %v7873_v37, 16  ;;  %8413 = vmatprep.subr.bf16.mxu1 %v9814_v11 }
 0x1d0   :  { %v4064_v39 = vcombine.low %v4056_v34, %v4063_v63  ;;  %v9820_v0 = vsel %vm8926_vm7, %v3646_v31, %v3650_v36  ;;  %v3673_v1 = vor.u32 %v3672_v8, %v3669_v25  ;;  %v3698_v2 = vshll.u32 %v7873_v37, 16  ;;  %v8803_v59 = vld.sshfl [vmem:[#allocation2 + $0x4] sm:$0xf pattern:$0x76325410] }
 0x1d1   :  { %v3714_v20 = vcombine.low %v9808_v46, %v9820_v0  ;;  %v3687_v21 = vor.u32 %v3686_v13, %v3683_v15  ;;  %v3704_v24 = vshll.u32 %v3595_v48, 16  ;;  %v3987_v19 = vcombine.high %v7891_v47, %v7891_v47  ;;  %v8804_v36 = vld.sshfl [vmem:[#allocation2 + $0xc] sm:$0xf pattern:$0x76325410] }
 0x1d2   :  { %8409 = vmatprep.mubr.msk.bf16.mxu1 %vm3759_vm6, %v4064_v39  ;;  %v3674_v44 = vrot.slane %v3673_v1, 2  ;;  %v3697_v26 = vrot.slane %v3695_v18, 6  ;;  %v3700_v56 = vrot.slane %v3698_v2, 7  ;;  %v3995_v57 = vcombine.high %v7892_v14, %v7892_v14 }
 0x1d3   :  { %v9827_v27 = vrot.slane %v3714_v20, %v8882_v9  ;;  %v3688_v28 = vrot.slane %v3687_v21, 2  ;;  %v3692_v50 = vrot.slane %v3690_v38, 7  ;;  %v4003_v37 = vcombine.high %v7893_v16, %v7893_v16  ;;  %v7921_v48 = vld.sshfl [vmem:[#allocation2 + $0x10] sm:$0x13 pattern:$0x76325410] }
 0x1d4   :  { %v9831_v4 = vsel %vm8926_vm7, %v3674_v44, %v3678_v51  ;;  %v3701_v10 = vor.u32 %v3700_v56, %v3697_v26  ;;  %v7899_v23 = vrot.slane %v7891_v47, 9  ;;  %v4033_v54 = vrot.slane %v3987_v19, 7  ;;  %v7925_v60 = vld.sshfl [vmem:[#allocation2 + $0x28] sm:$0x13 pattern:$0x76325410] }
 0x1d5   :  { %v3729_v34 = vcombine.low %v3721_v6, %v9827_v27  ;;  %v9836_v40 = vsel %vm8926_vm7, %v3688_v28, %v3692_v50  ;;  %v3706_v35 = vrot.slane %v3704_v24, 7  ;;  %v4030_v43 = vsel %vm9752_vm5, %v7898_v30, %v9757_v22  ;;  %v8720_v24 = vld [vmem:[%s10275_s3 + $0x38] sm:$0xff]  }
 0x1d6   :  { %v3702_v42 = vrot.slane %v3701_v10, 2  ;;  %v9845_v52 = vsel %vm9752_vm5, %v7899_v23, %v4033_v54  ;;  %v7900_v5 = vrot.slane %v7892_v14, 9  ;;  %v4037_v17 = vrot.slane %v3995_v57, 7  ;;  %v8721_v10 = vld [vmem:[%s10275_s3 + $0x40] sm:$0xff]  }
 0x1d7   :  { %8393 = vmatprep.mubr.msk.bf16.mxu0 %vm3759_vm6, %v3729_v34  ;;  %v3730_v47 = vcombine.low %v9775_v61, %v9831_v4  ;;  %v7901_v63 = vrot.slane %v7893_v16, 9  ;;  %v4041_v6 = vrot.slane %v4003_v37, 7  ;;  %v4065_v53 = vcombine.low %v4030_v43, %v9845_v52  ;;  %v7937_v37 = vld.sshfl [vmem:[#allocation2 + $0x10] sm:$0x12 pattern:$0x76325410] }
 0x1d8   :  { %v9852_v30 = vsel %vm8926_vm7, %v3702_v42, %v3706_v35  ;;  %v9856_v22 = vsel %vm9752_vm5, %v7900_v5, %v4037_v17  ;;  %v4326_v31 = vcombine.high %v7921_v48, %v7921_v48  ;;  %v4402_v25 = vshrl.u32 %v7921_v48, 16  ;;  %v8805_v23 = vld.sshfl [vmem:[#allocation2 + $0x24] sm:$0xf pattern:$0x76325410] }
 0x1d9   :  { %v3731_v29 = vcombine.low %v9836_v40, %v9852_v30  ;;  %v9863_v14 = vsel %vm9752_vm5, %v7901_v63, %v4041_v6  ;;  %v3738_v8 = vrot.slane %v3730_v47, %v8882_v9  ;;  %v4405_v39 = vshll.u32 %v7921_v48, 16  ;;  %v8806_v34 = vld.sshfl [vmem:[#allocation2 + $0x1c] sm:$0xf pattern:$0x76325410]  ;;  %v8724_v6 = vld [vmem:[%s10275_s3 + $0x48] sm:$0xff]  }
 0x1da   :  { %v4066_v61 = vcombine.low %v9856_v22, %v9863_v14  ;;  %v4073_v51 = vrot.slane %v4065_v53, %v8882_v9  ;;  %v4404_v13 = vrot.slane %v4402_v25, 6  ;;  %v4458_v1 = vshrl.u32 %v7925_v60, 16 }
 0x1db   :  { %v9869_v38 = vrot.slane %v3731_v29, %v8882_v9  ;;  %v4407_v2 = vrot.slane %v4405_v39, 7  ;;  %v4411_v16 = vshll.u32 %v4326_v31, 16  ;;  %v4461_v20 = vshll.u32 %v7925_v60, 16  ;;  %v8725_v29 = vld [vmem:[%s10275_s3 + $0x50] sm:$0xff]  }
 0x1dc   :  { %v9873_v15 = vrot.slane %v4066_v61, %v8882_v9  ;;  %v4190_v19 = vcombine.low %v8803_v59, %v8804_v36  ;;  %v4460_v26 = vrot.slane %v4458_v1, 6  ;;  %v4358_v50 = vcombine.high %v7925_v60, %v7925_v60 }
 0x1dd   :  { %v3746_v18 = vcombine.low %v3738_v8, %v9869_v38  ;;  %v4408_v44 = vor.u32 %v4407_v2, %v4404_v13  ;;  %v4463_v56 = vrot.slane %v4461_v20, 7  ;;  %v4413_v28 = vrot.slane %v4411_v16, 7 }
 0x1de   :  { %v4081_v21 = vcombine.low %v4073_v51, %v9873_v15  ;;  %v4628_v35 = vcombine.high %v7937_v37, %v7937_v37  ;;  %v4476_v43 = vcombine.low %v9790_v41, %v9808_v46  ;;  %v4467_v36 = vshll.u32 %v4358_v50, 16  ;;  %v7941_v46 = vld.sshfl [vmem:[#allocation2 + $0x28] sm:$0x12 pattern:$0x76325410] }
 0x1df   :  { %8394 = vmatmul.mubr.msk.bf16.vlgmr.msra.gmra.mrb[4].mxu0 %vm3759_vm6, %v3746_v18  ;;  %v4409_v57 = vrot.slane %v4408_v44, 2  ;;  %v4464_v59 = vor.u32 %v4463_v56, %v4460_v26  ;;  %v4207_v63 = vcombine.low %v8806_v34, %v8805_v23  ;;  %v4660_v25 = vcombine.high %v7941_v46, %v7941_v46  ;;  %v7969_v51 = vld.sshfl [vmem:[#allocation2 + $0x14] sm:$0x13 pattern:$0x76325410]  ;;  %v8727_v44 = vld [vmem:[%s10275_s3 + $0x60] sm:$0xff]  }
 0x1e0   :  { %8410 = vmatmul.mubr.msk.bf16.vlgmr.msra.gmra.mrb[0].mxu1 %vm3759_vm6, %v4081_v21  ;;  %v4675_v5 = vrot.slane %v4628_v35, 7  ;;  %v4484_v17 = vrot.slane %v4476_v43, %v8882_v9  ;;  %v4469_v47 = vrot.slane %v4467_v36, 7  ;;  %v4493_v8 = vcombine.low %v9831_v4, %v9836_v40  ;;  %v8726_v4 = vld [vmem:[%s10275_s3 + $0x58] sm:$0xff]  }
 0x1e1   :  { %8414 = vmatpush3.bf16.msra.mxu1 %v9814_v11  ;;  %8417 = vmatprep.mubr.msk.bf16.mxu1 %vm3759_vm6, %v4190_v19  ;;  %v9889_v54 = vsel %vm8926_vm7, %v4409_v57, %v4413_v28  ;;  %v4465_v42 = vrot.slane %v4464_v59, 2  ;;  %v4698_v39 = vcombine.low %v9779_v55, %v9786_v58  ;;  %v4691_v18 = vrot.slane %v4660_v25, 7  ;;  %v8807_v56 = vld.sshfl [vmem:[#allocation2 + $0x10] sm:$0xf pattern:$0x76325410] }
 0x1e2   :  { %8415 = vmatprep.subr.bf16.mxu1 %v8720_v24  ;;  %v4477_v11 = vcombine.low %v9820_v0, %v9889_v54  ;;  %v7945_v0 = vrot.slane %v7937_v37, 9  ;;  %v5053_v2 = vshrl.u32 %v7969_v51, 16  ;;  %v5056_v16 = vshll.u32 %v7969_v51, 16 }
 0x1e3   :  { %v9902_v53 = vsel %vm8926_vm7, %v4465_v42, %v4469_v47  ;;  %v7949_v20 = vrot.slane %v7941_v46, 9  ;;  %v4977_v40 = vcombine.high %v7969_v51, %v7969_v51  ;;  %v4715_v57 = vcombine.low %v9845_v52, %v9856_v22  ;;  %v7973_v37 = vld.sshfl [vmem:[#allocation2 + $0x2c] sm:$0x13 pattern:$0x76325410] }
 0x1e4   :  { %v4491_v48 = vrot.slane %v4477_v11, %v8882_v9  ;;  %v9907_v41 = vsel %vm9752_vm5, %v7945_v0, %v4675_v5  ;;  %v4494_v61 = vcombine.low %v9852_v30, %v9902_v53  ;;  %v4501_v30 = vrot.slane %v4493_v8, %v8882_v9  ;;  %v7985_v47 = vld.sshfl [vmem:[#allocation2 + $0x14] sm:$0x12 pattern:$0x76325410] }
 0x1e5   :  { %8416 = vmatpush3.bf16.msra.mxu1 %v8720_v24  ;;  %v4699_v31 = vcombine.low %v9800_v33, %v9907_v41  ;;  %v4706_v33 = vrot.slane %v4698_v39, %v8882_v9  ;;  %v9930_v58 = vsel %vm9752_vm5, %v7949_v20, %v4691_v18  ;;  %v5055_v24 = vrot.slane %v5053_v2, 6 }
 0x1e6   :  { %8421 = vmatprep.subr.bf16.mxu1 %v8721_v10  ;;  %v4492_v60 = vcombine.low %v4484_v17, %v4491_v48  ;;  %v4508_v13 = vrot.slane %v4494_v61, %v8882_v9  ;;  %v5058_v19 = vrot.slane %v5056_v16, 7  ;;  %v4716_v26 = vcombine.low %v9863_v14, %v9930_v58  ;;  %v8730_v14 = vld [vmem:[%s10275_s3 + $0x68] sm:$0xff]   ;;  %v8731_v17 = vld [vmem:[%s10275_s3 + $0x70] sm:$0xff]  }
 0x1e7   :  { %v4713_v1 = vrot.slane %v4699_v31, %v8882_v9  ;;  %v5062_v50 = vshll.u32 %v4977_v40, 16  ;;  %v5109_v59 = vshrl.u32 %v7973_v37, 16  ;;  %v5112_v34 = vshll.u32 %v7973_v37, 16 }
 0x1e8   :  { %v4509_v21 = vcombine.low %v4501_v30, %v4508_v13  ;;  %v5059_v28 = vor.u32 %v5058_v19, %v5055_v24  ;;  %v4730_v23 = vrot.slane %v4716_v26, %v8882_v9  ;;  %v4723_v11 = vrot.slane %v4715_v57, %v8882_v9  ;;  %v8810_v61 = vld.sshfl [vmem:[#allocation2 + $0x20] sm:$0xf pattern:$0x76325410] }
 0x1e9   :  { %v4714_v55 = vcombine.low %v4706_v33, %v4713_v1  ;;  %v5064_v43 = vrot.slane %v5062_v50, 7  ;;  %v5009_v22 = vcombine.high %v7973_v37, %v7973_v37  ;;  %v5111_v48 = vrot.slane %v5109_v59, 6  ;;  %v7989_v40 = vld.sshfl [vmem:[#allocation2 + $0x2c] sm:$0x12 pattern:$0x76325410] }
 0x1ea   :  { %v5060_v35 = vrot.slane %v5059_v28, 2  ;;  %v4731_v36 = vcombine.low %v4723_v11, %v4730_v23  ;;  %v5114_v42 = vrot.slane %v5112_v34, 7  ;;  %v5279_v31 = vcombine.high %v7985_v47, %v7985_v47  ;;  %v8735_v24 = vld [vmem:[%s10275_s3 + $0x80] sm:$0xff]   ;;  %v8736_v59 = vld [vmem:[%s10275_s3 + $0x88] sm:$0xff]  }
 0x1eb   :  { %v5118_v46 = vshll.u32 %v5009_v22, 16  ;;  %v7993_v1 = vrot.slane %v7985_v47, 9  ;;  %v7997_v37 = vrot.slane %v7989_v40, 9 }
 0x1ec   :  { %8418 = vmatmul.mubr.msk.bf16.vlgmr.msra.gmra.mrb[0].mxu1 %vm3759_vm6, %v4207_v63  ;;  %v5065_v5 = vsel %vm8926_vm7, %v5060_v35, %v5064_v43  ;;  %v8809_v63 = vld.sshfl [vmem:[#allocation2 + $0x28] sm:$0xf pattern:$0x76325410]  ;;  %v5326_v18 = vrot.slane %v5279_v31, 7  ;;  %v8737_v43 = vld [vmem:[%s10277_s5 + $0x10] sm:$0xff]  }
 0x1ed   :  { %8422 = vmatpush3.bf16.msra.mxu1 %v8721_v10  ;;  %8425 = vmatprep.mubr.msk.bf16.mxu1 %vm3759_vm6, %v4492_v60  ;;  %v8808_v10 = vld.sshfl [vmem:[#allocation2 + $0x8] sm:$0xf pattern:$0x76325410]  ;;  %v5128_v0 = vcombine.low %v9889_v54, %v5065_v5  ;;  %v5115_v60 = vor.u32 %v5114_v42, %v5111_v48  ;;  %v5120_v13 = vrot.slane %v5118_v46, 7  ;;  %v4858_v30 = vcombine.low %v8810_v61, %v8809_v63  ;;  %v8734_v54 = vld [vmem:[%s10275_s3 + $0x78] sm:$0xff]  }
 0x1ee   :  { %8423 = vmatprep.subr.bf16.mxu1 %v8724_v6  ;;  %v4841_v52 = vcombine.low %v8808_v10, %v8807_v56  ;;  %v5311_v56 = vcombine.high %v7989_v40, %v7989_v40  ;;  %v8015_v48 = vld.sshfl [vmem:[#allocation3] sm:$0x13 pattern:$0x76325410]  ;;  %v8006_v5 = vld [vmem:[%s10278_s4] ss:$0 sm:$0xff] }
 0x1ef   :  { %v5142_v39 = vrot.slane %v5128_v0, %v8882_v9  ;;  %v5116_v51 = vrot.slane %v5115_v60, 2  ;;  %v5710_v47 = vshll.u32 %v8015_v48, 16  ;;  %v5649_v31 = vcombine.high %v8015_v48, %v8015_v48 }
 0x1f0   :  { %v5342_v10 = vrot.slane %v5311_v56, 7 }
 0x1f1   :  { %8424 = vmatpush3.bf16.msra.mxu1 %v8724_v6  ;;  %v7982_v6 = vld.sshfl [vmem:[#allocation2 + $0x8] sm:$0x12 pattern:$0x76325410]  ;;  %v5143_v33 = vcombine.low %v9827_v27, %v5142_v39  ;;  %v5121_v20 = vsel %vm8926_vm7, %v5116_v51, %v5120_v13  ;;  %v10006_v51 = vrot.slane %v5710_v47, 7 }
 0x1f2   :  { %8429 = vmatprep.subr.bf16.mxu1 %v8725_v29  ;;  %v5255_v25 = vcombine.high %v7982_v6, %v7982_v6  ;;  %v5145_v27 = vcombine.low %v9902_v53, %v5121_v20  ;;  %v5593_v47 = vld [vmem:[#allocation3 + $0x8] sm:$0x7] }
 0x1f4   :  { %v5314_v2 = vrot.slane %v5255_v25, 7  ;;  %v5159_v28 = vrot.slane %v5145_v27, %v8882_v9 }
 0x1f6   :  { %v5160_v23 = vcombine.low %v9869_v38, %v5159_v28 }
 0x1f8   :  { %8426 = vmatmul.mubr.msk.bf16.vlgmr.msra.gmra.mrb[0].mxu1 %vm3759_vm6, %v4509_v21  ;;  %v7990_v21 = vrot.slane %v7982_v6, 9 }
 0x1f9   :  { %8430 = vmatpush3.bf16.msra.mxu1 %v8725_v29  ;;  %8433 = vmatprep.mubr.msk.bf16.mxu1 %vm3759_vm6, %v4714_v55  ;;  %v7983_v29 = vld.sshfl [vmem:[#allocation2 + $0xc] sm:$0x12 pattern:$0x76325410]  ;;  %v5327_v55 = vsel %vm9752_vm5, %v7993_v1, %v5326_v18 }
 0x1fa   :  { %8431 = vmatprep.subr.bf16.mxu1 %v8726_v4  ;;  %v5263_v8 = vcombine.high %v7983_v29, %v7983_v29  ;;  %v5315_v19 = vsel %vm9752_vm5, %v7990_v21, %v5314_v2  ;;  %v5350_v26 = vcombine.low %v9907_v41, %v5327_v55  ;;  %v5343_v41 = vsel %vm9752_vm5, %v7997_v37, %v5342_v10 }
 0x1fb   :  { %v5367_v11 = vcombine.low %v9930_v58, %v5343_v41  ;;  %v9998_v58 = vld [vmem:[%s10277_s5] sm:$0xff]  }
 0x1fc   :  { %v5318_v16 = vrot.slane %v5263_v8, 7  ;;  %v5364_v50 = vrot.slane %v5350_v26, %v8882_v9 }
 0x1fd   :  { %8432 = vmatpush3.bf16.msra.mxu1 %v8726_v4  ;;  %v7991_v4 = vrot.slane %v7983_v29, 9  ;;  %v5381_v35 = vrot.slane %v5367_v11, %v8882_v9  ;;  %v10012_v11 = vld.sshfl [vmem:[#allocation3 + $0x18] sm:$0x13 pattern:$0x76325410] }
 0x1fe   :  { %8437 = vmatprep.subr.bf16.mxu1 %v8727_v44 }
 0x1ff   :  { %v5382_v38 = vcombine.low %v9873_v15, %v5381_v35 }
 0x204   :  { %8434 = vmatmul.mubr.msk.bf16.vlgmr.msra.gmra.mrb[0].mxu1 %vm3759_vm6, %v4731_v36  ;;  %v8738_v36 = vld [vmem:[%s10277_s5 + $0x18] sm:$0xff]  }
 0x205   :  { %8438 = vmatpush3.bf16.msra.mxu1 %v8727_v44  ;;  %8441 = vmatprep.mubr.msk.bf16.mxu1 %vm3759_vm6, %v4841_v52  ;;  %v5319_v44 = vsel %vm9752_vm5, %v7991_v4, %v5318_v16 }
 0x206   :  { %8439 = vmatprep.subr.bf16.mxu1 %v8730_v14  ;;  %v5349_v57 = vcombine.low %v5315_v19, %v5319_v44 }
 0x208   :  { %v5357_v53 = vrot.slane %v5349_v57, %v8882_v9 }
 0x209   :  { %8440 = vmatpush3.bf16.msra.mxu1 %v8730_v14 }
 0x20a   :  { %8445 = vmatprep.subr.bf16.mxu1 %v8731_v17  ;;  %v5365_v34 = vcombine.low %v5357_v53, %v5364_v50  ;;  %v5602_v53 = vld [vmem:[#allocation3 + $0x1c] sm:$0x7] }
 0x210   :  { %8442 = vmatmul.mubr.msk.bf16.vlgmr.msra.gmra.mrb[0].mxu1 %vm3759_vm6, %v4858_v30 }
 0x211   :  { %8446 = vmatpush3.bf16.msra.mxu1 %v8731_v17  ;;  %8449 = vmatprep.mubr.msk.bf16.mxu1 %vm3759_vm6, %v5143_v33  ;;  %v5707_v17 = vshrl.u32 %v8015_v48, 16  ;;  %v10008_v33 = vshll.u32 %v5649_v31, 16 }
 0x212   :  { %8447 = vmatprep.subr.bf16.mxu1 %v8734_v54 }
 0x213   :  { %v10004_v39 = vrot.slane %v5707_v17, 6 }
 0x215   :  { %8448 = vmatpush3.bf16.msra.mxu1 %v8734_v54  ;;  %v5713_v55 = vor.u32 %v10006_v51, %v10004_v39  ;;  %v5763_v51 = vshrl.u32 %v10012_v11, 16 }
 0x216   :  { %8453 = vmatprep.subr.bf16.mxu1 %v8735_v24 }
 0x21c   :  { %8450 = vmatmul.mubr.msk.bf16.vlgmr.msra.gmra.mrb[0].mxu1 %vm3759_vm6, %v5160_v23 }
 0x21d   :  { %8454 = vmatpush3.bf16.msra.mxu1 %v8735_v24  ;;  %8457 = vmatprep.mubr.msk.bf16.mxu1 %vm3759_vm6, %v5365_v34 }
 0x21e   :  { %8455 = vmatprep.subr.bf16.mxu1 %v8736_v59 }
 0x221   :  { %8456 = vmatpush3.bf16.msra.mxu1 %v8736_v59 }
 0x222   :  { %8461 = vmatprep.subr.bf16.mxu1 %v8737_v43 }
 0x228   :  { %8458 = vmatmul.mubr.msk.bf16.vlgmr.msra.gmra.mrb[0].mxu1 %vm3759_vm6, %v5382_v38 }
 0x229   :  { %8462 = vmatpush3.bf16.msra.mxu1 %v8737_v43  ;;  %v5590_v43 = vld [vmem:[#allocation3 + $0x4] sm:$0x7] }
 0x22a   :  { %8463 = vmatprep.subr.bf16.mxu1 %v8738_v36 }
 0x22d   :  { %8464 = vmatpush3.bf16.msra.mxu1 %v8738_v36 }
 0x22e   :  { %8469 = vmatprep.subr.bf16.mxu1 %v9998_v58 }
 0x2b2   :  { %v8395_v15 = vpop.f32.mrb[4].mxu0 }
 0x2b3   :  { %v3800_v14 = vpop.f32.mrb[5].mxu0 }
 0x2b4   :  { %v8396_v52 = vpop.f32.mrb[6].mxu0 }
 0x2b5   :  { %v3803_v22 = vpop.f32.mrb[7].mxu0 }
 0x2fb   :  { %v8459_v42 = vpop.f32.mrb[0].mxu1 }
 0x2fc   :  { %v8533_v63 = vadd.f32 %v8459_v42, %v8395_v15  ;;  %v5435_v6 = vpop.f32.mrb[1].mxu1 }
 0x2fd   :  { %v8534_v0 = vadd.f32 %v5435_v6, %v3800_v14  ;;  %v8460_v60 = vpop.f32.mrb[2].mxu1  ;;  %v5605_v14 = vld [vmem:[#allocation3 + $0x20] sm:$0x7]  ;;  %v5608_v6 = vld [vmem:[#allocation3 + $0x24] sm:$0x7] }
 0x2fe   :  { %v5463_v46 = vadd.f32 %v8533_v63, %v8006_v5  ;;  %v8535_v29 = vadd.f32 %v8460_v60, %v8396_v52  ;;  %v5438_v61 = vpop.f32.mrb[3].mxu1 }
 0x2ff   :  { %v5461_v25 = vadd.f32 %v8534_v0, %v8006_v5  ;;  %v8536_v8 = vadd.f32 %v5438_v61, %v3803_v22  ;;  %v5611_v61 = vld [vmem:[#allocation3 + $0x28] sm:$0x7] }
 0x300   :  { %v5467_v13 = vmax.f32 %v5463_v46, 0.0  ;;  %v5464_v1 = vadd.f32 %v8535_v29, %v8006_v5 }
 0x301   :  { %v5465_v18 = vmax.f32 %v5461_v25, 0.0  ;;  %v5462_v30 = vadd.f32 %v8536_v8, %v8006_v5 }
 0x302   :  { %v5487_v54 = vcombine.high %v5467_v13, %v5467_v13  ;;  %v8169_v2 = vpack.c.bf16 %v5467_v13, %v5467_v13  ;;  %v5468_v16 = vmax.f32 %v5464_v1, 0.0 }
 0x303   :  { %v5485_v20 = vcombine.high %v5465_v18, %v5465_v18  ;;  %v8165_v21 = vpack.c.bf16 %v5465_v18, %v5465_v18  ;;  %v5466_v4 = vmax.f32 %v5462_v30, 0.0  ;;  %v5766_v30 = vshll.u32 %v10012_v11, 16 }
 0x304   :  { %v8170_v40 = vpack.c.bf16 %v5487_v54, %v5487_v54  ;;  %v5554_v24 = vshrl.u32 %v8169_v2, 16  ;;  %v5557_v27 = vshll.u32 %v8169_v2, 16  ;;  %v5488_v19 = vcombine.high %v5468_v16, %v5468_v16 }
 0x305   :  { %v8166_v44 = vpack.c.bf16 %v5485_v20, %v5485_v20  ;;  %v5526_v26 = vshrl.u32 %v8165_v21, 16  ;;  %v5529_v56 = vshll.u32 %v8165_v21, 16  ;;  %v8171_v57 = vpack.c.bf16 %v5468_v16, %v5468_v16 }
 0x306   :  { %v5556_v28 = vrot.slane %v5554_v24, 7  ;;  %v5561_v50 = vshrl.u32 %v8170_v40, 16  ;;  %v5564_v37 = vshll.u32 %v8170_v40, 16  ;;  %v8172_v10 = vpack.c.bf16 %v5488_v19, %v5488_v19  ;;  %v5596_v40 = vld [vmem:[#allocation3 + $0xc] sm:$0x7] }
 0x307   :  { %v5528_v23 = vrot.slane %v5526_v26, 7  ;;  %v5533_v59 = vshrl.u32 %v8166_v44, 16  ;;  %v5536_v34 = vshll.u32 %v8166_v44, 16  ;;  %v5568_v41 = vshrl.u32 %v8171_v57, 16  ;;  %v5599_v44 = vld [vmem:[#allocation3 + $0x10] sm:$0x7] }
 0x308   :  { %v5559_v35 = vor.u32 %v5557_v27, %v5556_v28  ;;  %v5563_v38 = vrot.slane %v5561_v50, 7  ;;  %v5571_v36 = vshll.u32 %v8171_v57, 16  ;;  %v5575_v15 = vshrl.u32 %v8172_v10, 16 }
 0x309   :  { %v5531_v52 = vor.u32 %v5529_v56, %v5528_v23  ;;  %v5535_v22 = vrot.slane %v5533_v59, 7  ;;  %v5570_v48 = vrot.slane %v5568_v41, 7  ;;  %v5578_v42 = vshll.u32 %v8172_v10, 16 }
 0x30a   :  { %v5566_v5 = vor.u32 %v5564_v37, %v5563_v38  ;;  %v5603_v17 = vsel %vm9703_vm1, %v5559_v35, %v5602_v53  ;;  %v5577_v63 = vrot.slane %v5575_v15, 7  ;;  %v5486_v0 = vcombine.high %v5466_v4, %v5466_v4 }
 0x30b   :  { %5604 = vst [vmem:[#allocation3 + $0x1c] sm:$0x7] %v5603_v17  ;;  %v5538_v60 = vor.u32 %v5536_v34, %v5535_v22  ;;  %v5591_v46 = vsel %vm9703_vm1, %v5531_v52, %v5590_v43  ;;  %v5573_v29 = vor.u32 %v5571_v36, %v5570_v48  ;;  %v8167_v31 = vpack.c.bf16 %v5466_v4, %v5466_v4 }
 0x30c   :  { %v5606_v25 = vsel %vm9703_vm1, %v5566_v5, %v5605_v14  ;;  %5592 = vst [vmem:[#allocation3 + $0x4] sm:$0x7] %v5591_v46  ;;  %v5580_v8 = vor.u32 %v5578_v42, %v5577_v63  ;;  %v8168_v39 = vpack.c.bf16 %v5486_v0, %v5486_v0  ;;  %v5714_v24 = vrot.slane %v5713_v55, 2 }
 0x30d   :  { %5607 = vst [vmem:[#allocation3 + $0x20] sm:$0x7] %v5606_v25  ;;  %v5594_v13 = vsel %vm9703_vm1, %v5538_v60, %v5593_v47  ;;  %v5609_v1 = vsel %vm9703_vm1, %v5573_v29, %v5608_v6  ;;  %v5540_v18 = vshrl.u32 %v8167_v31, 16  ;;  %v5543_v20 = vshll.u32 %v8167_v31, 16 }
 0x30e   :  { %5595 = vst [vmem:[#allocation3 + $0x8] sm:$0x7] %v5594_v13  ;;  %5610 = vst [vmem:[#allocation3 + $0x24] sm:$0x7] %v5609_v1  ;;  %v5612_v54 = vsel %vm9703_vm1, %v5580_v8, %v5611_v61  ;;  %v5547_v2 = vshrl.u32 %v8168_v39, 16  ;;  %v5550_v4 = vshll.u32 %v8168_v39, 16  ;;  %v5681_v26 = vcombine.high %v10012_v11, %v10012_v11 }
 0x30f   :  { %5613 = vst [vmem:[#allocation3 + $0x28] sm:$0x7] %v5612_v54  ;;  %v5542_v16 = vrot.slane %v5540_v18, 7  ;;  %v5718_v27 = vrot.slane %v10008_v33, 7  ;;  %v5765_v56 = vrot.slane %v5763_v51, 6  ;;  %v5768_v57 = vrot.slane %v5766_v30, 7 }
 0x310   :  { %v5549_v21 = vrot.slane %v5547_v2, 7  ;;  %v5772_v38 = vshll.u32 %v5681_v26, 16 }
 0x311   :  { %v5545_v19 = vor.u32 %v5543_v20, %v5542_v16  ;;  %v5769_v35 = vor.u32 %v5768_v57, %v5765_v56  ;;  %v5719_v3 = vsel %vm8926_vm7, %v5714_v24, %v5718_v27 }
 0x312   :  { %v5552_v28 = vor.u32 %v5550_v4, %v5549_v21  ;;  %v8020_v50 = vld.sshfl [vmem:[#allocation3 + $0x1c] sm:$0x13 pattern:$0x76325410]  ;;  %v5774_v60 = vrot.slane %v5772_v38, 7 }
 0x313   :  { %v5597_v37 = vsel %vm9703_vm1, %v5545_v19, %v5596_v40  ;;  %v8016_v10 = vld.sshfl [vmem:[#allocation3 + $0x4] sm:$0x13 pattern:$0x76325410]  ;;  %v5777_v53 = vshrl.u32 %v8020_v50, 16  ;;  %v5780_v23 = vshll.u32 %v8020_v50, 16  ;;  %v5689_v47 = vcombine.high %v8020_v50, %v8020_v50 }
 0x314   :  { %5598 = vst [vmem:[#allocation3 + $0xc] sm:$0x7] %v5597_v37  ;;  %v5600_v55 = vsel %vm9703_vm1, %v5552_v28, %v5599_v44  ;;  %v5657_v33 = vcombine.high %v8016_v10, %v8016_v10  ;;  %v5721_v59 = vshrl.u32 %v8016_v10, 16  ;;  %v5724_v34 = vshll.u32 %v8016_v10, 16 }
 0x315   :  { %5601 = vst [vmem:[#allocation3 + $0x10] sm:$0x7] %v5600_v55  ;;  %v8017_v41 = vld.sshfl [vmem:[#allocation3 + $0x8] sm:$0x13 pattern:$0x76325410] }
 0x316   :  { %v8021_v11 = vld.sshfl [vmem:[#allocation3 + $0x20] sm:$0x13 pattern:$0x76325410]  ;;  %v5723_v43 = vrot.slane %v5721_v59, 6  ;;  %v5726_v36 = vrot.slane %v5724_v34, 7  ;;  %v5665_v52 = vcombine.high %v8017_v41, %v8017_v41 }
 0x317   :  { %v5779_v15 = vrot.slane %v5777_v53, 6  ;;  %v5782_v14 = vrot.slane %v5780_v23, 7  ;;  %v5730_v22 = vshll.u32 %v5657_v33, 16  ;;  %v5735_v48 = vshrl.u32 %v8017_v41, 16 }
 0x318   :  { %v5738_v42 = vshll.u32 %v8017_v41, 16  ;;  %v5727_v5 = vor.u32 %v5726_v36, %v5723_v43  ;;  %v8022_v17 = vld.sshfl [vmem:[#allocation3 + $0x24] sm:$0x13 pattern:$0x76325410]  ;;  %v5770_v0 = vrot.slane %v5769_v35, 2  ;;  %v5697_v29 = vcombine.high %v8021_v11, %v8021_v11 }
 0x319   :  { %v5737_v63 = vrot.slane %v5735_v48, 6  ;;  %v5791_v61 = vshrl.u32 %v8021_v11, 16  ;;  %v5794_v31 = vshll.u32 %v8021_v11, 16  ;;  %v5732_v8 = vrot.slane %v5730_v22, 7 }
 0x31a   :  { %v5740_v6 = vrot.slane %v5738_v42, 7  ;;  %v5728_v46 = vrot.slane %v5727_v5, 2  ;;  %v5744_v51 = vshll.u32 %v5665_v52, 16  ;;  %v5783_v13 = vor.u32 %v5782_v14, %v5779_v15 }
 0x31b   :  { %v8018_v25 = vld.sshfl [vmem:[#allocation3 + $0xc] sm:$0x13 pattern:$0x76325410]  ;;  %v5786_v54 = vshll.u32 %v5689_v47, 16  ;;  %v5705_v20 = vcombine.high %v8022_v17, %v8022_v17  ;;  %v5793_v21 = vrot.slane %v5791_v61, 6  ;;  %v5775_v36 = vsel %vm8926_vm7, %v5770_v0, %v5774_v60 }
 0x31c   :  { %v5741_v39 = vor.u32 %v5740_v6, %v5737_v63  ;;  %v5673_v1 = vcombine.high %v8018_v25, %v8018_v25  ;;  %v5749_v18 = vshrl.u32 %v8018_v25, 16  ;;  %v5752_v30 = vshll.u32 %v8018_v25, 16  ;;  %v8035_v35 = vld.sshfl [vmem:[#allocation3] sm:$0x12 pattern:$0x76325410] }
 0x31d   :  { %v10039_v2 = vsel %vm8926_vm7, %v5728_v46, %v5732_v8  ;;  %v5796_v27 = vrot.slane %v5794_v31, 7  ;;  %v5746_v19 = vrot.slane %v5744_v51, 7  ;;  %v5784_v44 = vrot.slane %v5783_v13, 2 }
 0x31e   :  { %v5742_v16 = vrot.slane %v5741_v39, 2  ;;  %v5751_v4 = vrot.slane %v5749_v18, 6  ;;  %v5754_v40 = vrot.slane %v5752_v30, 7  ;;  %v5758_v24 = vshll.u32 %v5673_v1, 16 }
 0x31f   :  { %v5800_v26 = vshll.u32 %v5697_v29, 16  ;;  %v5805_v56 = vshrl.u32 %v8022_v17, 16  ;;  %v5788_v28 = vrot.slane %v5786_v54, 7  ;;  %v5797_v50 = vor.u32 %v5796_v27, %v5793_v21 }
 0x320   :  { %v5755_v57 = vor.u32 %v5754_v40, %v5751_v4  ;;  %v5808_v37 = vshll.u32 %v8022_v17, 16  ;;  %v10043_v10 = vsel %vm8926_vm7, %v5742_v16, %v5746_v19  ;;  %v5760_v53 = vrot.slane %v5758_v24, 7  ;;  %v8037_v38 = vld.sshfl [vmem:[#allocation3 + $0x8] sm:$0x12 pattern:$0x76325410] }
 0x321   :  { %v5823_v23 = vcombine.low %v5719_v3, %v10039_v2  ;;  %v5807_v55 = vrot.slane %v5805_v56, 6  ;;  %v5798_v59 = vrot.slane %v5797_v50, 2  ;;  %v5814_v41 = vshll.u32 %v5705_v20, 16  ;;  %v8742_v16 = vld [vmem:[%s10277_s5 + $0x8] sm:$0xff]  }
 0x322   :  { %v5756_v33 = vrot.slane %v5755_v57, 2  ;;  %v5810_v34 = vrot.slane %v5808_v37, 7  ;;  %v5802_v11 = vrot.slane %v5800_v26, 7  ;;  %v10054_v15 = vsel %vm8926_vm7, %v5784_v44, %v5788_v28  ;;  %v8743_v57 = vld [vmem:[%s10277_s5 + $0x20] sm:$0xff]  }
 0x323   :  { %v8038_v52 = vld.sshfl [vmem:[#allocation3 + $0xc] sm:$0x12 pattern:$0x76325410]  ;;  %v5831_v42 = vrot.slane %v5823_v23, %v8882_v9  ;;  %v5816_v17 = vrot.slane %v5814_v41, 7  ;;  %v5840_v6 = vcombine.low %v5775_v36, %v10054_v15  ;;  %v6072_v60 = vcombine.high %v8037_v38, %v8037_v38 }
 0x324   :  { %v10048_v43 = vsel %vm8926_vm7, %v5756_v33, %v5760_v53  ;;  %v5811_v14 = vor.u32 %v5810_v34, %v5807_v55  ;;  %v8811_v48 = vld.sshfl [vmem:[#allocation3 + $0x8] sm:$0xf pattern:$0x76325410]  ;;  %v10061_v3 = vsel %vm8926_vm7, %v5798_v59, %v5802_v11  ;;  %v6080_v46 = vcombine.high %v8038_v52, %v8038_v52 }
 0x325   :  { %v5824_v22 = vcombine.low %v10043_v10, %v10048_v43  ;;  %v8036_v47 = vld.sshfl [vmem:[#allocation3 + $0x4] sm:$0x12 pattern:$0x76325410]  ;;  %v6056_v61 = vcombine.high %v8035_v35, %v8035_v35  ;;  %v5848_v39 = vrot.slane %v5840_v6, %v8882_v9  ;;  %v6123_v13 = vrot.slane %v6072_v60, 7 }
 0x326   :  { %v5812_v5 = vrot.slane %v5811_v14, 2  ;;  %v8812_v0 = vld.sshfl [vmem:[#allocation3] sm:$0xf pattern:$0x76325410]  ;;  %v6064_v8 = vcombine.high %v8036_v47, %v8036_v47  ;;  %v6127_v1 = vrot.slane %v6080_v46, 7 }
 0x327   :  { %v10064_v63 = vrot.slane %v5824_v22, %v8882_v9  ;;  %v8043_v18 = vrot.slane %v8035_v35, 9  ;;  %v6115_v30 = vrot.slane %v6056_v61, 7  ;;  %v8045_v21 = vrot.slane %v8037_v38, 9 }
 0x328   :  { %v10069_v29 = vsel %vm8926_vm7, %v5812_v5, %v5816_v17  ;;  %v6119_v20 = vrot.slane %v6064_v8, 7  ;;  %v8046_v4 = vrot.slane %v8038_v52, 9  ;;  %v8041_v40 = vld.sshfl [vmem:[#allocation3 + $0x20] sm:$0x12 pattern:$0x76325410]  ;;  %v5948_v24 = vcombine.low %v8812_v0, %v8811_v48 }
 0x329   :  { %v5839_v31 = vcombine.low %v5831_v42, %v10064_v63  ;;  %v5841_v25 = vcombine.low %v10061_v3, %v10069_v29  ;;  %v8039_v27 = vld.sshfl [vmem:[#allocation3 + $0x18] sm:$0x12 pattern:$0x76325410]  ;;  %v8044_v44 = vrot.slane %v8036_v47, 9  ;;  %v10086_v26 = vsel %vm9752_vm5, %v8045_v21, %v6123_v13 }
 0x32a   :  { %v8042_v19 = vld.sshfl [vmem:[#allocation3 + $0x24] sm:$0x12 pattern:$0x76325410]  ;;  %v10090_v56 = vsel %vm9752_vm5, %v8046_v4, %v6127_v1  ;;  %v6116_v50 = vsel %vm9752_vm5, %v8043_v18, %v6115_v30  ;;  %v6088_v59 = vcombine.high %v8039_v27, %v8039_v27  ;;  %v8047_v38 = vrot.slane %v8039_v27, 9  ;;  %v8746_v0 = vld [vmem:[%s10277_s5 + $0x28] sm:$0xff]  }
 0x32b   :  { %8465 = vmatprep.mubr.msk.bf16.mxu1 %vm3759_vm6, %v5839_v31  ;;  %v10077_v51 = vrot.slane %v5841_v25, %v8882_v9  ;;  %v8813_v28 = vld.sshfl [vmem:[#allocation3 + $0x20] sm:$0xf pattern:$0x76325410]  ;;  %v10101_v37 = vsel %vm9752_vm5, %v8044_v44, %v6119_v20  ;;  %v6151_v23 = vcombine.low %v10086_v26, %v10090_v56  ;;  %v6112_v55 = vcombine.high %v8042_v19, %v8042_v19 }
 0x32c   :  { %v8040_v53 = vld.sshfl [vmem:[#allocation3 + $0x1c] sm:$0x12 pattern:$0x76325410]  ;;  %v6150_v34 = vcombine.low %v6116_v50, %v10101_v37  ;;  %v6131_v52 = vrot.slane %v6088_v59, 7  ;;  %v8049_v17 = vrot.slane %v8041_v40, 9 }
 0x32d   :  { %v5856_v54 = vcombine.low %v5848_v39, %v10077_v51  ;;  %v8814_v33 = vld.sshfl [vmem:[#allocation3 + $0x18] sm:$0xf pattern:$0x76325410]  ;;  %v6096_v41 = vcombine.high %v8040_v53, %v8040_v53  ;;  %v10107_v35 = vrot.slane %v6151_v23, %v8882_v9  ;;  %v6143_v14 = vrot.slane %v6112_v55, 7  ;;  %v8747_v1 = vld [vmem:[%s10277_s5 + $0x30] sm:$0xff]  }
 0x32e   :  { %v8070_v11 = vld.sshfl [vmem:[#allocation3 + $0x10] sm:$0x13 pattern:$0x76325410]  ;;  %v6158_v42 = vrot.slane %v6150_v34, %v8882_v9  ;;  %v8050_v47 = vrot.slane %v8042_v19, 9  ;;  %v5965_v6 = vcombine.low %v8814_v33, %v8813_v28  ;;  %v8048_v46 = vrot.slane %v8040_v53, 9 }
 0x32f   :  { %8466 = vmatmul.mubr.msk.bf16.vlgmr.msra.gmra.mrb[4].mxu1 %vm3759_vm6, %v5856_v54  ;;  %v6504_v22 = vshrl.u32 %v8070_v11, 16  ;;  %v6507_v48 = vshll.u32 %v8070_v11, 16  ;;  %v6135_v5 = vrot.slane %v6096_v41, 7  ;;  %v6132_v39 = vsel %vm9752_vm5, %v8047_v38, %v6131_v52  ;;  %v8750_v50 = vld [vmem:[%s10277_s5 + $0x38] sm:$0xff]   ;;  %v8751_v41 = vld [vmem:[%s10277_s5 + $0x40] sm:$0xff]  }
 0x330   :  { %8470 = vmatpush3.bf16.msra.mxu1 %v9998_v58  ;;  %8473 = vmatprep.mubr.msk.bf16.mxu1 %vm3759_vm6, %v5948_v24  ;;  %v6104_v58 = vcombine.high %v8041_v40, %v8041_v40  ;;  %v6166_v60 = vcombine.low %v6158_v42, %v10107_v35  ;;  %v10120_v31 = vsel %vm9752_vm5, %v8050_v47, %v6143_v14  ;;  %v8815_v54 = vld.sshfl [vmem:[#allocation3 + $0xc] sm:$0xf pattern:$0x76325410] }
 0x331   :  { %8471 = vmatprep.subr.bf16.mxu1 %v8742_v16  ;;  %v6506_v25 = vrot.slane %v6504_v22, 6  ;;  %v6509_v8 = vrot.slane %v6507_v48, 7  ;;  %v10128_v13 = vsel %vm9752_vm5, %v8048_v46, %v6135_v5  ;;  %v6428_v30 = vcombine.high %v8070_v11, %v8070_v11  ;;  %v8074_v21 = vld.sshfl [vmem:[#allocation3 + $0x28] sm:$0x13 pattern:$0x76325410] }
 0x332   :  { %v6139_v36 = vrot.slane %v6104_v58, 7  ;;  %v8816_v4 = vld.sshfl [vmem:[#allocation3 + $0x4] sm:$0xf pattern:$0x76325410]  ;;  %v6560_v27 = vshrl.u32 %v8074_v21, 16  ;;  %v6460_v59 = vcombine.high %v8074_v21, %v8074_v21  ;;  %v6578_v22 = vcombine.low %v10039_v2, %v10043_v10 }
 0x333   :  { %v6510_v20 = vor.u32 %v6509_v8, %v6506_v25  ;;  %v6513_v24 = vshll.u32 %v6428_v30, 16  ;;  %v6563_v19 = vshll.u32 %v8074_v21, 16  ;;  %v6292_v23 = vcombine.low %v8816_v4, %v8815_v54  ;;  %v8086_v34 = vld.sshfl [vmem:[#allocation3 + $0x10] sm:$0x12 pattern:$0x76325410] }
 0x334   :  { %8472 = vmatpush3.bf16.msra.mxu1 %v8742_v16  ;;  %v10116_v61 = vsel %vm9752_vm5, %v8049_v17, %v6139_v36  ;;  %v6167_v16 = vcombine.low %v6132_v39, %v10128_v13  ;;  %v6562_v58 = vrot.slane %v6560_v27, 6  ;;  %v8817_v11 = vld.sshfl [vmem:[#allocation3 + $0x24] sm:$0xf pattern:$0x76325410]  ;;  %v6730_v52 = vcombine.high %v8086_v34, %v8086_v34 }
 0x335   :  { %8477 = vmatprep.subr.bf16.mxu1 %v8743_v57  ;;  %v6168_v18 = vcombine.low %v10116_v61, %v10120_v31  ;;  %v6515_v53 = vrot.slane %v6513_v24, 7  ;;  %v6565_v55 = vrot.slane %v6563_v19, 7  ;;  %v8818_v14 = vld.sshfl [vmem:[#allocation3 + $0x1c] sm:$0xf pattern:$0x76325410]  ;;  %v6586_v47 = vrot.slane %v6578_v22, %v8882_v9 }
 0x336   :  { %v6175_v44 = vrot.slane %v6167_v16, %v8882_v9  ;;  %v6569_v48 = vshll.u32 %v6460_v59, 16  ;;  %v6777_v17 = vrot.slane %v6730_v52, 7  ;;  %v8090_v10 = vld.sshfl [vmem:[#allocation3 + $0x28] sm:$0x12 pattern:$0x76325410]  ;;  %v6595_v30 = vcombine.low %v10054_v15, %v10061_v3 }
 0x337   :  { %v10137_v40 = vrot.slane %v6168_v18, %v8882_v9  ;;  %v6566_v36 = vor.u32 %v6565_v55, %v6562_v58  ;;  %v8755_v8 = vld [vmem:[%s10277_s5 + $0x50] sm:$0xff]   ;;  %v6762_v18 = vcombine.high %v8090_v10, %v8090_v10  ;;  %v6800_v54 = vcombine.low %v10101_v37, %v10086_v26  ;;  %v8118_v16 = vld.sshfl [vmem:[#allocation3 + $0x14] sm:$0x13 pattern:$0x76325410]  ;;  %v8756_v15 = vld [vmem:[%s10277_s5 + $0x58] sm:$0xff]  }
 0x338   :  { %v7155_v24 = vshrl.u32 %v8118_v16, 16  ;;  %v7158_v27 = vshll.u32 %v8118_v16, 16  ;;  %v8098_v19 = vrot.slane %v8090_v10, 9  ;;  %v7079_v37 = vcombine.high %v8118_v16, %v8118_v16 }
 0x339   :  { %v6183_v28 = vcombine.low %v6175_v44, %v10137_v40  ;;  %v6567_v5 = vrot.slane %v6566_v36, 2  ;;  %v6793_v4 = vrot.slane %v6762_v18, 7  ;;  %v6817_v58 = vcombine.low %v10128_v13, %v10116_v61  ;;  %v8822_v10 = vld.sshfl [vmem:[#allocation3 + $0x20] sm:$0xf pattern:$0x76325410] }
 0x33a   :  { %v7164_v59 = vshll.u32 %v7079_v37, 16  ;;  %v8766_v37 = vld [vmem:[%s10277_s5 + $0x88] sm:$0xff]  }
 0x33b   :  { %8474 = vmatmul.mubr.msk.bf16.vlgmr.msra.gmra.mrb[4].mxu1 %vm3759_vm6, %v5965_v6  ;;  %v6571_v6 = vrot.slane %v6569_v48, 7  ;;  %v10192_v26 = vsel %vm9752_vm5, %v8098_v19, %v6793_v4 }
 0x33c   :  { %8478 = vmatpush3.bf16.msra.mxu1 %v8743_v57  ;;  %8481 = vmatprep.mubr.msk.bf16.mxu1 %vm3759_vm6, %v6166_v60  ;;  %v6511_v57 = vrot.slane %v6510_v20, 2  ;;  %v8094_v60 = vrot.slane %v8086_v34, 9  ;;  %v8122_v34 = vld.sshfl [vmem:[#allocation3 + $0x2c] sm:$0x13 pattern:$0x76325410] }
 0x33d   :  { %8479 = vmatprep.subr.bf16.mxu1 %v8746_v0  ;;  %v10164_v25 = vsel %vm8926_vm7, %v6567_v5, %v6571_v6  ;;  %v7214_v36 = vshll.u32 %v8122_v34, 16  ;;  %v7166_v22 = vrot.slane %v7164_v59, 7  ;;  %v7111_v13 = vcombine.high %v8122_v34, %v8122_v34  ;;  %v8761_v6 = vld [vmem:[%s10277_s5 + $0x70] sm:$0xff]  }
 0x33e   :  { %v10147_v33 = vsel %vm8926_vm7, %v6511_v57, %v6515_v53  ;;  %v10169_v2 = vsel %vm9752_vm5, %v8094_v60, %v6777_v17  ;;  %v6596_v39 = vcombine.low %v10069_v29, %v10164_v25  ;;  %v6603_v29 = vrot.slane %v6595_v30, %v8882_v9 }
 0x33f   :  { %v6579_v38 = vcombine.low %v10048_v43, %v10147_v33  ;;  %v8754_v43 = vld [vmem:[%s10277_s5 + $0x48] sm:$0xff]   ;;  %v7157_v57 = vrot.slane %v7155_v24, 6  ;;  %v6818_v53 = vcombine.low %v10120_v31, %v10192_v26  ;;  %v7216_v5 = vrot.slane %v7214_v36, 7  ;;  %v8765_v24 = vld [vmem:[%s10277_s5 + $0x80] sm:$0xff]  }
 0x340   :  { %8480 = vmatpush3.bf16.msra.mxu1 %v8746_v0  ;;  %v6309_v0 = vcombine.low %v8818_v14, %v8817_v11  ;;  %v6610_v20 = vrot.slane %v6596_v39, %v8882_v9  ;;  %v6825_v14 = vrot.slane %v6817_v58, %v8882_v9  ;;  %v8760_v31 = vld [vmem:[%s10277_s5 + $0x68] sm:$0xff]  }
 0x341   :  { %8485 = vmatprep.subr.bf16.mxu1 %v8747_v1  ;;  %v6593_v42 = vrot.slane %v6579_v38, %v8882_v9  ;;  %v6832_v11 = vrot.slane %v6818_v53, %v8882_v9  ;;  %v7211_v38 = vshrl.u32 %v8122_v34, 16 }
 0x342   :  { %v6611_v44 = vcombine.low %v6603_v29, %v6610_v20  ;;  %v8764_v20 = vld [vmem:[%s10277_s5 + $0x78] sm:$0xff]  }
 0x343   :  { %v6594_v46 = vcombine.low %v6586_v47, %v6593_v42  ;;  %v6833_v48 = vcombine.low %v6825_v14, %v6832_v11  ;;  %v7213_v42 = vrot.slane %v7211_v38, 6  ;;  %v8134_v47 = vld.sshfl [vmem:[#allocation3 + $0x14] sm:$0x12 pattern:$0x76325410] }
 0x344   :  { %v8142_v30 = vrot.slane %v8134_v47, 9  ;;  %v8138_v29 = vld.sshfl [vmem:[#allocation3 + $0x2c] sm:$0x12 pattern:$0x76325410] }
 0x345   :  { %v7217_v60 = vor.u32 %v7216_v5, %v7213_v42  ;;  %v7413_v45 = vcombine.high %v8138_v29, %v8138_v29 }
 0x347   :  { %8482 = vmatmul.mubr.msk.bf16.vlgmr.msra.gmra.mrb[4].mxu1 %vm3759_vm6, %v6183_v28  ;;  %v7160_v28 = vrot.slane %v7158_v27, 7 }
 0x348   :  { %8486 = vmatpush3.bf16.msra.mxu1 %v8747_v1  ;;  %8489 = vmatprep.mubr.msk.bf16.mxu1 %vm3759_vm6, %v6292_v23  ;;  %v6801_v1 = vcombine.low %v10090_v56, %v10169_v2  ;;  %v6808_v56 = vrot.slane %v6800_v54, %v8882_v9  ;;  %v8819_v23 = vld.sshfl [vmem:[#allocation3 + $0x10] sm:$0xf pattern:$0x76325410] }
 0x349   :  { %8487 = vmatprep.subr.bf16.mxu1 %v8750_v50  ;;  %v7161_v55 = vor.u32 %v7160_v28, %v7157_v57 }
 0x34a   :  { %v6815_v21 = vrot.slane %v6801_v1, %v8882_v9  ;;  %v7218_v1 = vrot.slane %v7217_v60, 2 }
 0x34b   :  { %v7162_v52 = vrot.slane %v7161_v55, 2 }
 0x34c   :  { %8488 = vmatpush3.bf16.msra.mxu1 %v8750_v50  ;;  %v6816_v3 = vcombine.low %v6808_v56, %v6815_v21  ;;  %v8757_v50 = vld [vmem:[%s10277_s5 + $0x60] sm:$0xff]  }
 0x34d   :  { %8493 = vmatprep.subr.bf16.mxu1 %v8751_v41  ;;  %v7167_v17 = vsel %vm8926_vm7, %v7162_v52, %v7166_v22 }
 0x353   :  { %8490 = vmatmul.mubr.msk.bf16.vlgmr.msra.gmra.mrb[4].mxu1 %vm3759_vm6, %v6309_v0  ;;  %v8821_v0 = vld.sshfl [vmem:[#allocation3 + $0x28] sm:$0xf pattern:$0x76325410] }
 0x354   :  { %8494 = vmatpush3.bf16.msra.mxu1 %v8751_v41  ;;  %8497 = vmatprep.mubr.msk.bf16.mxu1 %vm3759_vm6, %v6594_v46  ;;  %v8820_v41 = vld.sshfl [vmem:[#allocation3 + $0x8] sm:$0xf pattern:$0x76325410]  ;;  %v7220_v46 = vshll.u32 %v7111_v13, 16  ;;  %v6960_v16 = vcombine.low %v8822_v10, %v8821_v0 }
 0x355   :  { %8495 = vmatprep.subr.bf16.mxu1 %v8754_v43  ;;  %v6943_v61 = vcombine.low %v8820_v41, %v8819_v23 }
 0x356   :  { %v7222_v18 = vrot.slane %v7220_v46, 7 }
 0x358   :  { %8496 = vmatpush3.bf16.msra.mxu1 %v8754_v43  ;;  %v7230_v43 = vcombine.low %v10147_v33, %v7167_v17  ;;  %v7223_v33 = vsel %vm8926_vm7, %v7218_v1, %v7222_v18  ;;  %vm7594_vm7 = vcmask 7168  }
 0x359   :  { %8501 = vmatprep.subr.bf16.mxu1 %v8755_v8  ;;  %v7247_v27 = vcombine.low %v10164_v25, %v7223_v33 }
 0x35a   :  { %v7244_v39 = vrot.slane %v7230_v43, %v8882_v9 }
 0x35b   :  { %v7261_v56 = vrot.slane %v7247_v27, %v8882_v9 }
 0x35c   :  { %v7245_v21 = vcombine.low %v10064_v63, %v7244_v39 }
 0x35f   :  { %8498 = vmatmul.mubr.msk.bf16.vlgmr.msra.gmra.mrb[4].mxu1 %vm3759_vm6, %v6611_v44  ;;  %v8146_v44 = vrot.slane %v8138_v29, 9 }
 0x360   :  { %8502 = vmatpush3.bf16.msra.mxu1 %v8755_v8  ;;  %8505 = vmatprep.mubr.msk.bf16.mxu1 %vm3759_vm6, %v6816_v3  ;;  %v7381_v8 = vcombine.high %v8134_v47, %v8134_v47  ;;  %v7262_v3 = vcombine.low %v10077_v51, %v7261_v56 }
 0x361   :  { %8503 = vmatprep.subr.bf16.mxu1 %v8756_v15 }
 0x362   :  { %v7428_v54 = vrot.slane %v7381_v8, 7 }
 0x364   :  { %8504 = vmatpush3.bf16.msra.mxu1 %v8756_v15  ;;  %v7429_v4 = vsel %vm9752_vm5, %v8142_v30, %v7428_v54  ;;  %v7444_v15 = vrot.slane %v7413_v45, 7 }
 0x365   :  { %8509 = vmatprep.subr.bf16.mxu1 %v8757_v50  ;;  %v7452_v63 = vcombine.low %v10169_v2, %v7429_v4 }
 0x366   :  { %v7445_v25 = vsel %vm9752_vm5, %v8146_v44, %v7444_v15 }
 0x367   :  { %v7466_v19 = vrot.slane %v7452_v63, %v8882_v9  ;;  %v7469_v2 = vcombine.low %v10192_v26, %v7445_v25  ;;  %v8156_v26 = vld [vmem:[%s10280_s7] ss:$0 sm:$0xff] }
 0x369   :  { %v7467_v57 = vcombine.low %v10107_v35, %v7466_v19  ;;  %v7483_v51 = vrot.slane %v7469_v2, %v8882_v9 }
 0x36b   :  { %8506 = vmatmul.mubr.msk.bf16.vlgmr.msra.gmra.mrb[4].mxu1 %vm3759_vm6, %v6833_v48  ;;  %v7484_v28 = vcombine.low %v10137_v40, %v7483_v51 }
 0x36c   :  { %8510 = vmatpush3.bf16.msra.mxu1 %v8757_v50  ;;  %8513 = vmatprep.mubr.msk.bf16.mxu1 %vm3759_vm6, %v6943_v61 }
 0x36d   :  { %8511 = vmatprep.subr.bf16.mxu1 %v8760_v31 }
 0x370   :  { %8512 = vmatpush3.bf16.msra.mxu1 %v8760_v31 }
 0x371   :  { %8517 = vmatprep.subr.bf16.mxu1 %v8761_v6 }
 0x377   :  { %8514 = vmatmul.mubr.msk.bf16.vlgmr.msra.gmra.mrb[4].mxu1 %vm3759_vm6, %v6960_v16 }
 0x378   :  { %8518 = vmatpush3.bf16.msra.mxu1 %v8761_v6  ;;  %8521 = vmatprep.mubr.msk.bf16.mxu1 %vm3759_vm6, %v7245_v21 }
 0x379   :  { %8519 = vmatprep.subr.bf16.mxu1 %v8764_v20 }
 0x37c   :  { %8520 = vmatpush3.bf16.msra.mxu1 %v8764_v20 }
 0x37d   :  { %8525 = vmatprep.subr.bf16.mxu1 %v8765_v24 }
 0x383   :  { %8522 = vmatmul.mubr.msk.bf16.vlgmr.msra.gmra.mrb[4].mxu1 %vm3759_vm6, %v7262_v3 }
 0x384   :  { %8526 = vmatpush3.bf16.msra.mxu1 %v8765_v24  ;;  %8529 = vmatprep.mubr.msk.bf16.mxu1 %vm3759_vm6, %v7467_v57 }
 0x385   :  { %8527 = vmatprep.subr.bf16.mxu1 %v8766_v37 }
 0x388   :  { %8528 = vmatpush3.bf16.msra.mxu1 %v8766_v37 }
 0x38f   :  { %8530 = vmatmul.mubr.msk.bf16.vlgmr.msra.gmra.mrb[4].mxu1 %vm3759_vm6, %v7484_v28 }
 0x462   :  { %v8531_v50 = vpop.f32.mrb[4].mxu1 }
 0x463   :  { %v7558_v35 = vadd.f32 %v8531_v50, %v9681_v12  ;;  %v7537_v53 = vpop.f32.mrb[5].mxu1 }
 0x464   :  { %v7556_v23 = vadd.f32 %v7537_v53, %v9689_v7  ;;  %v8532_v58 = vpop.f32.mrb[6].mxu1 }
 0x465   :  { %v7569_v9 = vadd.f32 %v8155_v32, %v7558_v35  ;;  %v7559_v40 = vadd.f32 %v8532_v58, %v9695_v49  ;;  %v7540_v55 = vpop.f32.mrb[7].mxu1 }
 0x466   :  { %v7567_v59 = vadd.f32 %v8155_v32, %v7556_v23  ;;  %v7557_v34 = vadd.f32 %v7540_v55, %v9710_v62 }
 0x467   :  { %v7570_v41 = vadd.f32 %v8155_v32, %v7559_v40  ;;  %v7580_v11 = vmul.f32 %v8156_v26, %v7569_v9 }
 0x468   :  { %v7568_v38 = vadd.f32 %v8155_v32, %v7557_v34  ;;  %v7578_v36 = vmul.f32 %v8156_v26, %v7567_v59 }
 0x469   :  { %v7588_v12 = vsel %vm3759_vm6, %v7580_v11, 0.0  ;;  %v7581_v14 = vmul.f32 %v8156_v26, %v7570_v41 }
 0x46a   :  { %7589 = vadd.xlane.f32.xlu1 %v7588_v12  ;;  %v7582_v7 = vsel %vm3759_vm6, %v7578_v36, 0.0  ;;  %v7579_v52 = vmul.f32 %v8156_v26, %v7568_v38 }
 0x46b   :  { %7583 = vadd.xlane.f32.xlu0 %v7582_v7  ;;  %v7591_v22 = vsel %vm3759_vm6, %v7581_v14, 0.0 }
 0x46c   :  { %v7585_v49 = vsel %vm3759_vm6, %v7579_v52, 0.0 }
 0x46e   :  { %7592 = vadd.xlane.f32.xlu1 %v7591_v22 }
 0x46f   :  { %7586 = vadd.xlane.f32.xlu0 %v7585_v49 }
 0x4f7   :  { %v7590_v62 = vpop.xlane.xlu1 %7589 }
 0x4f8   :  { %7597 = vst.msk [vmem:[%s10281_s8 + $0x10] sm:$0xff] %vm7594_vm7, %v7590_v62  ;;  %v7584_v48 = vpop.xlane.xlu0 %7583 }
 0x4f9   :  { %7595 = vst.msk [vmem:[%s10281_s8] sm:$0xff] %vm7594_vm7, %v7584_v48 }
 0x4fb   :  { %v7593_v31 = vpop.xlane.xlu1 %7592 }
 0x4fc   :  { %7598 = vst.msk [vmem:[%s10281_s8 + $0x18] sm:$0xff] %vm7594_vm7, %v7593_v31  ;;  %v7587_v61 = vpop.xlane.xlu0 %7586 }
 0x4fd   :  { %7596 = vst.msk [vmem:[%s10281_s8 + $0x8] sm:$0xff] %vm7594_vm7, %v7587_v61 }

</bundles_post_ra>
